<compile_context>
chip_gen: v7x
topology: tpu7x:2x2x1
jax: 0.10.0
libtpu: 0.0.40
codegen_flags: <defaults>
</compile_context>

<pallas_src>
import functools

import jax
import jax.numpy as jnp
from jax import lax
from jax.experimental import pallas as pl
from jax.experimental.pallas import tpu as pltpu

# ----------------------------- configuration --------------------------------
LATENT_DIM = 16
HIDDEN_DIM = 256           # decoder seed channels = HIDDEN_DIM // 16
IMG_SIZE = 64              # chosen so the decoder view is batch-preserving
OUTPUT_CHANNELS = 3
FEAT_DIM = 128             # stand-in for resnet50 fc.in_features (=2048)
BATCH = 2
BN_EPS = 1e-5

# Consistency condition for the PyTorch `h.view(-1, hidden//16, img//16, img//16)`.
assert (IMG_SIZE // 16) ** 2 * (HIDDEN_DIM // 16) == HIDDEN_DIM


# ----------------------------- helpers ---------------------------------------
def _full_spec(shape):
    """BlockSpec covering the whole array at the single grid point (grid=(1,))."""
    return pl.BlockSpec(tuple(shape), lambda i, _n=len(shape): (0,) * _n)


def _pick_tile(dim, cap, align):
    """Largest divisor of `dim` that is <= cap and a multiple of `align`
    (instead of collapsing to the whole axis, which blows VMEM at scale)."""
    if dim <= cap:
        return dim
    for t in range(cap, align - 1, -1):
        if dim % t == 0 and t % align == 0:
            return t
    return dim  # pathological shape: keep correctness, accept the big block


# ----------------------- tiled matmul + bias + activation --------------------
def matmul_bias_act(x, w, b, act="none", out_dtype=jnp.float32,
                    tm_cap=256, tn_cap=256, tk_cap=4096):
    """o = act(x @ w + b).  bf16 MXU matmul, f32 accumulation, tiled (M,N,K)."""
    M, K = x.shape
    K2, N = w.shape
    assert K == K2
    tm = _pick_tile(M, tm_cap, 8)
    tn = _pick_tile(N, tn_cap, 128)
    tk = _pick_tile(K, tk_cap, 128)
    assert M % tm == 0 and N % tn == 0 and K % tk == 0
    out_bytes = jnp.dtype(out_dtype).itemsize

    def kernel(x_ref, w_ref, b_ref, o_ref, acc_ref):
        @pl.when(pl.program_id(2) == 0)
        def _init():
            acc_ref[...] = jnp.zeros_like(acc_ref)

        acc_ref[...] += jnp.dot(x_ref[...], w_ref[...],
                                preferred_element_type=jnp.float32)

        @pl.when(pl.program_id(2) == pl.num_programs(2) - 1)
        def _finalize():
            acc = acc_ref[...] + b_ref[...]
            if act == "relu":
                acc = jnp.maximum(acc, 0.0)
            elif act == "sigmoid":
                acc = jax.nn.sigmoid(acc)
            o_ref[...] = acc.astype(o_ref.dtype)

    # VMEM working set estimate: bf16 inputs double-buffered + out + f32 acc.
    vmem_est = (2 * (tm * tk + tk * tn) * 2
                + 2 * tm * tn * out_bytes + tm * tn * 4 + 2 * tn * 4)
    cp = dict(dimension_semantics=("parallel", "parallel", "arbitrary"))
    if vmem_est > 12 * 1024 * 1024:           # above v5e's conservative default
        cp["vmem_limit_bytes"] = min(2 * vmem_est, 64 * 1024 * 1024)

    cost = pl.CostEstimate(
        flops=2 * M * N * K, transcendentals=0,
        bytes_accessed=M * K * 2 + K * N * 2 + N * 4 + M * N * out_bytes)

    return pl.pallas_call(
        kernel,
        out_shape=jax.ShapeDtypeStruct((M, N), out_dtype),
        grid_spec=pltpu.PrefetchScalarGridSpec(
            num_scalar_prefetch=0,
            grid=(M // tm, N // tn, K // tk),
            in_specs=[pl.BlockSpec((tm, tk), lambda i, j, k: (i, k)),
                      pl.BlockSpec((tk, tn), lambda i, j, k: (k, j)),
                      pl.BlockSpec((1, tn), lambda i, j, k: (0, j))],
            out_specs=pl.BlockSpec((tm, tn), lambda i, j, k: (i, j)),
            scratch_shapes=[pltpu.VMEM((tm, tn), jnp.float32)]),
        compiler_params=pltpu.CompilerParams(**cp),
        cost_estimate=cost,
    )(x.astype(jnp.bfloat16), w.astype(jnp.bfloat16),
      b.reshape(1, N).astype(jnp.float32))


# --------- fused fc_mu + fc_logvar + reparameterize + decoder fc -------------
def encoder_tail_and_fc(feat, w_ml, b_ml, eps, fc_w, fc_b):
    """One kernel: h=[mu|logvar]=feat@W+b; z=mu+eps*exp(0.5*lv); hdec=relu(z@Wfc+bfc).

    z stays in VMEM; hdec is emitted bf16 (its consumer is the bf16 deconv) and
    its columns are already NHWC-ordered (fc weight columns permuted at init).
    TODO(synk): the tiny d1 deconv could also be folded in here.
    """
    M, K = feat.shape
    N2 = w_ml.shape[1]
    L = N2 // 2
    Hd = fc_w.shape[1]

    def kernel(f_ref, wml_ref, bml_ref, e_ref, wfc_ref, bfc_ref,
               mu_ref, lv_ref, h_ref):
        hml = jnp.dot(f_ref[...], wml_ref[...],
                      preferred_element_type=jnp.float32) + bml_ref[...]
        mu = hml[:, :L]
        lv = hml[:, L:]
        z = mu + e_ref[...] * jnp.exp(0.5 * lv)
        hdec = jnp.dot(z.astype(jnp.bfloat16), wfc_ref[...],
                       preferred_element_type=jnp.float32) + bfc_ref[...]
        mu_ref[...] = mu
        lv_ref[...] = lv
        h_ref[...] = jnp.maximum(hdec, 0.0).astype(h_ref.dtype)

    return pl.pallas_call(
        kernel,
        out_shape=(jax.ShapeDtypeStruct((M, L), jnp.float32),
                   jax.ShapeDtypeStruct((M, L), jnp.float32),
                   jax.ShapeDtypeStruct((M, Hd), jnp.bfloat16)),
        grid=(1,),
        in_specs=[_full_spec((M, K)), _full_spec((K, N2)), _full_spec((1, N2)),
                  _full_spec((M, L)), _full_spec((L, Hd)), _full_spec((1, Hd))],
        out_specs=(_full_spec((M, L)), _full_spec((M, L)), _full_spec((M, Hd))),
    )(feat.astype(jnp.bfloat16), w_ml.astype(jnp.bfloat16),
      b_ml.reshape(1, N2).astype(jnp.float32), eps.astype(jnp.float32),
      fc_w.astype(jnp.bfloat16), fc_b.reshape(1, Hd).astype(jnp.float32))


# ------------- ConvTranspose2d(k=4,s=2,p=1) via sub-pixel decomposition ------
# output[n, 2i+ph, 2j+pw, co] = sum_{u,v in {0,1}, ci}
#     x_pad[n, i+ph+u, j+pw+v, ci] * w_torch[ci, co, 3-ph-2u, 3-pw-2v]
# Each output phase is one matmul with K = 4*Cin (no structural zeros).

def _pack_deconv_weight(w_torch):
    """PyTorch ConvTranspose2d weight (Cin, Cout, 4, 4) -> (2, 2, 4*Cin, Cout)
    indexed [ph, pw, (u*2+v)*Cin + ci, cout]  (hoisted, done once at init)."""
    Cin, Cout = w_torch.shape[0], w_torch.shape[1]
    wp = jnp.zeros((2, 2, 2, 2, Cin, Cout), jnp.float32)
    for ph in range(2):
        for pw in range(2):
            for u in range(2):
                for v in range(2):
                    wp = wp.at[ph, pw, u, v].set(w_torch[:, :, 3 - ph - 2 * u,
                                                         3 - pw - 2 * v])
    return wp.reshape(2, 2, 4 * Cin, Cout)


def deconv_bn_relu(y_nhwc, w_pack, gamma, beta):
    """ConvTranspose2d(k=4,s=2,p=1) + train-mode BatchNorm2d + ReLU, one kernel.

    Tap gather, 4 per-phase MXU matmuls, BN batch stats (two-pass variance) and
    ReLU all happen in VMEM.  The store is phase-interleaved: the output buffer
    (N, H, 2, W, 2*Cout) reshapes for free to NHWC (N, 2H, 2W, Cout).
    ConvTranspose bias is dropped: it cancels under train-mode BN.
    TODO(synk): tile over M (two-pass BN with persistent scratch) for v7x at
    production sizes; the whole layer fits one grid point at these shapes.
    """
    N, H, W, Cin = y_nhwc.shape
    Cout = w_pack.shape[-1]
    assert w_pack.shape[2] == 4 * Cin
    M = N * H * W
    inv_n = 1.0 / float(4 * M)
    xp = jnp.pad(y_nhwc.astype(jnp.bfloat16), ((0, 0), (1, 1), (1, 1), (0, 0)))

    def kernel(xp_ref, w_ref, g_ref, b_ref, o_ref):
        # 9 shifted windows, built once from static ref views (VMEM only).
        wins = {(a, b): xp_ref[:, a:a + H, b:b + W, :]
                for a in range(3) for b in range(3)}
        accs = {}
        for ph in range(2):
            for pw in range(2):
                xph = jnp.concatenate(
                    [wins[(ph + u, pw + v)] for u in range(2) for v in range(2)],
                    axis=-1).reshape(M, 4 * Cin)
                accs[(ph, pw)] = jnp.dot(xph, w_ref[ph, pw],
                                         preferred_element_type=jnp.float32)
        # Train-mode BatchNorm over all N*2H*2W positions, two-pass variance.
        ch_sum = sum(jnp.sum(a, axis=0, keepdims=True) for a in accs.values())
        mean = ch_sum * inv_n                                   # (1, Cout)
        ch_varsum = sum(jnp.sum(jnp.square(a - mean), axis=0, keepdims=True)
                        for a in accs.values())
        var = ch_varsum * inv_n                                 # biased, as torch
        scale = g_ref[...] * lax.rsqrt(var + BN_EPS)
        shift = b_ref[...] - mean * scale
        for ph in range(2):
            row = jnp.concatenate(
                [jnp.maximum(accs[(ph, pw)] * scale + shift, 0.0)
                 for pw in range(2)], axis=-1)                  # (M, 2*Cout)
            o_ref[:, :, ph, :, :] = row.reshape(N, H, W, 2 * Cout).astype(o_ref.dtype)

    y = pl.pallas_call(
        kernel,
        out_shape=jax.ShapeDtypeStruct((N, H, 2, W, 2 * Cout), jnp.bfloat16),
        grid=(1,),
        in_specs=[_full_spec((N, H + 2, W + 2, Cin)),
                  _full_spec(tuple(w_pack.shape)),
                  _full_spec((1, Cout)), _full_spec((1, Cout))],
        out_specs=_full_spec((N, H, 2, W, 2 * Cout)),
    )(xp, w_pack.astype(jnp.bfloat16),
      gamma.reshape(1, Cout).astype(jnp.float32),
      beta.reshape(1, Cout).astype(jnp.float32))

    # Row-major (n, h, ph, w, (pw,c)) == (n, 2h+ph, 2w+pw, c): free reshape.
    return y.reshape(N, 2 * H, 2 * W, Cout)


def deconv_bias_sigmoid_nchw(y_nhwc, w_pack_t, bias):
    """Final ConvTranspose2d(k=4,s=2,p=1) + bias + Sigmoid, batch-parallel grid.

    Per-phase transposed product (channels on sublanes, spatial on the 128-lane
    axis => lane-dense store); the tap gather is in-kernel and the contraction
    uses lax.dot_general on dim 1 of both operands (no host-side transpose).
    TODO(synk): the final small phase->NCHW relayout stays in XLA; folding it
    into the store would need a strided out_spec BlockSpec cannot express.
    """
    N, H, W, Cin = y_nhwc.shape
    Cout = w_pack_t.shape[2]
    assert w_pack_t.shape[3] == 4 * Cin
    Mn = H * W
    xp = jnp.pad(y_nhwc.astype(jnp.bfloat16), ((0, 0), (1, 1), (1, 1), (0, 0)))

    def kernel(xp_ref, w_ref, b_ref, o_ref):
        wins = {(a, b): xp_ref[0, a:a + H, b:b + W, :]
                for a in range(3) for b in range(3)}
        bcol = b_ref[...]                                        # (Cout, 1)
        for ph in range(2):
            for pw in range(2):
                xph = jnp.concatenate(
                    [wins[(ph + u, pw + v)] for u in range(2) for v in range(2)],
                    axis=-1).reshape(Mn, 4 * Cin)
                acc = lax.dot_general(w_ref[ph, pw], xph,
                                      (((1,), (1,)), ((), ())),
                                      preferred_element_type=jnp.float32)
                o_ref[0, ph, pw] = jax.nn.sigmoid(acc + bcol)    # (Cout, Mn)

    y = pl.pallas_call(
        kernel,
        out_shape=jax.ShapeDtypeStruct((N, 2, 2, Cout, Mn), jnp.float32),
        grid=(N,),
        in_specs=[pl.BlockSpec((1, H + 2, W + 2, Cin), lambda n: (n, 0, 0, 0)),
                  pl.BlockSpec((2, 2, Cout, 4 * Cin), lambda n: (0, 0, 0, 0)),
                  pl.BlockSpec((Cout, 1), lambda n: (0, 0))],
        out_specs=pl.BlockSpec((1, 2, 2, Cout, Mn), lambda n: (n, 0, 0, 0, 0)),
        compiler_params=pltpu.CompilerParams(dimension_semantics=("parallel",)),
    )(xp, w_pack_t.astype(jnp.bfloat16), bias.reshape(Cout, 1).astype(jnp.float32))

    # (n, ph, pw, c, h, w) -> NCHW (N, Cout, 2H, 2W)
    y = y.reshape(N, 2, 2, Cout, H, W).transpose(0, 3, 4, 1, 5, 2)
    return y.reshape(N, Cout, 2 * H, 2 * W)


# ----------------------------- parameter setup -------------------------------
def init_params(key):
    ks = jax.random.split(key, 8)
    s = 0.05
    c0, c1, c2 = HIDDEN_DIM // 16, HIDDEN_DIM // 8, HIDDEN_DIM // 4
    s0 = IMG_SIZE // 16
    p = {}
    # Encoder.
    # TODO(synk): the pretrained torchvision ResNet50 backbone is not
    # reproduced; a linear+ReLU stem producing FEAT_DIM features stands in for
    # the flattened resnet feature vector feeding fc_mu / fc_logvar.
    p["stem_w"] = (s * jax.random.normal(ks[0], (3 * IMG_SIZE * IMG_SIZE, FEAT_DIM))
                   ).astype(jnp.bfloat16)
    p["stem_b"] = jnp.zeros((FEAT_DIM,), jnp.float32)
    # fc_mu and fc_logvar fused into one (FEAT_DIM, 2*LATENT_DIM) weight.
    p["ml_w"] = (s * jax.random.normal(ks[1], (FEAT_DIM, 2 * LATENT_DIM))
                 ).astype(jnp.bfloat16)
    p["ml_b"] = jnp.zeros((2 * LATENT_DIM,), jnp.float32)
    # Decoder fc; columns pre-permuted (hoisted) from PyTorch (c, i, j) order to
    # NHWC (i, j, c) order so the kernel output reshapes straight to NHWC.
    fc_w = s * jax.random.normal(ks[2], (LATENT_DIM, HIDDEN_DIM))
    fc_b = jnp.zeros((HIDDEN_DIM,), jnp.float32)
    p["fc_w"] = (fc_w.reshape(LATENT_DIM, c0, s0, s0).transpose(0, 2, 3, 1)
                 .reshape(LATENT_DIM, HIDDEN_DIM)).astype(jnp.bfloat16)
    p["fc_b"] = fc_b.reshape(c0, s0, s0).transpose(1, 2, 0).reshape(HIDDEN_DIM)
    # Deconv stack (PyTorch layout (Cin, Cout, 4, 4)); packed ONCE here into
    # per-phase sub-pixel matmul form (hoisted out of the forward pass).
    d1 = s * jax.random.normal(ks[3], (c0, c1, 4, 4))
    d2 = s * jax.random.normal(ks[4], (c1, c2, 4, 4))
    d3 = s * jax.random.normal(ks[5], (c2, OUTPUT_CHANNELS, 4, 4))
    p["d1_w"] = _pack_deconv_weight(d1).astype(jnp.bfloat16)             # (2,2,4c0,c1)
    p["d2_w"] = _pack_deconv_weight(d2).astype(jnp.bfloat16)             # (2,2,4c1,c2)
    p["d3_w"] = (_pack_deconv_weight(d3).transpose(0, 1, 3, 2)           # (2,2,3,4c2)
                 ).astype(jnp.bfloat16)
    p["d3_b"] = (s * jax.random.normal(ks[6], (OUTPUT_CHANNELS,))).astype(jnp.float32)
    # NOTE: d1/d2 ConvTranspose biases omitted — a per-channel bias before
    # train-mode BatchNorm cancels exactly in the mean subtraction.
    p["bn1_g"] = jnp.ones((c1,), jnp.float32)
    p["bn1_b"] = jnp.zeros((c1,), jnp.float32)
    p["bn2_g"] = jnp.ones((c2,), jnp.float32)
    p["bn2_b"] = jnp.zeros((c2,), jnp.float32)
    return p


# ----------------------------- VAE forward -----------------------------------
def vae_forward(params, x_nchw, eps):
    """x_nchw: (N, 3, IMG_SIZE, IMG_SIZE).  Returns (x_recon_nchw, mu, logvar)."""
    N = x_nchw.shape[0]

    # ---- encoder ----
    feat = matmul_bias_act(x_nchw.reshape(N, -1), params["stem_w"],
                           params["stem_b"], act="relu", out_dtype=jnp.bfloat16)
    mu, logvar, h = encoder_tail_and_fc(feat, params["ml_w"], params["ml_b"],
                                        eps, params["fc_w"], params["fc_b"])

    # ---- decoder ----
    c0 = HIDDEN_DIM // 16
    s0 = IMG_SIZE // 16
    h = h.reshape(N, s0, s0, c0)        # already NHWC-ordered: free reshape
    y = deconv_bn_relu(h, params["d1_w"], params["bn1_g"], params["bn1_b"])
    y = deconv_bn_relu(y, params["d2_w"], params["bn2_g"], params["bn2_b"])
    x_recon = deconv_bias_sigmoid_nchw(y, params["d3_w"], params["d3_b"])  # NCHW
    return x_recon, mu, logvar


# ----------------------------------- main -------------------------------------
if __name__ == "__main__":
    key = jax.random.PRNGKey(0)
    k_param, k_x, k_eps = jax.random.split(key, 3)

    params = init_params(k_param)
    x = jax.random.normal(k_x, (BATCH, 3, IMG_SIZE, IMG_SIZE), jnp.float32)
    eps = jax.random.normal(k_eps, (BATCH, LATENT_DIM), jnp.float32)

    fwd = jax.jit(functools.partial(vae_forward, params))
    x_recon, mu, logvar = fwd(x, eps)
    jax.block_until_ready((x_recon, mu, logvar))

    expected_spatial = (IMG_SIZE // 16) * 8   # same semantics as the PyTorch module
    assert x_recon.shape == (BATCH, OUTPUT_CHANNELS, expected_spatial, expected_spatial)
    assert mu.shape == (BATCH, LATENT_DIM) and logvar.shape == (BATCH, LATENT_DIM)
    assert bool(jnp.all((x_recon >= 0.0) & (x_recon <= 1.0)))  # sigmoid range

    print("KERNEL_OK")
</pallas_src>

<mosaic_0001>
module attributes {stable_mosaic.version = 11 : i64} {
  func.func @kernel(%arg0: i32, %arg1: i32, %arg2: i32, %arg3: memref<2x4096xbf16, #tpu.memory_space<vmem>>, %arg4: memref<4096x128xbf16, #tpu.memory_space<vmem>>, %arg5: memref<1x128xf32, #tpu.memory_space<vmem>>, %arg6: memref<2x128xbf16, #tpu.memory_space<vmem>>, %arg7: memref<2x128xf32, #tpu.memory_space<vmem>>) attributes {dimension_semantics = [#tpu.dimension_semantics<parallel>, #tpu.dimension_semantics<parallel>, #tpu.dimension_semantics<arbitrary>], iteration_bounds = array<i64: 1, 1, 3>, scalar_prefetch = 0 : i64, scratch_operands = 1 : i64, tpu.core_type = #tpu.core_type<tc>, window_params = [{transform_indices = @transform_0, window_bounds = array<i64: 2, 4096>}, {transform_indices = @transform_1, window_bounds = array<i64: 4096, 128>}, {transform_indices = @transform_2, window_bounds = array<i64: 1, 128>}, {transform_indices = @transform_3, window_bounds = array<i64: 2, 128>}]} {
    %c0_i32 = arith.constant 0 : i32
    %0 = arith.cmpi eq, %arg2, %c0_i32 : i32
    %1 = arith.extui %0 : i1 to i32
    %c0_i32_0 = arith.constant 0 : i32
    %2 = arith.cmpi ne, %1, %c0_i32_0 : i32
    scf.if %2 {
      %cst_9 = arith.constant 0.000000e+00 : f32
      %12 = vector.broadcast %cst_9 : f32 to vector<2x128xf32>
      %c0_10 = arith.constant 0 : index
      %c0_11 = arith.constant 0 : index
      %13 = vector.load %arg7[%c0_10, %c0_11] : memref<2x128xf32, #tpu.memory_space<vmem>>, vector<2x128xf32>
      tpu.vector_store %arg7[%c0_10, %c0_11], %12 {strides = array<i32>} : memref<2x128xf32, #tpu.memory_space<vmem>>, vector<2x128xf32>,
    } else {
    }
    %c0 = arith.constant 0 : index
    %c0_1 = arith.constant 0 : index
    %3 = vector.load %arg7[%c0, %c0_1] : memref<2x128xf32, #tpu.memory_space<vmem>>, vector<2x128xf32>
    %c0_2 = arith.constant 0 : index
    %c0_3 = arith.constant 0 : index
    %4 = vector.load %arg3[%c0_2, %c0_3] : memref<2x4096xbf16, #tpu.memory_space<vmem>>, vector<2x4096xbf16>
    %c0_4 = arith.constant 0 : index
    %c0_5 = arith.constant 0 : index
    %5 = vector.load %arg4[%c0_4, %c0_5] : memref<4096x128xbf16, #tpu.memory_space<vmem>>, vector<4096x128xbf16>
    %cst = arith.constant dense<0.000000e+00> : vector<2x128xf32>
    %6 = tpu.matmul %4, %5, %cst {dimension_numbers = #tpu.dot_dimension_numbers<[1], [0], [0], [1], [0, 0, 1, 1], [], []>} : vector<2x4096xbf16>, vector<4096x128xbf16>, vector<2x128xf32> -> vector<2x128xf32>
    %7 = arith.addf %3, %6 : vector<2x128xf32>
    %c0_6 = arith.constant 0 : index
    %c0_7 = arith.constant 0 : index
    %8 = vector.load %arg7[%c0_6, %c0_7] : memref<2x128xf32, #tpu.memory_space<vmem>>, vector<2x128xf32>
    tpu.vector_store %arg7[%c0_6, %c0_7], %7 {strides = array<i32>} : memref<2x128xf32, #tpu.memory_space<vmem>>, vector<2x128xf32>,
    %c2_i32 = arith.constant 2 : i32
    %9 = arith.cmpi eq, %arg2, %c2_i32 : i32
    %10 = arith.extui %9 : i1 to i32
    %c0_i32_8 = arith.constant 0 : i32
    %11 = arith.cmpi ne, %10, %c0_i32_8 : i32
    scf.if %11 {
      %c0_9 = arith.constant 0 : index
      %c0_10 = arith.constant 0 : index
      %12 = vector.load %arg7[%c0_9, %c0_10] : memref<2x128xf32, #tpu.memory_space<vmem>>, vector<2x128xf32>
      %c0_11 = arith.constant 0 : index
      %c0_12 = arith.constant 0 : index
      %13 = vector.load %arg5[%c0_11, %c0_12] : memref<1x128xf32, #tpu.memory_space<vmem>>, vector<1x128xf32>
      %14 = vector.broadcast %13 : vector<1x128xf32> to vector<2x128xf32>
      %15 = arith.addf %12, %14 : vector<2x128xf32>
      %cst_13 = arith.constant 0.000000e+00 : f32
      %16 = vector.broadcast %cst_13 : f32 to vector<2x128xf32>
      %17 = arith.maximumf %15, %16 : vector<2x128xf32>
      %18 = arith.truncf %17 : vector<2x128xf32> to vector<2x128xbf16>
      %c0_14 = arith.constant 0 : index
      %c0_15 = arith.constant 0 : index
      %19 = vector.load %arg6[%c0_14, %c0_15] : memref<2x128xbf16, #tpu.memory_space<vmem>>, vector<2x128xbf16>
      tpu.vector_store %arg6[%c0_14, %c0_15], %18 {strides = array<i32>} : memref<2x128xbf16, #tpu.memory_space<vmem>>, vector<2x128xbf16>,
    } else {
    }
    return
  }
  func.func @transform_0(%arg0: i32, %arg1: i32, %arg2: i32) -> (i32, i32) {
    %c0_i32 = arith.constant 0 : i32
    return %arg0, %arg2 : i32, i32
  }
  func.func @transform_1(%arg0: i32, %arg1: i32, %arg2: i32) -> (i32, i32) {
    %c0_i32 = arith.constant 0 : i32
    return %arg2, %arg1 : i32, i32
  }
  func.func @transform_2(%arg0: i32, %arg1: i32, %arg2: i32) -> (i32, i32) {
    %c0_i32 = arith.constant 0 : i32
    %c0_i32_0 = arith.constant 0 : i32
    return %c0_i32, %arg1 : i32, i32
  }
  func.func @transform_3(%arg0: i32, %arg1: i32, %arg2: i32) -> (i32, i32) {
    %c0_i32 = arith.constant 0 : i32
    return %arg0, %arg1 : i32, i32
  }
}

module attributes {stable_mosaic.version = 11 : i64} {
  func.func @kernel(%arg0: i32, %arg1: memref<2x128xbf16, #tpu.memory_space<vmem>>, %arg2: memref<128x32xbf16, #tpu.memory_space<vmem>>, %arg3: memref<1x32xf32, #tpu.memory_space<vmem>>, %arg4: memref<2x16xf32, #tpu.memory_space<vmem>>, %arg5: memref<16x256xbf16, #tpu.memory_space<vmem>>, %arg6: memref<1x256xf32, #tpu.memory_space<vmem>>, %arg7: memref<2x16xf32, #tpu.memory_space<vmem>>, %arg8: memref<2x16xf32, #tpu.memory_space<vmem>>, %arg9: memref<2x256xbf16, #tpu.memory_space<vmem>>) attributes {dimension_semantics = [#tpu.dimension_semantics<arbitrary>], iteration_bounds = array<i64: 1>, scalar_prefetch = 0 : i64, scratch_operands = 0 : i64, tpu.core_type = #tpu.core_type<tc>, window_params = [{pipeline_mode = #tpu.pipeline_mode<synchronous>, transform_indices = @transform_0, window_bounds = array<i64: 2, 128>}, {pipeline_mode = #tpu.pipeline_mode<synchronous>, transform_indices = @transform_1, window_bounds = array<i64: 128, 32>}, {pipeline_mode = #tpu.pipeline_mode<synchronous>, transform_indices = @transform_2, window_bounds = array<i64: 1, 32>}, {pipeline_mode = #tpu.pipeline_mode<synchronous>, transform_indices = @transform_3, window_bounds = array<i64: 2, 16>}, {pipeline_mode = #tpu.pipeline_mode<synchronous>, transform_indices = @transform_4, window_bounds = array<i64: 16, 256>}, {pipeline_mode = #tpu.pipeline_mode<synchronous>, transform_indices = @transform_5, window_bounds = array<i64: 1, 256>}, {pipeline_mode = #tpu.pipeline_mode<synchronous>, transform_indices = @transform_6, window_bounds = array<i64: 2, 16>}, {pipeline_mode = #tpu.pipeline_mode<synchronous>, transform_indices = @transform_7, window_bounds = array<i64: 2, 16>}, {pipeline_mode = #tpu.pipeline_mode<synchronous>, transform_indices = @transform_8, window_bounds = array<i64: 2, 256>}]} {
    %c0 = arith.constant 0 : index
    %c0_0 = arith.constant 0 : index
    %0 = vector.load %arg1[%c0, %c0_0] : memref<2x128xbf16, #tpu.memory_space<vmem>>, vector<2x128xbf16>
    %c0_1 = arith.constant 0 : index
    %c0_2 = arith.constant 0 : index
    %1 = vector.load %arg2[%c0_1, %c0_2] : memref<128x32xbf16, #tpu.memory_space<vmem>>, vector<128x32xbf16>
    %cst = arith.constant dense<0.000000e+00> : vector<2x32xf32>
    %2 = tpu.matmul %0, %1, %cst {dimension_numbers = #tpu.dot_dimension_numbers<[1], [0], [0], [1], [0, 0, 1, 1], [], []>} : vector<2x128xbf16>, vector<128x32xbf16>, vector<2x32xf32> -> vector<2x32xf32>
    %c0_3 = arith.constant 0 : index
    %c0_4 = arith.constant 0 : index
    %3 = vector.load %arg3[%c0_3, %c0_4] : memref<1x32xf32, #tpu.memory_space<vmem>>, vector<1x32xf32>
    %4 = vector.broadcast %3 : vector<1x32xf32> to vector<2x32xf32>
    %5 = arith.addf %2, %4 : vector<2x32xf32>
    %6 = vector.extract_strided_slice %5 {offsets = [0, 0], sizes = [2, 16], strides = [1, 1]} : vector<2x32xf32> to vector<2x16xf32>
    %7 = vector.extract_strided_slice %5 {offsets = [0, 16], sizes = [2, 16], strides = [1, 1]} : vector<2x32xf32> to vector<2x16xf32>
    %c0_5 = arith.constant 0 : index
    %c0_6 = arith.constant 0 : index
    %8 = vector.load %arg4[%c0_5, %c0_6] : memref<2x16xf32, #tpu.memory_space<vmem>>, vector<2x16xf32>
    %cst_7 = arith.constant 5.000000e-01 : f32
    %9 = vector.broadcast %cst_7 : f32 to vector<2x16xf32>
    %10 = arith.mulf %9, %7 : vector<2x16xf32>
    %11 = math.exp %10 : vector<2x16xf32>
    %12 = arith.mulf %8, %11 : vector<2x16xf32>
    %13 = arith.addf %6, %12 : vector<2x16xf32>
    %14 = arith.truncf %13 : vector<2x16xf32> to vector<2x16xbf16>
    %c0_8 = arith.constant 0 : index
    %c0_9 = arith.constant 0 : index
    %15 = vector.load %arg5[%c0_8, %c0_9] : memref<16x256xbf16, #tpu.memory_space<vmem>>, vector<16x256xbf16>
    %cst_10 = arith.constant dense<0.000000e+00> : vector<2x256xf32>
    %16 = tpu.matmul %14, %15, %cst_10 {dimension_numbers = #tpu.dot_dimension_numbers<[1], [0], [0], [1], [0, 0, 1, 1], [], []>} : vector<2x16xbf16>, vector<16x256xbf16>, vector<2x256xf32> -> vector<2x256xf32>
    %c0_11 = arith.constant 0 : index
    %c0_12 = arith.constant 0 : index
    %17 = vector.load %arg6[%c0_11, %c0_12] : memref<1x256xf32, #tpu.memory_space<vmem>>, vector<1x256xf32>
    %18 = vector.broadcast %17 : vector<1x256xf32> to vector<2x256xf32>
    %19 = arith.addf %16, %18 : vector<2x256xf32>
    %c0_13 = arith.constant 0 : index
    %c0_14 = arith.constant 0 : index
    %20 = vector.load %arg7[%c0_13, %c0_14] : memref<2x16xf32, #tpu.memory_space<vmem>>, vector<2x16xf32>
    tpu.vector_store %arg7[%c0_13, %c0_14], %6 {strides = array<i32>} : memref<2x16xf32, #tpu.memory_space<vmem>>, vector<2x16xf32>,
    %c0_15 = arith.constant 0 : index
    %c0_16 = arith.constant 0 : index
    %21 = vector.load %arg8[%c0_15, %c0_16] : memref<2x16xf32, #tpu.memory_space<vmem>>, vector<2x16xf32>
    tpu.vector_store %arg8[%c0_15, %c0_16], %7 {strides = array<i32>} : memref<2x16xf32, #tpu.memory_space<vmem>>, vector<2x16xf32>,
    %cst_17 = arith.constant 0.000000e+00 : f32
    %22 = vector.broadcast %cst_17 : f32 to vector<2x256xf32>
    %23 = arith.maximumf %19, %22 : vector<2x256xf32>
    %24 = arith.truncf %23 : vector<2x256xf32> to vector<2x256xbf16>
    %c0_18 = arith.constant 0 : index
    %c0_19 = arith.constant 0 : index
    %25 = vector.load %arg9[%c0_18, %c0_19] : memref<2x256xbf16, #tpu.memory_space<vmem>>, vector<2x256xbf16>
    tpu.vector_store %arg9[%c0_18, %c0_19], %24 {strides = array<i32>} : memref<2x256xbf16, #tpu.memory_space<vmem>>, vector<2x256xbf16>,
    return
  }
  func.func @transform_0(%arg0: i32) -> (i32, i32) {
    %c0_i32 = arith.constant 0 : i32
    %c0_i32_0 = arith.constant 0 : i32
    %c0_i32_1 = arith.constant 0 : i32
    return %c0_i32, %c0_i32_0 : i32, i32
  }
  func.func @transform_1(%arg0: i32) -> (i32, i32) {
    %c0_i32 = arith.constant 0 : i32
    %c0_i32_0 = arith.constant 0 : i32
    %c0_i32_1 = arith.constant 0 : i32
    return %c0_i32, %c0_i32_0 : i32, i32
  }
  func.func @transform_2(%arg0: i32) -> (i32, i32) {
    %c0_i32 = arith.constant 0 : i32
    %c0_i32_0 = arith.constant 0 : i32
    %c0_i32_1 = arith.constant 0 : i32
    return %c0_i32, %c0_i32_0 : i32, i32
  }
  func.func @transform_3(%arg0: i32) -> (i32, i32) {
    %c0_i32 = arith.constant 0 : i32
    %c0_i32_0 = arith.constant 0 : i32
    %c0_i32_1 = arith.constant 0 : i32
    return %c0_i32, %c0_i32_0 : i32, i32
  }
  func.func @transform_4(%arg0: i32) -> (i32, i32) {
    %c0_i32 = arith.constant 0 : i32
    %c0_i32_0 = arith.constant 0 : i32
    %c0_i32_1 = arith.constant 0 : i32
    return %c0_i32, %c0_i32_0 : i32, i32
  }
  func.func @transform_5(%arg0: i32) -> (i32, i32) {
    %c0_i32 = arith.constant 0 : i32
    %c0_i32_0 = arith.constant 0 : i32
    %c0_i32_1 = arith.constant 0 : i32
    return %c0_i32, %c0_i32_0 : i32, i32
  }
  func.func @transform_6(%arg0: i32) -> (i32, i32) {
    %c0_i32 = arith.constant 0 : i32
    %c0_i32_0 = arith.constant 0 : i32
    %c0_i32_1 = arith.constant 0 : i32
    return %c0_i32, %c0_i32_0 : i32, i32
  }
  func.func @transform_7(%arg0: i32) -> (i32, i32) {
    %c0_i32 = arith.constant 0 : i32
    %c0_i32_0 = arith.constant 0 : i32
    %c0_i32_1 = arith.constant 0 : i32
    return %c0_i32, %c0_i32_0 : i32, i32
  }
  func.func @transform_8(%arg0: i32) -> (i32, i32) {
    %c0_i32 = arith.constant 0 : i32
    %c0_i32_0 = arith.constant 0 : i32
    %c0_i32_1 = arith.constant 0 : i32
    return %c0_i32, %c0_i32_0 : i32, i32
  }
}

module attributes {stable_mosaic.version = 11 : i64} {
  func.func @kernel(%arg0: i32, %arg1: memref<2x6x6x16xbf16, #tpu.memory_space<vmem>>, %arg2: memref<2x2x64x32xbf16, #tpu.memory_space<vmem>>, %arg3: memref<1x32xf32, #tpu.memory_space<vmem>>, %arg4: memref<1x32xf32, #tpu.memory_space<vmem>>, %arg5: memref<2x4x2x4x64xbf16, #tpu.memory_space<vmem>>) attributes {dimension_semantics = [#tpu.dimension_semantics<arbitrary>], iteration_bounds = array<i64: 1>, scalar_prefetch = 0 : i64, scratch_operands = 0 : i64, tpu.core_type = #tpu.core_type<tc>, window_params = [{pipeline_mode = #tpu.pipeline_mode<synchronous>, transform_indices = @transform_0, window_bounds = array<i64: 2, 6, 6, 16>}, {pipeline_mode = #tpu.pipeline_mode<synchronous>, transform_indices = @transform_1, window_bounds = array<i64: 2, 2, 64, 32>}, {pipeline_mode = #tpu.pipeline_mode<synchronous>, transform_indices = @transform_2, window_bounds = array<i64: 1, 32>}, {pipeline_mode = #tpu.pipeline_mode<synchronous>, transform_indices = @transform_3, window_bounds = array<i64: 1, 32>}, {pipeline_mode = #tpu.pipeline_mode<synchronous>, transform_indices = @transform_4, window_bounds = array<i64: 2, 4, 2, 4, 64>}]} {
    %c0 = arith.constant 0 : index
    %c0_0 = arith.constant 0 : index
    %c0_1 = arith.constant 0 : index
    %c0_2 = arith.constant 0 : index
    %0 = vector.load %arg1[%c0, %c0_0, %c0_1, %c0_2] : memref<2x6x6x16xbf16, #tpu.memory_space<vmem>>, vector<2x4x4x16xbf16>
    %c0_3 = arith.constant 0 : index
    %c0_4 = arith.constant 0 : index
    %c1 = arith.constant 1 : index
    %c0_5 = arith.constant 0 : index
    %1 = vector.load %arg1[%c0_3, %c0_4, %c1, %c0_5] : memref<2x6x6x16xbf16, #tpu.memory_space<vmem>>, vector<2x4x4x16xbf16>
    %c0_6 = arith.constant 0 : index
    %c0_7 = arith.constant 0 : index
    %c2 = arith.constant 2 : index
    %c0_8 = arith.constant 0 : index
    %2 = vector.load %arg1[%c0_6, %c0_7, %c2, %c0_8] : memref<2x6x6x16xbf16, #tpu.memory_space<vmem>>, vector<2x4x4x16xbf16>
    %c0_9 = arith.constant 0 : index
    %c1_10 = arith.constant 1 : index
    %c0_11 = arith.constant 0 : index
    %c0_12 = arith.constant 0 : index
    %3 = vector.load %arg1[%c0_9, %c1_10, %c0_11, %c0_12] : memref<2x6x6x16xbf16, #tpu.memory_space<vmem>>, vector<2x4x4x16xbf16>
    %c0_13 = arith.constant 0 : index
    %c1_14 = arith.constant 1 : index
    %c1_15 = arith.constant 1 : index
    %c0_16 = arith.constant 0 : index
    %4 = vector.load %arg1[%c0_13, %c1_14, %c1_15, %c0_16] : memref<2x6x6x16xbf16, #tpu.memory_space<vmem>>, vector<2x4x4x16xbf16>
    %c0_17 = arith.constant 0 : index
    %c1_18 = arith.constant 1 : index
    %c2_19 = arith.constant 2 : index
    %c0_20 = arith.constant 0 : index
    %5 = vector.load %arg1[%c0_17, %c1_18, %c2_19, %c0_20] : memref<2x6x6x16xbf16, #tpu.memory_space<vmem>>, vector<2x4x4x16xbf16>
    %c0_21 = arith.constant 0 : index
    %c2_22 = arith.constant 2 : index
    %c0_23 = arith.constant 0 : index
    %c0_24 = arith.constant 0 : index
    %6 = vector.load %arg1[%c0_21, %c2_22, %c0_23, %c0_24] : memref<2x6x6x16xbf16, #tpu.memory_space<vmem>>, vector<2x4x4x16xbf16>
    %c0_25 = arith.constant 0 : index
    %c2_26 = arith.constant 2 : index
    %c1_27 = arith.constant 1 : index
    %c0_28 = arith.constant 0 : index
    %7 = vector.load %arg1[%c0_25, %c2_26, %c1_27, %c0_28] : memref<2x6x6x16xbf16, #tpu.memory_space<vmem>>, vector<2x4x4x16xbf16>
    %c0_29 = arith.constant 0 : index
    %c2_30 = arith.constant 2 : index
    %c2_31 = arith.constant 2 : index
    %c0_32 = arith.constant 0 : index
    %8 = vector.load %arg1[%c0_29, %c2_30, %c2_31, %c0_32] : memref<2x6x6x16xbf16, #tpu.memory_space<vmem>>, vector<2x4x4x16xbf16>
    %9 = tpu.concatenate %0, %1, %3, %4 in 3 : vector<2x4x4x16xbf16>, vector<2x4x4x16xbf16>, vector<2x4x4x16xbf16>, vector<2x4x4x16xbf16> -> vector<2x4x4x64xbf16>
    %10 = vector.shape_cast %9 : vector<2x4x4x64xbf16> to vector<32x64xbf16>
    %c0_33 = arith.constant 0 : index
    %c0_34 = arith.constant 0 : index
    %c0_35 = arith.constant 0 : index
    %c0_36 = arith.constant 0 : index
    %11 = vector.load %arg2[%c0_33, %c0_34, %c0_35, %c0_36] : memref<2x2x64x32xbf16, #tpu.memory_space<vmem>>, vector<1x1x64x32xbf16>
    %12 = vector.shape_cast %11 : vector<1x1x64x32xbf16> to vector<64x32xbf16>
    %cst = arith.constant dense<0.000000e+00> : vector<32x32xf32>
    %13 = tpu.matmul %10, %12, %cst {dimension_numbers = #tpu.dot_dimension_numbers<[1], [0], [0], [1], [0, 0, 1, 1], [], []>} : vector<32x64xbf16>, vector<64x32xbf16>, vector<32x32xf32> -> vector<32x32xf32>
    %14 = tpu.concatenate %1, %2, %4, %5 in 3 : vector<2x4x4x16xbf16>, vector<2x4x4x16xbf16>, vector<2x4x4x16xbf16>, vector<2x4x4x16xbf16> -> vector<2x4x4x64xbf16>
    %15 = vector.shape_cast %14 : vector<2x4x4x64xbf16> to vector<32x64xbf16>
    %c0_37 = arith.constant 0 : index
    %c1_38 = arith.constant 1 : index
    %c0_39 = arith.constant 0 : index
    %c0_40 = arith.constant 0 : index
    %16 = vector.load %arg2[%c0_37, %c1_38, %c0_39, %c0_40] : memref<2x2x64x32xbf16, #tpu.memory_space<vmem>>, vector<1x1x64x32xbf16>
    %17 = vector.shape_cast %16 : vector<1x1x64x32xbf16> to vector<64x32xbf16>
    %cst_41 = arith.constant dense<0.000000e+00> : vector<32x32xf32>
    %18 = tpu.matmul %15, %17, %cst_41 {dimension_numbers = #tpu.dot_dimension_numbers<[1], [0], [0], [1], [0, 0, 1, 1], [], []>} : vector<32x64xbf16>, vector<64x32xbf16>, vector<32x32xf32> -> vector<32x32xf32>
    %19 = tpu.concatenate %3, %4, %6, %7 in 3 : vector<2x4x4x16xbf16>, vector<2x4x4x16xbf16>, vector<2x4x4x16xbf16>, vector<2x4x4x16xbf16> -> vector<2x4x4x64xbf16>
    %20 = vector.shape_cast %19 : vector<2x4x4x64xbf16> to vector<32x64xbf16>
    %c1_42 = arith.constant 1 : index
    %c0_43 = arith.constant 0 : index
    %c0_44 = arith.constant 0 : index
    %c0_45 = arith.constant 0 : index
    %21 = vector.load %arg2[%c1_42, %c0_43, %c0_44, %c0_45] : memref<2x2x64x32xbf16, #tpu.memory_space<vmem>>, vector<1x1x64x32xbf16>
    %22 = vector.shape_cast %21 : vector<1x1x64x32xbf16> to vector<64x32xbf16>
    %cst_46 = arith.constant dense<0.000000e+00> : vector<32x32xf32>
    %23 = tpu.matmul %20, %22, %cst_46 {dimension_numbers = #tpu.dot_dimension_numbers<[1], [0], [0], [1], [0, 0, 1, 1], [], []>} : vector<32x64xbf16>, vector<64x32xbf16>, vector<32x32xf32> -> vector<32x32xf32>
    %24 = tpu.concatenate %4, %5, %7, %8 in 3 : vector<2x4x4x16xbf16>, vector<2x4x4x16xbf16>, vector<2x4x4x16xbf16>, vector<2x4x4x16xbf16> -> vector<2x4x4x64xbf16>
    %25 = vector.shape_cast %24 : vector<2x4x4x64xbf16> to vector<32x64xbf16>
    %c1_47 = arith.constant 1 : index
    %c1_48 = arith.constant 1 : index
    %c0_49 = arith.constant 0 : index
    %c0_50 = arith.constant 0 : index
    %26 = vector.load %arg2[%c1_47, %c1_48, %c0_49, %c0_50] : memref<2x2x64x32xbf16, #tpu.memory_space<vmem>>, vector<1x1x64x32xbf16>
    %27 = vector.shape_cast %26 : vector<1x1x64x32xbf16> to vector<64x32xbf16>
    %cst_51 = arith.constant dense<0.000000e+00> : vector<32x32xf32>
    %28 = tpu.matmul %25, %27, %cst_51 {dimension_numbers = #tpu.dot_dimension_numbers<[1], [0], [0], [1], [0, 0, 1, 1], [], []>} : vector<32x64xbf16>, vector<64x32xbf16>, vector<32x32xf32> -> vector<32x32xf32>
    %cst_52 = arith.constant dense<0.000000e+00> : vector<32xf32>
    %29 = vector.multi_reduction <add>, %13, %cst_52 [0] : vector<32x32xf32> to vector<32xf32>
    %30 = vector.shape_cast %29 : vector<32xf32> to vector<1x32xf32>
    %cst_53 = arith.constant 0.000000e+00 : f32
    %31 = vector.broadcast %cst_53 : f32 to vector<1x32xf32>
    %32 = arith.addf %31, %30 : vector<1x32xf32>
    %cst_54 = arith.constant dense<0.000000e+00> : vector<32xf32>
    %33 = vector.multi_reduction <add>, %18, %cst_54 [0] : vector<32x32xf32> to vector<32xf32>
    %34 = vector.shape_cast %33 : vector<32xf32> to vector<1x32xf32>
    %35 = arith.addf %32, %34 : vector<1x32xf32>
    %cst_55 = arith.constant dense<0.000000e+00> : vector<32xf32>
    %36 = vector.multi_reduction <add>, %23, %cst_55 [0] : vector<32x32xf32> to vector<32xf32>
    %37 = vector.shape_cast %36 : vector<32xf32> to vector<1x32xf32>
    %38 = arith.addf %35, %37 : vector<1x32xf32>
    %cst_56 = arith.constant dense<0.000000e+00> : vector<32xf32>
    %39 = vector.multi_reduction <add>, %28, %cst_56 [0] : vector<32x32xf32> to vector<32xf32>
    %40 = vector.shape_cast %39 : vector<32xf32> to vector<1x32xf32>
    %41 = arith.addf %38, %40 : vector<1x32xf32>
    %cst_57 = arith.constant 7.812500e-03 : f32
    %42 = vector.broadcast %cst_57 : f32 to vector<1x32xf32>
    %43 = arith.mulf %41, %42 : vector<1x32xf32>
    %44 = vector.broadcast %43 : vector<1x32xf32> to vector<32x32xf32>
    %45 = arith.subf %13, %44 : vector<32x32xf32>
    %46 = arith.mulf %45, %45 : vector<32x32xf32>
    %cst_58 = arith.constant dense<0.000000e+00> : vector<32xf32>
    %47 = vector.multi_reduction <add>, %46, %cst_58 [0] : vector<32x32xf32> to vector<32xf32>
    %48 = vector.shape_cast %47 : vector<32xf32> to vector<1x32xf32>
    %cst_59 = arith.constant 0.000000e+00 : f32
    %49 = vector.broadcast %cst_59 : f32 to vector<1x32xf32>
    %50 = arith.addf %49, %48 : vector<1x32xf32>
    %51 = vector.broadcast %43 : vector<1x32xf32> to vector<32x32xf32>
    %52 = arith.subf %18, %51 : vector<32x32xf32>
    %53 = arith.mulf %52, %52 : vector<32x32xf32>
    %cst_60 = arith.constant dense<0.000000e+00> : vector<32xf32>
    %54 = vector.multi_reduction <add>, %53, %cst_60 [0] : vector<32x32xf32> to vector<32xf32>
    %55 = vector.shape_cast %54 : vector<32xf32> to vector<1x32xf32>
    %56 = arith.addf %50, %55 : vector<1x32xf32>
    %57 = vector.broadcast %43 : vector<1x32xf32> to vector<32x32xf32>
    %58 = arith.subf %23, %57 : vector<32x32xf32>
    %59 = arith.mulf %58, %58 : vector<32x32xf32>
    %cst_61 = arith.constant dense<0.000000e+00> : vector<32xf32>
    %60 = vector.multi_reduction <add>, %59, %cst_61 [0] : vector<32x32xf32> to vector<32xf32>
    %61 = vector.shape_cast %60 : vector<32xf32> to vector<1x32xf32>
    %62 = arith.addf %56, %61 : vector<1x32xf32>
    %63 = vector.broadcast %43 : vector<1x32xf32> to vector<32x32xf32>
    %64 = arith.subf %28, %63 : vector<32x32xf32>
    %65 = arith.mulf %64, %64 : vector<32x32xf32>
    %cst_62 = arith.constant dense<0.000000e+00> : vector<32xf32>
    %66 = vector.multi_reduction <add>, %65, %cst_62 [0] : vector<32x32xf32> to vector<32xf32>
    %67 = vector.shape_cast %66 : vector<32xf32> to vector<1x32xf32>
    %68 = arith.addf %62, %67 : vector<1x32xf32>
    %cst_63 = arith.constant 7.812500e-03 : f32
    %69 = vector.broadcast %cst_63 : f32 to vector<1x32xf32>
    %70 = arith.mulf %68, %69 : vector<1x32xf32>
    %c0_64 = arith.constant 0 : index
    %c0_65 = arith.constant 0 : index
    %71 = vector.load %arg3[%c0_64, %c0_65] : memref<1x32xf32, #tpu.memory_space<vmem>>, vector<1x32xf32>
    %cst_66 = arith.constant 9.99999974E-6 : f32
    %72 = vector.broadcast %cst_66 : f32 to vector<1x32xf32>
    %73 = arith.addf %70, %72 : vector<1x32xf32>
    %74 = math.rsqrt %73 : vector<1x32xf32>
    %75 = arith.mulf %71, %74 : vector<1x32xf32>
    %c0_67 = arith.constant 0 : index
    %c0_68 = arith.constant 0 : index
    %76 = vector.load %arg4[%c0_67, %c0_68] : memref<1x32xf32, #tpu.memory_space<vmem>>, vector<1x32xf32>
    %77 = arith.mulf %43, %75 : vector<1x32xf32>
    %78 = arith.subf %76, %77 : vector<1x32xf32>
    %79 = vector.broadcast %75 : vector<1x32xf32> to vector<32x32xf32>
    %80 = arith.mulf %13, %79 : vector<32x32xf32>
    %81 = vector.broadcast %78 : vector<1x32xf32> to vector<32x32xf32>
    %82 = arith.addf %80, %81 : vector<32x32xf32>
    %cst_69 = arith.constant 0.000000e+00 : f32
    %83 = vector.broadcast %cst_69 : f32 to vector<32x32xf32>
    %84 = arith.maximumf %82, %83 : vector<32x32xf32>
    %85 = vector.broadcast %75 : vector<1x32xf32> to vector<32x32xf32>
    %86 = arith.mulf %18, %85 : vector<32x32xf32>
    %87 = vector.broadcast %78 : vector<1x32xf32> to vector<32x32xf32>
    %88 = arith.addf %86, %87 : vector<32x32xf32>
    %cst_70 = arith.constant 0.000000e+00 : f32
    %89 = vector.broadcast %cst_70 : f32 to vector<32x32xf32>
    %90 = arith.maximumf %88, %89 : vector<32x32xf32>
    %91 = tpu.concatenate %84, %90 in 1 : vector<32x32xf32>, vector<32x32xf32> -> vector<32x64xf32>
    %92 = vector.shape_cast %91 : vector<32x64xf32> to vector<2x4x4x64xf32>
    %93 = arith.truncf %92 : vector<2x4x4x64xf32> to vector<2x4x4x64xbf16>
    %c0_71 = arith.constant 0 : index
    %c0_72 = arith.constant 0 : index
    %c0_73 = arith.constant 0 : index
    %c0_74 = arith.constant 0 : index
    %c0_75 = arith.constant 0 : index
    %94 = vector.load %arg5[%c0_71, %c0_72, %c0_73, %c0_74, %c0_75] : memref<2x4x2x4x64xbf16, #tpu.memory_space<vmem>>, vector<2x4x1x4x64xbf16>
    %95 = vector.shape_cast %94 : vector<2x4x1x4x64xbf16> to vector<2x4x4x64xbf16>
    %96 = vector.shape_cast %93 : vector<2x4x4x64xbf16> to vector<2x4x1x4x64xbf16>
    tpu.vector_store %arg5[%c0_71, %c0_72, %c0_73, %c0_74, %c0_75], %96 {strides = array<i32>} : memref<2x4x2x4x64xbf16, #tpu.memory_space<vmem>>, vector<2x4x1x4x64xbf16>,
    %97 = vector.broadcast %75 : vector<1x32xf32> to vector<32x32xf32>
    %98 = arith.mulf %23, %97 : vector<32x32xf32>
    %99 = vector.broadcast %78 : vector<1x32xf32> to vector<32x32xf32>
    %100 = arith.addf %98, %99 : vector<32x32xf32>
    %cst_76 = arith.constant 0.000000e+00 : f32
    %101 = vector.broadcast %cst_76 : f32 to vector<32x32xf32>
    %102 = arith.maximumf %100, %101 : vector<32x32xf32>
    %103 = vector.broadcast %75 : vector<1x32xf32> to vector<32x32xf32>
    %104 = arith.mulf %28, %103 : vector<32x32xf32>
    %105 = vector.broadcast %78 : vector<1x32xf32> to vector<32x32xf32>
    %106 = arith.addf %104, %105 : vector<32x32xf32>
    %cst_77 = arith.constant 0.000000e+00 : f32
    %107 = vector.broadcast %cst_77 : f32 to vector<32x32xf32>
    %108 = arith.maximumf %106, %107 : vector<32x32xf32>
    %109 = tpu.concatenate %102, %108 in 1 : vector<32x32xf32>, vector<32x32xf32> -> vector<32x64xf32>
    %110 = vector.shape_cast %109 : vector<32x64xf32> to vector<2x4x4x64xf32>
    %111 = arith.truncf %110 : vector<2x4x4x64xf32> to vector<2x4x4x64xbf16>
    %c0_78 = arith.constant 0 : index
    %c0_79 = arith.constant 0 : index
    %c1_80 = arith.constant 1 : index
    %c0_81 = arith.constant 0 : index
    %c0_82 = arith.constant 0 : index
    %112 = vector.load %arg5[%c0_78, %c0_79, %c1_80, %c0_81, %c0_82] : memref<2x4x2x4x64xbf16, #tpu.memory_space<vmem>>, vector<2x4x1x4x64xbf16>
    %113 = vector.shape_cast %112 : vector<2x4x1x4x64xbf16> to vector<2x4x4x64xbf16>
    %114 = vector.shape_cast %111 : vector<2x4x4x64xbf16> to vector<2x4x1x4x64xbf16>
    tpu.vector_store %arg5[%c0_78, %c0_79, %c1_80, %c0_81, %c0_82], %114 {strides = array<i32>} : memref<2x4x2x4x64xbf16, #tpu.memory_space<vmem>>, vector<2x4x1x4x64xbf16>,
    return
  }
  func.func @transform_0(%arg0: i32) -> (i32, i32, i32, i32) {
    %c0_i32 = arith.constant 0 : i32
    %c0_i32_0 = arith.constant 0 : i32
    %c0_i32_1 = arith.constant 0 : i32
    %c0_i32_2 = arith.constant 0 : i32
    %c0_i32_3 = arith.constant 0 : i32
    return %c0_i32, %c0_i32_0, %c0_i32_1, %c0_i32_2 : i32, i32, i32, i32
  }
  func.func @transform_1(%arg0: i32) -> (i32, i32, i32, i32) {
    %c0_i32 = arith.constant 0 : i32
    %c0_i32_0 = arith.constant 0 : i32
    %c0_i32_1 = arith.constant 0 : i32
    %c0_i32_2 = arith.constant 0 : i32
    %c0_i32_3 = arith.constant 0 : i32
    return %c0_i32, %c0_i32_0, %c0_i32_1, %c0_i32_2 : i32, i32, i32, i32
  }
  func.func @transform_2(%arg0: i32) -> (i32, i32) {
    %c0_i32 = arith.constant 0 : i32
    %c0_i32_0 = arith.constant 0 : i32
    %c0_i32_1 = arith.constant 0 : i32
    return %c0_i32, %c0_i32_0 : i32, i32
  }
  func.func @transform_3(%arg0: i32) -> (i32, i32) {
    %c0_i32 = arith.constant 0 : i32
    %c0_i32_0 = arith.constant 0 : i32
    %c0_i32_1 = arith.constant 0 : i32
    return %c0_i32, %c0_i32_0 : i32, i32
  }
  func.func @transform_4(%arg0: i32) -> (i32, i32, i32, i32, i32) {
    %c0_i32 = arith.constant 0 : i32
    %c0_i32_0 = arith.constant 0 : i32
    %c0_i32_1 = arith.constant 0 : i32
    %c0_i32_2 = arith.constant 0 : i32
    %c0_i32_3 = arith.constant 0 : i32
    %c0_i32_4 = arith.constant 0 : i32
    return %c0_i32, %c0_i32_0, %c0_i32_1, %c0_i32_2, %c0_i32_3 : i32, i32, i32, i32, i32
  }
}

module attributes {stable_mosaic.version = 11 : i64} {
  func.func @kernel(%arg0: i32, %arg1: memref<2x10x10x32xbf16, #tpu.memory_space<vmem>>, %arg2: memref<2x2x128x64xbf16, #tpu.memory_space<vmem>>, %arg3: memref<1x64xf32, #tpu.memory_space<vmem>>, %arg4: memref<1x64xf32, #tpu.memory_space<vmem>>, %arg5: memref<2x8x2x8x128xbf16, #tpu.memory_space<vmem>>) attributes {dimension_semantics = [#tpu.dimension_semantics<arbitrary>], iteration_bounds = array<i64: 1>, scalar_prefetch = 0 : i64, scratch_operands = 0 : i64, tpu.core_type = #tpu.core_type<tc>, window_params = [{pipeline_mode = #tpu.pipeline_mode<synchronous>, transform_indices = @transform_0, window_bounds = array<i64: 2, 10, 10, 32>}, {pipeline_mode = #tpu.pipeline_mode<synchronous>, transform_indices = @transform_1, window_bounds = array<i64: 2, 2, 128, 64>}, {pipeline_mode = #tpu.pipeline_mode<synchronous>, transform_indices = @transform_2, window_bounds = array<i64: 1, 64>}, {pipeline_mode = #tpu.pipeline_mode<synchronous>, transform_indices = @transform_3, window_bounds = array<i64: 1, 64>}, {pipeline_mode = #tpu.pipeline_mode<synchronous>, transform_indices = @transform_4, window_bounds = array<i64: 2, 8, 2, 8, 128>}]} {
    %c0 = arith.constant 0 : index
    %c0_0 = arith.constant 0 : index
    %c0_1 = arith.constant 0 : index
    %c0_2 = arith.constant 0 : index
    %0 = vector.load %arg1[%c0, %c0_0, %c0_1, %c0_2] : memref<2x10x10x32xbf16, #tpu.memory_space<vmem>>, vector<2x8x8x32xbf16>
    %c0_3 = arith.constant 0 : index
    %c0_4 = arith.constant 0 : index
    %c1 = arith.constant 1 : index
    %c0_5 = arith.constant 0 : index
    %1 = vector.load %arg1[%c0_3, %c0_4, %c1, %c0_5] : memref<2x10x10x32xbf16, #tpu.memory_space<vmem>>, vector<2x8x8x32xbf16>
    %c0_6 = arith.constant 0 : index
    %c0_7 = arith.constant 0 : index
    %c2 = arith.constant 2 : index
    %c0_8 = arith.constant 0 : index
    %2 = vector.load %arg1[%c0_6, %c0_7, %c2, %c0_8] : memref<2x10x10x32xbf16, #tpu.memory_space<vmem>>, vector<2x8x8x32xbf16>
    %c0_9 = arith.constant 0 : index
    %c1_10 = arith.constant 1 : index
    %c0_11 = arith.constant 0 : index
    %c0_12 = arith.constant 0 : index
    %3 = vector.load %arg1[%c0_9, %c1_10, %c0_11, %c0_12] : memref<2x10x10x32xbf16, #tpu.memory_space<vmem>>, vector<2x8x8x32xbf16>
    %c0_13 = arith.constant 0 : index
    %c1_14 = arith.constant 1 : index
    %c1_15 = arith.constant 1 : index
    %c0_16 = arith.constant 0 : index
    %4 = vector.load %arg1[%c0_13, %c1_14, %c1_15, %c0_16] : memref<2x10x10x32xbf16, #tpu.memory_space<vmem>>, vector<2x8x8x32xbf16>
    %c0_17 = arith.constant 0 : index
    %c1_18 = arith.constant 1 : index
    %c2_19 = arith.constant 2 : index
    %c0_20 = arith.constant 0 : index
    %5 = vector.load %arg1[%c0_17, %c1_18, %c2_19, %c0_20] : memref<2x10x10x32xbf16, #tpu.memory_space<vmem>>, vector<2x8x8x32xbf16>
    %c0_21 = arith.constant 0 : index
    %c2_22 = arith.constant 2 : index
    %c0_23 = arith.constant 0 : index
    %c0_24 = arith.constant 0 : index
    %6 = vector.load %arg1[%c0_21, %c2_22, %c0_23, %c0_24] : memref<2x10x10x32xbf16, #tpu.memory_space<vmem>>, vector<2x8x8x32xbf16>
    %c0_25 = arith.constant 0 : index
    %c2_26 = arith.constant 2 : index
    %c1_27 = arith.constant 1 : index
    %c0_28 = arith.constant 0 : index
    %7 = vector.load %arg1[%c0_25, %c2_26, %c1_27, %c0_28] : memref<2x10x10x32xbf16, #tpu.memory_space<vmem>>, vector<2x8x8x32xbf16>
    %c0_29 = arith.constant 0 : index
    %c2_30 = arith.constant 2 : index
    %c2_31 = arith.constant 2 : index
    %c0_32 = arith.constant 0 : index
    %8 = vector.load %arg1[%c0_29, %c2_30, %c2_31, %c0_32] : memref<2x10x10x32xbf16, #tpu.memory_space<vmem>>, vector<2x8x8x32xbf16>
    %9 = tpu.concatenate %0, %1, %3, %4 in 3 : vector<2x8x8x32xbf16>, vector<2x8x8x32xbf16>, vector<2x8x8x32xbf16>, vector<2x8x8x32xbf16> -> vector<2x8x8x128xbf16>
    %10 = vector.shape_cast %9 : vector<2x8x8x128xbf16> to vector<128x128xbf16>
    %c0_33 = arith.constant 0 : index
    %c0_34 = arith.constant 0 : index
    %c0_35 = arith.constant 0 : index
    %c0_36 = arith.constant 0 : index
    %11 = vector.load %arg2[%c0_33, %c0_34, %c0_35, %c0_36] : memref<2x2x128x64xbf16, #tpu.memory_space<vmem>>, vector<1x1x128x64xbf16>
    %12 = vector.shape_cast %11 : vector<1x1x128x64xbf16> to vector<128x64xbf16>
    %cst = arith.constant dense<0.000000e+00> : vector<128x64xf32>
    %13 = tpu.matmul %10, %12, %cst {dimension_numbers = #tpu.dot_dimension_numbers<[1], [0], [0], [1], [0, 0, 1, 1], [], []>} : vector<128x128xbf16>, vector<128x64xbf16>, vector<128x64xf32> -> vector<128x64xf32>
    %14 = tpu.concatenate %1, %2, %4, %5 in 3 : vector<2x8x8x32xbf16>, vector<2x8x8x32xbf16>, vector<2x8x8x32xbf16>, vector<2x8x8x32xbf16> -> vector<2x8x8x128xbf16>
    %15 = vector.shape_cast %14 : vector<2x8x8x128xbf16> to vector<128x128xbf16>
    %c0_37 = arith.constant 0 : index
    %c1_38 = arith.constant 1 : index
    %c0_39 = arith.constant 0 : index
    %c0_40 = arith.constant 0 : index
    %16 = vector.load %arg2[%c0_37, %c1_38, %c0_39, %c0_40] : memref<2x2x128x64xbf16, #tpu.memory_space<vmem>>, vector<1x1x128x64xbf16>
    %17 = vector.shape_cast %16 : vector<1x1x128x64xbf16> to vector<128x64xbf16>
    %cst_41 = arith.constant dense<0.000000e+00> : vector<128x64xf32>
    %18 = tpu.matmul %15, %17, %cst_41 {dimension_numbers = #tpu.dot_dimension_numbers<[1], [0], [0], [1], [0, 0, 1, 1], [], []>} : vector<128x128xbf16>, vector<128x64xbf16>, vector<128x64xf32> -> vector<128x64xf32>
    %19 = tpu.concatenate %3, %4, %6, %7 in 3 : vector<2x8x8x32xbf16>, vector<2x8x8x32xbf16>, vector<2x8x8x32xbf16>, vector<2x8x8x32xbf16> -> vector<2x8x8x128xbf16>
    %20 = vector.shape_cast %19 : vector<2x8x8x128xbf16> to vector<128x128xbf16>
    %c1_42 = arith.constant 1 : index
    %c0_43 = arith.constant 0 : index
    %c0_44 = arith.constant 0 : index
    %c0_45 = arith.constant 0 : index
    %21 = vector.load %arg2[%c1_42, %c0_43, %c0_44, %c0_45] : memref<2x2x128x64xbf16, #tpu.memory_space<vmem>>, vector<1x1x128x64xbf16>
    %22 = vector.shape_cast %21 : vector<1x1x128x64xbf16> to vector<128x64xbf16>
    %cst_46 = arith.constant dense<0.000000e+00> : vector<128x64xf32>
    %23 = tpu.matmul %20, %22, %cst_46 {dimension_numbers = #tpu.dot_dimension_numbers<[1], [0], [0], [1], [0, 0, 1, 1], [], []>} : vector<128x128xbf16>, vector<128x64xbf16>, vector<128x64xf32> -> vector<128x64xf32>
    %24 = tpu.concatenate %4, %5, %7, %8 in 3 : vector<2x8x8x32xbf16>, vector<2x8x8x32xbf16>, vector<2x8x8x32xbf16>, vector<2x8x8x32xbf16> -> vector<2x8x8x128xbf16>
    %25 = vector.shape_cast %24 : vector<2x8x8x128xbf16> to vector<128x128xbf16>
    %c1_47 = arith.constant 1 : index
    %c1_48 = arith.constant 1 : index
    %c0_49 = arith.constant 0 : index
    %c0_50 = arith.constant 0 : index
    %26 = vector.load %arg2[%c1_47, %c1_48, %c0_49, %c0_50] : memref<2x2x128x64xbf16, #tpu.memory_space<vmem>>, vector<1x1x128x64xbf16>
    %27 = vector.shape_cast %26 : vector<1x1x128x64xbf16> to vector<128x64xbf16>
    %cst_51 = arith.constant dense<0.000000e+00> : vector<128x64xf32>
    %28 = tpu.matmul %25, %27, %cst_51 {dimension_numbers = #tpu.dot_dimension_numbers<[1], [0], [0], [1], [0, 0, 1, 1], [], []>} : vector<128x128xbf16>, vector<128x64xbf16>, vector<128x64xf32> -> vector<128x64xf32>
    %cst_52 = arith.constant dense<0.000000e+00> : vector<64xf32>
    %29 = vector.multi_reduction <add>, %13, %cst_52 [0] : vector<128x64xf32> to vector<64xf32>
    %30 = vector.shape_cast %29 : vector<64xf32> to vector<1x64xf32>
    %cst_53 = arith.constant 0.000000e+00 : f32
    %31 = vector.broadcast %cst_53 : f32 to vector<1x64xf32>
    %32 = arith.addf %31, %30 : vector<1x64xf32>
    %cst_54 = arith.constant dense<0.000000e+00> : vector<64xf32>
    %33 = vector.multi_reduction <add>, %18, %cst_54 [0] : vector<128x64xf32> to vector<64xf32>
    %34 = vector.shape_cast %33 : vector<64xf32> to vector<1x64xf32>
    %35 = arith.addf %32, %34 : vector<1x64xf32>
    %cst_55 = arith.constant dense<0.000000e+00> : vector<64xf32>
    %36 = vector.multi_reduction <add>, %23, %cst_55 [0] : vector<128x64xf32> to vector<64xf32>
    %37 = vector.shape_cast %36 : vector<64xf32> to vector<1x64xf32>
    %38 = arith.addf %35, %37 : vector<1x64xf32>
    %cst_56 = arith.constant dense<0.000000e+00> : vector<64xf32>
    %39 = vector.multi_reduction <add>, %28, %cst_56 [0] : vector<128x64xf32> to vector<64xf32>
    %40 = vector.shape_cast %39 : vector<64xf32> to vector<1x64xf32>
    %41 = arith.addf %38, %40 : vector<1x64xf32>
    %cst_57 = arith.constant 0.001953125 : f32
    %42 = vector.broadcast %cst_57 : f32 to vector<1x64xf32>
    %43 = arith.mulf %41, %42 : vector<1x64xf32>
    %44 = vector.broadcast %43 : vector<1x64xf32> to vector<128x64xf32>
    %45 = arith.subf %13, %44 : vector<128x64xf32>
    %46 = arith.mulf %45, %45 : vector<128x64xf32>
    %cst_58 = arith.constant dense<0.000000e+00> : vector<64xf32>
    %47 = vector.multi_reduction <add>, %46, %cst_58 [0] : vector<128x64xf32> to vector<64xf32>
    %48 = vector.shape_cast %47 : vector<64xf32> to vector<1x64xf32>
    %cst_59 = arith.constant 0.000000e+00 : f32
    %49 = vector.broadcast %cst_59 : f32 to vector<1x64xf32>
    %50 = arith.addf %49, %48 : vector<1x64xf32>
    %51 = vector.broadcast %43 : vector<1x64xf32> to vector<128x64xf32>
    %52 = arith.subf %18, %51 : vector<128x64xf32>
    %53 = arith.mulf %52, %52 : vector<128x64xf32>
    %cst_60 = arith.constant dense<0.000000e+00> : vector<64xf32>
    %54 = vector.multi_reduction <add>, %53, %cst_60 [0] : vector<128x64xf32> to vector<64xf32>
    %55 = vector.shape_cast %54 : vector<64xf32> to vector<1x64xf32>
    %56 = arith.addf %50, %55 : vector<1x64xf32>
    %57 = vector.broadcast %43 : vector<1x64xf32> to vector<128x64xf32>
    %58 = arith.subf %23, %57 : vector<128x64xf32>
    %59 = arith.mulf %58, %58 : vector<128x64xf32>
    %cst_61 = arith.constant dense<0.000000e+00> : vector<64xf32>
    %60 = vector.multi_reduction <add>, %59, %cst_61 [0] : vector<128x64xf32> to vector<64xf32>
    %61 = vector.shape_cast %60 : vector<64xf32> to vector<1x64xf32>
    %62 = arith.addf %56, %61 : vector<1x64xf32>
    %63 = vector.broadcast %43 : vector<1x64xf32> to vector<128x64xf32>
    %64 = arith.subf %28, %63 : vector<128x64xf32>
    %65 = arith.mulf %64, %64 : vector<128x64xf32>
    %cst_62 = arith.constant dense<0.000000e+00> : vector<64xf32>
    %66 = vector.multi_reduction <add>, %65, %cst_62 [0] : vector<128x64xf32> to vector<64xf32>
    %67 = vector.shape_cast %66 : vector<64xf32> to vector<1x64xf32>
    %68 = arith.addf %62, %67 : vector<1x64xf32>
    %cst_63 = arith.constant 0.001953125 : f32
    %69 = vector.broadcast %cst_63 : f32 to vector<1x64xf32>
    %70 = arith.mulf %68, %69 : vector<1x64xf32>
    %c0_64 = arith.constant 0 : index
    %c0_65 = arith.constant 0 : index
    %71 = vector.load %arg3[%c0_64, %c0_65] : memref<1x64xf32, #tpu.memory_space<vmem>>, vector<1x64xf32>
    %cst_66 = arith.constant 9.99999974E-6 : f32
    %72 = vector.broadcast %cst_66 : f32 to vector<1x64xf32>
    %73 = arith.addf %70, %72 : vector<1x64xf32>
    %74 = math.rsqrt %73 : vector<1x64xf32>
    %75 = arith.mulf %71, %74 : vector<1x64xf32>
    %c0_67 = arith.constant 0 : index
    %c0_68 = arith.constant 0 : index
    %76 = vector.load %arg4[%c0_67, %c0_68] : memref<1x64xf32, #tpu.memory_space<vmem>>, vector<1x64xf32>
    %77 = arith.mulf %43, %75 : vector<1x64xf32>
    %78 = arith.subf %76, %77 : vector<1x64xf32>
    %79 = vector.broadcast %75 : vector<1x64xf32> to vector<128x64xf32>
    %80 = arith.mulf %13, %79 : vector<128x64xf32>
    %81 = vector.broadcast %78 : vector<1x64xf32> to vector<128x64xf32>
    %82 = arith.addf %80, %81 : vector<128x64xf32>
    %cst_69 = arith.constant 0.000000e+00 : f32
    %83 = vector.broadcast %cst_69 : f32 to vector<128x64xf32>
    %84 = arith.maximumf %82, %83 : vector<128x64xf32>
    %85 = vector.broadcast %75 : vector<1x64xf32> to vector<128x64xf32>
    %86 = arith.mulf %18, %85 : vector<128x64xf32>
    %87 = vector.broadcast %78 : vector<1x64xf32> to vector<128x64xf32>
    %88 = arith.addf %86, %87 : vector<128x64xf32>
    %cst_70 = arith.constant 0.000000e+00 : f32
    %89 = vector.broadcast %cst_70 : f32 to vector<128x64xf32>
    %90 = arith.maximumf %88, %89 : vector<128x64xf32>
    %91 = tpu.concatenate %84, %90 in 1 : vector<128x64xf32>, vector<128x64xf32> -> vector<128x128xf32>
    %92 = vector.shape_cast %91 : vector<128x128xf32> to vector<2x8x8x128xf32>
    %93 = arith.truncf %92 : vector<2x8x8x128xf32> to vector<2x8x8x128xbf16>
    %c0_71 = arith.constant 0 : index
    %c0_72 = arith.constant 0 : index
    %c0_73 = arith.constant 0 : index
    %c0_74 = arith.constant 0 : index
    %c0_75 = arith.constant 0 : index
    %94 = vector.load %arg5[%c0_71, %c0_72, %c0_73, %c0_74, %c0_75] : memref<2x8x2x8x128xbf16, #tpu.memory_space<vmem>>, vector<2x8x1x8x128xbf16>
    %95 = vector.shape_cast %94 : vector<2x8x1x8x128xbf16> to vector<2x8x8x128xbf16>
    %96 = vector.shape_cast %93 : vector<2x8x8x128xbf16> to vector<2x8x1x8x128xbf16>
    tpu.vector_store %arg5[%c0_71, %c0_72, %c0_73, %c0_74, %c0_75], %96 {strides = array<i32>} : memref<2x8x2x8x128xbf16, #tpu.memory_space<vmem>>, vector<2x8x1x8x128xbf16>,
    %97 = vector.broadcast %75 : vector<1x64xf32> to vector<128x64xf32>
    %98 = arith.mulf %23, %97 : vector<128x64xf32>
    %99 = vector.broadcast %78 : vector<1x64xf32> to vector<128x64xf32>
    %100 = arith.addf %98, %99 : vector<128x64xf32>
    %cst_76 = arith.constant 0.000000e+00 : f32
    %101 = vector.broadcast %cst_76 : f32 to vector<128x64xf32>
    %102 = arith.maximumf %100, %101 : vector<128x64xf32>
    %103 = vector.broadcast %75 : vector<1x64xf32> to vector<128x64xf32>
    %104 = arith.mulf %28, %103 : vector<128x64xf32>
    %105 = vector.broadcast %78 : vector<1x64xf32> to vector<128x64xf32>
    %106 = arith.addf %104, %105 : vector<128x64xf32>
    %cst_77 = arith.constant 0.000000e+00 : f32
    %107 = vector.broadcast %cst_77 : f32 to vector<128x64xf32>
    %108 = arith.maximumf %106, %107 : vector<128x64xf32>
    %109 = tpu.concatenate %102, %108 in 1 : vector<128x64xf32>, vector<128x64xf32> -> vector<128x128xf32>
    %110 = vector.shape_cast %109 : vector<128x128xf32> to vector<2x8x8x128xf32>
    %111 = arith.truncf %110 : vector<2x8x8x128xf32> to vector<2x8x8x128xbf16>
    %c0_78 = arith.constant 0 : index
    %c0_79 = arith.constant 0 : index
    %c1_80 = arith.constant 1 : index
    %c0_81 = arith.constant 0 : index
    %c0_82 = arith.constant 0 : index
    %112 = vector.load %arg5[%c0_78, %c0_79, %c1_80, %c0_81, %c0_82] : memref<2x8x2x8x128xbf16, #tpu.memory_space<vmem>>, vector<2x8x1x8x128xbf16>
    %113 = vector.shape_cast %112 : vector<2x8x1x8x128xbf16> to vector<2x8x8x128xbf16>
    %114 = vector.shape_cast %111 : vector<2x8x8x128xbf16> to vector<2x8x1x8x128xbf16>
    tpu.vector_store %arg5[%c0_78, %c0_79, %c1_80, %c0_81, %c0_82], %114 {strides = array<i32>} : memref<2x8x2x8x128xbf16, #tpu.memory_space<vmem>>, vector<2x8x1x8x128xbf16>,
    return
  }
  func.func @transform_0(%arg0: i32) -> (i32, i32, i32, i32) {
    %c0_i32 = arith.constant 0 : i32
    %c0_i32_0 = arith.constant 0 : i32
    %c0_i32_1 = arith.constant 0 : i32
    %c0_i32_2 = arith.constant 0 : i32
    %c0_i32_3 = arith.constant 0 : i32
    return %c0_i32, %c0_i32_0, %c0_i32_1, %c0_i32_2 : i32, i32, i32, i32
  }
  func.func @transform_1(%arg0: i32) -> (i32, i32, i32, i32) {
    %c0_i32 = arith.constant 0 : i32
    %c0_i32_0 = arith.constant 0 : i32
    %c0_i32_1 = arith.constant 0 : i32
    %c0_i32_2 = arith.constant 0 : i32
    %c0_i32_3 = arith.constant 0 : i32
    return %c0_i32, %c0_i32_0, %c0_i32_1, %c0_i32_2 : i32, i32, i32, i32
  }
  func.func @transform_2(%arg0: i32) -> (i32, i32) {
    %c0_i32 = arith.constant 0 : i32
    %c0_i32_0 = arith.constant 0 : i32
    %c0_i32_1 = arith.constant 0 : i32
    return %c0_i32, %c0_i32_0 : i32, i32
  }
  func.func @transform_3(%arg0: i32) -> (i32, i32) {
    %c0_i32 = arith.constant 0 : i32
    %c0_i32_0 = arith.constant 0 : i32
    %c0_i32_1 = arith.constant 0 : i32
    return %c0_i32, %c0_i32_0 : i32, i32
  }
  func.func @transform_4(%arg0: i32) -> (i32, i32, i32, i32, i32) {
    %c0_i32 = arith.constant 0 : i32
    %c0_i32_0 = arith.constant 0 : i32
    %c0_i32_1 = arith.constant 0 : i32
    %c0_i32_2 = arith.constant 0 : i32
    %c0_i32_3 = arith.constant 0 : i32
    %c0_i32_4 = arith.constant 0 : i32
    return %c0_i32, %c0_i32_0, %c0_i32_1, %c0_i32_2, %c0_i32_3 : i32, i32, i32, i32, i32
  }
}

module attributes {stable_mosaic.version = 11 : i64} {
  func.func @kernel(%arg0: i32, %arg1: memref<1x18x18x64xbf16, #tpu.memory_space<vmem>>, %arg2: memref<2x2x3x256xbf16, #tpu.memory_space<vmem>>, %arg3: memref<3x1xf32, #tpu.memory_space<vmem>>, %arg4: memref<1x2x2x3x256xf32, #tpu.memory_space<vmem>>) attributes {dimension_semantics = [#tpu.dimension_semantics<parallel>], iteration_bounds = array<i64: 2>, scalar_prefetch = 0 : i64, scratch_operands = 0 : i64, tpu.core_type = #tpu.core_type<tc>, window_params = [{transform_indices = @transform_0, window_bounds = array<i64: 1, 18, 18, 64>}, {pipeline_mode = #tpu.pipeline_mode<synchronous>, transform_indices = @transform_1, window_bounds = array<i64: 2, 2, 3, 256>}, {pipeline_mode = #tpu.pipeline_mode<synchronous>, transform_indices = @transform_2, window_bounds = array<i64: 3, 1>}, {transform_indices = @transform_3, window_bounds = array<i64: 1, 2, 2, 3, 256>}]} {
    %c0 = arith.constant 0 : index
    %c0_0 = arith.constant 0 : index
    %c0_1 = arith.constant 0 : index
    %c0_2 = arith.constant 0 : index
    %0 = vector.load %arg1[%c0, %c0_0, %c0_1, %c0_2] : memref<1x18x18x64xbf16, #tpu.memory_space<vmem>>, vector<1x16x16x64xbf16>
    %1 = vector.shape_cast %0 : vector<1x16x16x64xbf16> to vector<16x16x64xbf16>
    %c0_3 = arith.constant 0 : index
    %c0_4 = arith.constant 0 : index
    %c1 = arith.constant 1 : index
    %c0_5 = arith.constant 0 : index
    %2 = vector.load %arg1[%c0_3, %c0_4, %c1, %c0_5] : memref<1x18x18x64xbf16, #tpu.memory_space<vmem>>, vector<1x16x16x64xbf16>
    %3 = vector.shape_cast %2 : vector<1x16x16x64xbf16> to vector<16x16x64xbf16>
    %c0_6 = arith.constant 0 : index
    %c0_7 = arith.constant 0 : index
    %c2 = arith.constant 2 : index
    %c0_8 = arith.constant 0 : index
    %4 = vector.load %arg1[%c0_6, %c0_7, %c2, %c0_8] : memref<1x18x18x64xbf16, #tpu.memory_space<vmem>>, vector<1x16x16x64xbf16>
    %5 = vector.shape_cast %4 : vector<1x16x16x64xbf16> to vector<16x16x64xbf16>
    %c0_9 = arith.constant 0 : index
    %c1_10 = arith.constant 1 : index
    %c0_11 = arith.constant 0 : index
    %c0_12 = arith.constant 0 : index
    %6 = vector.load %arg1[%c0_9, %c1_10, %c0_11, %c0_12] : memref<1x18x18x64xbf16, #tpu.memory_space<vmem>>, vector<1x16x16x64xbf16>
    %7 = vector.shape_cast %6 : vector<1x16x16x64xbf16> to vector<16x16x64xbf16>
    %c0_13 = arith.constant 0 : index
    %c1_14 = arith.constant 1 : index
    %c1_15 = arith.constant 1 : index
    %c0_16 = arith.constant 0 : index
    %8 = vector.load %arg1[%c0_13, %c1_14, %c1_15, %c0_16] : memref<1x18x18x64xbf16, #tpu.memory_space<vmem>>, vector<1x16x16x64xbf16>
    %9 = vector.shape_cast %8 : vector<1x16x16x64xbf16> to vector<16x16x64xbf16>
    %c0_17 = arith.constant 0 : index
    %c1_18 = arith.constant 1 : index
    %c2_19 = arith.constant 2 : index
    %c0_20 = arith.constant 0 : index
    %10 = vector.load %arg1[%c0_17, %c1_18, %c2_19, %c0_20] : memref<1x18x18x64xbf16, #tpu.memory_space<vmem>>, vector<1x16x16x64xbf16>
    %11 = vector.shape_cast %10 : vector<1x16x16x64xbf16> to vector<16x16x64xbf16>
    %c0_21 = arith.constant 0 : index
    %c2_22 = arith.constant 2 : index
    %c0_23 = arith.constant 0 : index
    %c0_24 = arith.constant 0 : index
    %12 = vector.load %arg1[%c0_21, %c2_22, %c0_23, %c0_24] : memref<1x18x18x64xbf16, #tpu.memory_space<vmem>>, vector<1x16x16x64xbf16>
    %13 = vector.shape_cast %12 : vector<1x16x16x64xbf16> to vector<16x16x64xbf16>
    %c0_25 = arith.constant 0 : index
    %c2_26 = arith.constant 2 : index
    %c1_27 = arith.constant 1 : index
    %c0_28 = arith.constant 0 : index
    %14 = vector.load %arg1[%c0_25, %c2_26, %c1_27, %c0_28] : memref<1x18x18x64xbf16, #tpu.memory_space<vmem>>, vector<1x16x16x64xbf16>
    %15 = vector.shape_cast %14 : vector<1x16x16x64xbf16> to vector<16x16x64xbf16>
    %c0_29 = arith.constant 0 : index
    %c2_30 = arith.constant 2 : index
    %c2_31 = arith.constant 2 : index
    %c0_32 = arith.constant 0 : index
    %16 = vector.load %arg1[%c0_29, %c2_30, %c2_31, %c0_32] : memref<1x18x18x64xbf16, #tpu.memory_space<vmem>>, vector<1x16x16x64xbf16>
    %17 = vector.shape_cast %16 : vector<1x16x16x64xbf16> to vector<16x16x64xbf16>
    %c0_33 = arith.constant 0 : index
    %c0_34 = arith.constant 0 : index
    %18 = vector.load %arg3[%c0_33, %c0_34] : memref<3x1xf32, #tpu.memory_space<vmem>>, vector<3x1xf32>
    %19 = tpu.concatenate %1, %3, %7, %9 in 2 : vector<16x16x64xbf16>, vector<16x16x64xbf16>, vector<16x16x64xbf16>, vector<16x16x64xbf16> -> vector<16x16x256xbf16>
    %20 = vector.shape_cast %19 : vector<16x16x256xbf16> to vector<256x256xbf16>
    %c0_35 = arith.constant 0 : index
    %c0_36 = arith.constant 0 : index
    %c0_37 = arith.constant 0 : index
    %c0_38 = arith.constant 0 : index
    %21 = vector.load %arg2[%c0_35, %c0_36, %c0_37, %c0_38] : memref<2x2x3x256xbf16, #tpu.memory_space<vmem>>, vector<1x1x3x256xbf16>
    %22 = vector.shape_cast %21 : vector<1x1x3x256xbf16> to vector<3x256xbf16>
    %cst = arith.constant dense<0.000000e+00> : vector<3x256xf32>
    %23 = tpu.matmul %22, %20, %cst {dimension_numbers = #tpu.dot_dimension_numbers<[1], [1], [0], [0], [0, 0, 1, 0], [], []>} : vector<3x256xbf16>, vector<256x256xbf16>, vector<3x256xf32> -> vector<3x256xf32>
    %24 = vector.broadcast %18 : vector<3x1xf32> to vector<3x256xf32>
    %25 = arith.addf %23, %24 : vector<3x256xf32>
    %26 = arith.negf %25 : vector<3x256xf32>
    %27 = math.exp %26 : vector<3x256xf32>
    %cst_39 = arith.constant 1.000000e+00 : f32
    %28 = vector.broadcast %cst_39 : f32 to vector<3x256xf32>
    %29 = arith.addf %28, %27 : vector<3x256xf32>
    %30 = arith.divf %28, %29 : vector<3x256xf32>
    %c0_40 = arith.constant 0 : index
    %c0_41 = arith.constant 0 : index
    %c0_42 = arith.constant 0 : index
    %c0_43 = arith.constant 0 : index
    %c0_44 = arith.constant 0 : index
    %31 = vector.load %arg4[%c0_40, %c0_41, %c0_42, %c0_43, %c0_44] : memref<1x2x2x3x256xf32, #tpu.memory_space<vmem>>, vector<1x1x1x3x256xf32>
    %32 = vector.shape_cast %31 : vector<1x1x1x3x256xf32> to vector<3x256xf32>
    %33 = vector.shape_cast %30 : vector<3x256xf32> to vector<1x1x1x3x256xf32>
    tpu.vector_store %arg4[%c0_40, %c0_41, %c0_42, %c0_43, %c0_44], %33 {strides = array<i32>} : memref<1x2x2x3x256xf32, #tpu.memory_space<vmem>>, vector<1x1x1x3x256xf32>,
    %34 = tpu.concatenate %3, %5, %9, %11 in 2 : vector<16x16x64xbf16>, vector<16x16x64xbf16>, vector<16x16x64xbf16>, vector<16x16x64xbf16> -> vector<16x16x256xbf16>
    %35 = vector.shape_cast %34 : vector<16x16x256xbf16> to vector<256x256xbf16>
    %c0_45 = arith.constant 0 : index
    %c1_46 = arith.constant 1 : index
    %c0_47 = arith.constant 0 : index
    %c0_48 = arith.constant 0 : index
    %36 = vector.load %arg2[%c0_45, %c1_46, %c0_47, %c0_48] : memref<2x2x3x256xbf16, #tpu.memory_space<vmem>>, vector<1x1x3x256xbf16>
    %37 = vector.shape_cast %36 : vector<1x1x3x256xbf16> to vector<3x256xbf16>
    %cst_49 = arith.constant dense<0.000000e+00> : vector<3x256xf32>
    %38 = tpu.matmul %37, %35, %cst_49 {dimension_numbers = #tpu.dot_dimension_numbers<[1], [1], [0], [0], [0, 0, 1, 0], [], []>} : vector<3x256xbf16>, vector<256x256xbf16>, vector<3x256xf32> -> vector<3x256xf32>
    %39 = vector.broadcast %18 : vector<3x1xf32> to vector<3x256xf32>
    %40 = arith.addf %38, %39 : vector<3x256xf32>
    %41 = arith.negf %40 : vector<3x256xf32>
    %42 = math.exp %41 : vector<3x256xf32>
    %cst_50 = arith.constant 1.000000e+00 : f32
    %43 = vector.broadcast %cst_50 : f32 to vector<3x256xf32>
    %44 = arith.addf %43, %42 : vector<3x256xf32>
    %45 = arith.divf %43, %44 : vector<3x256xf32>
    %c0_51 = arith.constant 0 : index
    %c0_52 = arith.constant 0 : index
    %c1_53 = arith.constant 1 : index
    %c0_54 = arith.constant 0 : index
    %c0_55 = arith.constant 0 : index
    %46 = vector.load %arg4[%c0_51, %c0_52, %c1_53, %c0_54, %c0_55] : memref<1x2x2x3x256xf32, #tpu.memory_space<vmem>>, vector<1x1x1x3x256xf32>
    %47 = vector.shape_cast %46 : vector<1x1x1x3x256xf32> to vector<3x256xf32>
    %48 = vector.shape_cast %45 : vector<3x256xf32> to vector<1x1x1x3x256xf32>
    tpu.vector_store %arg4[%c0_51, %c0_52, %c1_53, %c0_54, %c0_55], %48 {strides = array<i32>} : memref<1x2x2x3x256xf32, #tpu.memory_space<vmem>>, vector<1x1x1x3x256xf32>,
    %49 = tpu.concatenate %7, %9, %13, %15 in 2 : vector<16x16x64xbf16>, vector<16x16x64xbf16>, vector<16x16x64xbf16>, vector<16x16x64xbf16> -> vector<16x16x256xbf16>
    %50 = vector.shape_cast %49 : vector<16x16x256xbf16> to vector<256x256xbf16>
    %c1_56 = arith.constant 1 : index
    %c0_57 = arith.constant 0 : index
    %c0_58 = arith.constant 0 : index
    %c0_59 = arith.constant 0 : index
    %51 = vector.load %arg2[%c1_56, %c0_57, %c0_58, %c0_59] : memref<2x2x3x256xbf16, #tpu.memory_space<vmem>>, vector<1x1x3x256xbf16>
    %52 = vector.shape_cast %51 : vector<1x1x3x256xbf16> to vector<3x256xbf16>
    %cst_60 = arith.constant dense<0.000000e+00> : vector<3x256xf32>
    %53 = tpu.matmul %52, %50, %cst_60 {dimension_numbers = #tpu.dot_dimension_numbers<[1], [1], [0], [0], [0, 0, 1, 0], [], []>} : vector<3x256xbf16>, vector<256x256xbf16>, vector<3x256xf32> -> vector<3x256xf32>
    %54 = vector.broadcast %18 : vector<3x1xf32> to vector<3x256xf32>
    %55 = arith.addf %53, %54 : vector<3x256xf32>
    %56 = arith.negf %55 : vector<3x256xf32>
    %57 = math.exp %56 : vector<3x256xf32>
    %cst_61 = arith.constant 1.000000e+00 : f32
    %58 = vector.broadcast %cst_61 : f32 to vector<3x256xf32>
    %59 = arith.addf %58, %57 : vector<3x256xf32>
    %60 = arith.divf %58, %59 : vector<3x256xf32>
    %c0_62 = arith.constant 0 : index
    %c1_63 = arith.constant 1 : index
    %c0_64 = arith.constant 0 : index
    %c0_65 = arith.constant 0 : index
    %c0_66 = arith.constant 0 : index
    %61 = vector.load %arg4[%c0_62, %c1_63, %c0_64, %c0_65, %c0_66] : memref<1x2x2x3x256xf32, #tpu.memory_space<vmem>>, vector<1x1x1x3x256xf32>
    %62 = vector.shape_cast %61 : vector<1x1x1x3x256xf32> to vector<3x256xf32>
    %63 = vector.shape_cast %60 : vector<3x256xf32> to vector<1x1x1x3x256xf32>
    tpu.vector_store %arg4[%c0_62, %c1_63, %c0_64, %c0_65, %c0_66], %63 {strides = array<i32>} : memref<1x2x2x3x256xf32, #tpu.memory_space<vmem>>, vector<1x1x1x3x256xf32>,
    %64 = tpu.concatenate %9, %11, %15, %17 in 2 : vector<16x16x64xbf16>, vector<16x16x64xbf16>, vector<16x16x64xbf16>, vector<16x16x64xbf16> -> vector<16x16x256xbf16>
    %65 = vector.shape_cast %64 : vector<16x16x256xbf16> to vector<256x256xbf16>
    %c1_67 = arith.constant 1 : index
    %c1_68 = arith.constant 1 : index
    %c0_69 = arith.constant 0 : index
    %c0_70 = arith.constant 0 : index
    %66 = vector.load %arg2[%c1_67, %c1_68, %c0_69, %c0_70] : memref<2x2x3x256xbf16, #tpu.memory_space<vmem>>, vector<1x1x3x256xbf16>
    %67 = vector.shape_cast %66 : vector<1x1x3x256xbf16> to vector<3x256xbf16>
    %cst_71 = arith.constant dense<0.000000e+00> : vector<3x256xf32>
    %68 = tpu.matmul %67, %65, %cst_71 {dimension_numbers = #tpu.dot_dimension_numbers<[1], [1], [0], [0], [0, 0, 1, 0], [], []>} : vector<3x256xbf16>, vector<256x256xbf16>, vector<3x256xf32> -> vector<3x256xf32>
    %69 = vector.broadcast %18 : vector<3x1xf32> to vector<3x256xf32>
    %70 = arith.addf %68, %69 : vector<3x256xf32>
    %71 = arith.negf %70 : vector<3x256xf32>
    %72 = math.exp %71 : vector<3x256xf32>
    %cst_72 = arith.constant 1.000000e+00 : f32
    %73 = vector.broadcast %cst_72 : f32 to vector<3x256xf32>
    %74 = arith.addf %73, %72 : vector<3x256xf32>
    %75 = arith.divf %73, %74 : vector<3x256xf32>
    %c0_73 = arith.constant 0 : index
    %c1_74 = arith.constant 1 : index
    %c1_75 = arith.constant 1 : index
    %c0_76 = arith.constant 0 : index
    %c0_77 = arith.constant 0 : index
    %76 = vector.load %arg4[%c0_73, %c1_74, %c1_75, %c0_76, %c0_77] : memref<1x2x2x3x256xf32, #tpu.memory_space<vmem>>, vector<1x1x1x3x256xf32>
    %77 = vector.shape_cast %76 : vector<1x1x1x3x256xf32> to vector<3x256xf32>
    %78 = vector.shape_cast %75 : vector<3x256xf32> to vector<1x1x1x3x256xf32>
    tpu.vector_store %arg4[%c0_73, %c1_74, %c1_75, %c0_76, %c0_77], %78 {strides = array<i32>} : memref<1x2x2x3x256xf32, #tpu.memory_space<vmem>>, vector<1x1x1x3x256xf32>,
    return
  }
  func.func @transform_0(%arg0: i32) -> (i32, i32, i32, i32) {
    %c0_i32 = arith.constant 0 : i32
    %c0_i32_0 = arith.constant 0 : i32
    %c0_i32_1 = arith.constant 0 : i32
    %c0_i32_2 = arith.constant 0 : i32
    return %arg0, %c0_i32, %c0_i32_0, %c0_i32_1 : i32, i32, i32, i32
  }
  func.func @transform_1(%arg0: i32) -> (i32, i32, i32, i32) {
    %c0_i32 = arith.constant 0 : i32
    %c0_i32_0 = arith.constant 0 : i32
    %c0_i32_1 = arith.constant 0 : i32
    %c0_i32_2 = arith.constant 0 : i32
    %c0_i32_3 = arith.constant 0 : i32
    return %c0_i32, %c0_i32_0, %c0_i32_1, %c0_i32_2 : i32, i32, i32, i32
  }
  func.func @transform_2(%arg0: i32) -> (i32, i32) {
    %c0_i32 = arith.constant 0 : i32
    %c0_i32_0 = arith.constant 0 : i32
    %c0_i32_1 = arith.constant 0 : i32
    return %c0_i32, %c0_i32_0 : i32, i32
  }
  func.func @transform_3(%arg0: i32) -> (i32, i32, i32, i32, i32) {
    %c0_i32 = arith.constant 0 : i32
    %c0_i32_0 = arith.constant 0 : i32
    %c0_i32_1 = arith.constant 0 : i32
    %c0_i32_2 = arith.constant 0 : i32
    %c0_i32_3 = arith.constant 0 : i32
    return %arg0, %c0_i32, %c0_i32_0, %c0_i32_1, %c0_i32_2 : i32, i32, i32, i32, i32
  }
}

</mosaic_0001>

<bundles_post_ra>
// kernel: vae_forward.6
= control target key start
LH: loop header
LB: loop body
LE: loop exit
PB: predicated region body
PF: predicated region fallthrough
CT: control target
= control target key end

     0   :  { %14 = vsyncpa [#allocation3], 0  ;;  %v394_v1 = vmov 0.0   ;;  %vm395_vm0 = vmmov 0   ;;  %s517_s0 = inlined_call_operand.vmem [shape: bf16[2,128], index: 0, kind: input, shape index: {}]   ;;  %s518_s1 = inlined_call_operand.vmem [shape: bf16[128,32], index: 1, kind: input, shape index: {}]   ;;  %s519_s2 = inlined_call_operand.vmem [shape: f32[1,32], index: 2, kind: input, shape index: {}]   ;;  %s520_s3 = inlined_call_operand.vmem [shape: f32[2,16], index: 3, kind: input, shape index: {}]   ;;  %s521_s4 = inlined_call_operand.vmem [shape: bf16[16,256], index: 4, kind: input, shape index: {}]   ;;  %s522_s5 = inlined_call_operand.vmem [shape: f32[1,256], index: 5, kind: input, shape index: {}]   ;;  %s523_s6 = inlined_call_operand.hbm [shape: f32[2,16], index: 6, kind: output, shape index: {0}]   ;;  %s524_s7 = inlined_call_operand.hbm [shape: f32[2,16], index: 7, kind: output, shape index: {1}]   ;;  %s525_s8 = inlined_call_operand.vmem [shape: bf16[2,256], index: 8, kind: output, shape index: {2}]  }
   0x1   :  { %v333_v0 = vld [vmem:[%s518_s1] sm:$0xff]   ;;  %306 = vmatprep.subr.bf16.mxu0 %v394_v1  ;;  %v334_v2 = vld [vmem:[%s518_s1 + $0x8] sm:$0xff]   ;;  %322 = vmatprep.mubr.msk.bf16.mxu0 %vm395_vm0, %v394_v1  ;;  %v335_v3 = vld [vmem:[%s518_s1 + $0x10] sm:$0xff]  }
   0x2   :  { %307 = vmatpush3.bf16.msra.mxu0 %v333_v0 }
   0x3   :  { %308 = vmatprep.subr.bf16.mxu0 %v394_v1 }
   0x6   :  { %309 = vmatpush3.bf16.msra.mxu0 %v334_v2 }
   0x7   :  { %310 = vmatprep.subr.bf16.mxu0 %v394_v1 }
   0x8   :  { %15 = vsyncpa [#allocation5], 0  ;;  %v336_v4 = vld [vmem:[%s518_s1 + $0x18] sm:$0xff]   ;;  %v337_v5 = vld [vmem:[%s518_s1 + $0x20] sm:$0xff]   ;;  %vm221_vm1 = vcmask 123904   ;;  %v396_v20 = vmov 0  }
   0x9   :  { %v338_v6 = vld [vmem:[%s518_s1 + $0x28] sm:$0xff]   ;;  %v339_v7 = vld [vmem:[%s518_s1 + $0x30] sm:$0xff]   ;;  %v340_v8 = vld [vmem:[%s518_s1 + $0x38] sm:$0xff]   ;;  %212 = vmatprep.mubr.bf16.mxu1 %v396_v20  ;;  %vm176_vm2 = vcmask 130048   ;;  %s399_s30 = smov [#allocation4]  }
   0xa   :  { %311 = vmatpush3.bf16.msra.mxu0 %v335_v3  ;;  %v29_v9 = vld [vmem:[%s517_s0] sm:$0x1]  ;;  %v341_v18 = vld [vmem:[%s521_s4 + $0x4] ss:$8 sps:$4 sm:$0xff]   ;;  %s267_s9 = sshll.u32 %s399_s30, 4  ;;  %s268_s9 = int_to_ptr.vmem [resolvable:$true] %s267_s9 }
   0xb   :  { %312 = vmatprep.subr.bf16.mxu0 %v394_v1  ;;  %v283_v10 = vld [vmem:[%s519_s2] ss:$0 sm:$0xff]  ;;  %180 = vmatprep.subr.bf16.mxu1 %v341_v18  ;;  %s397_s2 = smov 112  }
   0xc   :  { %v343_v19 = vld [vmem:[%s521_s4] ss:$8 sps:$4 sm:$0xff]   ;;  %s398_s4 = smov [#allocation2]  }
   0xd   :  { %181 = vmatpush1.bf16.msra.mxu1 %v343_v19  ;;  %v141_v22 = vld [vmem:[%s520_s3] sm:$0x3]  ;;  %s257_s29 = sshll.u32 %s398_s4, 4  ;;  %s258_s29 = int_to_ptr.vmem [resolvable:$true] %s257_s29 }
   0xe   :  { %313 = vmatpush3.bf16.msra.mxu0 %v336_v4  ;;  %s346_s10 = scalar_lea.vmem %s258_s29, 32  ;;  %p351_p1 = scmp.lt.s32.totalorder %s258_s29, %s258_s29 }
   0xf   :  { %314 = vmatprep.subr.bf16.mxu0 %v394_v1  ;;  %p347_p0 = scmp.ne.s32.totalorder %s258_s29, %s346_s10  ;;  %p352_p2 = scmp.lt.s32.totalorder %s346_s10, %s346_s10 }
  0x11   :  { %p353_p3 = por %p352_p2, %p351_p1 }
  0x12   :  { %315 = vmatpush3.bf16.msra.mxu0 %v337_v5 }
  0x13   :  { %316 = vmatprep.subr.bf16.mxu0 %v394_v1  ;;  %p354_p4 = pnand %p353_p3, %p347_p0 }
  0x16   :  { %317 = vmatpush3.bf16.msra.mxu0 %v338_v6 }
  0x17   :  { %318 = vmatprep.subr.bf16.mxu0 %v394_v1 }
  0x1a   :  { %319 = vmatpush3.bf16.msra.mxu0 %v339_v7 }
  0x1b   :  { %320 = vmatprep.subr.bf16.mxu0 %v394_v1 }
  0x1e   :  { %321 = vmatpush3.bf16.msra.mxu0 %v340_v8 }
  0x21   :  { %323 = vmatmul.mubr.bf16.vlgmr.msra.gmra.mrb[0].mxu0 %v29_v9 }
  0xf4   :  { %v135_v11 = vpop.f32.mrb[0].mxu0 }
  0xf5   :  { %v136_v12 = vadd.f32 %v283_v10, %v135_v11  ;;  %v324_v13 = vpop.f32.mrb[1].mxu0 }
  0xf6   :  { %v138_v14 = vpop.f32.mrb[2].mxu0 }
  0xf7   :  { %v142_v15 = vmul.f32 0.5, %v136_v12  ;;  %v325_v16 = vpop.f32.mrb[3].mxu0  ;;  %222 = vst.msk [vmem:[#allocation2] sm:$0x3] %vm221_vm1, %v136_v12 }
  0xf9   :  { %v143_v17 = vmul.f32 1.442695, %v142_v15 }
  0xfb   :  { %344 = vpow2.f32 %v143_v17 }
 0x105   :  { %v345_v21 = vpop.eup %344 }
 0x106   :  { %146 = vrot.lane.b32.xlu0 %v345_v21, %s397_s2 }
 0x10a   :  { %224 = vrot.lane.b32.xlu0 %v136_v12, %s397_s2 }
 0x178   :  { %v147_v23 = vpop.permute.xlu0 %146 }
 0x179   :  { %v149_v24 = vmul.f32 %v147_v23, %v141_v22 }
 0x17b   :  { %v150_v25 = vadd.f32 %v149_v24, %v136_v12 }
 0x17c   :  { %v225_v26 = vpop.permute.xlu0 %224 }
 0x17d   :  { %v151_v27 = vpack.c.bf16 %v150_v25, %v150_v25  ;;  %227 = vst.msk [vmem:[#allocation4] sm:$0x3] %vm221_vm1, %v225_v26 }
 0x17f   :  { %294 = vmatmul.mubr.msk.bf16.vlgmr.msra.gmra.mrb[0].mxu1 %vm176_vm2, %v151_v27 }
 0x180   :  { %357 = shalt.err (!%p354_p4)
}
 0x181   :  { %s358_s12 = scalar_lea.hbm %s523_s6, 32 }
 0x182   :  { %p359_p5 = scmp.ne.s32.totalorder %s523_s6, %s358_s12  ;;  %p362_p6 = scmp.lt.u32.totalorder %s358_s12, %s523_s6 }
 0x184   :  { %p364_p7 = pnand %p362_p6, %p359_p5 }
 0x186   :  { %367 = shalt.err (!%p364_p7)
}
 0x187   :  { %260 = dma.vmem_to_hbm [thread:$0]  %s258_s29, 32, %s523_s6, [#allocation3]  }
 0x188   :  { %s368_s19 = scalar_lea.vmem %s268_s9, 32  ;;  %p373_p9 = scmp.lt.s32.totalorder %s268_s9, %s268_s9 }
 0x189   :  { %p369_p8 = scmp.ne.s32.totalorder %s268_s9, %s368_s19  ;;  %p374_p10 = scmp.lt.s32.totalorder %s368_s19, %s368_s19 }
 0x18b   :  { %p375_p11 = por %p374_p10, %p373_p9 }
 0x18d   :  { %p376_p12 = pnand %p375_p11, %p369_p8 }
 0x18f   :  { %379 = shalt.err (!%p376_p12)
}
 0x190   :  { %s380_s22 = scalar_lea.hbm %s524_s7, 32 }
 0x191   :  { %p381_p13 = scmp.ne.s32.totalorder %s524_s7, %s380_s22  ;;  %p384_p0 = scmp.lt.u32.totalorder %s380_s22, %s524_s7 }
 0x193   :  { %p386_p1 = pnand %p384_p0, %p381_p13 }
 0x195   :  { %389 = shalt.err (!%p386_p1)
}
 0x196   :  { %270 = dma.vmem_to_hbm [thread:$0]  %s268_s9, 32, %s524_s7, [#allocation5]   ;;  %v156_v28 = vlaneseq  ;;  %v154_v31 = vld [vmem:[%s522_s5] sm:$0x3]  ;;  %v400_v33 = vmov 1966171168  }
 0x197   :  { %v236_v34 = vunpack.c.l.s4 %v400_v33 }
 0x198   :  { %v157_v29 = vshrl.u32 %v156_v28, 7 }
 0x199   :  { %v237_v38 = vunpack.c.0.s8 %v236_v34 }
 0x19a   :  { %v158_v30 = vsub.s32 0, %v157_v29  ;;  %v162_v32 = vsub.s32 1, %v157_v29 }
 0x19b   :  { %v240_v46 = vsub.s32 %v237_v38, %v157_v29 }
 0x19c   :  { %v159_v35 = vrot.slane %v154_v31, %v158_v30  ;;  %v163_v36 = vrot.slane %v154_v31, %v162_v32 }
 0x252   :  { %v214_v37 = vpop.f32.mrb[0].mxu1 }
 0x253   :  { %v215_v39 = vadd.f32 %v214_v37, %v159_v35  ;;  %v216_v40 = vpop.f32.mrb[1].mxu1 }
 0x254   :  { %v217_v41 = vadd.f32 %v216_v40, %v163_v36  ;;  %v218_v42 = vpop.f32.mrb[2].mxu1 }
 0x255   :  { %v228_v43 = vmax.f32 %v215_v39, 0.0  ;;  %v219_v44 = vpop.f32.mrb[3].mxu1 }
 0x256   :  { %v229_v45 = vmax.f32 %v217_v41, 0.0 }
 0x258   :  { %v295_v47 = vpack.c.bf16 %v229_v45, %v228_v43 }
 0x25a   :  { %v241_v48 = vrot.slane %v295_v47, %v240_v46 }
 0x25c   :  { %296 = vst.sshfl [vmem:[%s525_s8] sm:$0x5 pattern:$0x73625140] %v241_v48 }
 0x25d   :  { %390 = dma.done.wait [#allocation3], 32  }
 0x25e   :  { %391 = vsyncadd [#allocation3], 4294967264 }
 0x25f   :  { %392 = dma.done.wait [#allocation5], 32  }
 0x260   :  { %393 = vsyncadd [#allocation5], 4294967264 }
 0x261   :  { %281 = vsyncpa [#allocation3], 1 }
 0x262   :  { %282 = vsyncpa [#allocation5], 1 }

// kernel: vae_forward.7
= control target key start
LH: loop header
LB: loop body
LE: loop exit
PB: predicated region body
PF: predicated region fallthrough
CT: control target
= control target key end

     0   :  { %s2575_s27 = smov 16   ;;  %s2576_s14 = smov 32   ;;  %vm324_vm0 = vcmask 130048   ;;  %vm349_vm1 = vcmask 261120   ;;  %vm366_vm2 = vcmask 392192   ;;  %vm457_vm10 = vcmask 523264   ;;  %s3743_s0 = inlined_call_operand.vmem [shape: bf16[2,6,6,16], index: 0, kind: input, shape index: {}]   ;;  %s3744_s1 = inlined_call_operand.vmem [shape: bf16[2,2,64,32], index: 1, kind: input, shape index: {}]   ;;  %s3745_s2 = inlined_call_operand.vmem [shape: f32[1,32], index: 2, kind: input, shape index: {}]   ;;  %s3746_s3 = inlined_call_operand.vmem [shape: f32[1,32], index: 3, kind: input, shape index: {}]   ;;  %s3747_s4 = inlined_call_operand.vmem [shape: bf16[2,4,2,4,64], index: 4, kind: output, shape index: {}]  }
   0x1   :  { %v2477_v0 = vld [vmem:[%s3743_s0 + $0x8] ss:$0 sps:$4 sm:$0x66]   ;;  %v2478_v1 = vld [vmem:[%s3743_s0] ss:$0 sps:$4 sm:$0x66]  }
   0x2   :  { %v552_v2 = vshrl.u32 %v2477_v0, 16  ;;  %v554_v3 = vshll.u32 %v2477_v0, 16  ;;  %v538_v4 = vshrl.u32 %v2478_v1, 16  ;;  %v540_v5 = vshll.u32 %v2478_v1, 16  ;;  %v2242_v40 = vld [vmem:[%s3743_s0 + $0x8] sm:$0x7] }
   0x3   :  { %v2479_v6 = vld [vmem:[%s3743_s0 + $0xc] ss:$0 sps:$4 sm:$0x66]   ;;  %v2480_v8 = vld [vmem:[%s3743_s0 + $0x4] ss:$0 sps:$4 sm:$0x66]   ;;  %v2641_v42 = vcombine.low %v2242_v40, %v2242_v40 }
   0x4   :  { %v556_v7 = vrot.slane %v554_v3, 1  ;;  %v542_v9 = vrot.slane %v540_v5, 1  ;;  %v559_v10 = vshrl.u32 %v2479_v6, 16  ;;  %v561_v11 = vshll.u32 %v2479_v6, 16  ;;  %v2241_v41 = vld [vmem:[%s3743_s0 + $0x4] sm:$0x7] }
   0x5   :  { %v2481_v12 = vld [vmem:[%s3743_s0 + $0x1c] ss:$0 sps:$4 sm:$0x66]   ;;  %v545_v14 = vshrl.u32 %v2480_v8, 16  ;;  %v547_v15 = vshll.u32 %v2480_v8, 16  ;;  %v2644_v43 = vcombine.low %v2241_v41, %v2241_v41  ;;  %s2577_s19 = smov 48  }
   0x6   :  { %v557_v13 = vor.u32 %v556_v7, %v552_v2  ;;  %v543_v16 = vor.u32 %v542_v9, %v538_v4  ;;  %v563_v17 = vrot.slane %v561_v11, 1  ;;  %v573_v18 = vshrl.u32 %v2481_v12, 16  ;;  %v2482_v20 = vld [vmem:[%s3743_s0 + $0x18] ss:$0 sps:$4 sm:$0x66]  }
   0x7   :  { %v575_v19 = vshll.u32 %v2481_v12, 16  ;;  %v549_v21 = vrot.slane %v547_v15, 1  ;;  %v2483_v22 = vld [vmem:[%s3743_s0 + $0x24] ss:$0 sps:$4 sm:$0x66]   ;;  %v566_v25 = vshrl.u32 %v2482_v20, 16 }
   0x8   :  { %597 = vrot.lane.b32.xlu1 %v557_v13, %s2575_s27  ;;  %593 = vrot.lane.b32.xlu0 %v543_v16, %s2575_s27  ;;  %v564_v23 = vor.u32 %v563_v17, %v559_v10  ;;  %v568_v26 = vshll.u32 %v2482_v20, 16  ;;  %v2484_v27 = vld [vmem:[%s3743_s0 + $0x20] ss:$0 sps:$4 sm:$0x66]   ;;  %v589_v29 = vshll.u32 %v2483_v22, 16  ;;  %v587_v33 = vshrl.u32 %v2483_v22, 16 }
   0x9   :  { %v577_v24 = vrot.slane %v575_v19, 1  ;;  %v550_v28 = vor.u32 %v549_v21, %v545_v14  ;;  %v582_v31 = vshll.u32 %v2484_v27, 16  ;;  %v580_v36 = vshrl.u32 %v2484_v27, 16  ;;  %v2244_v44 = vld [vmem:[%s3743_s0 + $0x10] sm:$0x7] }
   0xa   :  { %v570_v30 = vrot.slane %v568_v26, 1  ;;  %v591_v34 = vrot.slane %v589_v29, 1  ;;  %v2243_v45 = vld [vmem:[%s3743_s0 + $0xc] sm:$0x7]  ;;  %v2654_v46 = vcombine.low %v2244_v44, %v2244_v44  ;;  %v2246_v49 = vld [vmem:[%s3743_s0 + $0x20] sm:$0x7] }
   0xb   :  { %v578_v32 = vor.u32 %v577_v24, %v573_v18  ;;  %v584_v37 = vrot.slane %v582_v31, 1  ;;  %v2493_v47 = vld [vmem:[%s3743_s0 + $0x8] ss:$0 sps:$4 sm:$0x66]   ;;  %v2661_v48 = vcombine.low %v2243_v45, %v2243_v45  ;;  %v2245_v51 = vld [vmem:[%s3743_s0 + $0x1c] sm:$0x7]  ;;  %v2677_v53 = vcombine.low %v2246_v49, %v2246_v49 }
   0xc   :  { %599 = vrot.lane.b32.xlu1 %v564_v23, %s2575_s27  ;;  %595 = vrot.lane.b32.xlu0 %v550_v28, %s2575_s27  ;;  %v571_v35 = vor.u32 %v570_v30, %v566_v25  ;;  %v592_v38 = vor.u32 %v591_v34, %v587_v33  ;;  %v2494_v50 = vld [vmem:[%s3743_s0 + $0x4] ss:$0 sps:$4 sm:$0x66]   ;;  %v2495_v52 = vld [vmem:[%s3743_s0 + $0x10] ss:$0 sps:$4 sm:$0x66]   ;;  %v2684_v56 = vcombine.low %v2245_v51, %v2245_v51 }
   0xd   :  { %v585_v39 = vor.u32 %v584_v37, %v580_v36  ;;  %v659_v54 = vshll.u32 %v2493_v47, 16  ;;  %v2496_v55 = vld [vmem:[%s3743_s0 + $0xc] ss:$0 sps:$4 sm:$0x66]   ;;  %v2248_v57 = vld [vmem:[%s3743_s0 + $0x28] sm:$0x7] }
   0xe   :  { %v652_v58 = vshll.u32 %v2494_v50, 16  ;;  %v2247_v59 = vld [vmem:[%s3743_s0 + $0x24] sm:$0x7]  ;;  %v673_v60 = vshll.u32 %v2495_v52, 16  ;;  %v2694_v61 = vcombine.low %v2248_v57, %v2248_v57  ;;  %v657_v62 = vshrl.u32 %v2493_v47, 16 }
   0xf   :  { %v661_v63 = vrot.slane %v659_v54, 1  ;;  %v666_v0 = vshll.u32 %v2496_v55, 16  ;;  %v2497_v1 = vld [vmem:[%s3743_s0 + $0x20] ss:$0 sps:$4 sm:$0x66]   ;;  %v2701_v2 = vcombine.low %v2247_v59, %v2247_v59  ;;  %v650_v3 = vshrl.u32 %v2494_v50, 16 }
  0x10   :  { %603 = vrot.lane.b32.xlu1 %v578_v32, %s2575_s27  ;;  %601 = vrot.lane.b32.xlu0 %v571_v35, %s2575_s27  ;;  %v654_v4 = vrot.slane %v652_v58, 1  ;;  %v2498_v5 = vld [vmem:[%s3743_s0 + $0x1c] ss:$0 sps:$4 sm:$0x66]   ;;  %v671_v6 = vshrl.u32 %v2495_v52, 16  ;;  %v675_v7 = vrot.slane %v673_v60, 1 }
  0x11   :  { %v2499_v8 = vld [vmem:[%s3743_s0 + $0x28] ss:$0 sps:$4 sm:$0x66]   ;;  %v2711_v9 = vor.u32 %v661_v63, %v657_v62  ;;  %v664_v10 = vshrl.u32 %v2496_v55, 16  ;;  %v668_v11 = vrot.slane %v666_v0, 1  ;;  %v687_v12 = vshll.u32 %v2497_v1, 16 }
  0x12   :  { %v2716_v13 = vld [vmem:[%s3743_s0 + $0x4] sm:$0x7]  ;;  %v2720_v14 = vor.u32 %v654_v4, %v650_v3  ;;  %v680_v15 = vshll.u32 %v2498_v5, 16  ;;  %v2728_v17 = vld [vmem:[%s3743_s0] sm:$0x7]  ;;  %v2730_v18 = vor.u32 %v675_v7, %v671_v6  ;;  %v701_v19 = vshll.u32 %v2499_v8, 16 }
  0x13   :  { %v2500_v16 = vld [vmem:[%s3743_s0 + $0x24] ss:$0 sps:$4 sm:$0x66]   ;;  %v685_v20 = vshrl.u32 %v2497_v1, 16  ;;  %v689_v21 = vrot.slane %v687_v12, 1  ;;  %v678_v22 = vshrl.u32 %v2498_v5, 16  ;;  %v2282_v23 = vcombine.low %v2716_v13, %v2716_v13 }
  0x14   :  { %607 = vrot.lane.b32.xlu1 %v592_v38, %s2575_s27  ;;  %605 = vrot.lane.b32.xlu0 %v585_v39, %s2575_s27  ;;  %v2738_v24 = vor.u32 %v668_v11, %v664_v10  ;;  %v682_v25 = vrot.slane %v680_v15, 1  ;;  %v694_v26 = vshll.u32 %v2500_v16, 16  ;;  %v2281_v27 = vcombine.low %v2728_v17, %v2728_v17  ;;  %v2745_v28 = vld [vmem:[%s3743_s0 + $0xc] sm:$0x7]  ;;  %v2750_v29 = vld [vmem:[%s3743_s0 + $0x8] sm:$0x7] }
  0x15   :  { %v699_v30 = vshrl.u32 %v2499_v8, 16  ;;  %v703_v31 = vrot.slane %v701_v19, 1  ;;  %v2754_v32 = vor.u32 %v689_v21, %v685_v20  ;;  %v692_v33 = vshrl.u32 %v2500_v16, 16  ;;  %v2767_v40 = vld [vmem:[%s3743_s0 + $0x1c] sm:$0x7]  ;;  %v2535_v21 = vld [vmem:[%s3744_s1 + $0x20] sm:$0xff]  }
  0x16   :  { %v126_v34 = vshll.u32 %v2282_v23, 16  ;;  %v2284_v35 = vcombine.low %v2745_v28, %v2745_v28  ;;  %v2760_v36 = vor.u32 %v682_v25, %v678_v22  ;;  %v696_v37 = vrot.slane %v694_v26, 1  ;;  %v2772_v41 = vld [vmem:[%s3743_s0 + $0x18] sm:$0x7]  ;;  %v2789_v58 = vld [vmem:[%s3743_s0 + $0x24] sm:$0x7]  ;;  %2437 = vmatprep.subr.bf16.mxu1 %v2535_v21 }
  0x17   :  { %v119_v38 = vshll.u32 %v2281_v27, 16  ;;  %v2283_v39 = vcombine.low %v2750_v29, %v2750_v29  ;;  %v2774_v44 = vor.u32 %v703_v31, %v699_v30  ;;  %v124_v45 = vshrl.u32 %v2282_v23, 16  ;;  %v2794_v59 = vld [vmem:[%s3743_s0 + $0x20] sm:$0x7]  ;;  %v2538_v22 = vld [vmem:[%s3744_s1 + $0x28] sm:$0xff]   ;;  %2438 = vmatpush3.bf16.msra.mxu1 %v2535_v21 }
  0x18   :  { %611 = vrot.lane.b32.xlu1 %v2641_v42, %s2576_s14  ;;  %609 = vrot.lane.b32.xlu0 %v2644_v43, %s2576_s14  ;;  %v128_v47 = vrot.slane %v126_v34, 1  ;;  %v117_v49 = vshrl.u32 %v2281_v27, 16  ;;  %v140_v50 = vshll.u32 %v2284_v35, 16  ;;  %v2286_v51 = vcombine.low %v2767_v40, %v2767_v40 }
  0x19   :  { %v2782_v52 = vor.u32 %v696_v37, %v692_v33  ;;  %v121_v54 = vrot.slane %v119_v38, 1  ;;  %v133_v55 = vshll.u32 %v2283_v39, 16  ;;  %v2285_v57 = vcombine.low %v2772_v41, %v2772_v41  ;;  %2439 = vmatprep.subr.bf16.mxu1 %v2538_v22  ;;  %v2541_v33 = vld [vmem:[%s3744_s1 + $0x30] sm:$0xff]   ;;  %v2234_v37 = vld [vmem:[%s3743_s0 + $0x8] sm:$0x3]  ;;  %v2544_v38 = vld [vmem:[%s3744_s1 + $0x38] sm:$0xff]  }
  0x1a   :  { %v138_v60 = vshrl.u32 %v2284_v35, 16  ;;  %v131_v62 = vshrl.u32 %v2283_v39, 16  ;;  %v129_v63 = vor.u32 %v128_v47, %v124_v45  ;;  %v142_v0 = vrot.slane %v140_v50, 1  ;;  %v2233_v39 = vld [vmem:[%s3743_s0 + $0x4] sm:$0x3] }
  0x1b   :  { %v154_v1 = vshll.u32 %v2286_v51, 16  ;;  %v2288_v3 = vcombine.low %v2789_v58, %v2789_v58  ;;  %v122_v4 = vor.u32 %v121_v54, %v117_v49  ;;  %v135_v5 = vrot.slane %v133_v55, 1  ;;  %2440 = vmatpush3.bf16.msra.mxu1 %v2538_v22  ;;  %v2236_v49 = vld [vmem:[%s3743_s0 + $0x10] sm:$0x3]  ;;  %v2235_v50 = vld [vmem:[%s3743_s0 + $0xc] sm:$0x3] }
  0x1c   :  { %615 = vrot.lane.b32.xlu1 %v2654_v46, %s2576_s14  ;;  %613 = vrot.lane.b32.xlu0 %v2661_v48, %s2576_s14  ;;  %v147_v6 = vshll.u32 %v2285_v57, 16  ;;  %v2287_v7 = vcombine.low %v2794_v59, %v2794_v59  ;;  %v143_v8 = vor.u32 %v142_v0, %v138_v60  ;;  %v152_v10 = vshrl.u32 %v2286_v51, 16  ;;  %v2237_v60 = vld [vmem:[%s3743_s0 + $0x1c] sm:$0x3] }
  0x1d   :  { %v156_v11 = vrot.slane %v154_v1, 1  ;;  %v168_v12 = vshll.u32 %v2288_v3, 16  ;;  %v136_v15 = vor.u32 %v135_v5, %v131_v62  ;;  %v145_v16 = vshrl.u32 %v2285_v57, 16  ;;  %2441 = vmatprep.subr.bf16.mxu1 %v2541_v33  ;;  %v2238_v57 = vld [vmem:[%s3743_s0 + $0x20] sm:$0x3] }
  0x1e   :  { %v149_v19 = vrot.slane %v147_v6, 1  ;;  %v161_v20 = vshll.u32 %v2287_v7, 16  ;;  %v166_v25 = vshrl.u32 %v2288_v3, 16  ;;  %v159_v30 = vshrl.u32 %v2287_v7, 16  ;;  %v2239_v5 = vld [vmem:[%s3743_s0 + $0x24] sm:$0x3] }
  0x1f   :  { %v157_v23 = vor.u32 %v156_v11, %v152_v10  ;;  %v170_v26 = vrot.slane %v168_v12, 1  ;;  %v2290_v45 = vcombine.low %v2234_v37, %v2234_v37  ;;  %2442 = vmatpush3.bf16.msra.mxu1 %v2541_v33  ;;  %v2289_v47 = vcombine.low %v2233_v39, %v2233_v39 }
  0x20   :  { %619 = vrot.lane.b32.xlu1 %v2677_v53, %s2576_s14  ;;  %617 = vrot.lane.b32.xlu0 %v2684_v56, %s2576_s14  ;;  %v150_v27 = vor.u32 %v149_v19, %v145_v16  ;;  %v163_v31 = vrot.slane %v161_v20, 1  ;;  %v262_v51 = vshll.u32 %v2641_v42, 16  ;;  %v2292_v54 = vcombine.low %v2236_v49, %v2236_v49  ;;  %v2546_v19 = vld [vmem:[%s3744_s1 + $0x8] sm:$0xff]  }
  0x21   :  { %v171_v34 = vor.u32 %v170_v26, %v166_v25  ;;  %2443 = vmatprep.subr.bf16.mxu1 %v2544_v38  ;;  %v2291_v55 = vcombine.low %v2235_v50, %v2235_v50  ;;  %v260_v62 = vshrl.u32 %v2641_v42, 16  ;;  %v253_v0 = vshrl.u32 %v2644_v43, 16  ;;  %v2547_v25 = vld [vmem:[%s3744_s1 + $0x10] sm:$0xff]   ;;  %v2974_v50 = vld [vmem:[%s3743_s0 + $0x20] ss:$0 sps:$4 sm:$0x77]  }
  0x22   :  { %v164_v35 = vor.u32 %v163_v31, %v159_v30  ;;  %v255_v1 = vshll.u32 %v2644_v43, 16  ;;  %v2294_v3 = vcombine.low %v2238_v57, %v2238_v57  ;;  %v2293_v6 = vcombine.low %v2237_v60, %v2237_v60  ;;  %v2545_v43 = vld [vmem:[%s3744_s1] sm:$0xff]   ;;  %v2528_v57 = vld [vmem:[%s3743_s0 + $0x10] ss:$0 sps:$4 sm:$0x66]  }
  0x23   :  { %2444 = vmatpush3.bf16.msra.mxu1 %v2544_v38  ;;  %v276_v42 = vshll.u32 %v2654_v46, 16  ;;  %v274_v7 = vshrl.u32 %v2654_v46, 16  ;;  %v290_v11 = vshll.u32 %v2677_v53, 16  ;;  %2425 = vmatprep.subr.bf16.mxu0 %v2545_v43  ;;  %v267_v21 = vshrl.u32 %v2661_v48, 16 }
  0x24   :  { %623 = vrot.lane.b32.xlu1 %v2694_v61, %s2576_s14  ;;  %621 = vrot.lane.b32.xlu0 %v2701_v2, %s2576_s14  ;;  %v257_v10 = vrot.slane %v255_v1, 1  ;;  %v304_v31 = vshll.u32 %v2694_v61, 16  ;;  %v281_v33 = vshrl.u32 %v2684_v56, 16  ;;  %vm849_vm3 = vsmask.f32 1280 }
  0x25   :  { %2426 = vmatpush3.bf16.msra.mxu0 %v2545_v43  ;;  %v278_v16 = vrot.slane %v276_v42, 1  ;;  %v292_v30 = vrot.slane %v290_v11, 1  ;;  %v1501_v43 = vshll.u32 %v2528_v57, 16  ;;  %vm850_vm4 = vsmask.f32 3336 }
  0x26   :  { %2427 = vmatprep.subr.bf16.mxu0 %v2546_v19  ;;  %v2872_v20 = vor.u32 %v257_v10, %v253_v0  ;;  %v306_v38 = vrot.slane %v304_v31, 1  ;;  %v2998_v0 = vld [vmem:[%s3743_s0 + $0x28] ss:$0 sps:$4 sm:$0x77]   ;;  %vm852_vm5 = vsmask.f32 5392  ;;  %vm3158_vm7 = vmor %vm849_vm3, %vm850_vm4 }
  0x27   :  { %v2881_v26 = vor.u32 %v278_v16, %v274_v7  ;;  %v2530_v7 = vld [vmem:[%s3743_s0 + $0x20] ss:$0 sps:$4 sm:$0x66]   ;;  %vm854_vm6 = vsmask.f32 7448  ;;  %vm3175_vm8 = vmor %vm3158_vm7, %vm852_vm5  ;;  %vm2147_vm11 = vcmask 517120  }
  0x28   :  { %707 = vrot.lane.b32.xlu1 %v2711_v9, %s2577_s19  ;;  %705 = vrot.lane.b32.xlu0 %v2720_v14, %s2577_s19  ;;  %vm3193_vm9 = vmor %vm3175_vm8, %vm854_vm6 }
  0x29   :  { %2428 = vmatpush3.bf16.msra.mxu0 %v2546_v19  ;;  %v2531_v19 = vld [vmem:[%s3743_s0 + $0x2c] ss:$0 sps:$4 sm:$0x66]  }
  0x2a   :  { %2429 = vmatprep.subr.bf16.mxu0 %v2547_v25 }
  0x2c   :  { %711 = vrot.lane.b32.xlu1 %v2730_v18, %s2577_s19  ;;  %709 = vrot.lane.b32.xlu0 %v2738_v24, %s2577_s19 }
  0x2d   :  { %2430 = vmatpush3.bf16.msra.mxu0 %v2547_v25  ;;  %v1515_v25 = vshll.u32 %v2530_v7, 16 }
  0x30   :  { %715 = vrot.lane.b32.xlu1 %v2754_v32, %s2577_s19  ;;  %713 = vrot.lane.b32.xlu0 %v2760_v36, %s2577_s19 }
  0x34   :  { %719 = vrot.lane.b32.xlu1 %v2774_v44, %s2577_s19  ;;  %717 = vrot.lane.b32.xlu0 %v2782_v52, %s2577_s19 }
  0x38   :  { %174 = vrot.lane.b32.xlu1 %v129_v63, %s2575_s27  ;;  %172 = vrot.lane.b32.xlu0 %v122_v4, %s2575_s27  ;;  %v264_v63 = vrot.slane %v262_v51, 1  ;;  %v2240_v4 = vld [vmem:[%s3743_s0 + $0x28] sm:$0x3] }
  0x39   :  { %v2296_v12 = vcombine.low %v2240_v4, %v2240_v4 }
  0x3a   :  { %v2869_v46 = vor.u32 %v264_v63, %v260_v62  ;;  %v2993_v63 = vld [vmem:[%s3743_s0 + $0x2c] ss:$0 sps:$4 sm:$0x77]  }
  0x3c   :  { %178 = vrot.lane.b32.xlu1 %v143_v8, %s2575_s27  ;;  %176 = vrot.lane.b32.xlu0 %v136_v15, %s2575_s27  ;;  %v269_v8 = vshll.u32 %v2661_v48, 16  ;;  %v2295_v15 = vcombine.low %v2239_v5, %v2239_v5  ;;  %v2529_v5 = vld [vmem:[%s3743_s0 + $0x24] ss:$0 sps:$4 sm:$0x66]  }
  0x3d   :  { %v1522_v16 = vshll.u32 %v2529_v5, 16 }
  0x3e   :  { %v271_v22 = vrot.slane %v269_v8, 1 }
  0x40   :  { %182 = vrot.lane.b32.xlu1 %v157_v23, %s2575_s27  ;;  %180 = vrot.lane.b32.xlu0 %v150_v27, %s2575_s27  ;;  %v283_v23 = vshll.u32 %v2684_v56, 16  ;;  %v288_v27 = vshrl.u32 %v2677_v53, 16  ;;  %v2887_v48 = vor.u32 %v271_v22, %v267_v21  ;;  %v302_v53 = vshrl.u32 %v2694_v61, 16 }
  0x41   :  { %v295_v56 = vshrl.u32 %v2701_v2, 16  ;;  %v1499_v22 = vshrl.u32 %v2528_v57, 16 }
  0x42   :  { %v2893_v37 = vor.u32 %v292_v30, %v288_v27  ;;  %v2906_v49 = vor.u32 %v306_v38, %v302_v53  ;;  %v2532_v27 = vld [vmem:[%s3743_s0 + $0x28] ss:$0 sps:$4 sm:$0x66]   ;;  %v1536_v53 = vshll.u32 %v2531_v19, 16 }
  0x44   :  { %186 = vrot.lane.b32.xlu1 %v171_v34, %s2575_s27  ;;  %184 = vrot.lane.b32.xlu0 %v164_v35, %s2575_s27  ;;  %v285_v34 = vrot.slane %v283_v23, 1  ;;  %v297_v35 = vshll.u32 %v2701_v2, 16  ;;  %v2933_v2 = vld [vmem:[%s3743_s0 + $0xc] ss:$0 sps:$4 sm:$0x77]   ;;  %v1503_v23 = vrot.slane %v1501_v43, 1 }
  0x46   :  { %v2898_v39 = vor.u32 %v285_v34, %v281_v33  ;;  %v1520_v34 = vshrl.u32 %v2529_v5, 16  ;;  %v1504_v38 = vor.u32 %v1503_v23, %v1499_v22  ;;  %v1178_v23 = vshrl.u32 %v2933_v2, 16 }
  0x48   :  { %214 = vrot.lane.b32.xlu1 %v2290_v45, %s2576_s14  ;;  %212 = vrot.lane.b32.xlu0 %v2289_v47, %s2576_s14  ;;  %v299_v45 = vrot.slane %v297_v35, 1  ;;  %v2548_v47 = vld [vmem:[%s3744_s1 + $0x18] sm:$0xff]   ;;  %v1524_v35 = vrot.slane %v1522_v16, 1 }
  0x49   :  { %2431 = vmatprep.subr.bf16.mxu0 %v2548_v47 }
  0x4a   :  { %2432 = vmatpush3.bf16.msra.mxu0 %v2548_v47  ;;  %v2910_v61 = vor.u32 %v299_v45, %v295_v56  ;;  %v1513_v56 = vshrl.u32 %v2530_v7, 16  ;;  %v1517_v45 = vrot.slane %v1515_v25, 1  ;;  %v1529_v47 = vshll.u32 %v2532_v27, 16 }
  0x4b   :  { %v404_v7 = vlaneseq }
  0x4c   :  { %218 = vrot.lane.b32.xlu1 %v2292_v54, %s2576_s14  ;;  %216 = vrot.lane.b32.xlu0 %v2291_v55, %s2576_s14  ;;  %v2527_v54 = vld [vmem:[%s3743_s0 + $0x14] ss:$0 sps:$4 sm:$0x66]   ;;  %v1518_v57 = vor.u32 %v1517_v45, %v1513_v56 }
  0x4d   :  { %v1508_v4 = vshll.u32 %v2527_v54, 16  ;;  %v3041_v22 = vshrl.u32 %v404_v7, 7 }
  0x50   :  { %222 = vrot.lane.b32.xlu1 %v2294_v3, %s2576_s14  ;;  %220 = vrot.lane.b32.xlu0 %v2293_v6, %s2576_s14 }
  0x54   :  { %226 = vrot.lane.b32.xlu1 %v2296_v12, %s2576_s14  ;;  %224 = vrot.lane.b32.xlu0 %v2295_v15, %s2576_s14  ;;  %v1506_v12 = vshrl.u32 %v2527_v54, 16  ;;  %v1510_v15 = vrot.slane %v1508_v4, 1  ;;  %v1534_v54 = vshrl.u32 %v2531_v19, 16 }
  0x56   :  { %v1511_v33 = vor.u32 %v1510_v15, %v1506_v12 }
  0x58   :  { %310 = vrot.lane.b32.xlu1 %v2869_v46, %s2577_s19  ;;  %308 = vrot.lane.b32.xlu0 %v2872_v20, %s2577_s19 }
  0x5c   :  { %314 = vrot.lane.b32.xlu1 %v2881_v26, %s2577_s19  ;;  %312 = vrot.lane.b32.xlu0 %v2887_v48, %s2577_s19 }
  0x60   :  { %318 = vrot.lane.b32.xlu1 %v2893_v37, %s2577_s19  ;;  %316 = vrot.lane.b32.xlu0 %v2898_v39, %s2577_s19 }
  0x64   :  { %322 = vrot.lane.b32.xlu1 %v2906_v49, %s2577_s19  ;;  %320 = vrot.lane.b32.xlu0 %v2910_v61, %s2577_s19 }
  0x68   :  { %1430 = vrot.lane.b32.xlu1 %v2711_v9, %s2575_s27  ;;  %1428 = vrot.lane.b32.xlu0 %v2720_v14, %s2575_s27  ;;  %v2940_v9 = vld [vmem:[%s3743_s0 + $0x8] ss:$0 sps:$4 sm:$0x77]   ;;  %v2947_v14 = vld [vmem:[%s3743_s0 + $0x14] ss:$0 sps:$4 sm:$0x77]  }
  0x69   :  { %v1173_v19 = vshll.u32 %v2940_v9, 16  ;;  %v1192_v45 = vshrl.u32 %v2947_v14, 16 }
  0x6c   :  { %1434 = vrot.lane.b32.xlu1 %v2730_v18, %s2575_s27  ;;  %1432 = vrot.lane.b32.xlu0 %v2738_v24, %s2575_s27  ;;  %v2525_v18 = vld [vmem:[%s3743_s0 + $0xc] ss:$0 sps:$4 sm:$0x66]   ;;  %v2957_v24 = vld [vmem:[%s3743_s0 + $0x10] ss:$0 sps:$4 sm:$0x77]  }
  0x6d   :  { %v1494_v51 = vshll.u32 %v2525_v18, 16  ;;  %v1492_v1 = vshrl.u32 %v2525_v18, 16 }
  0x6f   :  { %v1496_v3 = vrot.slane %v1494_v51, 1  ;;  %v1525_v51 = vor.u32 %v1524_v35, %v1520_v34  ;;  %v1171_v35 = vshrl.u32 %v2940_v9, 16 }
  0x70   :  { %1438 = vrot.lane.b32.xlu1 %v2754_v32, %s2575_s27  ;;  %1436 = vrot.lane.b32.xlu0 %v2760_v36, %s2575_s27  ;;  %v2526_v32 = vld [vmem:[%s3743_s0 + $0x8] ss:$0 sps:$4 sm:$0x66]  }
  0x71   :  { %v1487_v55 = vshll.u32 %v2526_v32, 16  ;;  %v1485_v6 = vshrl.u32 %v2526_v32, 16  ;;  %v1497_v11 = vor.u32 %v1496_v3, %v1492_v1  ;;  %v1527_v1 = vshrl.u32 %v2532_v27, 16  ;;  %v3047_v27 = vld [vmem:[%s3744_s1 + $0x60] sm:$0xff]  }
  0x72   :  { %v1531_v3 = vrot.slane %v1529_v47, 1  ;;  %2461 = vmatprep.subr.bf16.mxu1 %v3047_v27  ;;  %v1185_v47 = vshrl.u32 %v2957_v24, 16 }
  0x73   :  { %v1489_v42 = vrot.slane %v1487_v55, 1  ;;  %v1538_v55 = vrot.slane %v1536_v53, 1  ;;  %v1175_v53 = vrot.slane %v1173_v19, 1 }
  0x74   :  { %1442 = vrot.lane.b32.xlu1 %v2774_v44, %s2575_s27  ;;  %1440 = vrot.lane.b32.xlu0 %v2782_v52, %s2575_s27  ;;  %v2969_v52 = vld [vmem:[%s3743_s0 + $0x24] ss:$0 sps:$4 sm:$0x77]   ;;  %v1532_v12 = vor.u32 %v1531_v3, %v1527_v1  ;;  %v1199_v3 = vshrl.u32 %v2974_v50, 16 }
  0x75   :  { %v1490_v21 = vor.u32 %v1489_v42, %v1485_v6  ;;  %v1539_v6 = vor.u32 %v1538_v55, %v1534_v54  ;;  %v2578_v42 = vmov 1983009808   ;;  %v1208_v54 = vshll.u32 %v2969_v52, 16 }
  0x76   :  { %v402_v43 = vunpack.c.l.s4 %v2578_v42  ;;  %v3080_v42 = vor.u32 %v1175_v53, %v1171_v35 }
  0x78   :  { %1446 = vrot.lane.b32.xlu1 %v2933_v2, %s2576_s14  ;;  %1444 = vrot.lane.b32.xlu0 %v2940_v9, %s2576_s14  ;;  %v1187_v9 = vshll.u32 %v2957_v24, 16 }
  0x7a   :  { %v2962_v36 = vpop.permute.xlu1 %597  ;;  %v2964_v44 = vpop.permute.xlu0 %593 }
  0x7b   :  { %v723_v55 = vsel %vm324_vm0, %v2728_v17, %v2964_v44  ;;  %v729_v17 = vsel %vm324_vm0, %v2750_v29, %v2962_v36 }
  0x7c   :  { %1450 = vrot.lane.b32.xlu1 %v2947_v14, %s2576_s14  ;;  %1448 = vrot.lane.b32.xlu0 %v2957_v24, %s2576_s14 }
  0x7e   :  { %v2986_v60 = vpop.permute.xlu1 %599  ;;  %v2988_v62 = vpop.permute.xlu0 %595 }
  0x7f   :  { %v732_v44 = vsel %vm324_vm0, %v2745_v28, %v2986_v60 }
  0x80   :  { %1454 = vrot.lane.b32.xlu1 %v2969_v52, %s2576_s14  ;;  %1452 = vrot.lane.b32.xlu0 %v2974_v50, %s2576_s14 }
  0x82   :  { %v3010_v8 = vpop.permute.xlu1 %603  ;;  %v3012_v10 = vpop.permute.xlu0 %601 }
  0x84   :  { %1458 = vrot.lane.b32.xlu1 %v2993_v63, %s2576_s14  ;;  %1456 = vrot.lane.b32.xlu0 %v2998_v0, %s2576_s14 }
  0x86   :  { %v3024_v30 = vpop.permute.xlu1 %607  ;;  %v3026_v31 = vpop.permute.xlu0 %605 }
  0x87   :  { %v741_v35 = vsel %vm324_vm0, %v2794_v59, %v3026_v31 }
  0x88   :  { %1542 = vrot.lane.b32.xlu1 %v1497_v11, %s2577_s19  ;;  %1540 = vrot.lane.b32.xlu0 %v1490_v21, %s2577_s19  ;;  %v1180_v11 = vshll.u32 %v2933_v2, 16  ;;  %v403_v21 = vunpack.c.0.s8 %v402_v43  ;;  %v1194_v2 = vshll.u32 %v2947_v14, 16 }
  0x8a   :  { %v612_v18 = vpop.permute.xlu1 %611  ;;  %v610_v32 = vpop.permute.xlu0 %609  ;;  %v1182_v25 = vrot.slane %v1180_v11, 1  ;;  %v3082_v43 = vrot.slane %v1194_v2, 1  ;;  %v735_v11 = vsel %vm324_vm0, %v2772_v41, %v3012_v10 }
  0x8c   :  { %1546 = vrot.lane.b32.xlu1 %v1511_v33, %s2577_s19  ;;  %1544 = vrot.lane.b32.xlu0 %v1504_v38, %s2577_s19  ;;  %v3058_v38 = vsub.s32 %v403_v21, %v3041_v22  ;;  %v3060_v56 = vor.u32 %v1182_v25, %v1178_v23 }
  0x8e   :  { %v616_v4 = vpop.permute.xlu1 %615  ;;  %v614_v5 = vpop.permute.xlu0 %613 }
  0x8f   :  { %v752_v29 = vsel %vm349_vm1, %v732_v44, %v616_v4  ;;  %v750_v28 = vsel %vm349_vm1, %v729_v17, %v614_v5  ;;  %v744_v5 = vsel %vm324_vm0, %v2789_v58, %v3024_v30 }
  0x90   :  { %1550 = vrot.lane.b32.xlu1 %v1525_v51, %s2577_s19  ;;  %1548 = vrot.lane.b32.xlu0 %v1518_v57, %s2577_s19  ;;  %v726_v51 = vsel %vm324_vm0, %v2716_v13, %v2988_v62  ;;  %v1201_v13 = vshll.u32 %v2974_v50, 16  ;;  %v746_v62 = vsel %vm349_vm1, %v723_v55, %v610_v32  ;;  %v738_v32 = vsel %vm324_vm0, %v2767_v40, %v3010_v8 }
  0x91   :  { %v748_v57 = vsel %vm349_vm1, %v726_v51, %v612_v18 }
  0x92   :  { %v3035_v15 = vpop.permute.xlu1 %619  ;;  %v3037_v16 = vpop.permute.xlu0 %617 }
  0x93   :  { %v756_v53 = vsel %vm349_vm1, %v738_v32, %v3035_v15 }
  0x94   :  { %1554 = vrot.lane.b32.xlu1 %v1539_v6, %s2577_s19  ;;  %1552 = vrot.lane.b32.xlu0 %v1532_v12, %s2577_s19 }
  0x96   :  { %v624_v33 = vpop.permute.xlu1 %623  ;;  %v3051_v34 = vpop.permute.xlu0 %621 }
  0x97   :  { %v760_v51 = vsel %vm349_vm1, %v744_v5, %v624_v33  ;;  %v2533_v33 = vld [vmem:[%s3743_s0 + $0xc] ss:$0 sps:$4 sm:$0x33]  }
  0x98   :  { %1092 = vrot.lane.b32.xlu1 %v2869_v46, %s2575_s27  ;;  %1090 = vrot.lane.b32.xlu0 %v2872_v20, %s2575_s27  ;;  %v1206_v46 = vshrl.u32 %v2969_v52, 16 }
  0x9a   :  { %v708_v1 = vpop.permute.xlu1 %707  ;;  %v706_v6 = vpop.permute.xlu0 %705 }
  0x9b   :  { %v764_v20 = vsel %vm366_vm2, %v748_v57, %v708_v1  ;;  %v762_v7 = vsel %vm366_vm2, %v746_v62, %v706_v6  ;;  %v758_v62 = vsel %vm349_vm1, %v741_v35, %v3051_v34  ;;  %v2534_v34 = vld [vmem:[%s3743_s0 + $0x8] ss:$0 sps:$4 sm:$0x33]  }
  0x9c   :  { %v799_v18 = vrot.slane %v764_v20, %v3058_v38  ;;  %1096 = vrot.lane.b32.xlu1 %v2881_v26, %s2575_s27  ;;  %v791_v36 = vrot.slane %v762_v7, %v3058_v38  ;;  %1094 = vrot.lane.b32.xlu0 %v2887_v48, %s2575_s27 }
  0x9e   :  { %v800_v60 = vcombine.high %v799_v18, %v799_v18  ;;  %v871_v12 = vshrl.u32 %v799_v18, 16  ;;  %v874_v26 = vshll.u32 %v799_v18, 16  ;;  %v712_v19 = vpop.permute.xlu1 %711  ;;  %v792_v40 = vcombine.high %v791_v36, %v791_v36  ;;  %v710_v10 = vpop.permute.xlu0 %709 }
  0x9f   :  { %v857_v8 = vshrl.u32 %v791_v36, 16  ;;  %v860_v21 = vshll.u32 %v791_v36, 16  ;;  %v768_v41 = vsel %vm366_vm2, %v752_v29, %v712_v19  ;;  %v766_v2 = vsel %vm366_vm2, %v750_v28, %v710_v10 }
  0xa0   :  { %v873_v4 = vrot.slane %v871_v12, 6  ;;  %v876_v23 = vrot.slane %v874_v26, 7  ;;  %v3106_v25 = vshll.u32 %v800_v60, 16  ;;  %v815_v48 = vrot.slane %v768_v41, %v3058_v38  ;;  %1100 = vrot.lane.b32.xlu1 %v2893_v37, %s2575_s27  ;;  %1098 = vrot.lane.b32.xlu0 %v2898_v39, %s2575_s27 }
  0xa1   :  { %v754_v37 = vsel %vm349_vm1, %v735_v11, %v3037_v16  ;;  %v859_v55 = vrot.slane %v857_v8, 6  ;;  %v862_v57 = vrot.slane %v860_v21, 7  ;;  %v3125_v1 = vshll.u32 %v792_v40, 16  ;;  %v2536_v21 = vld [vmem:[%s3743_s0 + $0x14] ss:$0 sps:$4 sm:$0x33]  }
  0xa2   :  { %v899_v58 = vshrl.u32 %v815_v48, 16  ;;  %v716_v30 = vpop.permute.xlu1 %715  ;;  %v902_v59 = vshll.u32 %v815_v48, 16  ;;  %v807_v31 = vrot.slane %v766_v2, %v3058_v38  ;;  %v714_v15 = vpop.permute.xlu0 %713  ;;  %v877_v39 = vor.u32 %v876_v23, %v873_v4 }
  0xa3   :  { %v882_v20 = vrot.slane %v3106_v25, 7  ;;  %v772_v16 = vsel %vm366_vm2, %v756_v53, %v716_v30  ;;  %v816_v6 = vcombine.high %v815_v48, %v815_v48  ;;  %v770_v11 = vsel %vm366_vm2, %v754_v37, %v714_v15  ;;  %v2537_v48 = vld [vmem:[%s3743_s0 + $0x10] ss:$0 sps:$4 sm:$0x33]  }
  0xa4   :  { %1104 = vrot.lane.b32.xlu1 %v2906_v49, %s2575_s27  ;;  %v901_v17 = vrot.slane %v899_v58, 6  ;;  %v904_v44 = vrot.slane %v902_v59, 7  ;;  %v885_v18 = vshrl.u32 %v807_v31, 16  ;;  %1102 = vrot.lane.b32.xlu0 %v2910_v61, %s2575_s27  ;;  %v808_v7 = vcombine.high %v807_v31, %v807_v31 }
  0xa5   :  { %v888_v32 = vshll.u32 %v807_v31, 16  ;;  %v831_v49 = vrot.slane %v772_v16, %v3058_v38  ;;  %v863_v36 = vor.u32 %v862_v57, %v859_v55  ;;  %v868_v28 = vrot.slane %v3125_v1, 7 }
  0xa6   :  { %v720_v29 = vpop.permute.xlu1 %719  ;;  %v887_v60 = vrot.slane %v885_v18, 6  ;;  %v823_v12 = vrot.slane %v770_v11, %v3058_v38  ;;  %v718_v26 = vpop.permute.xlu0 %717  ;;  %v878_v41 = vrot.slane %v877_v39, 2  ;;  %v905_v10 = vor.u32 %v904_v44, %v901_v17 }
  0xa7   :  { %v890_v19 = vrot.slane %v888_v32, 7  ;;  %v832_v61 = vcombine.high %v831_v49, %v831_v49  ;;  %v927_v40 = vshrl.u32 %v831_v49, 16  ;;  %v930_v8 = vshll.u32 %v831_v49, 16 }
  0xa8   :  { %1132 = vrot.lane.b32.xlu1 %v2533_v33, %s2576_s14  ;;  %v3150_v4 = vshll.u32 %v816_v6, 16  ;;  %v913_v23 = vshrl.u32 %v823_v12, 16  ;;  %1130 = vrot.lane.b32.xlu0 %v2534_v34, %s2576_s14  ;;  %v894_v35 = vshll.u32 %v808_v7, 16  ;;  %v824_v37 = vcombine.high %v823_v12, %v823_v12  ;;  %v2539_v6 = vld [vmem:[%s3743_s0 + $0x24] ss:$0 sps:$4 sm:$0x33]  }
  0xa9   :  { %v929_v53 = vrot.slane %v927_v40, 6  ;;  %v932_v2 = vrot.slane %v930_v8, 7  ;;  %v891_v58 = vor.u32 %v890_v19, %v887_v60  ;;  %v916_v57 = vshll.u32 %v823_v12, 16  ;;  %v2540_v7 = vld [vmem:[%s3743_s0 + $0x20] ss:$0 sps:$4 sm:$0x33]  }
  0xaa   :  { %v3162_v55 = vpop.permute.xlu1 %174  ;;  %v915_v30 = vrot.slane %v913_v23, 6  ;;  %v776_v59 = vsel %vm366_vm2, %v760_v51, %v720_v29  ;;  %v3165_v31 = vpop.permute.xlu0 %172  ;;  %v864_v15 = vrot.slane %v863_v36, 2  ;;  %v936_v16 = vshll.u32 %v832_v61, 16  ;;  %v3203_v8 = vld [vmem:[%s3744_s1 + $0x40] sm:$0xff]  }
  0xab   :  { %v933_v39 = vor.u32 %v932_v2, %v929_v53  ;;  %v847_v33 = vrot.slane %v776_v59, %v3058_v38  ;;  %v906_v51 = vrot.slane %v905_v10, 2  ;;  %v910_v44 = vrot.slane %v3150_v4, 7  ;;  %v2543_v2 = vld [vmem:[%s3743_s0 + $0x28] ss:$0 sps:$4 sm:$0x33]   ;;  %2449 = vmatprep.subr.bf16.mxu0 %v3203_v8 }
  0xac   :  { %1136 = vrot.lane.b32.xlu1 %v2536_v21, %s2576_s14  ;;  %v918_v18 = vrot.slane %v916_v57, 7  ;;  %v774_v34 = vsel %vm366_vm2, %v758_v62, %v718_v26  ;;  %1134 = vrot.lane.b32.xlu0 %v2537_v48, %s2576_s14  ;;  %v896_v32 = vrot.slane %v894_v35, 7  ;;  %v892_v60 = vrot.slane %v891_v58, 2  ;;  %v2542_v26 = vld [vmem:[%s3743_s0 + $0x2c] ss:$0 sps:$4 sm:$0x33]  }
  0xad   :  { %v848_v49 = vcombine.high %v847_v33, %v847_v33  ;;  %v955_v11 = vshrl.u32 %v847_v33, 16  ;;  %v958_v29 = vshll.u32 %v847_v33, 16  ;;  %v922_v19 = vshll.u32 %v824_v37, 16 }
  0xae   :  { %v3185_v36 = vpop.permute.xlu1 %178  ;;  %v919_v12 = vor.u32 %v918_v18, %v915_v30  ;;  %v839_v61 = vrot.slane %v774_v34, %v3058_v38  ;;  %v3188_v40 = vpop.permute.xlu0 %176  ;;  %v934_v21 = vrot.slane %v933_v39, 2  ;;  %v938_v10 = vrot.slane %v936_v16, 7 }
  0xaf   :  { %v957_v4 = vrot.slane %v955_v11, 6  ;;  %v960_v23 = vrot.slane %v958_v29, 7  ;;  %v964_v48 = vshll.u32 %v848_v49, 16  ;;  %v869_v30 = vsel %vm3193_vm9, %v864_v15, %v868_v28 }
  0xb0   :  { %1140 = vrot.lane.b32.xlu1 %v2539_v6, %s2576_s14  ;;  %v840_v5 = vcombine.high %v839_v61, %v839_v61  ;;  %v941_v35 = vshrl.u32 %v839_v61, 16  ;;  %v944_v53 = vshll.u32 %v839_v61, 16  ;;  %1138 = vrot.lane.b32.xlu0 %v2540_v7, %s2576_s14  ;;  %v920_v37 = vrot.slane %v919_v12, 2 }
  0xb1   :  { %v961_v58 = vor.u32 %v960_v23, %v957_v4  ;;  %v883_v57 = vsel %vm3193_vm9, %v878_v41, %v882_v20  ;;  %v897_v6 = vsel %vm3193_vm9, %v892_v60, %v896_v32  ;;  %v924_v18 = vrot.slane %v922_v19, 7 }
  0xb2   :  { %v3219_v59 = vpop.permute.xlu1 %182  ;;  %v943_v39 = vrot.slane %v941_v35, 6  ;;  %v946_v16 = vrot.slane %v944_v53, 7  ;;  %v950_v33 = vshll.u32 %v840_v5, 16  ;;  %v3223_v17 = vpop.permute.xlu0 %180  ;;  %v911_v28 = vsel %vm3193_vm9, %v906_v51, %v910_v44 }
  0xb3   :  { %v962_v1 = vrot.slane %v961_v58, 2  ;;  %v977_v15 = vcombine.low %v869_v30, %v883_v57  ;;  %v966_v25 = vrot.slane %v964_v48, 7  ;;  %v978_v41 = vcombine.low %v897_v6, %v911_v28  ;;  %v2552_v30 = vld [vmem:[%s3744_s1 + $0x78] sm:$0xff]   ;;  %v18_v57 = vld [vmem:[%s3743_s0] sm:$0x3] }
  0xb4   :  { %1144 = vrot.lane.b32.xlu1 %v2542_v26, %s2576_s14  ;;  %v947_v20 = vor.u32 %v946_v16, %v943_v39  ;;  %1142 = vrot.lane.b32.xlu0 %v2543_v2, %s2576_s14  ;;  %v1189_v34 = vrot.slane %v1187_v9, 1  ;;  %v952_v7 = vrot.slane %v950_v33, 7  ;;  %v925_v49 = vsel %vm3193_vm9, %v920_v37, %v924_v18  ;;  %v2550_v2 = vld [vmem:[%s3744_s1 + $0x68] sm:$0xff]  }
  0xb5   :  { %v939_v51 = vsel %vm3193_vm9, %v934_v21, %v938_v10  ;;  %v1210_v44 = vrot.slane %v1208_v54, 1  ;;  %v985_v29 = vrot.slane %v977_v15, %v3058_v38  ;;  %v992_v60 = vrot.slane %v978_v41, %v3058_v38  ;;  %v21_v6 = vld [vmem:[%s3743_s0 + $0xc] sm:$0x3] }
  0xb6   :  { %v3231_v32 = vpop.permute.xlu1 %186  ;;  %v948_v11 = vrot.slane %v947_v20, 2  ;;  %v3241_v12 = vpop.permute.xlu0 %184  ;;  %v967_v9 = vsel %vm3193_vm9, %v962_v1, %v966_v25  ;;  %v994_v19 = vcombine.low %v925_v49, %v939_v51  ;;  %v1197_v61 = vor.u32 %v3082_v43, %v1192_v45  ;;  %v20_v1 = vld [vmem:[%s3743_s0 + $0x8] sm:$0x3]  ;;  %v23_v49 = vld [vmem:[%s3743_s0 + $0x1c] sm:$0x3] }
  0xb7   :  { %v1203_v54 = vrot.slane %v1201_v13, 1  ;;  %v1222_v26 = vshll.u32 %v2993_v63, 16  ;;  %v993_v21 = vcombine.low %v985_v29, %v992_v60  ;;  %v1215_v4 = vshll.u32 %v2998_v0, 16  ;;  %v22_v51 = vld [vmem:[%s3743_s0 + $0x18] sm:$0x3] }
  0xb8   :  { %1228 = vrot.lane.b32.xlu1 %v3060_v56, %s2577_s19  ;;  %1226 = vrot.lane.b32.xlu0 %v3080_v42, %s2577_s19  ;;  %v953_v10 = vsel %vm3193_vm9, %v948_v11, %v952_v7  ;;  %v1190_v56 = vor.u32 %v1189_v34, %v1185_v47  ;;  %v1220_v13 = vshrl.u32 %v2993_v63, 16  ;;  %v1002_v43 = vrot.slane %v994_v19, %v3058_v38 }
  0xb9   :  { %v995_v14 = vcombine.low %v953_v10, %v967_v9  ;;  %2445 = vmatprep.mubr.msk.bf16.mxu1 %vm457_vm10, %v993_v21  ;;  %v1211_v42 = vor.u32 %v1210_v44, %v1206_v46  ;;  %v1224_v24 = vrot.slane %v1222_v26, 1  ;;  %v1204_v47 = vor.u32 %v1203_v54, %v1199_v3  ;;  %v24_v26 = vld [vmem:[%s3743_s0 + $0x20] sm:$0x3] }
  0xba   :  { %v215_v23 = vpop.permute.xlu1 %214  ;;  %v213_v45 = vpop.permute.xlu0 %212  ;;  %v1213_v5 = vshrl.u32 %v2998_v0, 16  ;;  %v1217_v35 = vrot.slane %v1215_v4, 1  ;;  %v2551_v0 = vld [vmem:[%s3744_s1 + $0x70] sm:$0xff]   ;;  %v327_v33 = vsel %vm324_vm0, %v18_v57, %v3165_v31  ;;  %v336_v31 = vsel %vm324_vm0, %v21_v6, %v3185_v36 }
  0xbb   :  { %v1009_v48 = vrot.slane %v995_v14, %v3058_v38  ;;  %v1225_v52 = vor.u32 %v1224_v24, %v1220_v13  ;;  %v351_v15 = vsel %vm349_vm1, %v327_v33, %v213_v45  ;;  %v333_v41 = vsel %vm324_vm0, %v20_v1, %v3188_v40 }
  0xbc   :  { %1232 = vrot.lane.b32.xlu1 %v1197_v61, %s2577_s19  ;;  %1230 = vrot.lane.b32.xlu0 %v1190_v56, %s2577_s19  ;;  %v1218_v46 = vor.u32 %v1217_v35, %v1213_v5  ;;  %v342_v9 = vsel %vm324_vm0, %v23_v49, %v3219_v59  ;;  %v339_v19 = vsel %vm324_vm0, %v22_v51, %v3223_v17  ;;  %v25_v61 = vld [vmem:[%s3743_s0 + $0x24] sm:$0x3]  ;;  %v2561_v51 = vld [vmem:[%s3743_s0 + $0x10] sm:$0x7] }
  0xbd   :  { %v1010_v53 = vcombine.low %v1002_v43, %v1009_v48  ;;  %v345_v13 = vsel %vm324_vm0, %v24_v26, %v3241_v12 }
  0xbe   :  { %v219_v63 = vpop.permute.xlu1 %218  ;;  %v217_v37 = vpop.permute.xlu0 %216 }
  0xbf   :  { %2446 = vmatmul.mubr.msk.bf16.vlgmr.msra.gmra.mrb[0].mxu1 %vm457_vm10, %v1010_v53  ;;  %v357_v34 = vsel %vm349_vm1, %v336_v31, %v219_v63  ;;  %v355_v44 = vsel %vm349_vm1, %v333_v41, %v217_v37 }
  0xc0   :  { %1236 = vrot.lane.b32.xlu1 %v1211_v42, %s2577_s19  ;;  %1234 = vrot.lane.b32.xlu0 %v1204_v47, %s2577_s19 }
  0xc1   :  { %2462 = vmatpush3.bf16.msra.mxu1 %v3047_v27  ;;  %v19_v27 = vld [vmem:[%s3743_s0 + $0x4] sm:$0x3] }
  0xc2   :  { %v223_v50 = vpop.permute.xlu1 %222  ;;  %2463 = vmatprep.subr.bf16.mxu1 %v2550_v2  ;;  %v221_v3 = vpop.permute.xlu0 %220  ;;  %v330_v16 = vsel %vm324_vm0, %v19_v27, %v3162_v55 }
  0xc3   :  { %v353_v28 = vsel %vm349_vm1, %v330_v16, %v215_v23  ;;  %v361_v21 = vsel %vm349_vm1, %v342_v9, %v223_v50  ;;  %v359_v10 = vsel %vm349_vm1, %v339_v19, %v221_v3  ;;  %v348_v23 = vsel %vm324_vm0, %v25_v61, %v3231_v32  ;;  %v2564_v19 = vld [vmem:[%s3743_s0 + $0x1c] sm:$0x7] }
  0xc4   :  { %1240 = vrot.lane.b32.xlu1 %v1225_v52, %s2577_s19  ;;  %1238 = vrot.lane.b32.xlu0 %v1218_v46, %s2577_s19  ;;  %v2554_v52 = vld [vmem:[%s3744_s1 + $0x48] sm:$0xff]  }
  0xc5   :  { %2464 = vmatpush3.bf16.msra.mxu1 %v2550_v2 }
  0xc6   :  { %v227_v58 = vpop.permute.xlu1 %226  ;;  %2465 = vmatprep.subr.bf16.mxu1 %v2551_v0  ;;  %v225_v39 = vpop.permute.xlu0 %224 }
  0xc7   :  { %v365_v43 = vsel %vm349_vm1, %v348_v23, %v227_v58  ;;  %v363_v42 = vsel %vm349_vm1, %v345_v13, %v225_v39 }
  0xc9   :  { %2466 = vmatpush3.bf16.msra.mxu1 %v2551_v0  ;;  %v2555_v0 = vld [vmem:[%s3744_s1 + $0x50] sm:$0xff]  }
  0xca   :  { %v311_v18 = vpop.permute.xlu1 %310  ;;  %2467 = vmatprep.subr.bf16.mxu1 %v2552_v30  ;;  %v309_v25 = vpop.permute.xlu0 %308 }
  0xcb   :  { %v370_v55 = vsel %vm366_vm2, %v353_v28, %v311_v18  ;;  %v368_v20 = vsel %vm366_vm2, %v351_v15, %v309_v25  ;;  %v2559_v15 = vld [vmem:[%s3743_s0 + $0x8] sm:$0x7] }
  0xcc   :  { %v399_v11 = vcombine.low %v368_v20, %v370_v55  ;;  %v2560_v55 = vld [vmem:[%s3743_s0 + $0x4] sm:$0x7] }
  0xcd   :  { %2468 = vmatpush3.bf16.msra.mxu1 %v2552_v30  ;;  %v2556_v30 = vld [vmem:[%s3744_s1 + $0x58] sm:$0xff]  }
  0xce   :  { %v315_v7 = vpop.permute.xlu1 %314  ;;  %v313_v29 = vpop.permute.xlu0 %312  ;;  %v407_v4 = vrot.slane %v399_v11, %v3058_v38  ;;  %v2562_v11 = vld [vmem:[%s3743_s0 + $0xc] sm:$0x7] }
  0xcf   :  { %v374_v36 = vsel %vm366_vm2, %v357_v34, %v315_v7  ;;  %v372_v60 = vsel %vm366_vm2, %v355_v44, %v313_v29 }
  0xd0   :  { %v400_v40 = vcombine.low %v372_v60, %v374_v36 }
  0xd2   :  { %v319_v54 = vpop.permute.xlu1 %318  ;;  %v317_v56 = vpop.permute.xlu0 %316  ;;  %v414_v59 = vrot.slane %v400_v40, %v3058_v38  ;;  %v2563_v40 = vld [vmem:[%s3743_s0 + $0x20] sm:$0x7] }
  0xd3   :  { %v378_v17 = vsel %vm366_vm2, %v361_v21, %v319_v54  ;;  %v376_v14 = vsel %vm366_vm2, %v359_v10, %v317_v56  ;;  %v2565_v54 = vld [vmem:[%s3743_s0 + $0x28] sm:$0x7] }
  0xd4   :  { %v415_v45 = vcombine.low %v407_v4, %v414_v59  ;;  %v416_v24 = vcombine.low %v376_v14, %v378_v17 }
  0xd6   :  { %v323_v48 = vpop.permute.xlu1 %322  ;;  %v321_v5 = vpop.permute.xlu0 %320  ;;  %2433 = vmatprep.mubr.msk.bf16.mxu0 %vm457_vm10, %v415_v45  ;;  %v424_v32 = vrot.slane %v416_v24, %v3058_v38 }
  0xd7   :  { %v382_v47 = vsel %vm366_vm2, %v365_v43, %v323_v48  ;;  %v380_v35 = vsel %vm366_vm2, %v363_v42, %v321_v5  ;;  %v2566_v5 = vld [vmem:[%s3743_s0 + $0x24] sm:$0x7] }
  0xd8   :  { %v417_v53 = vcombine.low %v380_v35, %v382_v47 }
  0xda   :  { %v1431_v63 = vpop.permute.xlu1 %1430  ;;  %v431_v2 = vrot.slane %v417_v53, %v3058_v38  ;;  %v1429_v12 = vpop.permute.xlu0 %1428 }
  0xdb   :  { %v1561_v25 = vsel %vm324_vm0, %v2559_v15, %v1431_v63  ;;  %v1558_v20 = vsel %vm324_vm0, %v2560_v55, %v1429_v12 }
  0xdc   :  { %v432_v37 = vcombine.low %v424_v32, %v431_v2 }
  0xde   :  { %v1435_v46 = vpop.permute.xlu1 %1434  ;;  %v1433_v50 = vpop.permute.xlu0 %1432  ;;  %2434 = vmatmul.mubr.msk.bf16.vlgmr.msra.gmra.mrb[0].mxu0 %vm457_vm10, %v432_v37 }
  0xdf   :  { %2450 = vmatpush3.bf16.msra.mxu0 %v3203_v8  ;;  %v1567_v44 = vsel %vm324_vm0, %v2561_v51, %v1435_v46  ;;  %v1564_v36 = vsel %vm324_vm0, %v2562_v11, %v1433_v50 }
  0xe0   :  { %2451 = vmatprep.subr.bf16.mxu0 %v2554_v52 }
  0xe2   :  { %v1439_v3 = vpop.permute.xlu1 %1438  ;;  %v1437_v58 = vpop.permute.xlu0 %1436 }
  0xe3   :  { %2452 = vmatpush3.bf16.msra.mxu0 %v2554_v52  ;;  %v1573_v9 = vsel %vm324_vm0, %v2563_v40, %v1439_v3  ;;  %v1570_v61 = vsel %vm324_vm0, %v2564_v19, %v1437_v58 }
  0xe4   :  { %2453 = vmatprep.subr.bf16.mxu0 %v2555_v0 }
  0xe6   :  { %v1443_v27 = vpop.permute.xlu1 %1442  ;;  %v1441_v57 = vpop.permute.xlu0 %1440 }
  0xe7   :  { %2454 = vmatpush3.bf16.msra.mxu0 %v2555_v0  ;;  %v1579_v26 = vsel %vm324_vm0, %v2565_v54, %v1443_v27  ;;  %v1576_v35 = vsel %vm324_vm0, %v2566_v5, %v1441_v57 }
  0xe8   :  { %2455 = vmatprep.subr.bf16.mxu0 %v2556_v30 }
  0xea   :  { %v1447_v39 = vpop.permute.xlu1 %1446  ;;  %v1445_v16 = vpop.permute.xlu0 %1444 }
  0xeb   :  { %2456 = vmatpush3.bf16.msra.mxu0 %v2556_v30  ;;  %v1583_v31 = vsel %vm349_vm1, %v1561_v25, %v1447_v39  ;;  %v1581_v34 = vsel %vm349_vm1, %v1558_v20, %v1445_v16 }
  0xee   :  { %v1451_v8 = vpop.permute.xlu1 %1450  ;;  %v1449_v33 = vpop.permute.xlu0 %1448 }
  0xef   :  { %v1587_v10 = vsel %vm349_vm1, %v1567_v44, %v1451_v8  ;;  %v1585_v48 = vsel %vm349_vm1, %v1564_v36, %v1449_v33 }
  0xf2   :  { %v1455_v6 = vpop.permute.xlu1 %1454  ;;  %v1453_v18 = vpop.permute.xlu0 %1452 }
  0xf3   :  { %v1591_v53 = vsel %vm349_vm1, %v1573_v9, %v1455_v6  ;;  %v1589_v2 = vsel %vm349_vm1, %v1570_v61, %v1453_v18 }
  0xf6   :  { %v1459_v1 = vpop.permute.xlu1 %1458  ;;  %v1457_v28 = vpop.permute.xlu0 %1456 }
  0xf7   :  { %v1595_v27 = vsel %vm349_vm1, %v1579_v26, %v1459_v1  ;;  %v1593_v57 = vsel %vm349_vm1, %v1576_v35, %v1457_v28 }
  0xfa   :  { %v1543_v41 = vpop.permute.xlu1 %1542  ;;  %v1541_v49 = vpop.permute.xlu0 %1540 }
  0xfb   :  { %v1599_v7 = vsel %vm366_vm2, %v1583_v31, %v1543_v41  ;;  %v1597_v60 = vsel %vm366_vm2, %v1581_v34, %v1541_v49 }
  0xfc   :  { %v1634_v29 = vrot.slane %v1599_v7, %v3058_v38  ;;  %v1626_v21 = vrot.slane %v1597_v60, %v3058_v38 }
  0xfe   :  { %v1635_v56 = vcombine.high %v1634_v29, %v1634_v29  ;;  %v1699_v4 = vshrl.u32 %v1634_v29, 16  ;;  %v1702_v59 = vshll.u32 %v1634_v29, 16  ;;  %v1547_v17 = vpop.permute.xlu1 %1546  ;;  %v1627_v14 = vcombine.high %v1626_v21, %v1626_v21  ;;  %v1545_v43 = vpop.permute.xlu0 %1544 }
  0xff   :  { %v1685_v23 = vshrl.u32 %v1626_v21, 16  ;;  %v1688_v45 = vshll.u32 %v1626_v21, 16  ;;  %v1603_v13 = vsel %vm366_vm2, %v1587_v10, %v1547_v17  ;;  %v1601_v32 = vsel %vm366_vm2, %v1585_v48, %v1545_v43 }
 0x100   :  { %v1701_v42 = vrot.slane %v1699_v4, 6  ;;  %v1704_v24 = vrot.slane %v1702_v59, 7  ;;  %v1650_v47 = vrot.slane %v1603_v13, %v3058_v38  ;;  %v3401_v63 = vshll.u32 %v1635_v56, 16 }
 0x101   :  { %v1687_v12 = vrot.slane %v1685_v23, 6  ;;  %v1690_v37 = vrot.slane %v1688_v45, 7  ;;  %v3405_v50 = vshll.u32 %v1627_v14, 16  ;;  %v1642_v58 = vrot.slane %v1601_v32, %v3058_v38 }
 0x102   :  { %v1727_v52 = vshrl.u32 %v1650_v47, 16  ;;  %v1551_v46 = vpop.permute.xlu1 %1550  ;;  %v1651_v0 = vcombine.high %v1650_v47, %v1650_v47  ;;  %v1730_v3 = vshll.u32 %v1650_v47, 16  ;;  %v1549_v30 = vpop.permute.xlu0 %1548  ;;  %v1705_v39 = vor.u32 %v1704_v24, %v1701_v42 }
 0x103   :  { %v1607_v16 = vsel %vm366_vm2, %v1591_v53, %v1551_v46  ;;  %v1710_v8 = vrot.slane %v3401_v63, 7  ;;  %v1713_v18 = vshrl.u32 %v1642_v58, 16  ;;  %v1691_v15 = vor.u32 %v1690_v37, %v1687_v12 }
 0x104   :  { %v1729_v33 = vrot.slane %v1727_v52, 6  ;;  %v1732_v6 = vrot.slane %v1730_v3, 7  ;;  %v1716_v25 = vshll.u32 %v1642_v58, 16  ;;  %v1666_v55 = vrot.slane %v1607_v16, %v3058_v38 }
 0x105   :  { %v1605_v20 = vsel %vm366_vm2, %v1589_v2, %v1549_v30  ;;  %v1696_v41 = vrot.slane %v3405_v50, 7  ;;  %v3415_v1 = vshll.u32 %v1651_v0, 16  ;;  %v1715_v28 = vrot.slane %v1713_v18, 6 }
 0x106   :  { %v1555_v31 = vpop.permute.xlu1 %1554  ;;  %v1658_v34 = vrot.slane %v1605_v20, %v3058_v38  ;;  %v1553_v7 = vpop.permute.xlu0 %1552  ;;  %v1718_v49 = vrot.slane %v1716_v25, 7  ;;  %v1667_v51 = vcombine.high %v1666_v55, %v1666_v55  ;;  %v1755_v44 = vshrl.u32 %v1666_v55, 16 }
 0x107   :  { %v1758_v11 = vshll.u32 %v1666_v55, 16  ;;  %v1706_v36 = vrot.slane %v1705_v39, 2  ;;  %v1733_v29 = vor.u32 %v1732_v6, %v1729_v33  ;;  %v1643_v60 = vcombine.high %v1642_v58, %v1642_v58 }
 0x108   :  { %v1741_v40 = vshrl.u32 %v1658_v34, 16  ;;  %v1692_v9 = vrot.slane %v1691_v15, 2  ;;  %v1757_v19 = vrot.slane %v1755_v44, 6  ;;  %v1659_v54 = vcombine.high %v1658_v34, %v1658_v34 }
 0x109   :  { %v1760_v61 = vrot.slane %v1758_v11, 7  ;;  %v1719_v21 = vor.u32 %v1718_v49, %v1715_v28  ;;  %v1744_v56 = vshll.u32 %v1658_v34, 16  ;;  %v1611_v4 = vsel %vm366_vm2, %v1595_v27, %v1555_v31 }
 0x10a   :  { %v3418_v26 = vpop.permute.xlu1 %1092  ;;  %v1743_v10 = vrot.slane %v1741_v40, 6  ;;  %v3421_v59 = vpop.permute.xlu0 %1090  ;;  %v1738_v17 = vrot.slane %v3415_v1, 7  ;;  %v1764_v23 = vshll.u32 %v1667_v51, 16  ;;  %v1682_v45 = vrot.slane %v1611_v4, %v3058_v38 }
 0x10b   :  { %v1761_v14 = vor.u32 %v1760_v61, %v1757_v19  ;;  %v1734_v13 = vrot.slane %v1733_v29, 2  ;;  %v1722_v43 = vshll.u32 %v1643_v60, 16  ;;  %v1746_v48 = vrot.slane %v1744_v56, 7 }
 0x10c   :  { %v1609_v42 = vsel %vm366_vm2, %v1593_v57, %v1553_v7  ;;  %v1750_v24 = vshll.u32 %v1659_v54, 16  ;;  %v1683_v47 = vcombine.high %v1682_v45, %v1682_v45  ;;  %v1783_v5 = vshrl.u32 %v1682_v45, 16 }
 0x10d   :  { %v1786_v35 = vshll.u32 %v1682_v45, 16  ;;  %v1720_v32 = vrot.slane %v1719_v21, 2  ;;  %v1762_v2 = vrot.slane %v1761_v14, 2  ;;  %v1747_v12 = vor.u32 %v1746_v48, %v1743_v10 }
 0x10e   :  { %v3426_v53 = vpop.permute.xlu1 %1096  ;;  %v1674_v37 = vrot.slane %v1609_v42, %v3058_v38  ;;  %v3429_v52 = vpop.permute.xlu0 %1094  ;;  %v1766_v46 = vrot.slane %v1764_v23, 7  ;;  %v1785_v50 = vrot.slane %v1783_v5, 6  ;;  %v1792_v3 = vshll.u32 %v1683_v47, 16  ;;  %v2567_v42 = vld [vmem:[%s3743_s0 + $0x8] sm:$0x3] }
 0x10f   :  { %v1788_v0 = vrot.slane %v1786_v35, 7  ;;  %v1748_v58 = vrot.slane %v1747_v12, 2  ;;  %v1724_v39 = vrot.slane %v1722_v43, 7  ;;  %v1752_v16 = vrot.slane %v1750_v24, 7  ;;  %v2568_v47 = vld [vmem:[%s3743_s0 + $0x4] sm:$0x3] }
 0x110   :  { %v1675_v30 = vcombine.high %v1674_v37, %v1674_v37  ;;  %v1769_v27 = vshrl.u32 %v1674_v37, 16  ;;  %v1772_v57 = vshll.u32 %v1674_v37, 16  ;;  %v1697_v6 = vsel %vm3193_vm9, %v1692_v9, %v1696_v41 }
 0x111   :  { %v1789_v33 = vor.u32 %v1788_v0, %v1785_v50  ;;  %v1767_v15 = vsel %vm3193_vm9, %v1762_v2, %v1766_v46  ;;  %v1794_v28 = vrot.slane %v1792_v3, 7  ;;  %v1711_v34 = vsel %vm3193_vm9, %v1706_v36, %v1710_v8 }
 0x112   :  { %v3433_v18 = vpop.permute.xlu1 %1100  ;;  %v1771_v25 = vrot.slane %v1769_v27, 6  ;;  %v1774_v55 = vrot.slane %v1772_v57, 7  ;;  %v1778_v20 = vshll.u32 %v1675_v30, 16  ;;  %v1099_v31 = vpop.permute.xlu0 %1098  ;;  %v1725_v7 = vsel %vm3193_vm9, %v1720_v32, %v1724_v39 }
 0x113   :  { %v1790_v1 = vrot.slane %v1789_v33, 2  ;;  %v1753_v41 = vsel %vm3193_vm9, %v1748_v58, %v1752_v16  ;;  %v1739_v51 = vsel %vm3193_vm9, %v1734_v13, %v1738_v17  ;;  %v1805_v44 = vcombine.low %v1697_v6, %v1711_v34 }
 0x114   :  { %v1775_v49 = vor.u32 %v1774_v55, %v1771_v25  ;;  %v1806_v11 = vcombine.low %v1725_v7, %v1739_v51  ;;  %v1780_v40 = vrot.slane %v1778_v20, 7  ;;  %v1822_v8 = vcombine.low %v1753_v41, %v1767_v15  ;;  %v2573_v41 = vld [vmem:[%s3743_s0 + $0x28] sm:$0x3]  ;;  %v2574_v51 = vld [vmem:[%s3743_s0 + $0x24] sm:$0x3] }
 0x115   :  { %v1795_v60 = vsel %vm3193_vm9, %v1790_v1, %v1794_v28  ;;  %v1813_v36 = vrot.slane %v1805_v44, %v3058_v38  ;;  %v1247_v24 = vsel %vm324_vm0, %v2567_v42, %v3418_v26  ;;  %v1244_v5 = vsel %vm324_vm0, %v2568_v47, %v3421_v59  ;;  %v2569_v26 = vld [vmem:[%s3743_s0 + $0x10] sm:$0x3]  ;;  %v2570_v59 = vld [vmem:[%s3743_s0 + $0xc] sm:$0x3] }
 0x116   :  { %v1105_v29 = vpop.permute.xlu1 %1104  ;;  %v1776_v63 = vrot.slane %v1775_v49, 2  ;;  %v1103_v9 = vpop.permute.xlu0 %1102  ;;  %v1820_v19 = vrot.slane %v1806_v11, %v3058_v38  ;;  %v1830_v4 = vrot.slane %v1822_v8, %v3058_v38  ;;  %v1253_v50 = vsel %vm324_vm0, %v2569_v26, %v3426_v53  ;;  %v2571_v53 = vld [vmem:[%s3743_s0 + $0x20] sm:$0x3] }
 0x117   :  { %v1250_v0 = vsel %vm324_vm0, %v2570_v59, %v3429_v52  ;;  %v1259_v6 = vsel %vm324_vm0, %v2571_v53, %v3433_v18  ;;  %v2572_v52 = vld [vmem:[%s3743_s0 + $0x1c] sm:$0x3]  ;;  %v1262_v44 = vsel %vm324_vm0, %v2574_v51, %v1103_v9 }
 0x118   :  { %v1781_v61 = vsel %vm3193_vm9, %v1776_v63, %v1780_v40  ;;  %v1821_v21 = vcombine.low %v1813_v36, %v1820_v19  ;;  %v1256_v15 = vsel %vm324_vm0, %v2572_v52, %v1099_v31  ;;  %v1265_v31 = vsel %vm324_vm0, %v2573_v41, %v1105_v29 }
 0x119   :  { %v1823_v54 = vcombine.low %v1781_v61, %v1795_v60 }
 0x11a   :  { %v1133_v10 = vpop.permute.xlu1 %1132  ;;  %v1131_v56 = vpop.permute.xlu0 %1130  ;;  %2469 = vmatprep.mubr.msk.bf16.mxu1 %vm457_vm10, %v1821_v21 }
 0x11b   :  { %v1837_v17 = vrot.slane %v1823_v54, %v3058_v38  ;;  %v1269_v32 = vsel %vm349_vm1, %v1247_v24, %v1133_v10  ;;  %v1267_v2 = vsel %vm349_vm1, %v1244_v5, %v1131_v56 }
 0x11d   :  { %v1838_v14 = vcombine.low %v1830_v4, %v1837_v17 }
 0x11e   :  { %v1137_v23 = vpop.permute.xlu1 %1136  ;;  %v1135_v45 = vpop.permute.xlu0 %1134 }
 0x11f   :  { %2470 = vmatmul.mubr.msk.bf16.vlgmr.msra.gmra.mrb[4].mxu1 %vm457_vm10, %v1838_v14  ;;  %v1273_v3 = vsel %vm349_vm1, %v1253_v50, %v1137_v23  ;;  %v1271_v30 = vsel %vm349_vm1, %v1250_v0, %v1135_v45 }
 0x122   :  { %v1141_v13 = vpop.permute.xlu1 %1140  ;;  %v1139_v43 = vpop.permute.xlu0 %1138 }
 0x123   :  { %v1277_v55 = vsel %vm349_vm1, %v1259_v6, %v1141_v13  ;;  %v1275_v20 = vsel %vm349_vm1, %v1256_v15, %v1139_v43 }
 0x126   :  { %v1145_v48 = vpop.permute.xlu1 %1144  ;;  %v1143_v62 = vpop.permute.xlu0 %1142 }
 0x127   :  { %v1281_v11 = vsel %vm349_vm1, %v1265_v31, %v1145_v48  ;;  %v1279_v63 = vsel %vm349_vm1, %v1262_v44, %v1143_v62 }
 0x12a   :  { %v1229_v35 = vpop.permute.xlu1 %1228  ;;  %v1227_v12 = vpop.permute.xlu0 %1226 }
 0x12b   :  { %v1285_v37 = vsel %vm366_vm2, %v1269_v32, %v1229_v35  ;;  %v1283_v46 = vsel %vm366_vm2, %v1267_v2, %v1227_v12 }
 0x12c   :  { %v1315_v27 = vcombine.low %v1283_v46, %v1285_v37 }
 0x12e   :  { %v1233_v58 = vpop.permute.xlu1 %1232  ;;  %v1231_v39 = vpop.permute.xlu0 %1230  ;;  %v1323_v1 = vrot.slane %v1315_v27, %v3058_v38 }
 0x12f   :  { %v1289_v57 = vsel %vm366_vm2, %v1273_v3, %v1233_v58  ;;  %v1287_v16 = vsel %vm366_vm2, %v1271_v30, %v1231_v39 }
 0x130   :  { %v1316_v33 = vcombine.low %v1287_v16, %v1289_v57 }
 0x132   :  { %v1237_v25 = vpop.permute.xlu1 %1236  ;;  %v1330_v28 = vrot.slane %v1316_v33, %v3058_v38  ;;  %v1235_v34 = vpop.permute.xlu0 %1234 }
 0x133   :  { %v1293_v7 = vsel %vm366_vm2, %v1277_v55, %v1237_v25  ;;  %v1291_v18 = vsel %vm366_vm2, %v1275_v20, %v1235_v34 }
 0x134   :  { %v1331_v49 = vcombine.low %v1323_v1, %v1330_v28  ;;  %v1332_v40 = vcombine.low %v1291_v18, %v1293_v7 }
 0x136   :  { %v1241_v60 = vpop.permute.xlu1 %1240  ;;  %v1239_v36 = vpop.permute.xlu0 %1238  ;;  %2457 = vmatprep.mubr.msk.bf16.mxu0 %vm457_vm10, %v1331_v49  ;;  %v1340_v61 = vrot.slane %v1332_v40, %v3058_v38 }
 0x137   :  { %v1297_v8 = vsel %vm366_vm2, %v1281_v11, %v1241_v60  ;;  %v1295_v29 = vsel %vm366_vm2, %v1279_v63, %v1239_v36 }
 0x138   :  { %v1333_v19 = vcombine.low %v1295_v29, %v1297_v8 }
 0x13a   :  { %v1347_v54 = vrot.slane %v1333_v19, %v3058_v38 }
 0x13c   :  { %v1348_v21 = vcombine.low %v1340_v61, %v1347_v54 }
 0x13e   :  { %2458 = vmatmul.mubr.msk.bf16.vlgmr.msra.gmra.mrb[4].mxu0 %vm457_vm10, %v1348_v21 }
 0x192   :  { %v3516_v9 = vpop.f32.mrb[0].mxu1 }
 0x193   :  { %v3518_v10 = vpop.f32.mrb[1].mxu1  ;;  %v1935_v38 = vsel %vm349_vm1, %v3516_v9, 0.0 }
 0x194   :  { %v3520_v56 = vpop.f32.mrb[2].mxu1  ;;  %v1932_v17 = vsel %vm349_vm1, %v3518_v10, 0.0 }
 0x195   :  { %v3522_v4 = vpop.f32.mrb[3].mxu1  ;;  %v1937_v13 = vsel %vm349_vm1, %v3520_v56, 0.0 }
 0x196   :  { %v1933_v14 = vsel %vm349_vm1, %v3522_v4, 0.0 }
 0x197   :  { %v1934_v23 = vadd.f32 %v1933_v14, %v1932_v17 }
 0x199   :  { %v1936_v45 = vadd.f32 %v1935_v38, %v1934_v23 }
 0x19b   :  { %v1938_v43 = vadd.f32 %v1937_v13, %v1936_v45 }
 0x19d   :  { %v1939_v62 = vrot.slane %v1938_v43, 4 }
 0x19f   :  { %v1940_v32 = vadd.f32 %v1939_v62, %v1938_v43 }
 0x1a1   :  { %v1941_v26 = vrot.slane %v1940_v32, 2 }
 0x1a3   :  { %v1942_v0 = vadd.f32 %v1941_v26, %v1940_v32 }
 0x1a5   :  { %v1943_v30 = vrot.slane %v1942_v0, 1 }
 0x1a7   :  { %v1944_v39 = vadd.f32 %v1943_v30, %v1942_v0 }
 0x1b1   :  { %v3532_v48 = vpop.f32.mrb[0].mxu0 }
 0x1b2   :  { %v3534_v42 = vpop.f32.mrb[1].mxu0  ;;  %v1921_v12 = vsel %vm349_vm1, %v3532_v48, 0.0 }
 0x1b3   :  { %v3536_v24 = vpop.f32.mrb[2].mxu0  ;;  %v1918_v5 = vsel %vm349_vm1, %v3534_v42, 0.0 }
 0x1b4   :  { %v3538_v47 = vpop.f32.mrb[3].mxu0  ;;  %v1923_v46 = vsel %vm349_vm1, %v3536_v24, 0.0 }
 0x1b5   :  { %v1919_v35 = vsel %vm349_vm1, %v3538_v47, 0.0 }
 0x1b6   :  { %v1920_v2 = vadd.f32 %v1919_v35, %v1918_v5 }
 0x1b8   :  { %v1922_v37 = vadd.f32 %v1921_v12, %v1920_v2 }
 0x1ba   :  { %v1924_v50 = vadd.f32 %v1923_v46, %v1922_v37 }
 0x1bc   :  { %v1925_v59 = vrot.slane %v1924_v50, 4 }
 0x1be   :  { %v1926_v3 = vadd.f32 %v1925_v59, %v1924_v50 }
 0x1c0   :  { %v1927_v58 = vrot.slane %v1926_v3, 2 }
 0x1c2   :  { %v1928_v27 = vadd.f32 %v1927_v58, %v1926_v3 }
 0x1c4   :  { %v1929_v57 = vrot.slane %v1928_v27, 1 }
 0x1c6   :  { %v1930_v16 = vadd.f32 %v1929_v57, %v1928_v27 }
 0x1c8   :  { %v1945_v33 = vadd.f32 %v1944_v39, %v1930_v16 }
 0x1f2   :  { %v3548_v53 = vpop.f32.mrb[4].mxu1 }
 0x1f3   :  { %v3550_v6 = vpop.f32.mrb[5].mxu1  ;;  %v1963_v1 = vsel %vm349_vm1, %v3548_v53, 0.0 }
 0x1f4   :  { %v3552_v52 = vpop.f32.mrb[6].mxu1  ;;  %v1960_v25 = vsel %vm349_vm1, %v3550_v6, 0.0 }
 0x1f5   :  { %v3554_v15 = vpop.f32.mrb[7].mxu1  ;;  %v1965_v34 = vsel %vm349_vm1, %v3552_v52, 0.0 }
 0x1f6   :  { %v1961_v55 = vsel %vm349_vm1, %v3554_v15, 0.0 }
 0x1f7   :  { %v1962_v20 = vadd.f32 %v1961_v55, %v1960_v25 }
 0x1f9   :  { %v1964_v28 = vadd.f32 %v1963_v1, %v1962_v20 }
 0x1fb   :  { %v1966_v7 = vadd.f32 %v1965_v34, %v1964_v28 }
 0x1fd   :  { %v1967_v49 = vrot.slane %v1966_v7, 4 }
 0x1ff   :  { %v1968_v40 = vadd.f32 %v1967_v49, %v1966_v7 }
 0x201   :  { %v1969_v19 = vrot.slane %v1968_v40, 2 }
 0x203   :  { %v1970_v21 = vadd.f32 %v1969_v19, %v1968_v40 }
 0x205   :  { %v1971_v23 = vrot.slane %v1970_v21, 1 }
 0x207   :  { %v1972_v13 = vadd.f32 %v1971_v23, %v1970_v21 }
 0x211   :  { %v3564_v18 = vpop.f32.mrb[4].mxu0 }
 0x212   :  { %v3566_v41 = vpop.f32.mrb[5].mxu0  ;;  %v1949_v63 = vsel %vm349_vm1, %v3564_v18, 0.0 }
 0x213   :  { %v3568_v31 = vpop.f32.mrb[6].mxu0  ;;  %v1946_v44 = vsel %vm349_vm1, %v3566_v41, 0.0 }
 0x214   :  { %v3570_v51 = vpop.f32.mrb[7].mxu0  ;;  %v1951_v36 = vsel %vm349_vm1, %v3568_v31, 0.0 }
 0x215   :  { %v1947_v11 = vsel %vm349_vm1, %v3570_v51, 0.0 }
 0x216   :  { %v1948_v60 = vadd.f32 %v1947_v11, %v1946_v44 }
 0x218   :  { %v1950_v8 = vadd.f32 %v1949_v63, %v1948_v60 }
 0x21a   :  { %v1952_v29 = vadd.f32 %v1951_v36, %v1950_v8 }
 0x21c   :  { %v1953_v61 = vrot.slane %v1952_v29, 4 }
 0x21e   :  { %v1954_v54 = vadd.f32 %v1953_v61, %v1952_v29 }
 0x220   :  { %v1955_v17 = vrot.slane %v1954_v54, 2 }
 0x222   :  { %v1956_v14 = vadd.f32 %v1955_v17, %v1954_v54 }
 0x224   :  { %v1957_v38 = vrot.slane %v1956_v14, 1 }
 0x226   :  { %v1958_v45 = vadd.f32 %v1957_v38, %v1956_v14 }
 0x228   :  { %v1959_v43 = vadd.f32 %v1958_v45, %v1945_v33 }
 0x22a   :  { %v1973_v62 = vadd.f32 %v1972_v13, %v1959_v43 }
 0x22c   :  { %v3580_v5 = vmul.f32 0.0078125, %v1973_v62 }
 0x22e   :  { %v1975_v35 = vsub.f32 %v3534_v42, %v3580_v5  ;;  %v1976_v32 = vsub.f32 %v3538_v47, %v3580_v5  ;;  %v1977_v2 = vsub.f32 %v3532_v48, %v3580_v5  ;;  %v1978_v12 = vsub.f32 %v3536_v24, %v3580_v5 }
 0x22f   :  { %v1997_v37 = vsub.f32 %v3518_v10, %v3580_v5  ;;  %v1998_v46 = vsub.f32 %v3522_v4, %v3580_v5  ;;  %v1999_v26 = vsub.f32 %v3516_v9, %v3580_v5  ;;  %v2000_v50 = vsub.f32 %v3520_v56, %v3580_v5 }
 0x230   :  { %v1979_v59 = vmul.f32 %v1975_v35, %v1975_v35  ;;  %v1980_v0 = vmul.f32 %v1976_v32, %v1976_v32  ;;  %v1981_v3 = vmul.f32 %v1977_v2, %v1977_v2  ;;  %v1982_v58 = vmul.f32 %v1978_v12, %v1978_v12 }
 0x231   :  { %v2001_v30 = vmul.f32 %v1997_v37, %v1997_v37  ;;  %v2002_v27 = vmul.f32 %v1998_v46, %v1998_v46  ;;  %v2003_v57 = vmul.f32 %v1999_v26, %v1999_v26  ;;  %v2004_v39 = vmul.f32 %v2000_v50, %v2000_v50 }
 0x232   :  { %v1983_v16 = vsel %vm349_vm1, %v1979_v59, 0.0  ;;  %v1984_v33 = vsel %vm349_vm1, %v1980_v0, 0.0  ;;  %v1986_v25 = vsel %vm349_vm1, %v1981_v3, 0.0  ;;  %v1988_v55 = vsel %vm349_vm1, %v1982_v58, 0.0 }
 0x233   :  { %v1985_v20 = vadd.f32 %v1984_v33, %v1983_v16  ;;  %v2005_v1 = vsel %vm349_vm1, %v2001_v30, 0.0  ;;  %v2006_v28 = vsel %vm349_vm1, %v2002_v27, 0.0  ;;  %v2008_v34 = vsel %vm349_vm1, %v2003_v57, 0.0 }
 0x234   :  { %v2007_v7 = vadd.f32 %v2006_v28, %v2005_v1  ;;  %v2010_v49 = vsel %vm349_vm1, %v2004_v39, 0.0  ;;  %v2019_v44 = vsub.f32 %v3566_v41, %v3580_v5  ;;  %v2020_v11 = vsub.f32 %v3570_v51, %v3580_v5 }
 0x235   :  { %v1987_v60 = vadd.f32 %v1986_v25, %v1985_v20  ;;  %v2021_v63 = vsub.f32 %v3564_v18, %v3580_v5  ;;  %v2022_v40 = vsub.f32 %v3568_v31, %v3580_v5  ;;  %v2041_v8 = vsub.f32 %v3550_v6, %v3580_v5 }
 0x236   :  { %v2009_v36 = vadd.f32 %v2008_v34, %v2007_v7  ;;  %v2023_v29 = vmul.f32 %v2019_v44, %v2019_v44  ;;  %v2024_v19 = vmul.f32 %v2020_v11, %v2020_v11  ;;  %v2042_v61 = vsub.f32 %v3554_v15, %v3580_v5 }
 0x237   :  { %v1989_v54 = vadd.f32 %v1988_v55, %v1987_v60  ;;  %v2025_v21 = vmul.f32 %v2021_v63, %v2021_v63  ;;  %v2026_v17 = vmul.f32 %v2022_v40, %v2022_v40  ;;  %v2043_v14 = vsub.f32 %v3548_v53, %v3580_v5 }
 0x238   :  { %v2011_v23 = vadd.f32 %v2010_v49, %v2009_v36  ;;  %v2027_v38 = vsel %vm349_vm1, %v2023_v29, 0.0  ;;  %v2028_v45 = vsel %vm349_vm1, %v2024_v19, 0.0  ;;  %v2044_v13 = vsub.f32 %v3552_v52, %v3580_v5 }
 0x239   :  { %v1990_v43 = vrot.slane %v1989_v54, 4  ;;  %v2029_v62 = vadd.f32 %v2028_v45, %v2027_v38  ;;  %v2030_v35 = vsel %vm349_vm1, %v2025_v21, 0.0  ;;  %v2045_v2 = vmul.f32 %v2041_v8, %v2041_v8 }
 0x23a   :  { %v2012_v32 = vrot.slane %v2011_v23, 4  ;;  %v2046_v12 = vmul.f32 %v2042_v61, %v2042_v61  ;;  %v2047_v37 = vmul.f32 %v2043_v14, %v2043_v14  ;;  %v2032_v50 = vsel %vm349_vm1, %v2026_v17, 0.0 }
 0x23b   :  { %v1991_v46 = vadd.f32 %v1990_v43, %v1989_v54  ;;  %v2031_v26 = vadd.f32 %v2030_v35, %v2029_v62  ;;  %v2048_v0 = vmul.f32 %v2044_v13, %v2044_v13  ;;  %v2049_v3 = vsel %vm349_vm1, %v2045_v2, 0.0  ;;  %v2064_v13 = vld [vmem:[%s3745_s2] sm:$0x1] }
 0x23c   :  { %v2013_v59 = vadd.f32 %v2012_v32, %v2011_v23  ;;  %v2050_v58 = vsel %vm349_vm1, %v2046_v12, 0.0  ;;  %v2052_v16 = vsel %vm349_vm1, %v2047_v37, 0.0  ;;  %v2074_v43 = vsub.s32 0, %v3041_v22  ;;  %v2068_v32 = vld [vmem:[%s3746_s3] sm:$0x1] }
 0x23d   :  { %v1992_v30 = vrot.slane %v1991_v46, 2  ;;  %v2033_v27 = vadd.f32 %v2032_v50, %v2031_v26  ;;  %v2051_v57 = vadd.f32 %v2050_v58, %v2049_v3  ;;  %v2054_v1 = vsel %vm349_vm1, %v2048_v0, 0.0 }
 0x23e   :  { %v2014_v39 = vrot.slane %v2013_v59, 2 }
 0x23f   :  { %v1993_v33 = vadd.f32 %v1992_v30, %v1991_v46  ;;  %v2034_v25 = vrot.slane %v2033_v27, 4  ;;  %v2053_v55 = vadd.f32 %v2052_v16, %v2051_v57 }
 0x240   :  { %v2015_v20 = vadd.f32 %v2014_v39, %v2013_v59 }
 0x241   :  { %v1994_v28 = vrot.slane %v1993_v33, 1  ;;  %v2035_v34 = vadd.f32 %v2034_v25, %v2033_v27  ;;  %v2055_v7 = vadd.f32 %v2054_v1, %v2053_v55 }
 0x242   :  { %v2016_v49 = vrot.slane %v2015_v20, 1 }
 0x243   :  { %v1995_v44 = vadd.f32 %v1994_v28, %v1993_v33  ;;  %v2036_v11 = vrot.slane %v2035_v34, 2  ;;  %v2056_v60 = vrot.slane %v2055_v7, 4 }
 0x244   :  { %v2017_v63 = vadd.f32 %v2016_v49, %v2015_v20 }
 0x245   :  { %v2037_v40 = vadd.f32 %v2036_v11, %v2035_v34  ;;  %v2057_v8 = vadd.f32 %v2056_v60, %v2055_v7 }
 0x246   :  { %v2018_v36 = vadd.f32 %v2017_v63, %v1995_v44 }
 0x247   :  { %v2038_v29 = vrot.slane %v2037_v40, 1  ;;  %v2058_v19 = vrot.slane %v2057_v8, 2 }
 0x249   :  { %v2039_v61 = vadd.f32 %v2038_v29, %v2037_v40  ;;  %v2059_v54 = vadd.f32 %v2058_v19, %v2057_v8 }
 0x24b   :  { %v2040_v21 = vadd.f32 %v2039_v61, %v2018_v36  ;;  %v2060_v17 = vrot.slane %v2059_v54, 1 }
 0x24d   :  { %v2061_v14 = vadd.f32 %v2060_v17, %v2059_v54 }
 0x24f   :  { %v2062_v23 = vadd.f32 %v2061_v14, %v2040_v21 }
 0x251   :  { %v2063_v38 = vmul.f32 0.0078125, %v2062_v23 }
 0x253   :  { %v2065_v45 = vadd.f32 1e-05, %v2063_v38 }
 0x255   :  { %2557 = vrsqrt.f32 %v2065_v45 }
 0x25f   :  { %v2558_v62 = vpop.eup %2557 }
 0x260   :  { %v2067_v35 = vmul.f32 %v2558_v62, %v2064_v13 }
 0x262   :  { %v2069_v2 = vmul.f32 %v2067_v35, %v3580_v5  ;;  %v2075_v12 = vrot.slane %v2067_v35, %v2074_v43 }
 0x264   :  { %v2070_v37 = vsub.f32 %v2068_v32, %v2069_v2  ;;  %v2157_v46 = vmul.f32 %v2075_v12, %v3570_v51  ;;  %v2096_v26 = vmul.f32 %v2075_v12, %v3522_v4  ;;  %v2095_v50 = vmul.f32 %v2075_v12, %v3518_v10 }
 0x265   :  { %v2098_v59 = vmul.f32 %v3520_v56, %v2075_v12  ;;  %v2097_v22 = vmul.f32 %v3516_v9, %v2075_v12  ;;  %v2169_v0 = vmul.f32 %v2075_v12, %v3554_v15  ;;  %v2168_v3 = vmul.f32 %v2075_v12, %v3550_v6 }
 0x266   :  { %v2085_v58 = vrot.slane %v2070_v37, %v2074_v43  ;;  %v2171_v30 = vmul.f32 %v3552_v52, %v2075_v12  ;;  %v2170_v5 = vmul.f32 %v3548_v53, %v2075_v12  ;;  %v2078_v27 = vmul.f32 %v2075_v12, %v3538_v47 }
 0x267   :  { %v2077_v51 = vmul.f32 %v2075_v12, %v3534_v42  ;;  %v2080_v4 = vmul.f32 %v3536_v24, %v2075_v12  ;;  %v2079_v10 = vmul.f32 %v3532_v48, %v2075_v12  ;;  %v2156_v56 = vmul.f32 %v2075_v12, %v3566_v41 }
 0x268   :  { %v3652_v9 = vadd.f32 %v2157_v46, %v2085_v58  ;;  %v2100_v15 = vadd.f32 %v2096_v26, %v2085_v58  ;;  %v2099_v57 = vadd.f32 %v2095_v50, %v2085_v58  ;;  %v2102_v6 = vadd.f32 %v2098_v59, %v2085_v58 }
 0x269   :  { %v2101_v39 = vadd.f32 %v2097_v22, %v2085_v58  ;;  %v2173_v16 = vadd.f32 %v2169_v0, %v2085_v58  ;;  %v2172_v52 = vadd.f32 %v2168_v3, %v2085_v58  ;;  %v2175_v33 = vadd.f32 %v2171_v30, %v2085_v58 }
 0x26a   :  { %v2104_v53 = vmax.f32 %v2100_v15, 0.0  ;;  %v2103_v25 = vmax.f32 %v2099_v57, 0.0  ;;  %v2174_v42 = vadd.f32 %v2170_v5, %v2085_v58  ;;  %v2088_v24 = vadd.f32 %v2085_v58, %v2078_v27 }
 0x26b   :  { %v2087_v48 = vadd.f32 %v2085_v58, %v2077_v51  ;;  %v2090_v47 = vadd.f32 %v2085_v58, %v2080_v4  ;;  %v2089_v41 = vadd.f32 %v2085_v58, %v2079_v10  ;;  %v2160_v55 = vadd.f32 %v2156_v56, %v2085_v58 }
 0x26c   :  { %2113 = vrot.lane.b32.xlu1 %v2104_v53, %s2576_s14  ;;  %2111 = vrot.lane.b32.xlu0 %v2103_v25, %s2576_s14  ;;  %v2159_v20 = vmul.f32 %v3568_v31, %v2075_v12  ;;  %v2106_v1 = vmax.f32 %v2102_v6, 0.0  ;;  %v2105_v28 = vmax.f32 %v2101_v39, 0.0  ;;  %v2158_v34 = vmul.f32 %v3564_v18, %v2075_v12 }
 0x26d   :  { %v2177_v44 = vmax.f32 %v2173_v16, 0.0  ;;  %v2176_v11 = vmax.f32 %v2172_v52, 0.0  ;;  %v2179_v60 = vmax.f32 %v2175_v33, 0.0  ;;  %v2178_v31 = vmax.f32 %v2174_v42, 0.0 }
 0x26e   :  { %v3658_v7 = vadd.f32 %v2159_v20, %v2085_v58  ;;  %v3662_v49 = vadd.f32 %v2158_v34, %v2085_v58  ;;  %v2092_v18 = vmax.f32 %v2088_v24, 0.0  ;;  %v2091_v63 = vmax.f32 %v2087_v48, 0.0 }
 0x26f   :  { %v2094_v17 = vmax.f32 %v2090_v47, 0.0  ;;  %v2093_v14 = vmax.f32 %v2089_v41, 0.0  ;;  %v2165_v37 = vmax.f32 %v3652_v9, 0.0  ;;  %v2164_v46 = vmax.f32 %v2160_v55, 0.0 }
 0x270   :  { %2117 = vrot.lane.b32.xlu1 %v2106_v1, %s2576_s14  ;;  %2115 = vrot.lane.b32.xlu0 %v2105_v28, %s2576_s14  ;;  %v2167_v51 = vmax.f32 %v3658_v7, 0.0  ;;  %v2166_v4 = vmax.f32 %v3662_v49, 0.0 }
 0x274   :  { %2186 = vrot.lane.b32.xlu1 %v2177_v44, %s2576_s14  ;;  %2184 = vrot.lane.b32.xlu0 %v2176_v11, %s2576_s14 }
 0x278   :  { %2190 = vrot.lane.b32.xlu1 %v2179_v60, %s2576_s14  ;;  %2188 = vrot.lane.b32.xlu0 %v2178_v31, %s2576_s14 }
 0x2de   :  { %v2114_v40 = vpop.permute.xlu1 %2113  ;;  %v2112_v8 = vpop.permute.xlu0 %2111 }
 0x2df   :  { %v2124_v36 = vsel %vm349_vm1, %v2092_v18, %v2114_v40  ;;  %v2123_v29 = vsel %vm349_vm1, %v2091_v63, %v2112_v8 }
 0x2e0   :  { %v2132_v19 = vcombine.high %v2124_v36, %v2124_v36  ;;  %v2141_v61 = vpack.c.bf16 %v2124_v36, %v2124_v36  ;;  %v2131_v54 = vcombine.high %v2123_v29, %v2123_v29  ;;  %v2139_v21 = vpack.c.bf16 %v2123_v29, %v2123_v29 }
 0x2e2   :  { %v2142_v23 = vpack.c.bf16 %v2132_v19, %v2132_v19  ;;  %2150 = vst.msk [vmem:[%s3747_s4 + $0x8] sm:$0x3] %vm2147_vm11, %v2141_v61  ;;  %v2140_v38 = vpack.c.bf16 %v2131_v54, %v2131_v54  ;;  %2148 = vst.msk [vmem:[%s3747_s4] sm:$0x3] %vm2147_vm11, %v2139_v21  ;;  %v2118_v45 = vpop.permute.xlu1 %2117  ;;  %v2116_v13 = vpop.permute.xlu0 %2115 }
 0x2e3   :  { %v2126_v43 = vsel %vm349_vm1, %v2094_v17, %v2118_v45  ;;  %v2125_v62 = vsel %vm349_vm1, %v2093_v14, %v2116_v13 }
 0x2e4   :  { %2151 = vst.msk [vmem:[%s3747_s4 + $0xc] sm:$0x3] %vm2147_vm11, %v2142_v23  ;;  %2149 = vst.msk [vmem:[%s3747_s4 + $0x4] sm:$0x3] %vm2147_vm11, %v2140_v38  ;;  %v2134_v35 = vcombine.high %v2126_v43, %v2126_v43  ;;  %v2145_v32 = vpack.c.bf16 %v2126_v43, %v2126_v43  ;;  %v2133_v2 = vcombine.high %v2125_v62, %v2125_v62 }
 0x2e5   :  { %v2143_v12 = vpack.c.bf16 %v2125_v62, %v2125_v62 }
 0x2e6   :  { %v2146_v26 = vpack.c.bf16 %v2134_v35, %v2134_v35  ;;  %2154 = vst.msk [vmem:[%s3747_s4 + $0x18] sm:$0x3] %vm2147_vm11, %v2145_v32  ;;  %v2144_v50 = vpack.c.bf16 %v2133_v2, %v2133_v2  ;;  %v2187_v59 = vpop.permute.xlu1 %2186  ;;  %v2185_v22 = vpop.permute.xlu0 %2184 }
 0x2e7   :  { %2152 = vst.msk [vmem:[%s3747_s4 + $0x10] sm:$0x3] %vm2147_vm11, %v2143_v12  ;;  %v2197_v0 = vsel %vm349_vm1, %v2165_v37, %v2187_v59  ;;  %v2196_v3 = vsel %vm349_vm1, %v2164_v46, %v2185_v22 }
 0x2e8   :  { %2155 = vst.msk [vmem:[%s3747_s4 + $0x1c] sm:$0x3] %vm2147_vm11, %v2146_v26  ;;  %2153 = vst.msk [vmem:[%s3747_s4 + $0x14] sm:$0x3] %vm2147_vm11, %v2144_v50  ;;  %v2205_v58 = vcombine.high %v2197_v0, %v2197_v0  ;;  %v2214_v30 = vpack.c.bf16 %v2197_v0, %v2197_v0  ;;  %v2204_v5 = vcombine.high %v2196_v3, %v2196_v3 }
 0x2e9   :  { %v2212_v27 = vpack.c.bf16 %v2196_v3, %v2196_v3 }
 0x2ea   :  { %v2215_v10 = vpack.c.bf16 %v2205_v58, %v2205_v58  ;;  %2395 = vst.msk [vmem:[%s3747_s4 + $0xa] sm:$0x3] %vm2147_vm11, %v2214_v30  ;;  %v2213_v56 = vpack.c.bf16 %v2204_v5, %v2204_v5  ;;  %v2191_v9 = vpop.permute.xlu1 %2190  ;;  %v2189_v15 = vpop.permute.xlu0 %2188 }
 0x2eb   :  { %2393 = vst.msk [vmem:[%s3747_s4 + $0x2] sm:$0x3] %vm2147_vm11, %v2212_v27  ;;  %v2199_v57 = vsel %vm349_vm1, %v2167_v51, %v2191_v9  ;;  %v2198_v6 = vsel %vm349_vm1, %v2166_v4, %v2189_v15 }
 0x2ec   :  { %2396 = vst.msk [vmem:[%s3747_s4 + $0xe] sm:$0x3] %vm2147_vm11, %v2215_v10  ;;  %2394 = vst.msk [vmem:[%s3747_s4 + $0x6] sm:$0x3] %vm2147_vm11, %v2213_v56  ;;  %v2207_v39 = vcombine.high %v2199_v57, %v2199_v57  ;;  %v2218_v16 = vpack.c.bf16 %v2199_v57, %v2199_v57  ;;  %v2206_v52 = vcombine.high %v2198_v6, %v2198_v6 }
 0x2ed   :  { %v2216_v33 = vpack.c.bf16 %v2198_v6, %v2198_v6 }
 0x2ee   :  { %v2219_v53 = vpack.c.bf16 %v2207_v39, %v2207_v39  ;;  %2399 = vst.msk [vmem:[%s3747_s4 + $0x1a] sm:$0x3] %vm2147_vm11, %v2218_v16  ;;  %v2217_v25 = vpack.c.bf16 %v2206_v52, %v2206_v52 }
 0x2ef   :  { %2397 = vst.msk [vmem:[%s3747_s4 + $0x12] sm:$0x3] %vm2147_vm11, %v2216_v33 }
 0x2f0   :  { %2400 = vst.msk [vmem:[%s3747_s4 + $0x1e] sm:$0x3] %vm2147_vm11, %v2219_v53  ;;  %2398 = vst.msk [vmem:[%s3747_s4 + $0x16] sm:$0x3] %vm2147_vm11, %v2217_v25 }

// kernel: vae_forward.5
= control target key start
LH: loop header
LB: loop body
LE: loop exit
PB: predicated region body
PF: predicated region fallthrough
CT: control target
= control target key end

     0   :  { %8 = vsyncpa [#allocation4], 0  ;;  %s4812_s0 = inlined_call_operand.vmem [shape: bf16[2,12288], index: 0, kind: input, shape index: {}]   ;;  %s4813_s1 = inlined_call_operand.hbm [shape: bf16[12288,128], index: 1, kind: input, shape index: {}]   ;;  %s4814_s2 = inlined_call_operand.vmem [shape: f32[1,128], index: 2, kind: input, shape index: {}]   ;;  %s4815_s3 = inlined_call_operand.vmem [shape: bf16[2,128], index: 3, kind: output, shape index: {}]  }
   0x1   :  { %10 = vsyncpa [#allocation4 + $0x1], 0  ;;  %s4371_s12 = smov 0   ;;  %s4373_s13 = smov 0  }
   0x2   :  { %s4375_s14 = smov 0   ;;  %s4377_s15 = smov 0  }
   0x3   :  { %s4379_s16 = smov 0   ;;  %s4381_s17 = smov 0  }
   0x4 LB: > { %s3320_s18 = sadd.s32 4294967295, %s4344_s17   ;;  %s28_s19 = sadd.s32 1, %s4340_s16  ;;  %s4344_s17 = sphi %s4381_s17, %s16_s17   ;;  %s4340_s16 = sphi %s4379_s16, %s4823_s16   ;;  %s4336_s15 = sphi %s4377_s15, %s4822_s15   ;;  %s4332_s14 = sphi %s4375_s14, %s4821_s14   ;;  %s4328_s13 = sphi %s4373_s13, %s4820_s13   ;;  %s4324_s12 = sphi %s4371_s12, %s4819_s12  }
   0x5   : > { %p29_p0 = scmp.ge.s32.totalorder %s28_s19, 3  ;;  %s72_s20 = sadd.s32 1, %s4332_s14 }
   0x6   : > { %p79_p1 = scmp.ne.s32.totalorder %s4332_s14, %s4328_s13  ;;  %p80_p2 = scmp.eq.s32.totalorder %s4344_s17, 0 }
   0x7   : > { %s4825_s19 = smov (%p29_p0, %s28_s19), 0  ;;  %p85_p4 = scmp.ne.s32.totalorder %s4328_s13, %s4324_s12 }
   0x8   : > { %p4407_p3 = por %p80_p2, %p79_p1  ;;  %s67_s22 = ssub.s32 %s4340_s16, %s4825_s19 }
   0x9   : > { %p86_p5 = scmp.eq.s32.totalorder %s3320_s18, 0  ;;  %p70_p6 = scmp.eq.s32.totalorder %s67_s22, 0 }
   0xa   : > { %p3951_p8 = scmp.lt.s32.totalorder %s4344_s17, 3  ;;  %s181_s25 = sand.u32 1, %s4332_s14  }
   0xb   : > { %p4414_p7 = por %p86_p5, %p85_p4  ;;  %s3592_s26 = sshll.u32 %s4340_s16, 15 }
   0xc   : > { %s4420_s24 = scalar_select %p70_p6, %s4332_s14, %s72_s20  }
   0xd   : > { %s3324_s27 = sshll.u32 %s181_s25, 11  ;;  %s4427_s30 = scalar_lea.hbm %s4813_s1, %s3592_s26 }
   0xe   : > { %s185_s4 = scalar_lea.vmem [#allocation3], %s3324_s27  ;;  %p4431_p9 = pnand %p3951_p8, %p4407_p3 }
   0xf   : > { %s193_s5 = sshll.u32 %s185_s4, 4  ;;  %s4437_s7 = scalar_lea.sflag [#allocation4], %s181_s25  ;;  %s4435_s5 = int_to_ptr.vmem [resolvable:$true] %s193_s5 }
  0x10   : > { %s4264_s8 = scalar_lea.hbm %s4427_s30, 32768  ;;  %p4266_p11 = pneg %p4431_p9 }
  0x11   : > { %p4265_p10 = scmp.ne.s32.totalorder %s4427_s30, %s4264_s8  ;;  %s4269_s11 = scalar_lea.hbm %s4813_s1, 98304 }
  0x12   : > { %p4270_p0 = scmp.lt.u32.totalorder %s4427_s30, %s4813_s1  ;;  %p4271_p1 = scmp.lt.u32.totalorder %s4269_s11, %s4264_s8 }
  0x13   : > { %p4267_p12 = pnand %p4266_p11, %p4265_p10  ;;  %p4273_p3 = scmp.lt.u32.totalorder %s4264_s8, %s4427_s30 }
  0x14   : > { %p4272_p2 = por %p4271_p1, %p4270_p0 }
  0x15   : > { %p4268_p13 = pneg %p4267_p12 }
  0x16   : > { %p4274_p4 = por %p4273_p3, %p4272_p2 }
  0x18   : > { %p4275_p5 = pnand %p4274_p4, %p4268_p13 }
  0x1a   : > { %4278 = shalt.err (!%p4275_p5)
}
  0x1b   : > { %s4279_s20 = scalar_lea.vmem %s4435_s5, 32768  ;;  %s4346_s21 = smov [#allocation3]  }
  0x1c   : > { %p4280_p6 = scmp.ne.s32.totalorder %s4435_s5, %s4279_s20  ;;  %s4284_s22 = sshll.u32 %s4346_s21, 4  ;;  %s4285_s22 = int_to_ptr.vmem [resolvable:$false] %s4284_s22 }
  0x1d   : > { %s4286_s25 = scalar_lea.vmem %s4285_s22, 65536  ;;  %p4287_p12 = scmp.lt.s32.totalorder %s4435_s5, %s4285_s22 }
  0x1e   : > { %p4282_p8 = pnand %p4280_p6, %p4266_p11  ;;  %p4288_p0 = scmp.lt.s32.totalorder %s4286_s25, %s4279_s20 }
  0x20   : > { %p4283_p10 = pneg %p4282_p8  ;;  %p4289_p1 = por %p4288_p0, %p4287_p12 }
  0x22   : > { %p4290_p2 = pnand %p4289_p1, %p4283_p10 }
  0x24   : > { %4293 = shalt.err (!%p4290_p2)
}
  0x25   : > { %s4347_s26 = smov 64   ;;  %s4348_s27 = smov 4  }
  0x26   : > { %3950 = dma.hbm_to_vmem [thread:$0]  (!%p4431_p9), %s4427_s30, 32768, %s4435_s5, %s4437_s7, %s4347_s26, %s4347_s26, %s4348_s27  }
  0x27   : > { %p3327_p11 = scmp.ge.s32.totalorder %s4344_s17, 1  ;;  %p201_p13 = scmp.lt.s32.totalorder %s4344_s17, 4 }
  0x29   : > { %p202_p3 = pnand %p3327_p11, %p201_p13 }
  0x2a   : > { %s207_s28 = sand.u32 (!%p202_p3), 1, %s4328_s13  }
  0x2b   : > { %205 = sbr.rel (%p202_p3) target bundleno = 554 (0x22a), region = 32  ;;  %s3328_s29 = sshll.u32 (!%p202_p3), %s207_s28, 11 }
  0x2c   : > { %s208_s4 = scalar_lea.sflag (!%p202_p3), [#allocation4], %s207_s28  ;;  %s4468_s8 = scalar_lea.vmem (!%p202_p3), [#allocation3], %s3328_s29 }
  0x32   : > { %4319 = dma.done.wait (%p4414_p7), %s208_s4, 32768  }
  0x33   : > { %4321 = vsyncadd (%p4414_p7), %s208_s4, 4294934528  ;;  %s3329_s9 = sshll.u32 %s4336_s15, 5  ;;  %p3330_p9 = scmp.ne.s32.totalorder %s4336_s15, 0 }
  0x34   : > { %p249_p4 = scmp.lt.s32.totalorder %s3329_s9, 95  ;;  %v4349_v0 = vmov (!%p3330_p9), 0.0  }
  0x35   : > { %269 = sbr.rel (%p3330_p9) target bundleno = 60 (0x3c), region = 40  ;;  %270 = vst [vmem:[#allocation2] sm:$0x3] (!%p3330_p9), %v4349_v0 }
  0x36   : > { %s4827_s9 = smov (!%p249_p4, %s3329_s9), 95 }
  0x37   : > { %s4478_s6 = scalar_lea.vmem %s4812_s0, %s4827_s9 }
  0x3c PF: > { %v4004_v1 = vld [vmem:[%s4468_s8 + $0x40] sm:$0xff]   ;;  %v4008_v5 = vld [vmem:[%s4468_s8 + $0x48] sm:$0xff]   ;;  %v4012_v9 = vld [vmem:[%s4468_s8 + $0x50] sm:$0xff]   ;;  %v796_v29 = vlaneseq  ;;  %v4350_v37 = vmov 1966171168   ;;  %p3587_p7 = scmp.ne.s32.totalorder %s4336_s15, 2 }
  0x3d   : > { %v4005_v2 = vld [vmem:[%s4468_s8 + $0xc0] sm:$0xff]   ;;  %3593 = vmatprep.subr.bf16.mxu0 %v4004_v1  ;;  %v4009_v6 = vld [vmem:[%s4468_s8 + $0xc8] sm:$0xff]   ;;  %v4013_v10 = vld [vmem:[%s4468_s8 + $0xd0] sm:$0xff]   ;;  %v794_v38 = vunpack.c.l.s4 %v4350_v37 }
  0x3e   : > { %v4006_v3 = vld [vmem:[%s4468_s8] sm:$0xff]   ;;  %3615 = vmatprep.subr.bf16.mxu1 %v4005_v2  ;;  %v4010_v7 = vld [vmem:[%s4468_s8 + $0x8] sm:$0xff]   ;;  %v4014_v11 = vld [vmem:[%s4468_s8 + $0x10] sm:$0xff]   ;;  %v797_v34 = vshrl.u32 %v796_v29, 7 }
  0x3f   : > { %v4007_v4 = vld [vmem:[%s4468_s8 + $0x80] sm:$0xff]   ;;  %3594 = vmatpush3.bf16.msra.mxu0 %v4006_v3  ;;  %v4011_v8 = vld [vmem:[%s4468_s8 + $0x88] sm:$0xff]   ;;  %v4015_v12 = vld [vmem:[%s4468_s8 + $0x90] sm:$0xff]   ;;  %v795_v41 = vunpack.c.0.s8 %v794_v38 }
  0x40   : > { %3616 = vmatpush3.bf16.msra.mxu1 %v4007_v4  ;;  %3595 = vmatprep.subr.bf16.mxu0 %v4008_v5  ;;  %v4016_v13 = vld [vmem:[%s4468_s8 + $0x58] sm:$0xff]   ;;  %v4020_v17 = vld [vmem:[%s4468_s8 + $0x60] sm:$0xff]   ;;  %v4024_v21 = vld [vmem:[%s4468_s8 + $0x68] sm:$0xff]  }
  0x41   : > { %3617 = vmatprep.subr.bf16.mxu1 %v4009_v6  ;;  %v4017_v14 = vld [vmem:[%s4468_s8 + $0xd8] sm:$0xff]   ;;  %v4021_v18 = vld [vmem:[%s4468_s8 + $0xe0] sm:$0xff]   ;;  %v4025_v22 = vld [vmem:[%s4468_s8 + $0xe8] sm:$0xff]   ;;  %v4516_v42 = vsub.s32 %v795_v41, %v797_v34 }
  0x42   : > { %v4018_v15 = vld [vmem:[%s4468_s8 + $0x18] sm:$0xff]   ;;  %v4022_v19 = vld [vmem:[%s4468_s8 + $0x20] sm:$0xff]   ;;  %v4026_v23 = vld [vmem:[%s4468_s8 + $0x28] sm:$0xff]  }
  0x43   : > { %3596 = vmatpush3.bf16.msra.mxu0 %v4010_v7  ;;  %v4019_v16 = vld [vmem:[%s4468_s8 + $0x98] sm:$0xff]   ;;  %v4023_v20 = vld [vmem:[%s4468_s8 + $0xa0] sm:$0xff]   ;;  %v4027_v24 = vld [vmem:[%s4468_s8 + $0xa8] sm:$0xff]  }
  0x44   : > { %3618 = vmatpush3.bf16.msra.mxu1 %v4011_v8  ;;  %3597 = vmatprep.subr.bf16.mxu0 %v4012_v9  ;;  %v4028_v25 = vld [vmem:[%s4468_s8 + $0x70] sm:$0xff]   ;;  %v4032_v30 = vld [vmem:[%s4468_s8 + $0x78] sm:$0xff]   ;;  %v4037_v36 = vld [vmem:[%s4468_s8 + $0x140] sm:$0xff]  }
  0x45   : > { %3619 = vmatprep.subr.bf16.mxu1 %v4013_v10  ;;  %v4029_v26 = vld [vmem:[%s4468_s8 + $0xf0] sm:$0xff]   ;;  %v4033_v31 = vld [vmem:[%s4468_s8 + $0xf8] sm:$0xff]   ;;  %v4038_v39 = vld [vmem:[%s4468_s8 + $0x1c0] sm:$0xff]  }
  0x46   : > { %v4030_v27 = vld [vmem:[%s4468_s8 + $0x30] sm:$0xff]   ;;  %v4034_v32 = vld [vmem:[%s4468_s8 + $0x38] sm:$0xff]   ;;  %v4039_v48 = vld [vmem:[%s4468_s8 + $0x100] sm:$0xff]  }
  0x47   : > { %3598 = vmatpush3.bf16.msra.mxu0 %v4014_v11  ;;  %v4031_v28 = vld [vmem:[%s4468_s8 + $0xb0] sm:$0xff]   ;;  %v4035_v33 = vld [vmem:[%s4468_s8 + $0xb8] sm:$0xff]   ;;  %v4040_v50 = vld [vmem:[%s4468_s8 + $0x180] sm:$0xff]  }
  0x48   : > { %3620 = vmatpush3.bf16.msra.mxu1 %v4015_v12  ;;  %3599 = vmatprep.subr.bf16.mxu0 %v4016_v13  ;;  %v272_v35 = vld [vmem:[%s4478_s6] sm:$0xff]  ;;  %v4041_v53 = vld [vmem:[%s4468_s8 + $0x148] sm:$0xff]   ;;  %v4045_v59 = vld [vmem:[%s4468_s8 + $0x150] sm:$0xff]  }
  0x49   : > { %3621 = vmatprep.subr.bf16.mxu1 %v4017_v14  ;;  %v792_v40 = vcombine.high %v272_v35, %v272_v35  ;;  %v799_v43 = vrot.slane %v272_v35, %v4516_v42  ;;  %v4042_v55 = vld [vmem:[%s4468_s8 + $0x1c8] sm:$0xff]   ;;  %v4046_v60 = vld [vmem:[%s4468_s8 + $0x1d0] sm:$0xff]   ;;  %v4049_v63 = vld [vmem:[%s4468_s8 + $0x158] sm:$0xff]  }
  0x4a   : > { %v4043_v56 = vld [vmem:[%s4468_s8 + $0x108] sm:$0xff]   ;;  %v4047_v61 = vld [vmem:[%s4468_s8 + $0x110] sm:$0xff]   ;;  %v4050_v0 = vld [vmem:[%s4468_s8 + $0x1d8] sm:$0xff]  }
  0x4b   : > { %3600 = vmatpush3.bf16.msra.mxu0 %v4018_v15  ;;  %v4520_v44 = vrot.slane %v792_v40, %v4516_v42  ;;  %v807_v45 = vcombine.high %v799_v43, %v799_v43  ;;  %v815_v46 = vrot.slane %v799_v43, %v4516_v42  ;;  %v4044_v58 = vld [vmem:[%s4468_s8 + $0x188] sm:$0xff]   ;;  %v4048_v62 = vld [vmem:[%s4468_s8 + $0x190] sm:$0xff]   ;;  %v4051_v1 = vld [vmem:[%s4468_s8 + $0x118] sm:$0xff]  }
  0x4c   : > { %3622 = vmatpush3.bf16.msra.mxu1 %v4019_v16  ;;  %3601 = vmatprep.subr.bf16.mxu0 %v4020_v17  ;;  %v4052_v2 = vld [vmem:[%s4468_s8 + $0x198] sm:$0xff]   ;;  %v4053_v3 = vld [vmem:[%s4468_s8 + $0x160] sm:$0xff]   ;;  %v4057_v7 = vld [vmem:[%s4468_s8 + $0x168] sm:$0xff]  }
  0x4d   : > { %3623 = vmatprep.subr.bf16.mxu1 %v4021_v18  ;;  %v808_v47 = vcombine.high %v4520_v44, %v4520_v44  ;;  %v829_v49 = vrot.slane %v807_v45, %v4516_v42  ;;  %v837_v52 = vcombine.high %v815_v46, %v815_v46  ;;  %v4054_v4 = vld [vmem:[%s4468_s8 + $0x1e0] sm:$0xff]   ;;  %v4058_v8 = vld [vmem:[%s4468_s8 + $0x1e8] sm:$0xff]   ;;  %v4061_v11 = vld [vmem:[%s4468_s8 + $0x170] sm:$0xff]  }
  0x4e   : > { %v4055_v5 = vld [vmem:[%s4468_s8 + $0x120] sm:$0xff]   ;;  %v4059_v9 = vld [vmem:[%s4468_s8 + $0x128] sm:$0xff]   ;;  %v4062_v12 = vld [vmem:[%s4468_s8 + $0x1f0] sm:$0xff]  }
  0x4f   : > { %3602 = vmatpush3.bf16.msra.mxu0 %v4022_v19  ;;  %v836_v51 = vrot.slane %v808_v47, %v4516_v42  ;;  %2588 = vmatprep.mubr.bf16.mxu0 %v829_v49  ;;  %v839_v54 = vcombine.high %v829_v49, %v829_v49  ;;  %v4056_v6 = vld [vmem:[%s4468_s8 + $0x1a0] sm:$0xff]   ;;  %v4060_v10 = vld [vmem:[%s4468_s8 + $0x1a8] sm:$0xff]   ;;  %v4063_v13 = vld [vmem:[%s4468_s8 + $0x130] sm:$0xff]   ;;  %v822_v19 = vrot.slane %v4520_v44, %v4516_v42 }
  0x50   : > { %3624 = vmatpush3.bf16.msra.mxu1 %v4023_v20  ;;  %3603 = vmatprep.subr.bf16.mxu0 %v4024_v21  ;;  %v4064_v14 = vld [vmem:[%s4468_s8 + $0x1b0] sm:$0xff]   ;;  %v4065_v15 = vld [vmem:[%s4468_s8 + $0x178] sm:$0xff]   ;;  %v4069_v20 = vld [vmem:[%s4468_s8 + $0x240] sm:$0xff]  }
  0x51   : > { %3625 = vmatprep.subr.bf16.mxu1 %v4025_v22  ;;  %v840_v57 = vcombine.high %v836_v51, %v836_v51  ;;  %2628 = vmatprep.mubr.bf16.mxu1 %v839_v54  ;;  %v4066_v16 = vld [vmem:[%s4468_s8 + $0x1f8] sm:$0xff]   ;;  %v4070_v21 = vld [vmem:[%s4468_s8 + $0x2c0] sm:$0xff]   ;;  %v4077_v29 = vld [vmem:[%s4468_s8 + $0x250] sm:$0xff]  }
  0x52   : > { %v4067_v17 = vld [vmem:[%s4468_s8 + $0x138] sm:$0xff]   ;;  %v4071_v22 = vld [vmem:[%s4468_s8 + $0x200] sm:$0xff]   ;;  %v4089_v41 = vld [vmem:[%s4468_s8 + $0x268] sm:$0xff]  }
  0x53   : > { %3604 = vmatpush3.bf16.msra.mxu0 %v4026_v23  ;;  %v4068_v18 = vld [vmem:[%s4468_s8 + $0x1b8] sm:$0xff]   ;;  %v4072_v23 = vld [vmem:[%s4468_s8 + $0x280] sm:$0xff]   ;;  %v4090_v43 = vld [vmem:[%s4468_s8 + $0x2e8] sm:$0xff]  }
  0x54   : > { %3626 = vmatpush3.bf16.msra.mxu1 %v4027_v24  ;;  %3605 = vmatprep.subr.bf16.mxu0 %v4028_v25  ;;  %v838_v24 = vcombine.high %v822_v19, %v822_v19  ;;  %v4073_v25 = vld [vmem:[%s4468_s8 + $0x248] sm:$0xff]   ;;  %v4082_v34 = vld [vmem:[%s4468_s8 + $0x2d8] sm:$0xff]   ;;  %v4085_v37 = vld [vmem:[%s4468_s8 + $0x260] sm:$0xff]  }
  0x55   : > { %3627 = vmatprep.subr.bf16.mxu1 %v4029_v26  ;;  %v4074_v26 = vld [vmem:[%s4468_s8 + $0x2c8] sm:$0xff]   ;;  %v4083_v35 = vld [vmem:[%s4468_s8 + $0x218] sm:$0xff]   ;;  %v4086_v38 = vld [vmem:[%s4468_s8 + $0x2e0] sm:$0xff]  }
  0x56   : > { %v4088_v40 = vld [vmem:[%s4468_s8 + $0x2a0] sm:$0xff]   ;;  %v4091_v44 = vld [vmem:[%s4468_s8 + $0x228] sm:$0xff]  }
  0x57   : > { %3606 = vmatpush3.bf16.msra.mxu0 %v4030_v27  ;;  %v4075_v27 = vld [vmem:[%s4468_s8 + $0x208] sm:$0xff]  }
  0x58   : > { %3628 = vmatpush3.bf16.msra.mxu1 %v4031_v28  ;;  %3607 = vmatprep.subr.bf16.mxu0 %v4032_v30  ;;  %v4076_v28 = vld [vmem:[%s4468_s8 + $0x288] sm:$0xff]   ;;  %v4078_v30 = vld [vmem:[%s4468_s8 + $0x2d0] sm:$0xff]  }
  0x59   : > { %3629 = vmatprep.subr.bf16.mxu1 %v4033_v31  ;;  %v4079_v31 = vld [vmem:[%s4468_s8 + $0x210] sm:$0xff]   ;;  %v4092_v45 = vld [vmem:[%s4468_s8 + $0x2a8] sm:$0xff]  }
  0x5a   : > { %v273_v47 = vld [vmem:[%s4478_s6 + $0x8] sm:$0xff] }
  0x5b   : > { %3608 = vmatpush3.bf16.msra.mxu0 %v4034_v32  ;;  %v4080_v32 = vld [vmem:[%s4468_s8 + $0x290] sm:$0xff]   ;;  %v848_v49 = vrot.slane %v273_v47, %v4516_v42 }
  0x5c   : > { %3630 = vmatpush3.bf16.msra.mxu1 %v4035_v33  ;;  %3637 = vmatprep.subr.bf16.mxu0 %v4037_v36  ;;  %v4081_v33 = vld [vmem:[%s4468_s8 + $0x258] sm:$0xff]  }
  0x5d   : > { %3659 = vmatprep.subr.bf16.mxu1 %v4038_v39  ;;  %v4084_v36 = vld [vmem:[%s4468_s8 + $0x298] sm:$0xff]   ;;  %v4087_v39 = vld [vmem:[%s4468_s8 + $0x220] sm:$0xff]  }
  0x5e   : > { %2589 = vmatmul.mubr.bf16.vlgmr.msra.gmra.mrb[0].mxu0 %v815_v46  ;;  %v4093_v46 = vld [vmem:[%s4468_s8 + $0x270] sm:$0xff]  }
  0x5f   : > { %3638 = vmatpush3.bf16.msra.mxu0 %v4039_v48  ;;  %2629 = vmatmul.mubr.bf16.vlgmr.msra.gmra.mrb[0].mxu1 %v837_v52  ;;  %v4094_v48 = vld [vmem:[%s4468_s8 + $0x2f0] sm:$0xff]  }
  0x60   : > { %3639 = vmatprep.subr.bf16.mxu0 %v4041_v53  ;;  %3660 = vmatpush3.bf16.msra.mxu1 %v4040_v50  ;;  %v841_v50 = vcombine.high %v273_v47, %v273_v47  ;;  %v4096_v52 = vld [vmem:[%s4468_s8 + $0x2b0] sm:$0xff]   ;;  %v856_v53 = vcombine.high %v848_v49, %v848_v49 }
  0x61   : > { %2668 = vmatprep.mubr.bf16.mxu0 %v836_v51  ;;  %3661 = vmatprep.subr.bf16.mxu1 %v4042_v55  ;;  %v4095_v51 = vld [vmem:[%s4468_s8 + $0x230] sm:$0xff]   ;;  %v4097_v55 = vld [vmem:[%s4468_s8 + $0x278] sm:$0xff]  }
  0x62   : > { %2708 = vmatprep.mubr.bf16.mxu1 %v840_v57  ;;  %v4590_v54 = vrot.slane %v841_v50, %v4516_v42  ;;  %v878_v57 = vrot.slane %v856_v53, %v4516_v42  ;;  %v4144_v47 = vld [vmem:[%s4468_s8 + $0x410] sm:$0xff]   ;;  %v4147_v50 = vld [vmem:[%s4468_s8 + $0x4d8] sm:$0xff]   ;;  %v4150_v53 = vld [vmem:[%s4468_s8 + $0x460] sm:$0xff]  }
  0x63   : > { %3640 = vmatpush3.bf16.msra.mxu0 %v4043_v56  ;;  %v4098_v56 = vld [vmem:[%s4468_s8 + $0x2f8] sm:$0xff]  }
  0x64   : > { %3641 = vmatprep.subr.bf16.mxu0 %v4045_v59  ;;  %3662 = vmatpush3.bf16.msra.mxu1 %v4044_v58  ;;  %v857_v58 = vcombine.high %v4590_v54, %v4590_v54  ;;  %v4099_v59 = vld [vmem:[%s4468_s8 + $0x238] sm:$0xff]  }
  0x65   : > { %3663 = vmatprep.subr.bf16.mxu1 %v4046_v60  ;;  %v4100_v60 = vld [vmem:[%s4468_s8 + $0x2b8] sm:$0xff]  }
  0x67   : > { %3642 = vmatpush3.bf16.msra.mxu0 %v4047_v61  ;;  %v888_v61 = vcombine.high %v878_v57, %v878_v57 }
  0x68   : > { %3643 = vmatprep.subr.bf16.mxu0 %v4049_v63  ;;  %3664 = vmatpush3.bf16.msra.mxu1 %v4048_v62  ;;  %v864_v62 = vrot.slane %v848_v49, %v4516_v42  ;;  %v4101_v63 = vld [vmem:[%s4468_s8 + $0x340] sm:$0xff]   ;;  %v4146_v49 = vld [vmem:[%s4468_s8 + $0x458] sm:$0xff]  }
  0x69   : > { %3665 = vmatprep.subr.bf16.mxu1 %v4050_v0  ;;  %v4102_v0 = vld [vmem:[%s4468_s8 + $0x3c0] sm:$0xff]  }
  0x6b   : > { %3644 = vmatpush3.bf16.msra.mxu0 %v4051_v1  ;;  %v885_v1 = vrot.slane %v857_v58, %v4516_v42  ;;  %v4155_v58 = vld [vmem:[%s4468_s8 + $0x4e8] sm:$0xff]  }
  0x6c   : > { %3645 = vmatprep.subr.bf16.mxu0 %v4053_v3  ;;  %3666 = vmatpush3.bf16.msra.mxu1 %v4052_v2  ;;  %v4103_v2 = vld [vmem:[%s4468_s8 + $0x300] sm:$0xff]  }
  0x6d   : > { %3667 = vmatprep.subr.bf16.mxu1 %v4054_v4  ;;  %v4104_v3 = vld [vmem:[%s4468_s8 + $0x380] sm:$0xff]   ;;  %v886_v4 = vcombine.high %v864_v62, %v864_v62 }
  0x6f   : > { %3646 = vmatpush3.bf16.msra.mxu0 %v4055_v5  ;;  %v4105_v5 = vld [vmem:[%s4468_s8 + $0x348] sm:$0xff]  }
  0x70   : > { %3647 = vmatprep.subr.bf16.mxu0 %v4057_v7  ;;  %3668 = vmatpush3.bf16.msra.mxu1 %v4056_v6  ;;  %v4106_v6 = vld [vmem:[%s4468_s8 + $0x3c8] sm:$0xff]   ;;  %v889_v7 = vcombine.high %v885_v1, %v885_v1 }
  0x71   : > { %3669 = vmatprep.subr.bf16.mxu1 %v4058_v8  ;;  %v4107_v8 = vld [vmem:[%s4468_s8 + $0x308] sm:$0xff]  }
  0x73   : > { %3648 = vmatpush3.bf16.msra.mxu0 %v4059_v9  ;;  %v4108_v9 = vld [vmem:[%s4468_s8 + $0x388] sm:$0xff]  }
  0x74   : > { %3649 = vmatprep.subr.bf16.mxu0 %v4061_v11  ;;  %3670 = vmatpush3.bf16.msra.mxu1 %v4060_v10  ;;  %v4109_v10 = vld [vmem:[%s4468_s8 + $0x350] sm:$0xff]  }
  0x75   : > { %3671 = vmatprep.subr.bf16.mxu1 %v4062_v12  ;;  %v4110_v11 = vld [vmem:[%s4468_s8 + $0x3d0] sm:$0xff]  }
  0x76   : > { %v4111_v12 = vld [vmem:[%s4468_s8 + $0x310] sm:$0xff]  }
  0x77   : > { %3650 = vmatpush3.bf16.msra.mxu0 %v4063_v13  ;;  %v4112_v13 = vld [vmem:[%s4468_s8 + $0x390] sm:$0xff]  }
  0x78   : > { %3651 = vmatprep.subr.bf16.mxu0 %v4065_v15  ;;  %3672 = vmatpush3.bf16.msra.mxu1 %v4064_v14  ;;  %v4113_v14 = vld [vmem:[%s4468_s8 + $0x358] sm:$0xff]  }
  0x79   : > { %3673 = vmatprep.subr.bf16.mxu1 %v4066_v16  ;;  %v4114_v15 = vld [vmem:[%s4468_s8 + $0x3d8] sm:$0xff]  }
  0x7a   : > { %v4115_v16 = vld [vmem:[%s4468_s8 + $0x318] sm:$0xff]  }
  0x7b   : > { %3652 = vmatpush3.bf16.msra.mxu0 %v4067_v17  ;;  %v4116_v17 = vld [vmem:[%s4468_s8 + $0x398] sm:$0xff]  }
  0x7c   : > { %3681 = vmatprep.subr.bf16.mxu0 %v4069_v20  ;;  %3674 = vmatpush3.bf16.msra.mxu1 %v4068_v18  ;;  %v4117_v18 = vld [vmem:[%s4468_s8 + $0x360] sm:$0xff]  }
  0x7d   : > { %3703 = vmatprep.subr.bf16.mxu1 %v4070_v21  ;;  %v4119_v20 = vld [vmem:[%s4468_s8 + $0x320] sm:$0xff]  }
  0x7e   : > { %2669 = vmatmul.mubr.bf16.vlgmr.msra.gmra.mrb[4].mxu0 %v822_v19  ;;  %v4118_v19 = vld [vmem:[%s4468_s8 + $0x3e0] sm:$0xff]  }
  0x7f   : > { %3682 = vmatpush3.bf16.msra.mxu0 %v4071_v22  ;;  %2709 = vmatmul.mubr.bf16.vlgmr.msra.gmra.mrb[4].mxu1 %v838_v24  ;;  %v4120_v21 = vld [vmem:[%s4468_s8 + $0x3a0] sm:$0xff]   ;;  %v4121_v22 = vld [vmem:[%s4468_s8 + $0x368] sm:$0xff]  }
  0x80   : > { %3683 = vmatprep.subr.bf16.mxu0 %v4073_v25  ;;  %3704 = vmatpush3.bf16.msra.mxu1 %v4072_v23  ;;  %v4122_v23 = vld [vmem:[%s4468_s8 + $0x3e8] sm:$0xff]  }
  0x81   : > { %3705 = vmatprep.subr.bf16.mxu1 %v4074_v26  ;;  %2748 = vmatprep.mubr.bf16.mxu0 %v878_v57  ;;  %v4123_v24 = vld [vmem:[%s4468_s8 + $0x328] sm:$0xff]   ;;  %v4125_v26 = vld [vmem:[%s4468_s8 + $0x370] sm:$0xff]  }
  0x82   : > { %2788 = vmatprep.mubr.bf16.mxu1 %v888_v61  ;;  %v4124_v25 = vld [vmem:[%s4468_s8 + $0x3a8] sm:$0xff]   ;;  %v4158_v61 = vld [vmem:[%s4468_s8 + $0x470] sm:$0xff]  }
  0x83   : > { %3684 = vmatpush3.bf16.msra.mxu0 %v4075_v27  ;;  %v4126_v27 = vld [vmem:[%s4468_s8 + $0x3f0] sm:$0xff]   ;;  %v4154_v57 = vld [vmem:[%s4468_s8 + $0x468] sm:$0xff]  }
  0x84   : > { %3685 = vmatprep.subr.bf16.mxu0 %v4077_v29  ;;  %3706 = vmatpush3.bf16.msra.mxu1 %v4076_v28  ;;  %v4127_v28 = vld [vmem:[%s4468_s8 + $0x330] sm:$0xff]  }
  0x85   : > { %3707 = vmatprep.subr.bf16.mxu1 %v4078_v30  ;;  %v4128_v29 = vld [vmem:[%s4468_s8 + $0x3b0] sm:$0xff]   ;;  %v4129_v30 = vld [vmem:[%s4468_s8 + $0x378] sm:$0xff]  }
  0x87   : > { %3686 = vmatpush3.bf16.msra.mxu0 %v4079_v31  ;;  %v4130_v31 = vld [vmem:[%s4468_s8 + $0x3f8] sm:$0xff]  }
  0x88   : > { %3687 = vmatprep.subr.bf16.mxu0 %v4081_v33  ;;  %3708 = vmatpush3.bf16.msra.mxu1 %v4080_v32  ;;  %v4131_v32 = vld [vmem:[%s4468_s8 + $0x338] sm:$0xff]  }
  0x89   : > { %3709 = vmatprep.subr.bf16.mxu1 %v4082_v34  ;;  %v4132_v33 = vld [vmem:[%s4468_s8 + $0x3b8] sm:$0xff]   ;;  %v871_v34 = vrot.slane %v4590_v54, %v4516_v42  ;;  %v4151_v54 = vld [vmem:[%s4468_s8 + $0x4e0] sm:$0xff]  }
  0x8b   : > { %3688 = vmatpush3.bf16.msra.mxu0 %v4083_v35  ;;  %v4134_v35 = vld [vmem:[%s4468_s8 + $0x440] sm:$0xff]  }
  0x8c   : > { %3689 = vmatprep.subr.bf16.mxu0 %v4085_v37  ;;  %3710 = vmatpush3.bf16.msra.mxu1 %v4084_v36  ;;  %v4135_v36 = vld [vmem:[%s4468_s8 + $0x4c0] sm:$0xff]  }
  0x8d   : > { %3711 = vmatprep.subr.bf16.mxu1 %v4086_v38  ;;  %v4136_v37 = vld [vmem:[%s4468_s8 + $0x400] sm:$0xff]  }
  0x8e   : > { %v4137_v38 = vld [vmem:[%s4468_s8 + $0x480] sm:$0xff]  }
  0x8f   : > { %3690 = vmatpush3.bf16.msra.mxu0 %v4087_v39  ;;  %v887_v39 = vcombine.high %v871_v34, %v871_v34 }
  0x90   : > { %3691 = vmatprep.subr.bf16.mxu0 %v4089_v41  ;;  %3712 = vmatpush3.bf16.msra.mxu1 %v4088_v40  ;;  %v4138_v40 = vld [vmem:[%s4468_s8 + $0x448] sm:$0xff]  }
  0x91   : > { %3713 = vmatprep.subr.bf16.mxu1 %v4090_v43  ;;  %v4139_v41 = vld [vmem:[%s4468_s8 + $0x4c8] sm:$0xff]  }
  0x92   : > { %v4140_v43 = vld [vmem:[%s4468_s8 + $0x408] sm:$0xff]  }
  0x93   : > { %3692 = vmatpush3.bf16.msra.mxu0 %v4091_v44  ;;  %v4141_v44 = vld [vmem:[%s4468_s8 + $0x488] sm:$0xff]  }
  0x94   : > { %3693 = vmatprep.subr.bf16.mxu0 %v4093_v46  ;;  %3714 = vmatpush3.bf16.msra.mxu1 %v4092_v45  ;;  %v4142_v45 = vld [vmem:[%s4468_s8 + $0x450] sm:$0xff]  }
  0x95   : > { %3715 = vmatprep.subr.bf16.mxu1 %v4094_v48  ;;  %v4143_v46 = vld [vmem:[%s4468_s8 + $0x4d0] sm:$0xff]  }
  0x96   : > { %v4145_v48 = vld [vmem:[%s4468_s8 + $0x490] sm:$0xff]  }
  0x97   : > { %3694 = vmatpush3.bf16.msra.mxu0 %v4095_v51  ;;  %v4148_v51 = vld [vmem:[%s4468_s8 + $0x418] sm:$0xff]  }
  0x98   : > { %3695 = vmatprep.subr.bf16.mxu0 %v4097_v55  ;;  %3716 = vmatpush3.bf16.msra.mxu1 %v4096_v52  ;;  %v4149_v52 = vld [vmem:[%s4468_s8 + $0x498] sm:$0xff]   ;;  %v4152_v55 = vld [vmem:[%s4468_s8 + $0x420] sm:$0xff]  }
  0x99   : > { %3717 = vmatprep.subr.bf16.mxu1 %v4098_v56  ;;  %v4153_v56 = vld [vmem:[%s4468_s8 + $0x4a0] sm:$0xff]  }
  0x9b   : > { %3696 = vmatpush3.bf16.msra.mxu0 %v4099_v59  ;;  %v4156_v59 = vld [vmem:[%s4468_s8 + $0x428] sm:$0xff]  }
  0x9c   : > { %3725 = vmatprep.subr.bf16.mxu0 %v4101_v63  ;;  %3718 = vmatpush3.bf16.msra.mxu1 %v4100_v60  ;;  %v4157_v60 = vld [vmem:[%s4468_s8 + $0x4a8] sm:$0xff]   ;;  %v4159_v63 = vld [vmem:[%s4468_s8 + $0x4f0] sm:$0xff]  }
  0x9d   : > { %3747 = vmatprep.subr.bf16.mxu1 %v4102_v0 }
  0x9e   : > { %2749 = vmatmul.mubr.bf16.vlgmr.msra.gmra.mrb[8].mxu0 %v864_v62  ;;  %v274_v62 = vld [vmem:[%s4478_s6 + $0x10] sm:$0xff] }
  0x9f   : > { %3726 = vmatpush3.bf16.msra.mxu0 %v4103_v2  ;;  %2828 = vmatprep.mubr.bf16.mxu0 %v885_v1  ;;  %v897_v0 = vrot.slane %v274_v62, %v4516_v42  ;;  %v890_v1 = vcombine.high %v274_v62, %v274_v62  ;;  %v4160_v2 = vld [vmem:[%s4468_s8 + $0x430] sm:$0xff]  }
  0xa0   : > { %2789 = vmatmul.mubr.bf16.vlgmr.msra.gmra.mrb[8].mxu1 %v886_v4  ;;  %3727 = vmatprep.subr.bf16.mxu0 %v4105_v5  ;;  %v4209_v62 = vld [vmem:[%s4468_s8 + $0x610] sm:$0xff]  }
  0xa1   : > { %3748 = vmatpush3.bf16.msra.mxu1 %v4104_v3  ;;  %2868 = vmatprep.mubr.bf16.mxu1 %v889_v7  ;;  %v4161_v3 = vld [vmem:[%s4468_s8 + $0x4b0] sm:$0xff]   ;;  %v905_v4 = vcombine.high %v897_v0, %v897_v0  ;;  %v4666_v5 = vrot.slane %v890_v1, %v4516_v42  ;;  %v4163_v7 = vld [vmem:[%s4468_s8 + $0x4f8] sm:$0xff]  }
  0xa2   : > { %3749 = vmatprep.subr.bf16.mxu1 %v4106_v6  ;;  %v4162_v6 = vld [vmem:[%s4468_s8 + $0x478] sm:$0xff]  }
  0xa3   : > { %3728 = vmatpush3.bf16.msra.mxu0 %v4107_v8  ;;  %v927_v8 = vrot.slane %v905_v4, %v4516_v42  ;;  %v4212_v1 = vld [vmem:[%s4468_s8 + $0x6d8] sm:$0xff]   ;;  %v4215_v4 = vld [vmem:[%s4468_s8 + $0x660] sm:$0xff]  }
  0xa4   : > { %3729 = vmatprep.subr.bf16.mxu0 %v4109_v10  ;;  %v4164_v10 = vld [vmem:[%s4468_s8 + $0x438] sm:$0xff]  }
  0xa5   : > { %3750 = vmatpush3.bf16.msra.mxu1 %v4108_v9  ;;  %v906_v9 = vcombine.high %v4666_v5, %v4666_v5 }
  0xa6   : > { %3751 = vmatprep.subr.bf16.mxu1 %v4110_v11  ;;  %v4165_v11 = vld [vmem:[%s4468_s8 + $0x4b8] sm:$0xff]  }
  0xa7   : > { %3730 = vmatpush3.bf16.msra.mxu0 %v4111_v12  ;;  %v937_v12 = vcombine.high %v927_v8, %v927_v8 }
  0xa8   : > { %3731 = vmatprep.subr.bf16.mxu0 %v4113_v14  ;;  %v4166_v14 = vld [vmem:[%s4468_s8 + $0x540] sm:$0xff]  }
  0xa9   : > { %3752 = vmatpush3.bf16.msra.mxu1 %v4112_v13  ;;  %v913_v13 = vrot.slane %v897_v0, %v4516_v42  ;;  %v4211_v0 = vld [vmem:[%s4468_s8 + $0x658] sm:$0xff]  }
  0xaa   : > { %3753 = vmatprep.subr.bf16.mxu1 %v4114_v15  ;;  %v4167_v15 = vld [vmem:[%s4468_s8 + $0x5c0] sm:$0xff]  }
  0xab   : > { %3732 = vmatpush3.bf16.msra.mxu0 %v4115_v16  ;;  %v934_v16 = vrot.slane %v906_v9, %v4516_v42  ;;  %v4220_v9 = vld [vmem:[%s4468_s8 + $0x6e8] sm:$0xff]  }
  0xac   : > { %3733 = vmatprep.subr.bf16.mxu0 %v4117_v18  ;;  %v4169_v18 = vld [vmem:[%s4468_s8 + $0x580] sm:$0xff]  }
  0xad   : > { %3754 = vmatpush3.bf16.msra.mxu1 %v4116_v17  ;;  %v4168_v17 = vld [vmem:[%s4468_s8 + $0x500] sm:$0xff]  }
  0xae   : > { %3755 = vmatprep.subr.bf16.mxu1 %v4118_v19  ;;  %v935_v19 = vcombine.high %v913_v13, %v913_v13 }
  0xaf   : > { %3734 = vmatpush3.bf16.msra.mxu0 %v4119_v20  ;;  %v4170_v20 = vld [vmem:[%s4468_s8 + $0x548] sm:$0xff]  }
  0xb0   : > { %3735 = vmatprep.subr.bf16.mxu0 %v4121_v22  ;;  %v938_v22 = vcombine.high %v934_v16, %v934_v16 }
  0xb1   : > { %3756 = vmatpush3.bf16.msra.mxu1 %v4120_v21  ;;  %v4171_v21 = vld [vmem:[%s4468_s8 + $0x5c8] sm:$0xff]  }
  0xb2   : > { %3757 = vmatprep.subr.bf16.mxu1 %v4122_v23  ;;  %v4172_v23 = vld [vmem:[%s4468_s8 + $0x508] sm:$0xff]  }
  0xb3   : > { %3736 = vmatpush3.bf16.msra.mxu0 %v4123_v24  ;;  %v4173_v24 = vld [vmem:[%s4468_s8 + $0x588] sm:$0xff]  }
  0xb4   : > { %3737 = vmatprep.subr.bf16.mxu0 %v4125_v26  ;;  %v4175_v26 = vld [vmem:[%s4468_s8 + $0x5d0] sm:$0xff]  }
  0xb5   : > { %3758 = vmatpush3.bf16.msra.mxu1 %v4124_v25  ;;  %v4174_v25 = vld [vmem:[%s4468_s8 + $0x550] sm:$0xff]  }
  0xb6   : > { %3759 = vmatprep.subr.bf16.mxu1 %v4126_v27  ;;  %v4176_v27 = vld [vmem:[%s4468_s8 + $0x510] sm:$0xff]  }
  0xb7   : > { %3738 = vmatpush3.bf16.msra.mxu0 %v4127_v28  ;;  %v4177_v28 = vld [vmem:[%s4468_s8 + $0x590] sm:$0xff]  }
  0xb8   : > { %3739 = vmatprep.subr.bf16.mxu0 %v4129_v30  ;;  %v4179_v30 = vld [vmem:[%s4468_s8 + $0x5d8] sm:$0xff]  }
  0xb9   : > { %3760 = vmatpush3.bf16.msra.mxu1 %v4128_v29  ;;  %v4178_v29 = vld [vmem:[%s4468_s8 + $0x558] sm:$0xff]  }
  0xba   : > { %3761 = vmatprep.subr.bf16.mxu1 %v4130_v31  ;;  %v4180_v31 = vld [vmem:[%s4468_s8 + $0x518] sm:$0xff]  }
  0xbb   : > { %3740 = vmatpush3.bf16.msra.mxu0 %v4131_v32  ;;  %v4181_v32 = vld [vmem:[%s4468_s8 + $0x598] sm:$0xff]  }
  0xbc   : > { %3769 = vmatprep.subr.bf16.mxu0 %v4134_v35  ;;  %v4184_v35 = vld [vmem:[%s4468_s8 + $0x520] sm:$0xff]  }
  0xbd   : > { %3762 = vmatpush3.bf16.msra.mxu1 %v4132_v33  ;;  %v4182_v33 = vld [vmem:[%s4468_s8 + $0x560] sm:$0xff]  }
  0xbe   : > { %2829 = vmatmul.mubr.bf16.vlgmr.msra.gmra.mrb[12].mxu0 %v871_v34  ;;  %3791 = vmatprep.subr.bf16.mxu1 %v4135_v36  ;;  %v4183_v34 = vld [vmem:[%s4468_s8 + $0x5e0] sm:$0xff]  }
  0xbf   : > { %3770 = vmatpush3.bf16.msra.mxu0 %v4136_v37  ;;  %2908 = vmatprep.mubr.bf16.mxu0 %v927_v8  ;;  %v4185_v36 = vld [vmem:[%s4468_s8 + $0x5a0] sm:$0xff]   ;;  %v4186_v37 = vld [vmem:[%s4468_s8 + $0x568] sm:$0xff]  }
  0xc0   : > { %2869 = vmatmul.mubr.bf16.vlgmr.msra.gmra.mrb[12].mxu1 %v887_v39  ;;  %3771 = vmatprep.subr.bf16.mxu0 %v4138_v40  ;;  %v4188_v39 = vld [vmem:[%s4468_s8 + $0x528] sm:$0xff]  }
  0xc1   : > { %3792 = vmatpush3.bf16.msra.mxu1 %v4137_v38  ;;  %2948 = vmatprep.mubr.bf16.mxu1 %v937_v12  ;;  %v4187_v38 = vld [vmem:[%s4468_s8 + $0x5e8] sm:$0xff]   ;;  %v4223_v12 = vld [vmem:[%s4468_s8 + $0x670] sm:$0xff]  }
  0xc2   : > { %3793 = vmatprep.subr.bf16.mxu1 %v4139_v41  ;;  %v4189_v40 = vld [vmem:[%s4468_s8 + $0x5a8] sm:$0xff]   ;;  %v4190_v41 = vld [vmem:[%s4468_s8 + $0x570] sm:$0xff]  }
  0xc3   : > { %3772 = vmatpush3.bf16.msra.mxu0 %v4140_v43  ;;  %v4191_v43 = vld [vmem:[%s4468_s8 + $0x5f0] sm:$0xff]   ;;  %v4219_v8 = vld [vmem:[%s4468_s8 + $0x668] sm:$0xff]  }
  0xc4   : > { %3773 = vmatprep.subr.bf16.mxu0 %v4142_v45  ;;  %v4193_v45 = vld [vmem:[%s4468_s8 + $0x5b0] sm:$0xff]  }
  0xc5   : > { %3794 = vmatpush3.bf16.msra.mxu1 %v4141_v44  ;;  %v4192_v44 = vld [vmem:[%s4468_s8 + $0x530] sm:$0xff]  }
  0xc6   : > { %3795 = vmatprep.subr.bf16.mxu1 %v4143_v46  ;;  %v4194_v46 = vld [vmem:[%s4468_s8 + $0x578] sm:$0xff]  }
  0xc7   : > { %3774 = vmatpush3.bf16.msra.mxu0 %v4144_v47  ;;  %v4195_v47 = vld [vmem:[%s4468_s8 + $0x5f8] sm:$0xff]  }
  0xc8   : > { %3775 = vmatprep.subr.bf16.mxu0 %v4146_v49  ;;  %v4197_v49 = vld [vmem:[%s4468_s8 + $0x5b8] sm:$0xff]  }
  0xc9   : > { %3796 = vmatpush3.bf16.msra.mxu1 %v4145_v48  ;;  %v4196_v48 = vld [vmem:[%s4468_s8 + $0x538] sm:$0xff]  }
  0xca   : > { %3797 = vmatprep.subr.bf16.mxu1 %v4147_v50  ;;  %v920_v50 = vrot.slane %v4666_v5, %v4516_v42  ;;  %v4216_v5 = vld [vmem:[%s4468_s8 + $0x6e0] sm:$0xff]  }
  0xcb   : > { %3776 = vmatpush3.bf16.msra.mxu0 %v4148_v51  ;;  %v4199_v51 = vld [vmem:[%s4468_s8 + $0x640] sm:$0xff]  }
  0xcc   : > { %3777 = vmatprep.subr.bf16.mxu0 %v4150_v53  ;;  %v4201_v53 = vld [vmem:[%s4468_s8 + $0x600] sm:$0xff]  }
  0xcd   : > { %3798 = vmatpush3.bf16.msra.mxu1 %v4149_v52  ;;  %v4200_v52 = vld [vmem:[%s4468_s8 + $0x6c0] sm:$0xff]  }
  0xce   : > { %3799 = vmatprep.subr.bf16.mxu1 %v4151_v54  ;;  %v4202_v54 = vld [vmem:[%s4468_s8 + $0x680] sm:$0xff]  }
  0xcf   : > { %3778 = vmatpush3.bf16.msra.mxu0 %v4152_v55  ;;  %v936_v55 = vcombine.high %v920_v50, %v920_v50 }
  0xd0   : > { %3779 = vmatprep.subr.bf16.mxu0 %v4154_v57  ;;  %v4204_v57 = vld [vmem:[%s4468_s8 + $0x6c8] sm:$0xff]  }
  0xd1   : > { %3800 = vmatpush3.bf16.msra.mxu1 %v4153_v56  ;;  %v4203_v56 = vld [vmem:[%s4468_s8 + $0x648] sm:$0xff]  }
  0xd2   : > { %3801 = vmatprep.subr.bf16.mxu1 %v4155_v58  ;;  %v4205_v58 = vld [vmem:[%s4468_s8 + $0x608] sm:$0xff]  }
  0xd3   : > { %3780 = vmatpush3.bf16.msra.mxu0 %v4156_v59  ;;  %v4206_v59 = vld [vmem:[%s4468_s8 + $0x688] sm:$0xff]  }
  0xd4   : > { %3781 = vmatprep.subr.bf16.mxu0 %v4158_v61  ;;  %v4208_v61 = vld [vmem:[%s4468_s8 + $0x6d0] sm:$0xff]  }
  0xd5   : > { %3802 = vmatpush3.bf16.msra.mxu1 %v4157_v60  ;;  %v4207_v60 = vld [vmem:[%s4468_s8 + $0x650] sm:$0xff]  }
  0xd6   : > { %3803 = vmatprep.subr.bf16.mxu1 %v4159_v63  ;;  %v4210_v63 = vld [vmem:[%s4468_s8 + $0x690] sm:$0xff]  }
  0xd7   : > { %3782 = vmatpush3.bf16.msra.mxu0 %v4160_v2  ;;  %v4213_v2 = vld [vmem:[%s4468_s8 + $0x618] sm:$0xff]  }
  0xd8   : > { %3783 = vmatprep.subr.bf16.mxu0 %v4162_v6  ;;  %v4217_v6 = vld [vmem:[%s4468_s8 + $0x620] sm:$0xff]  }
  0xd9   : > { %3804 = vmatpush3.bf16.msra.mxu1 %v4161_v3  ;;  %v4214_v3 = vld [vmem:[%s4468_s8 + $0x698] sm:$0xff]  }
  0xda   : > { %3805 = vmatprep.subr.bf16.mxu1 %v4163_v7  ;;  %v4218_v7 = vld [vmem:[%s4468_s8 + $0x6a0] sm:$0xff]  }
  0xdb   : > { %3784 = vmatpush3.bf16.msra.mxu0 %v4164_v10  ;;  %v4221_v10 = vld [vmem:[%s4468_s8 + $0x628] sm:$0xff]  }
  0xdc   : > { %3813 = vmatprep.subr.bf16.mxu0 %v4166_v14  ;;  %v4224_v14 = vld [vmem:[%s4468_s8 + $0x6f0] sm:$0xff]  }
  0xdd   : > { %3806 = vmatpush3.bf16.msra.mxu1 %v4165_v11  ;;  %v4222_v11 = vld [vmem:[%s4468_s8 + $0x6a8] sm:$0xff]  }
  0xde   : > { %2909 = vmatmul.mubr.bf16.vlgmr.msra.gmra.mrb[16].mxu0 %v913_v13  ;;  %3835 = vmatprep.subr.bf16.mxu1 %v4167_v15  ;;  %v275_v13 = vld [vmem:[%s4478_s6 + $0x18] sm:$0xff] }
  0xdf   : > { %3814 = vmatpush3.bf16.msra.mxu0 %v4168_v17  ;;  %2988 = vmatprep.mubr.bf16.mxu0 %v934_v16  ;;  %v946_v15 = vrot.slane %v275_v13, %v4516_v42  ;;  %v939_v16 = vcombine.high %v275_v13, %v275_v13  ;;  %v4225_v17 = vld [vmem:[%s4468_s8 + $0x630] sm:$0xff]  }
  0xe0   : > { %2949 = vmatmul.mubr.bf16.vlgmr.msra.gmra.mrb[16].mxu1 %v935_v19  ;;  %3815 = vmatprep.subr.bf16.mxu0 %v4170_v20 }
  0xe1   : > { %3836 = vmatpush3.bf16.msra.mxu1 %v4169_v18  ;;  %3028 = vmatprep.mubr.bf16.mxu1 %v938_v22  ;;  %v4227_v18 = vld [vmem:[%s4468_s8 + $0x678] sm:$0xff]   ;;  %v954_v19 = vcombine.high %v946_v15, %v946_v15  ;;  %v4742_v20 = vrot.slane %v939_v16, %v4516_v42 }
  0xe2   : > { %3837 = vmatprep.subr.bf16.mxu1 %v4171_v21  ;;  %v4226_v21 = vld [vmem:[%s4468_s8 + $0x6b0] sm:$0xff]   ;;  %v4228_v22 = vld [vmem:[%s4468_s8 + $0x6f8] sm:$0xff]  }
  0xe3   : > { %3816 = vmatpush3.bf16.msra.mxu0 %v4172_v23  ;;  %v976_v23 = vrot.slane %v954_v19, %v4516_v42 }
  0xe4   : > { %3817 = vmatprep.subr.bf16.mxu0 %v4174_v25  ;;  %v4229_v25 = vld [vmem:[%s4468_s8 + $0x638] sm:$0xff]  }
  0xe5   : > { %3838 = vmatpush3.bf16.msra.mxu1 %v4173_v24  ;;  %v955_v24 = vcombine.high %v4742_v20, %v4742_v20 }
  0xe6   : > { %3839 = vmatprep.subr.bf16.mxu1 %v4175_v26  ;;  %v986_v26 = vcombine.high %v976_v23, %v976_v23 }
  0xe7   : > { %3818 = vmatpush3.bf16.msra.mxu0 %v4176_v27  ;;  %v962_v27 = vrot.slane %v946_v15, %v4516_v42 }
  0xe8   : > { %3819 = vmatprep.subr.bf16.mxu0 %v4178_v29  ;;  %v4230_v29 = vld [vmem:[%s4468_s8 + $0x6b8] sm:$0xff]  }
  0xe9   : > { %3840 = vmatpush3.bf16.msra.mxu1 %v4177_v28  ;;  %v4231_v28 = vld [vmem:[%s4468_s8 + $0x740] sm:$0xff]  }
  0xea   : > { %3841 = vmatprep.subr.bf16.mxu1 %v4179_v30  ;;  %v983_v30 = vrot.slane %v955_v24, %v4516_v42 }
  0xeb   : > { %3820 = vmatpush3.bf16.msra.mxu0 %v4180_v31  ;;  %v4232_v31 = vld [vmem:[%s4468_s8 + $0x7c0] sm:$0xff]  }
  0xec   : > { %3821 = vmatprep.subr.bf16.mxu0 %v4182_v33  ;;  %v984_v33 = vcombine.high %v962_v27, %v962_v27 }
  0xed   : > { %3842 = vmatpush3.bf16.msra.mxu1 %v4181_v32  ;;  %v4233_v32 = vld [vmem:[%s4468_s8 + $0x700] sm:$0xff]  }
  0xee   : > { %3843 = vmatprep.subr.bf16.mxu1 %v4183_v34  ;;  %v4235_v34 = vld [vmem:[%s4468_s8 + $0x748] sm:$0xff]  }
  0xef   : > { %3822 = vmatpush3.bf16.msra.mxu0 %v4184_v35  ;;  %v4234_v35 = vld [vmem:[%s4468_s8 + $0x780] sm:$0xff]  }
  0xf0   : > { %3823 = vmatprep.subr.bf16.mxu0 %v4186_v37  ;;  %v4236_v37 = vld [vmem:[%s4468_s8 + $0x7c8] sm:$0xff]  }
  0xf1   : > { %3844 = vmatpush3.bf16.msra.mxu1 %v4185_v36  ;;  %v987_v36 = vcombine.high %v983_v30, %v983_v30 }
  0xf2   : > { %3845 = vmatprep.subr.bf16.mxu1 %v4187_v38  ;;  %v4237_v38 = vld [vmem:[%s4468_s8 + $0x708] sm:$0xff]  }
  0xf3   : > { %3824 = vmatpush3.bf16.msra.mxu0 %v4188_v39  ;;  %v4239_v39 = vld [vmem:[%s4468_s8 + $0x750] sm:$0xff]  }
  0xf4   : > { %3825 = vmatprep.subr.bf16.mxu0 %v4190_v41  ;;  %v4240_v41 = vld [vmem:[%s4468_s8 + $0x7d0] sm:$0xff]  }
  0xf5   : > { %3846 = vmatpush3.bf16.msra.mxu1 %v4189_v40  ;;  %v4238_v40 = vld [vmem:[%s4468_s8 + $0x788] sm:$0xff]  }
  0xf6   : > { %3847 = vmatprep.subr.bf16.mxu1 %v4191_v43  ;;  %v4241_v43 = vld [vmem:[%s4468_s8 + $0x710] sm:$0xff]  }
  0xf7   : > { %3826 = vmatpush3.bf16.msra.mxu0 %v4192_v44  ;;  %v4243_v44 = vld [vmem:[%s4468_s8 + $0x758] sm:$0xff]  }
  0xf8   : > { %3827 = vmatprep.subr.bf16.mxu0 %v4194_v46  ;;  %v4244_v46 = vld [vmem:[%s4468_s8 + $0x7d8] sm:$0xff]  }
  0xf9   : > { %3848 = vmatpush3.bf16.msra.mxu1 %v4193_v45  ;;  %v4242_v45 = vld [vmem:[%s4468_s8 + $0x790] sm:$0xff]  }
  0xfa   : > { %3849 = vmatprep.subr.bf16.mxu1 %v4195_v47  ;;  %v4245_v47 = vld [vmem:[%s4468_s8 + $0x718] sm:$0xff]  }
  0xfb   : > { %3828 = vmatpush3.bf16.msra.mxu0 %v4196_v48  ;;  %v4247_v48 = vld [vmem:[%s4468_s8 + $0x760] sm:$0xff]  }
  0xfc   : > { %3857 = vmatprep.subr.bf16.mxu0 %v4199_v51  ;;  %v4249_v51 = vld [vmem:[%s4468_s8 + $0x720] sm:$0xff]  }
  0xfd   : > { %3850 = vmatpush3.bf16.msra.mxu1 %v4197_v49  ;;  %v4246_v49 = vld [vmem:[%s4468_s8 + $0x798] sm:$0xff]  }
  0xfe   : > { %2989 = vmatmul.mubr.bf16.vlgmr.msra.gmra.mrb[20].mxu0 %v920_v50  ;;  %3879 = vmatprep.subr.bf16.mxu1 %v4200_v52  ;;  %v4248_v50 = vld [vmem:[%s4468_s8 + $0x7e0] sm:$0xff]   ;;  %v4251_v52 = vld [vmem:[%s4468_s8 + $0x768] sm:$0xff]  }
  0xff   : > { %3858 = vmatpush3.bf16.msra.mxu0 %v4201_v53  ;;  %3068 = vmatprep.mubr.bf16.mxu0 %v976_v23  ;;  %v4250_v53 = vld [vmem:[%s4468_s8 + $0x7a0] sm:$0xff]  }
 0x100   : > { %3029 = vmatmul.mubr.bf16.vlgmr.msra.gmra.mrb[20].mxu1 %v936_v55  ;;  %3859 = vmatprep.subr.bf16.mxu0 %v4203_v56  ;;  %v4253_v55 = vld [vmem:[%s4468_s8 + $0x728] sm:$0xff]   ;;  %v4255_v56 = vld [vmem:[%s4468_s8 + $0x770] sm:$0xff]  }
 0x101   : > { %3880 = vmatpush3.bf16.msra.mxu1 %v4202_v54  ;;  %3108 = vmatprep.mubr.bf16.mxu1 %v986_v26  ;;  %v4252_v54 = vld [vmem:[%s4468_s8 + $0x7e8] sm:$0xff]  }
 0x102   : > { %3881 = vmatprep.subr.bf16.mxu1 %v4204_v57 }
 0x103   : > { %3860 = vmatpush3.bf16.msra.mxu0 %v4205_v58  ;;  %v4254_v58 = vld [vmem:[%s4468_s8 + $0x7a8] sm:$0xff]  }
 0x104   : > { %3861 = vmatprep.subr.bf16.mxu0 %v4207_v60  ;;  %v4256_v60 = vld [vmem:[%s4468_s8 + $0x7f0] sm:$0xff]  }
 0x105   : > { %3882 = vmatpush3.bf16.msra.mxu1 %v4206_v59 }
 0x106   : > { %3883 = vmatprep.subr.bf16.mxu1 %v4208_v61 }
 0x107   : > { %3862 = vmatpush3.bf16.msra.mxu0 %v4209_v62 }
 0x108   : > { %3863 = vmatprep.subr.bf16.mxu0 %v4211_v0  ;;  %v4257_v0 = vld [vmem:[%s4468_s8 + $0x730] sm:$0xff]  }
 0x109   : > { %3884 = vmatpush3.bf16.msra.mxu1 %v4210_v63 }
 0x10a   : > { %3885 = vmatprep.subr.bf16.mxu1 %v4212_v1 }
 0x10b   : > { %3864 = vmatpush3.bf16.msra.mxu0 %v4213_v2 }
 0x10c   : > { %3865 = vmatprep.subr.bf16.mxu0 %v4215_v4 }
 0x10d   : > { %3886 = vmatpush3.bf16.msra.mxu1 %v4214_v3  ;;  %v4259_v3 = vld [vmem:[%s4468_s8 + $0x778] sm:$0xff]  }
 0x10e   : > { %3887 = vmatprep.subr.bf16.mxu1 %v4216_v5 }
 0x10f   : > { %3866 = vmatpush3.bf16.msra.mxu0 %v4217_v6  ;;  %v4258_v6 = vld [vmem:[%s4468_s8 + $0x7b0] sm:$0xff]  }
 0x110   : > { %3867 = vmatprep.subr.bf16.mxu0 %v4219_v8  ;;  %v4260_v8 = vld [vmem:[%s4468_s8 + $0x7f8] sm:$0xff]  }
 0x111   : > { %3888 = vmatpush3.bf16.msra.mxu1 %v4218_v7 }
 0x112   : > { %3889 = vmatprep.subr.bf16.mxu1 %v4220_v9 }
 0x113   : > { %3868 = vmatpush3.bf16.msra.mxu0 %v4221_v10  ;;  %v4261_v10 = vld [vmem:[%s4468_s8 + $0x738] sm:$0xff]  }
 0x114   : > { %3869 = vmatprep.subr.bf16.mxu0 %v4223_v12  ;;  %v4262_v12 = vld [vmem:[%s4468_s8 + $0x7b8] sm:$0xff]  }
 0x115   : > { %3890 = vmatpush3.bf16.msra.mxu1 %v4222_v11  ;;  %v969_v11 = vrot.slane %v4742_v20, %v4516_v42 }
 0x116   : > { %3891 = vmatprep.subr.bf16.mxu1 %v4224_v14 }
 0x117   : > { %3870 = vmatpush3.bf16.msra.mxu0 %v4225_v17  ;;  %v985_v13 = vcombine.high %v969_v11, %v969_v11 }
 0x118   : > { %3871 = vmatprep.subr.bf16.mxu0 %v4227_v18 }
 0x119   : > { %3892 = vmatpush3.bf16.msra.mxu1 %v4226_v21 }
 0x11a   : > { %3893 = vmatprep.subr.bf16.mxu1 %v4228_v22 }
 0x11b   : > { %3872 = vmatpush3.bf16.msra.mxu0 %v4229_v25 }
 0x11c   : > { %3901 = vmatprep.subr.bf16.mxu0 %v4231_v28 }
 0x11d   : > { %3894 = vmatpush3.bf16.msra.mxu1 %v4230_v29 }
 0x11e   : > { %3069 = vmatmul.mubr.bf16.vlgmr.msra.gmra.mrb[24].mxu0 %v962_v27  ;;  %3923 = vmatprep.subr.bf16.mxu1 %v4232_v31 }
 0x11f   : > { %3902 = vmatpush3.bf16.msra.mxu0 %v4233_v32  ;;  %3148 = vmatprep.mubr.bf16.mxu0 %v983_v30 }
 0x120   : > { %3109 = vmatmul.mubr.bf16.vlgmr.msra.gmra.mrb[24].mxu1 %v984_v33  ;;  %3903 = vmatprep.subr.bf16.mxu0 %v4235_v34 }
 0x121   : > { %3924 = vmatpush3.bf16.msra.mxu1 %v4234_v35  ;;  %3188 = vmatprep.mubr.bf16.mxu1 %v987_v36 }
 0x122   : > { %3925 = vmatprep.subr.bf16.mxu1 %v4236_v37 }
 0x123   : > { %3904 = vmatpush3.bf16.msra.mxu0 %v4237_v38 }
 0x124   : > { %3905 = vmatprep.subr.bf16.mxu0 %v4239_v39 }
 0x125   : > { %3926 = vmatpush3.bf16.msra.mxu1 %v4238_v40 }
 0x126   : > { %3927 = vmatprep.subr.bf16.mxu1 %v4240_v41 }
 0x127   : > { %3906 = vmatpush3.bf16.msra.mxu0 %v4241_v43 }
 0x128   : > { %3907 = vmatprep.subr.bf16.mxu0 %v4243_v44 }
 0x129   : > { %3928 = vmatpush3.bf16.msra.mxu1 %v4242_v45 }
 0x12a   : > { %3929 = vmatprep.subr.bf16.mxu1 %v4244_v46 }
 0x12b   : > { %3908 = vmatpush3.bf16.msra.mxu0 %v4245_v47 }
 0x12c   : > { %3909 = vmatprep.subr.bf16.mxu0 %v4247_v48 }
 0x12d   : > { %3930 = vmatpush3.bf16.msra.mxu1 %v4246_v49 }
 0x12e   : > { %3931 = vmatprep.subr.bf16.mxu1 %v4248_v50 }
 0x12f   : > { %3910 = vmatpush3.bf16.msra.mxu0 %v4249_v51 }
 0x130   : > { %3911 = vmatprep.subr.bf16.mxu0 %v4251_v52 }
 0x131   : > { %3932 = vmatpush3.bf16.msra.mxu1 %v4250_v53  ;;  %v3609_v57 = vpop.f32.mrb[0].mxu0 }
 0x132   : > { %v3610_v59 = vpop.f32.mrb[1].mxu0  ;;  %3933 = vmatprep.subr.bf16.mxu1 %v4252_v54  ;;  %v3631_v61 = vpop.f32.mrb[0].mxu1 }
 0x133   : > { %v3611_v62 = vadd.f32 %v3610_v59, %v3609_v57  ;;  %v3612_v63 = vpop.f32.mrb[2].mxu0  ;;  %3912 = vmatpush3.bf16.msra.mxu0 %v4253_v55  ;;  %v3632_v1 = vpop.f32.mrb[1].mxu1 }
 0x134   : > { %v3613_v2 = vpop.f32.mrb[3].mxu0  ;;  %3913 = vmatprep.subr.bf16.mxu0 %v4255_v56  ;;  %v3633_v4 = vadd.f32 %v3632_v1, %v3631_v61  ;;  %v3634_v5 = vpop.f32.mrb[2].mxu1 }
 0x135   : > { %3934 = vmatpush3.bf16.msra.mxu1 %v4254_v58  ;;  %v3635_v7 = vpop.f32.mrb[3].mxu1 }
 0x136   : > { %3935 = vmatprep.subr.bf16.mxu1 %v4256_v60  ;;  %v2631_v9 = vadd.f32 %v3633_v4, %v3611_v62 }
 0x137   : > { %3914 = vmatpush3.bf16.msra.mxu0 %v4257_v0 }
 0x138   : > { %3915 = vmatprep.subr.bf16.mxu0 %v4259_v3 }
 0x139   : > { %3936 = vmatpush3.bf16.msra.mxu1 %v4258_v6 }
 0x13a   : > { %3937 = vmatprep.subr.bf16.mxu1 %v4260_v8 }
 0x13b   : > { %3916 = vmatpush3.bf16.msra.mxu0 %v4261_v10 }
 0x13d   : > { %3938 = vmatpush3.bf16.msra.mxu1 %v4262_v12 }
 0x13e   : > { %3149 = vmatmul.mubr.bf16.vlgmr.msra.gmra.mrb[28].mxu0 %v969_v11 }
 0x140   : > { %3189 = vmatmul.mubr.bf16.vlgmr.msra.gmra.mrb[28].mxu1 %v985_v13 }
 0x151   : > { %v3653_v14 = vpop.f32.mrb[4].mxu0 }
 0x152   : > { %v3654_v15 = vpop.f32.mrb[5].mxu0  ;;  %v3675_v16 = vpop.f32.mrb[4].mxu1 }
 0x153   : > { %v3655_v17 = vadd.f32 %v3654_v15, %v3653_v14  ;;  %v3656_v18 = vpop.f32.mrb[6].mxu0  ;;  %v3676_v19 = vpop.f32.mrb[5].mxu1 }
 0x154   : > { %v3657_v21 = vpop.f32.mrb[7].mxu0  ;;  %v3677_v23 = vadd.f32 %v3676_v19, %v3675_v16  ;;  %v3678_v24 = vpop.f32.mrb[6].mxu1 }
 0x155   : > { %v2671_v22 = vadd.f32 %v3655_v17, %v2631_v9  ;;  %v3679_v25 = vpop.f32.mrb[7].mxu1 }
 0x157   : > { %v2711_v42 = vadd.f32 %v3677_v23, %v2671_v22 }
 0x171   : > { %v3697_v20 = vpop.f32.mrb[8].mxu0 }
 0x172   : > { %v3698_v26 = vpop.f32.mrb[9].mxu0 }
 0x173   : > { %v3719_v27 = vpop.f32.mrb[8].mxu1  ;;  %v3699_v28 = vadd.f32 %v3698_v26, %v3697_v20  ;;  %v3700_v29 = vpop.f32.mrb[10].mxu0 }
 0x174   : > { %v3720_v30 = vpop.f32.mrb[9].mxu1  ;;  %v3701_v31 = vpop.f32.mrb[11].mxu0 }
 0x175   : > { %v2751_v32 = vadd.f32 %v3699_v28, %v2711_v42  ;;  %v3721_v33 = vadd.f32 %v3720_v30, %v3719_v27  ;;  %v3722_v34 = vpop.f32.mrb[10].mxu1  ;;  %v271_v31 = vld [vmem:[#allocation2] sm:$0x3] }
 0x176   : > { %v3723_v35 = vpop.f32.mrb[11].mxu1 }
 0x177   : > { %v2791_v36 = vadd.f32 %v3721_v33, %v2751_v32 }
 0x191   : > { %v3741_v37 = vpop.f32.mrb[12].mxu0 }
 0x192   : > { %v3742_v38 = vpop.f32.mrb[13].mxu0 }
 0x193   : > { %v3763_v39 = vpop.f32.mrb[12].mxu1  ;;  %v3743_v40 = vadd.f32 %v3742_v38, %v3741_v37  ;;  %v3744_v41 = vpop.f32.mrb[14].mxu0 }
 0x194   : > { %v3764_v43 = vpop.f32.mrb[13].mxu1  ;;  %v3745_v44 = vpop.f32.mrb[15].mxu0 }
 0x195   : > { %v2831_v45 = vadd.f32 %v3743_v40, %v2791_v36  ;;  %v3765_v46 = vadd.f32 %v3764_v43, %v3763_v39  ;;  %v3766_v47 = vpop.f32.mrb[14].mxu1  ;;  %v3588_v36 = vld [vmem:[%s4814_s2] ss:$0 sm:$0xff] (!%p3587_p7) }
 0x196   : > { %v3767_v48 = vpop.f32.mrb[15].mxu1 }
 0x197   : > { %v2871_v49 = vadd.f32 %v3765_v46, %v2831_v45 }
 0x1b1   : > { %v3785_v50 = vpop.f32.mrb[16].mxu0 }
 0x1b2   : > { %v3786_v51 = vpop.f32.mrb[17].mxu0 }
 0x1b3   : > { %v3807_v52 = vpop.f32.mrb[16].mxu1  ;;  %v3787_v53 = vadd.f32 %v3786_v51, %v3785_v50  ;;  %v3788_v54 = vpop.f32.mrb[18].mxu0 }
 0x1b4   : > { %v3808_v55 = vpop.f32.mrb[17].mxu1  ;;  %v3789_v56 = vpop.f32.mrb[19].mxu0 }
 0x1b5   : > { %v2911_v57 = vadd.f32 %v3787_v53, %v2871_v49  ;;  %v3809_v58 = vadd.f32 %v3808_v55, %v3807_v52  ;;  %v3810_v59 = vpop.f32.mrb[18].mxu1 }
 0x1b6   : > { %v3811_v60 = vpop.f32.mrb[19].mxu1 }
 0x1b7   : > { %v2951_v61 = vadd.f32 %v3809_v58, %v2911_v57 }
 0x1d1   : > { %v3829_v62 = vpop.f32.mrb[20].mxu0 }
 0x1d2   : > { %v3830_v63 = vpop.f32.mrb[21].mxu0 }
 0x1d3   : > { %v3851_v0 = vpop.f32.mrb[20].mxu1  ;;  %v3831_v1 = vadd.f32 %v3830_v63, %v3829_v62  ;;  %v3832_v2 = vpop.f32.mrb[22].mxu0 }
 0x1d4   : > { %v3852_v3 = vpop.f32.mrb[21].mxu1  ;;  %v3833_v4 = vpop.f32.mrb[23].mxu0 }
 0x1d5   : > { %v2991_v5 = vadd.f32 %v3831_v1, %v2951_v61  ;;  %v3853_v6 = vadd.f32 %v3852_v3, %v3851_v0  ;;  %v3854_v7 = vpop.f32.mrb[22].mxu1 }
 0x1d6   : > { %v3855_v8 = vpop.f32.mrb[23].mxu1 }
 0x1d7   : > { %v3031_v9 = vadd.f32 %v3853_v6, %v2991_v5 }
 0x1f1   : > { %v3873_v10 = vpop.f32.mrb[24].mxu0 }
 0x1f2   : > { %v3874_v11 = vpop.f32.mrb[25].mxu0 }
 0x1f3   : > { %v3895_v12 = vpop.f32.mrb[24].mxu1  ;;  %v3875_v13 = vadd.f32 %v3874_v11, %v3873_v10  ;;  %v3876_v14 = vpop.f32.mrb[26].mxu0 }
 0x1f4   : > { %v3896_v15 = vpop.f32.mrb[25].mxu1  ;;  %v3877_v16 = vpop.f32.mrb[27].mxu0 }
 0x1f5   : > { %v3071_v17 = vadd.f32 %v3875_v13, %v3031_v9  ;;  %v3897_v18 = vadd.f32 %v3896_v15, %v3895_v12  ;;  %v3898_v19 = vpop.f32.mrb[26].mxu1 }
 0x1f6   : > { %v3899_v21 = vpop.f32.mrb[27].mxu1 }
 0x1f7   : > { %v3111_v22 = vadd.f32 %v3897_v18, %v3071_v17 }
 0x211   : > { %v3917_v23 = vpop.f32.mrb[28].mxu0 }
 0x212   : > { %v3918_v24 = vpop.f32.mrb[29].mxu0 }
 0x213   : > { %v3939_v25 = vpop.f32.mrb[28].mxu1  ;;  %v3919_v42 = vadd.f32 %v3918_v24, %v3917_v23  ;;  %v3920_v20 = vpop.f32.mrb[30].mxu0 }
 0x214   : > { %v3940_v26 = vpop.f32.mrb[29].mxu1  ;;  %v3921_v27 = vpop.f32.mrb[31].mxu0 }
 0x215   : > { %v3151_v28 = vadd.f32 %v3919_v42, %v3111_v22  ;;  %v3941_v29 = vadd.f32 %v3940_v26, %v3939_v25  ;;  %v3942_v30 = vpop.f32.mrb[30].mxu1  ;;  %3201 = sbr.rel (%p3587_p7) target bundleno = 554 (0x22a), region = 44 }
 0x216   : > { %v3943_v32 = vpop.f32.mrb[31].mxu1 }
 0x217   : > { %v3191_v33 = vadd.f32 %v3941_v29, %v3151_v28 }
 0x219   : > { %v3196_v34 = vadd.f32 %v3191_v33, %v271_v31 }
 0x21b   : > { %3197 = vst [vmem:[#allocation2] sm:$0x3] %v3196_v34 }
 0x222   : > { %v3202_v35 = vld [vmem:[#allocation2] sm:$0x3] }
 0x223   : > { %v3210_v37 = vadd.f32 %v3588_v36, %v3202_v35 }
 0x225   : > { %v3211_v38 = vmax.f32 %v3210_v37, 0.0 }
 0x227   : > { %v3212_v39 = vpack.c.bf16 %v3211_v38, %v3211_v38 }
 0x229   : > { %3213 = vst [vmem:[%s4815_s3] sm:$0x1] %v3212_v39 }
 0x22a PF: > { %s16_s17 = sadd.s32 1, %s4344_s17   ;;  %s4819_s12 = smov %s4328_s13 }
 0x22b   : > { %p13_p5 = scmp.ge.s32.totalorder %s16_s17, 5   ;;  %s4820_s13 = smov %s4332_s14 }
 0x22c   : > { %s4821_s14 = smov %s4420_s24  ;;  %s4822_s15 = smov %s4340_s16 }
 0x22d   : > { %s4823_s16 = smov %s4825_s19  ;;  %15 = sbr.rel (!%p13_p5) target bundleno = 4 (0x4), region = 86 }
 0x234   :  { %3237 = vsyncpa [#allocation4], 1 }
 0x235   :  { %3239 = vsyncpa [#allocation4 + $0x1], 1 }

// kernel: vae_forward.8
= control target key start
LH: loop header
LB: loop body
LE: loop exit
PB: predicated region body
PF: predicated region fallthrough
CT: control target
= control target key end

     0   :  { %s5232_s5 = smov 64   ;;  %s5233_s26 = smov 32   ;;  %vm660_vm0 = vcmask 261120   ;;  %vm709_vm1 = vcmask 523264   ;;  %vm742_vm2 = vcmask 785408   ;;  %s8401_s0 = inlined_call_operand.vmem [shape: bf16[2,10,10,32], index: 0, kind: input, shape index: {}]   ;;  %s8402_s1 = inlined_call_operand.vmem [shape: bf16[2,2,128,64], index: 1, kind: input, shape index: {}]   ;;  %s8403_s2 = inlined_call_operand.vmem [shape: f32[1,64], index: 2, kind: input, shape index: {}]   ;;  %s8404_s3 = inlined_call_operand.vmem [shape: f32[1,64], index: 3, kind: input, shape index: {}]   ;;  %s8405_s4 = inlined_call_operand.vmem [shape: bf16[2,8,2,8,128], index: 4, kind: output, shape index: {}]  }
   0x1   :  { %v5263_v0 = vld [vmem:[%s8401_s0 + $0x10] sm:$0xf]  ;;  %v4364_v1 = vld [vmem:[%s8401_s0 + $0x14] sm:$0x1]  ;;  %v5271_v2 = vld [vmem:[%s8401_s0 + $0x8] sm:$0xf] }
   0x2   :  { %v5274_v3 = vcombine.low %v5263_v0, %v4364_v1  ;;  %v4363_v4 = vld [vmem:[%s8401_s0 + $0xc] sm:$0x1]  ;;  %v5282_v5 = vld [vmem:[%s8401_s0 + $0x14] sm:$0x1]  ;;  %v52_v6 = vld [vmem:[%s8401_s0 + $0x10] sm:$0xe] }
   0x3   :  { %v5288_v7 = vcombine.low %v5271_v2, %v4363_v4  ;;  %v4509_v8 = vcombine.low %v52_v6, %v5282_v5  ;;  %v5294_v9 = vld [vmem:[%s8401_s0 + $0x4] sm:$0x1]  ;;  %v50_v10 = vld [vmem:[%s8401_s0] sm:$0xe]  ;;  %v5305_v12 = vld [vmem:[%s8401_s0 + $0x1c] sm:$0x1] }
   0x4   :  { %8497 = vst [vmem:[#allocation2_spill] sm:$0xff] %v5274_v3  ;;  %1178 = vrot.lane.b32.xlu1 %v5274_v3, %s5232_s5  ;;  %v4507_v11 = vcombine.low %v50_v10, %v5294_v9  ;;  %v53_v13 = vld [vmem:[%s8401_s0 + $0x18] sm:$0xe]  ;;  %v5316_v17 = vld [vmem:[%s8401_s0 + $0xc] sm:$0x1]  ;;  %v5094_v32 = vld [vmem:[%s8402_s1 + $0x40] sm:$0xff]  }
   0x5   :  { %8498 = vst [vmem:[#allocation3_spill] sm:$0xff] %v5288_v7  ;;  %1176 = vrot.lane.b32.xlu0 %v5288_v7, %s5232_s5  ;;  %v1047_v14 = vshrl.u32 %v4509_v8, 16  ;;  %v1049_v15 = vshll.u32 %v4509_v8, 16  ;;  %v4510_v16 = vcombine.low %v53_v13, %v5305_v12  ;;  %v51_v20 = vld [vmem:[%s8401_s0 + $0x8] sm:$0xe]  ;;  %4859 = vmatprep.subr.bf16.mxu1 %v5094_v32  ;;  %v5100_v53 = vld [vmem:[%s8402_s1 + $0x50] sm:$0xff]  }
   0x6   :  { %v1033_v18 = vshrl.u32 %v4507_v11, 16  ;;  %v1035_v19 = vshll.u32 %v4507_v11, 16  ;;  %v4508_v24 = vcombine.low %v51_v20, %v5316_v17  ;;  %v5325_v30 = vld [vmem:[%s8401_s0 + $0x20] sm:$0xf]  ;;  %v4366_v31 = vld [vmem:[%s8401_s0 + $0x24] sm:$0x1]  ;;  %4860 = vmatpush3.bf16.msra.mxu1 %v5094_v32 }
   0x7   :  { %v1051_v21 = vrot.slane %v1049_v15, 1  ;;  %v1054_v22 = vshrl.u32 %v4510_v16, 16  ;;  %v1056_v23 = vshll.u32 %v4510_v16, 16  ;;  %v4380_v34 = vld [vmem:[%s8401_s0 + $0x10] sm:$0xe]  ;;  %v5099_v43 = vld [vmem:[%s8402_s1 + $0x48] sm:$0xff]   ;;  %v5378_v54 = vcombine.low %v5325_v30, %v4366_v31 }
   0x8   :  { %v1037_v25 = vrot.slane %v1035_v19, 1  ;;  %v1040_v28 = vshrl.u32 %v4508_v24, 16  ;;  %v1042_v29 = vshll.u32 %v4508_v24, 16  ;;  %v4379_v35 = vld [vmem:[%s8401_s0 + $0x8] sm:$0xe]  ;;  %v4524_v40 = vcombine.low %v4380_v34, %v4364_v1  ;;  %4861 = vmatprep.subr.bf16.mxu1 %v5099_v43  ;;  %v5105_v8 = vld [vmem:[%s8402_s1 + $0x58] sm:$0xff]  }
   0x9   :  { %v1052_v26 = vor.u32 %v1051_v21, %v1047_v14  ;;  %v1058_v27 = vrot.slane %v1056_v23, 1  ;;  %v4382_v36 = vld [vmem:[%s8401_s0 + $0x20] sm:$0xe]  ;;  %v4365_v39 = vld [vmem:[%s8401_s0 + $0x1c] sm:$0x1]  ;;  %v4523_v41 = vcombine.low %v4379_v35, %v4363_v4  ;;  %8499 = vst [vmem:[#allocation4_spill] sm:$0xff] %v5378_v54 }
   0xa   :  { %v1038_v33 = vor.u32 %v1037_v25, %v1033_v18  ;;  %v1044_v38 = vrot.slane %v1042_v29, 1  ;;  %v4381_v42 = vld [vmem:[%s8401_s0 + $0x18] sm:$0xe]  ;;  %v4526_v45 = vcombine.low %v4382_v36, %v4366_v31  ;;  %v5361_v47 = vld [vmem:[%s8401_s0 + $0x2c] sm:$0x1]  ;;  %v1266_v50 = vshll.u32 %v4524_v40, 16  ;;  %4862 = vmatpush3.bf16.msra.mxu1 %v5099_v43 }
   0xb   :  { %1148 = vrot.lane.b32.xlu1 %v1052_v26, %s5233_s26  ;;  %v1059_v37 = vor.u32 %v1058_v27, %v1054_v22  ;;  %v5356_v44 = vld [vmem:[%s8401_s0 + $0x18] sm:$0xf]  ;;  %v4525_v46 = vcombine.low %v4381_v42, %v4365_v39  ;;  %v55_v48 = vld [vmem:[%s8401_s0 + $0x28] sm:$0xe]  ;;  %v5369_v51 = vld [vmem:[%s8401_s0 + $0x24] sm:$0x1]  ;;  %4863 = vmatprep.subr.bf16.mxu1 %v5100_v53 }
   0xc   :  { %1144 = vrot.lane.b32.xlu0 %v1038_v33, %s5233_s26  ;;  %v1045_v49 = vor.u32 %v1044_v38, %v1040_v28  ;;  %v54_v52 = vld [vmem:[%s8401_s0 + $0x20] sm:$0xe]  ;;  %v1259_v55 = vshll.u32 %v4523_v41, 16  ;;  %v1280_v56 = vshll.u32 %v4526_v45, 16  ;;  %v5382_v57 = vcombine.low %v5356_v44, %v4365_v39  ;;  %v19_v61 = vld [vmem:[%s8401_s0 + $0x8] sm:$0xf] }
   0xd   :  { %v1264_v58 = vshrl.u32 %v4524_v40, 16  ;;  %v1268_v59 = vrot.slane %v1266_v50, 1  ;;  %v4512_v60 = vcombine.low %v55_v48, %v5361_v47  ;;  %v1257_v62 = vshrl.u32 %v4523_v41, 16  ;;  %v18_v6 = vld [vmem:[%s8401_s0] sm:$0xf]  ;;  %s5234_s12 = smov 96  }
   0xe   :  { %8500 = vst [vmem:[#allocation5_spill] sm:$0xff] %v5382_v57  ;;  %v1261_v63 = vrot.slane %v1259_v55, 1  ;;  %v1273_v1 = vshll.u32 %v4525_v46, 16  ;;  %v4511_v4 = vcombine.low %v54_v52, %v5369_v51  ;;  %v1278_v10 = vshrl.u32 %v4526_v45, 16  ;;  %v57_v22 = vld [vmem:[%s8401_s0 + $0x38] sm:$0xe]  ;;  %4864 = vmatpush3.bf16.msra.mxu1 %v5100_v53 }
   0xf   :  { %1150 = vrot.lane.b32.xlu1 %v1059_v37, %s5233_s26  ;;  %v1282_v11 = vrot.slane %v1280_v56, 1  ;;  %v5397_v13 = vcombine.low %v19_v61, %v5316_v17  ;;  %v5401_v14 = vor.u32 %v1268_v59, %v1264_v58  ;;  %v1271_v15 = vshrl.u32 %v4525_v46, 16  ;;  %v5413_v17 = vld [vmem:[%s8401_s0 + $0x3c] sm:$0x1]  ;;  %v56_v23 = vld [vmem:[%s8401_s0 + $0x30] sm:$0xe]  ;;  %4865 = vmatprep.subr.bf16.mxu1 %v5105_v8 }
  0x10   :  { %1146 = vrot.lane.b32.xlu0 %v1045_v49, %s5233_s26  ;;  %v1070_v16 = vshll.u32 %v4512_v60, 16  ;;  %v5404_v18 = vcombine.low %v18_v6, %v5294_v9  ;;  %v5408_v19 = vor.u32 %v1261_v63, %v1257_v62  ;;  %v1275_v20 = vrot.slane %v1273_v1, 1  ;;  %v5421_v9 = vld [vmem:[%s8401_s0 + $0x34] sm:$0x1]  ;;  %v5108_v24 = vld [vmem:[%s8402_s1 + $0x60] sm:$0xff]   ;;  %v5109_v36 = vld [vmem:[%s8402_s1 + $0x68] sm:$0xff]  }
  0x11   :  { %v1063_v21 = vshll.u32 %v4511_v4, 16  ;;  %v5429_v25 = vor.u32 %v1282_v11, %v1278_v10  ;;  %v1068_v26 = vshrl.u32 %v4512_v60, 16  ;;  %v1061_v28 = vshrl.u32 %v4511_v4, 16  ;;  %v21_v41 = vld [vmem:[%s8401_s0 + $0x18] sm:$0xf]  ;;  %v5112_v49 = vld [vmem:[%s8402_s1 + $0x70] sm:$0xff]  }
  0x12   :  { %v1072_v27 = vrot.slane %v1070_v16, 1  ;;  %v254_v29 = vshll.u32 %v5397_v13, 16  ;;  %v4514_v31 = vcombine.low %v57_v22, %v5413_v17  ;;  %v5437_v32 = vor.u32 %v1275_v20, %v1271_v15  ;;  %4866 = vmatpush3.bf16.msra.mxu1 %v5105_v8  ;;  %v20_v48 = vld [vmem:[%s8401_s0 + $0x10] sm:$0xf]  ;;  %v5120_v61 = vld [vmem:[%s8402_s1] sm:$0xff]   ;;  %v5121_v8 = vld [vmem:[%s8402_s1 + $0x8] sm:$0xff]  }
  0x13   :  { %1182 = vrot.lane.b32.xlu1 %v5378_v54, %s5232_s5  ;;  %v1065_v33 = vrot.slane %v1063_v21, 1  ;;  %v247_v34 = vshll.u32 %v5404_v18, 16  ;;  %v4513_v35 = vcombine.low %v56_v23, %v5421_v9  ;;  %4867 = vmatprep.subr.bf16.mxu1 %v5108_v24  ;;  %v252_v38 = vshrl.u32 %v5397_v13, 16  ;;  %v5479_v1 = vld [vmem:[%s8401_s0 + $0x30] sm:$0xf] }
  0x14   :  { %1180 = vrot.lane.b32.xlu0 %v5382_v57, %s5232_s5  ;;  %v1073_v37 = vor.u32 %v1072_v27, %v1068_v26  ;;  %v256_v39 = vrot.slane %v254_v29, 1  ;;  %v1084_v40 = vshll.u32 %v4514_v31, 16  ;;  %v245_v43 = vshrl.u32 %v5404_v18, 16  ;;  %v4368_v4 = vld [vmem:[%s8401_s0 + $0x34] sm:$0x1]  ;;  %4827 = vmatprep.subr.bf16.mxu0 %v5120_v61 }
  0x15   :  { %v1066_v42 = vor.u32 %v1065_v33, %v1061_v28  ;;  %v249_v45 = vrot.slane %v247_v34, 1  ;;  %v1077_v46 = vshll.u32 %v4513_v35, 16  ;;  %v5460_v50 = vcombine.low %v21_v41, %v5305_v12  ;;  %v5115_v12 = vld [vmem:[%s8402_s1 + $0x78] sm:$0xff]   ;;  %v5491_v10 = vld [vmem:[%s8401_s0 + $0x28] sm:$0xf]  ;;  %4828 = vmatpush3.bf16.msra.mxu0 %v5120_v61  ;;  %v5124_v27 = vld [vmem:[%s8402_s1 + $0x10] sm:$0xff]  }
  0x16   :  { %4868 = vmatpush3.bf16.msra.mxu1 %v5108_v24  ;;  %v257_v52 = vor.u32 %v256_v39, %v252_v38  ;;  %v1082_v53 = vshrl.u32 %v4514_v31, 16  ;;  %v1086_v55 = vrot.slane %v1084_v40, 1  ;;  %v5464_v56 = vcombine.low %v20_v48, %v5282_v5  ;;  %v4367_v11 = vld [vmem:[%s8401_s0 + $0x2c] sm:$0x1]  ;;  %4829 = vmatprep.subr.bf16.mxu0 %v5121_v8  ;;  %v4384_v24 = vld [vmem:[%s8401_s0 + $0x30] sm:$0xe] }
  0x17   :  { %1370 = vrot.lane.b32.xlu1 %v5401_v14, %s5234_s12  ;;  %4869 = vmatprep.subr.bf16.mxu1 %v5109_v36  ;;  %v250_v58 = vor.u32 %v249_v45, %v245_v43  ;;  %v1075_v59 = vshrl.u32 %v4513_v35, 16  ;;  %v1079_v60 = vrot.slane %v1077_v46, 1  ;;  %v268_v5 = vshll.u32 %v5460_v50, 16  ;;  %v4383_v26 = vld [vmem:[%s8401_s0 + $0x28] sm:$0xe]  ;;  %v5125_v43 = vld [vmem:[%s8402_s1 + $0x18] sm:$0xff]  }
  0x18   :  { %1368 = vrot.lane.b32.xlu0 %v5408_v19, %s5234_s12  ;;  %v1087_v62 = vor.u32 %v1086_v55, %v1082_v53  ;;  %v261_v6 = vshll.u32 %v5464_v56, 16  ;;  %v5498_v15 = vcombine.low %v5479_v1, %v4368_v4  ;;  %v266_v16 = vshrl.u32 %v5460_v50, 16  ;;  %v4370_v38 = vld [vmem:[%s8401_s0 + $0x44] sm:$0x1]  ;;  %v4369_v40 = vld [vmem:[%s8401_s0 + $0x3c] sm:$0x1] }
  0x19   :  { %v1080_v63 = vor.u32 %v1079_v60, %v1075_v59  ;;  %v270_v20 = vrot.slane %v268_v5, 1  ;;  %v5503_v21 = vcombine.low %v5491_v10, %v4367_v11  ;;  %v259_v22 = vshrl.u32 %v5464_v56, 16  ;;  %4830 = vmatpush3.bf16.msra.mxu0 %v5121_v8  ;;  %v4385_v53 = vld [vmem:[%s8401_s0 + $0x38] sm:$0xe]  ;;  %v5127_v60 = vld [vmem:[%s8402_s1 + $0x28] sm:$0xff]  }
  0x1a   :  { %4870 = vmatpush3.bf16.msra.mxu1 %v5109_v36  ;;  %8501 = vst [vmem:[#allocation6_spill] sm:$0xff] %v5498_v15  ;;  %v263_v23 = vrot.slane %v261_v6, 1  ;;  %v4528_v29 = vcombine.low %v4384_v24, %v4368_v4  ;;  %4831 = vmatprep.subr.bf16.mxu0 %v5124_v27  ;;  %v4527_v33 = vcombine.low %v4383_v26, %v4367_v11  ;;  %v526_v55 = vshll.u32 %v5274_v3, 16  ;;  %v5582_v8 = vld [vmem:[%s8401_s0 + $0x5c] sm:$0x1]  ;;  %v5128_v11 = vld [vmem:[%s8402_s1 + $0x30] sm:$0xff]  }
  0x1b   :  { %1374 = vrot.lane.b32.xlu1 %v5429_v25, %s5234_s12  ;;  %4871 = vmatprep.subr.bf16.mxu1 %v5112_v49  ;;  %8502 = vst [vmem:[#allocation7_spill] sm:$0xff] %v5503_v21  ;;  %v271_v28 = vor.u32 %v270_v20, %v266_v16  ;;  %v4460_v34 = vcombine.low %v5263_v0, %v5263_v0  ;;  %v5536_v0 = vld [vmem:[%s8401_s0 + $0x38] sm:$0xf]  ;;  %v519_v61 = vshll.u32 %v5288_v7, 16  ;;  %v524_v5 = vshrl.u32 %v5274_v3, 16 }
  0x1c   :  { %1372 = vrot.lane.b32.xlu0 %v5437_v32, %s5234_s12  ;;  %v264_v31 = vor.u32 %v263_v23, %v259_v22  ;;  %v1294_v35 = vshll.u32 %v4528_v29, 16  ;;  %v4459_v36 = vcombine.low %v5271_v2, %v5271_v2  ;;  %v1287_v39 = vshll.u32 %v4527_v33, 16  ;;  %v59_v23 = vld [vmem:[%s8401_s0 + $0x58] sm:$0xe]  ;;  %v5598_v24 = vld [vmem:[%s8401_s0 + $0x54] sm:$0x1] }
  0x1d   :  { %4832 = vmatpush3.bf16.msra.mxu0 %v5124_v27  ;;  %v1292_v41 = vshrl.u32 %v4528_v29, 16  ;;  %v5550_v45 = vcombine.low %v5536_v0, %v4369_v40  ;;  %v1285_v46 = vshrl.u32 %v4527_v33, 16  ;;  %v4462_v4 = vcombine.low %v5325_v30, %v5325_v30  ;;  %v58_v26 = vld [vmem:[%s8401_s0 + $0x50] sm:$0xe] }
  0x1e   :  { %4872 = vmatpush3.bf16.msra.mxu1 %v5112_v49  ;;  %v1289_v48 = vrot.slane %v1287_v39, 1  ;;  %v4386_v49 = vld [vmem:[%s8401_s0 + $0x40] sm:$0xe]  ;;  %4833 = vmatprep.subr.bf16.mxu0 %v5125_v43  ;;  %v4461_v16 = vcombine.low %v5356_v44, %v5356_v44  ;;  %v517_v20 = vshrl.u32 %v5288_v7, 16  ;;  %v521_v30 = vrot.slane %v519_v61, 1 }
  0x1f   :  { %1154 = vrot.lane.b32.xlu1 %v1073_v37, %s5233_s26  ;;  %4873 = vmatprep.subr.bf16.mxu1 %v5115_v12  ;;  %v5528_v37 = vld [vmem:[%s8401_s0 + $0x40] sm:$0xf]  ;;  %8504 = vst [vmem:[#allocation9_spill] sm:$0xff] %v5550_v45  ;;  %v4530_v59 = vcombine.low %v4386_v49, %v4370_v38  ;;  %v540_v44 = vshll.u32 %v5378_v54, 16  ;;  %v4516_v33 = vcombine.low %v59_v23, %v5582_v8  ;;  %v5649_v61 = vld [vmem:[%s8401_s0 + $0x64] sm:$0x1] }
  0x20   :  { %1152 = vrot.lane.b32.xlu0 %v1066_v42, %s5233_s26  ;;  %v5543_v2 = vcombine.low %v5528_v37, %v4370_v38  ;;  %v1296_v42 = vrot.slane %v1294_v35, 1  ;;  %v23_v35 = vld [vmem:[%s8401_s0 + $0x28] sm:$0xf]  ;;  %v5618_v38 = vor.u32 %v521_v30, %v517_v20  ;;  %vm1576_vm3 = vsmask.f32 3328 }
  0x21   :  { %4834 = vmatpush3.bf16.msra.mxu0 %v5125_v43  ;;  %v1308_v6 = vshll.u32 %v4530_v59, 16  ;;  %v542_v43 = vrot.slane %v540_v44, 1  ;;  %vm1577_vm4 = vsmask.f32 7440 }
  0x22   :  { %4874 = vmatpush3.bf16.msra.mxu1 %v5115_v12  ;;  %8503 = vst [vmem:[#allocation8_spill] sm:$0xff] %v5543_v2  ;;  %v5571_v12 = vor.u32 %v1289_v48, %v1285_v46  ;;  %8505 = vst [vmem:[#allocation10_spill] sm:$0xff] %v5618_v38  ;;  %v5626_v46 = vld [vmem:[%s8401_s0 + $0x6c] sm:$0x1]  ;;  %v5629_v48 = vcombine.low %v23_v35, %v5361_v47  ;;  %v531_v47 = vshrl.u32 %v5382_v57, 16 }
  0x23   :  { %358 = vrot.lane.b32.xlu1 %v257_v52, %s5233_s26  ;;  %v5126_v52 = vld [vmem:[%s8402_s1 + $0x20] sm:$0xff]   ;;  %v1310_v29 = vrot.slane %v1308_v6, 1  ;;  %vm6007_vm5 = vmor %vm1576_vm3, %vm1577_vm4 }
  0x24   :  { %356 = vrot.lane.b32.xlu0 %v250_v58, %s5233_s26  ;;  %v5564_v58 = vor.u32 %v1296_v42, %v1292_v41  ;;  %4835 = vmatprep.subr.bf16.mxu0 %v5126_v52  ;;  %v4515_v41 = vcombine.low %v58_v26, %v5598_v24  ;;  %v538_v42 = vshrl.u32 %v5378_v54, 16  ;;  %v25_v26 = vld [vmem:[%s8401_s0 + $0x38] sm:$0xf] }
  0x25   :  { %4836 = vmatpush3.bf16.msra.mxu0 %v5126_v52 }
  0x26   :  { %4837 = vmatprep.subr.bf16.mxu0 %v5127_v60  ;;  %v1089_v6 = vshrl.u32 %v4515_v41, 16 }
  0x27   :  { %1158 = vrot.lane.b32.xlu1 %v1087_v62, %s5233_s26  ;;  %v4529_v62 = vcombine.low %v4385_v53, %v4369_v40  ;;  %v533_v40 = vshll.u32 %v5382_v57, 16  ;;  %v1098_v53 = vshll.u32 %v4516_v33, 16 }
  0x28   :  { %1156 = vrot.lane.b32.xlu0 %v1080_v63, %s5233_s26  ;;  %v528_v63 = vrot.slane %v526_v55, 1  ;;  %v61_v55 = vld [vmem:[%s8401_s0 + $0x68] sm:$0xe] }
  0x29   :  { %v1301_v22 = vshll.u32 %v4529_v62, 16  ;;  %4838 = vmatpush3.bf16.msra.mxu0 %v5127_v60  ;;  %v1091_v60 = vshll.u32 %v4515_v41, 16 }
  0x2a   :  { %v5603_v27 = vor.u32 %v528_v63, %v524_v5  ;;  %4839 = vmatprep.subr.bf16.mxu0 %v5128_v11  ;;  %v5654_v5 = vor.u32 %v542_v43, %v538_v42  ;;  %v1096_v63 = vshrl.u32 %v4516_v33, 16 }
  0x2b   :  { %1186 = vrot.lane.b32.xlu1 %v5498_v15, %s5232_s5  ;;  %v1303_v39 = vrot.slane %v1301_v22, 1  ;;  %v1093_v30 = vrot.slane %v1091_v60, 1 }
  0x2c   :  { %1184 = vrot.lane.b32.xlu0 %v5503_v21, %s5232_s5  ;;  %8508 = vst [vmem:[#allocation13_spill] sm:$0xff] %v5654_v5 }
  0x2d   :  { %4840 = vmatpush3.bf16.msra.mxu0 %v5128_v11  ;;  %v282_v11 = vshll.u32 %v5629_v48, 16  ;;  %v1094_v33 = vor.u32 %v1093_v30, %v1089_v6  ;;  %v5701_v6 = vld [vmem:[%s8401_s0 + $0x58] sm:$0xf] }
  0x2e   :  { %v4387_v30 = vld [vmem:[%s8401_s0 + $0x58] sm:$0xe] }
  0x2f   :  { %362 = vrot.lane.b32.xlu1 %v271_v28, %s5233_s26  ;;  %v1306_v28 = vshrl.u32 %v4530_v59, 16 }
  0x30   :  { %360 = vrot.lane.b32.xlu0 %v264_v31, %s5233_s26  ;;  %v1299_v31 = vshrl.u32 %v4529_v62, 16  ;;  %v60_v62 = vld [vmem:[%s8401_s0 + $0x60] sm:$0xe] }
  0x31   :  { %v5636_v52 = vor.u32 %v1310_v29, %v1306_v28  ;;  %v4517_v23 = vcombine.low %v60_v62, %v5649_v61  ;;  %v280_v28 = vshrl.u32 %v5629_v48, 16  ;;  %v284_v29 = vrot.slane %v282_v11, 1  ;;  %v4371_v11 = vld [vmem:[%s8401_s0 + $0x5c] sm:$0x1] }
  0x32   :  { %v5643_v59 = vor.u32 %v1303_v39, %v1299_v31  ;;  %v24_v39 = vld [vmem:[%s8401_s0 + $0x30] sm:$0xf] }
  0x33   :  { %438 = vrot.lane.b32.xlu1 %v4460_v34, %s5232_s5  ;;  %v5135_v34 = vld [vmem:[%s8402_s1 + $0x38] sm:$0xff]   ;;  %8506 = vst [vmem:[#allocation11_spill] sm:$0xff] %v5636_v52  ;;  %v285_v41 = vor.u32 %v284_v29, %v280_v28 }
  0x34   :  { %436 = vrot.lane.b32.xlu0 %v4459_v36, %s5232_s5  ;;  %v22_v36 = vld [vmem:[%s8401_s0 + $0x20] sm:$0xf]  ;;  %4841 = vmatprep.subr.bf16.mxu0 %v5135_v34  ;;  %8507 = vst [vmem:[#allocation12_spill] sm:$0xff] %v5643_v59 }
  0x35   :  { %v5632_v49 = vcombine.low %v22_v36, %v5369_v51  ;;  %v535_v51 = vrot.slane %v533_v40, 1  ;;  %4842 = vmatpush3.bf16.msra.mxu0 %v5135_v34  ;;  %v1105_v36 = vshll.u32 %v4517_v23, 16  ;;  %v5679_v40 = vcombine.low %v25_v26, %v5413_v17 }
  0x37   :  { %1190 = vrot.lane.b32.xlu1 %v5543_v2, %s5232_s5  ;;  %v5662_v20 = vor.u32 %v535_v51, %v531_v47  ;;  %v275_v22 = vshll.u32 %v5632_v49, 16  ;;  %v273_v34 = vshrl.u32 %v5632_v49, 16  ;;  %v1103_v47 = vshrl.u32 %v4517_v23, 16 }
  0x38   :  { %1188 = vrot.lane.b32.xlu0 %v5550_v45, %s5232_s5  ;;  %v1107_v51 = vrot.slane %v1105_v36, 1  ;;  %v296_v62 = vshll.u32 %v5679_v40, 16  ;;  %v294_v23 = vshrl.u32 %v5679_v40, 16 }
  0x39   :  { %8509 = vst [vmem:[#allocation14_spill] sm:$0xff] %v5662_v20  ;;  %v277_v35 = vrot.slane %v275_v22, 1 }
  0x3a   :  { %v1108_v17 = vor.u32 %v1107_v51, %v1103_v47  ;;  %v298_v26 = vrot.slane %v296_v62, 1  ;;  %v5743_v47 = vld [vmem:[%s8401_s0 + $0x68] sm:$0xf] }
  0x3b   :  { %1378 = vrot.lane.b32.xlu1 %v5564_v58, %s5234_s12 }
  0x3c   :  { %1376 = vrot.lane.b32.xlu0 %v5571_v12, %s5234_s12 }
  0x3f   :  { %442 = vrot.lane.b32.xlu1 %v4462_v4, %s5232_s5  ;;  %v1100_v4 = vrot.slane %v1098_v53, 1  ;;  %v5683_v53 = vcombine.low %v24_v39, %v5421_v9  ;;  %v4372_v9 = vld [vmem:[%s8401_s0 + $0x64] sm:$0x1] }
  0x40   :  { %440 = vrot.lane.b32.xlu0 %v4461_v16, %s5232_s5  ;;  %v4518_v16 = vcombine.low %v61_v55, %v5626_v46  ;;  %v278_v55 = vor.u32 %v277_v35, %v273_v34  ;;  %v299_v34 = vor.u32 %v298_v26, %v294_v23 }
  0x41   :  { %v1101_v44 = vor.u32 %v1100_v4, %v1096_v63  ;;  %v5692_v63 = vld [vmem:[%s8401_s0 + $0x60] sm:$0xf]  ;;  %v289_v4 = vshll.u32 %v5683_v53, 16  ;;  %v287_v28 = vshrl.u32 %v5683_v53, 16 }
  0x42   :  { %v1112_v31 = vshll.u32 %v4518_v16, 16  ;;  %v1110_v42 = vshrl.u32 %v4518_v16, 16  ;;  %v4388_v16 = vld [vmem:[%s8401_s0 + $0x60] sm:$0xe]  ;;  %v5714_v22 = vcombine.low %v5692_v63, %v4372_v9 }
  0x43   :  { %630 = vrot.lane.b32.xlu1 %v5603_v27, %s5234_s12  ;;  %v291_v29 = vrot.slane %v289_v4, 1  ;;  %v4389_v4 = vld [vmem:[%s8401_s0 + $0x68] sm:$0xe] }
  0x44   :  { %628 = vrot.lane.b32.xlu0 %v5618_v38, %s5234_s12  ;;  %v1114_v43 = vrot.slane %v1112_v31, 1  ;;  %8510 = vst [vmem:[#allocation15_spill] sm:$0xff] %v5714_v22  ;;  %v4532_v31 = vcombine.low %v4388_v16, %v4372_v9  ;;  %v4390_v9 = vld [vmem:[%s8401_s0 + $0x70] sm:$0xe]  ;;  %v554_v16 = vshll.u32 %v5498_v15, 16 }
  0x45   :  { %v292_v35 = vor.u32 %v291_v29, %v287_v28  ;;  %v547_v28 = vshll.u32 %v5503_v21, 16 }
  0x46   :  { %v1115_v60 = vor.u32 %v1114_v43, %v1110_v42  ;;  %v1322_v36 = vshll.u32 %v4532_v31, 16  ;;  %v5732_v42 = vld [vmem:[%s8401_s0 + $0x70] sm:$0xf]  ;;  %v4374_v43 = vld [vmem:[%s8401_s0 + $0x74] sm:$0x1]  ;;  %v1320_v51 = vshrl.u32 %v4532_v31, 16 }
  0x47   :  { %1382 = vrot.lane.b32.xlu1 %v5636_v52, %s5234_s12  ;;  %v4534_v23 = vcombine.low %v4390_v9, %v4374_v43  ;;  %v552_v31 = vshrl.u32 %v5498_v15, 16 }
  0x48   :  { %1380 = vrot.lane.b32.xlu0 %v5643_v59, %s5234_s12  ;;  %v1324_v62 = vrot.slane %v1322_v36, 1  ;;  %v5780_v36 = vld [vmem:[%s8401_s0 + $0x7c] sm:$0x1] }
  0x4b   :  { %634 = vrot.lane.b32.xlu1 %v5654_v5, %s5234_s12  ;;  %v4468_v5 = vcombine.low %v5692_v63, %v5692_v63 }
  0x4c   :  { %632 = vrot.lane.b32.xlu0 %v5662_v20, %s5234_s12 }
  0x4f   :  { %1162 = vrot.lane.b32.xlu1 %v1101_v44, %s5233_s26  ;;  %v5719_v44 = vcombine.low %v5701_v6, %v4371_v11 }
  0x50   :  { %1160 = vrot.lane.b32.xlu0 %v1094_v33, %s5233_s26  ;;  %v4531_v33 = vcombine.low %v4387_v30, %v4371_v11  ;;  %v5765_v30 = vor.u32 %v1324_v62, %v1320_v51  ;;  %v62_v51 = vld [vmem:[%s8401_s0 + $0x70] sm:$0xe]  ;;  %v1334_v62 = vshrl.u32 %v4534_v23, 16 }
  0x51   :  { %8511 = vst [vmem:[#allocation16_spill] sm:$0xff] %v5719_v44 }
  0x52   :  { %v1315_v39 = vshll.u32 %v4531_v33, 16  ;;  %8514 = vst [vmem:[#allocation19_spill] sm:$0xff] %v5765_v30 }
  0x53   :  { %366 = vrot.lane.b32.xlu1 %v285_v41, %s5233_s26  ;;  %v4464_v41 = vcombine.low %v5479_v1, %v5479_v1  ;;  %v4373_v1 = vld [vmem:[%s8401_s0 + $0x6c] sm:$0x1] }
  0x54   :  { %364 = vrot.lane.b32.xlu0 %v278_v55, %s5233_s26  ;;  %v4463_v55 = vcombine.low %v5491_v10, %v5491_v10  ;;  %v5753_v10 = vcombine.low %v5732_v42, %v4374_v43  ;;  %v5760_v11 = vcombine.low %v5743_v47, %v4373_v1  ;;  %v4533_v29 = vcombine.low %v4389_v4, %v4373_v1  ;;  %v5793_v1 = vld [vmem:[%s8401_s0 + $0x74] sm:$0x1] }
  0x55   :  { %v549_v43 = vrot.slane %v547_v28, 1  ;;  %v26_v28 = vld [vmem:[%s8401_s0 + $0x50] sm:$0xf] }
  0x56   :  { %8512 = vst [vmem:[#allocation17_spill] sm:$0xff] %v5753_v10  ;;  %8513 = vst [vmem:[#allocation18_spill] sm:$0xff] %v5760_v11  ;;  %v1327_v9 = vshrl.u32 %v4533_v29, 16 }
  0x57   :  { %1166 = vrot.lane.b32.xlu1 %v1115_v60, %s5233_s26  ;;  %v1313_v60 = vshrl.u32 %v4531_v33, 16  ;;  %v556_v33 = vrot.slane %v554_v16, 1  ;;  %v27_v16 = vld [vmem:[%s8401_s0 + $0x58] sm:$0xf] }
  0x58   :  { %1164 = vrot.lane.b32.xlu0 %v1108_v17, %s5233_s26  ;;  %v1317_v17 = vrot.slane %v1315_v39, 1  ;;  %v4465_v39 = vcombine.low %v5536_v0, %v5536_v0  ;;  %v568_v0 = vshll.u32 %v5543_v2, 16 }
  0x5a   :  { %v5769_v26 = vor.u32 %v1317_v17, %v1313_v60  ;;  %v5798_v60 = vor.u32 %v556_v33, %v552_v31 }
  0x5b   :  { %1194 = vrot.lane.b32.xlu1 %v5714_v22, %s5232_s5 }
  0x5c   :  { %1192 = vrot.lane.b32.xlu0 %v5719_v44, %s5232_s5  ;;  %8515 = vst [vmem:[#allocation20_spill] sm:$0xff] %v5769_v26  ;;  %8516 = vst [vmem:[#allocation21_spill] sm:$0xff] %v5798_v60 }
  0x5f   :  { %370 = vrot.lane.b32.xlu1 %v299_v34, %s5233_s26  ;;  %v4466_v34 = vcombine.low %v5528_v37, %v5528_v37  ;;  %v63_v37 = vld [vmem:[%s8401_s0 + $0x78] sm:$0xe] }
  0x60   :  { %368 = vrot.lane.b32.xlu0 %v292_v35, %s5233_s26  ;;  %v1336_v35 = vshll.u32 %v4534_v23, 16  ;;  %v4520_v4 = vcombine.low %v63_v37, %v5780_v36  ;;  %v4519_v23 = vcombine.low %v62_v51, %v5793_v1  ;;  %v5816_v37 = vcombine.low %v27_v16, %v5582_v8 }
  0x61   :  { %v559_v8 = vshrl.u32 %v5550_v45, 16 }
  0x62   :  { %v1338_v17 = vrot.slane %v1336_v35, 1  ;;  %v570_v35 = vrot.slane %v568_v0, 1  ;;  %v1119_v51 = vshll.u32 %v4519_v23, 16  ;;  %v65_v0 = vld [vmem:[%s8401_s0 + $0x88] sm:$0xe] }
  0x63   :  { %446 = vrot.lane.b32.xlu1 %v4464_v41, %s5232_s5  ;;  %v545_v41 = vshrl.u32 %v5503_v21, 16  ;;  %v5819_v21 = vcombine.low %v26_v28, %v5598_v24 }
  0x64   :  { %444 = vrot.lane.b32.xlu0 %v4463_v55, %s5232_s5  ;;  %v1329_v55 = vshll.u32 %v4533_v29, 16  ;;  %v566_v29 = vshrl.u32 %v5543_v2, 16 }
  0x65   :  { %v5810_v31 = vor.u32 %v549_v43, %v545_v41  ;;  %v1126_v41 = vshll.u32 %v4520_v4, 16  ;;  %v5828_v43 = vld [vmem:[%s8401_s0 + $0x8c] sm:$0x1]  ;;  %v301_v54 = vshrl.u32 %v5819_v21, 16 }
  0x66   :  { %v1331_v33 = vrot.slane %v1329_v55, 1  ;;  %v5846_v16 = vor.u32 %v570_v35, %v566_v29  ;;  %v4522_v2 = vcombine.low %v65_v0, %v5828_v43  ;;  %v1121_v29 = vrot.slane %v1119_v51, 1 }
  0x67   :  { %1198 = vrot.lane.b32.xlu1 %v5753_v10, %s5232_s5  ;;  %8517 = vst [vmem:[#allocation22_spill] sm:$0xff] %v5810_v31 }
  0x68   :  { %1196 = vrot.lane.b32.xlu0 %v5760_v11, %s5232_s5  ;;  %v5832_v55 = vor.u32 %v1331_v33, %v1327_v9  ;;  %8520 = vst [vmem:[#allocation25_spill] sm:$0xff] %v5846_v16  ;;  %v1124_v9 = vshrl.u32 %v4520_v4, 16  ;;  %v1128_v33 = vrot.slane %v1126_v41, 1  ;;  %v303_v4 = vshll.u32 %v5819_v21, 16  ;;  %v28_v41 = vld [vmem:[%s8401_s0 + $0x60] sm:$0xf] }
  0x69   :  { %v1140_v51 = vshll.u32 %v4522_v2, 16 }
  0x6a   :  { %8519 = vst [vmem:[#allocation24_spill] sm:$0xff] %v5832_v55  ;;  %v1129_v0 = vor.u32 %v1128_v33, %v1124_v9  ;;  %v305_v7 = vrot.slane %v303_v4, 1  ;;  %v1138_v33 = vshrl.u32 %v4522_v2, 16  ;;  %v5892_v2 = vld [vmem:[%s8401_s0 + $0x80] sm:$0xf] }
  0x6b   :  { %1386 = vrot.lane.b32.xlu1 %v5765_v30, %s5234_s12 }
  0x6c   :  { %1384 = vrot.lane.b32.xlu0 %v5769_v26, %s5234_s12 }
  0x6f   :  { %450 = vrot.lane.b32.xlu1 %v4466_v34, %s5232_s5  ;;  %v561_v34 = vshll.u32 %v5550_v45, 16  ;;  %v310_v45 = vshll.u32 %v5816_v37, 16 }
  0x70   :  { %448 = vrot.lane.b32.xlu0 %v4465_v39, %s5232_s5  ;;  %v5823_v39 = vor.u32 %v1338_v17, %v1334_v62  ;;  %v5841_v62 = vld [vmem:[%s8401_s0 + $0x84] sm:$0x1]  ;;  %v64_v17 = vld [vmem:[%s8401_s0 + $0x80] sm:$0xe] }
  0x71   :  { %v563_v24 = vrot.slane %v561_v34, 1  ;;  %v1117_v34 = vshrl.u32 %v4519_v23, 16  ;;  %v4521_v35 = vcombine.low %v64_v17, %v5841_v62  ;;  %v29_v23 = vld [vmem:[%s8401_s0 + $0x68] sm:$0xf] }
  0x72   :  { %8518 = vst [vmem:[#allocation23_spill] sm:$0xff] %v5823_v39 }
  0x73   :  { %638 = vrot.lane.b32.xlu1 %v5798_v60, %s5234_s12  ;;  %v5858_v57 = vor.u32 %v563_v24, %v559_v8  ;;  %v308_v8 = vshrl.u32 %v5816_v37, 16  ;;  %v312_v24 = vrot.slane %v310_v45, 1  ;;  %v1122_v17 = vor.u32 %v1121_v29, %v1117_v34  ;;  %v5932_v60 = vld [vmem:[%s8401_s0 + $0x8c] sm:$0x1] }
  0x74   :  { %636 = vrot.lane.b32.xlu0 %v5810_v31, %s5234_s12  ;;  %v1133_v3 = vshll.u32 %v4521_v35, 16  ;;  %v1142_v31 = vrot.slane %v1140_v51, 1  ;;  %v306_v34 = vor.u32 %v305_v7, %v301_v54  ;;  %v1131_v29 = vshrl.u32 %v4521_v35, 16  ;;  %v5901_v54 = vld [vmem:[%s8401_s0 + $0x78] sm:$0xf] }
  0x75   :  { %8521 = vst [vmem:[#allocation26_spill] sm:$0xff] %v5858_v57  ;;  %v313_v45 = vor.u32 %v312_v24, %v308_v8  ;;  %v4375_v35 = vld [vmem:[%s8401_s0 + $0x7c] sm:$0x1]  ;;  %v5918_v24 = vld [vmem:[%s8401_s0 + $0x94] sm:$0x1] }
  0x76   :  { %v5850_v28 = vpop.permute.xlu1 %1178  ;;  %v1135_v4 = vrot.slane %v1133_v3, 1  ;;  %v4376_v3 = vld [vmem:[%s8401_s0 + $0x84] sm:$0x1]  ;;  %v1143_v7 = vor.u32 %v1142_v31, %v1138_v33  ;;  %v5913_v31 = vld [vmem:[%s8401_s0 + $0x90] sm:$0xf] }
  0x77   :  { %1390 = vrot.lane.b32.xlu1 %v5823_v39, %s5234_s12  ;;  %v5856_v15 = vpop.permute.xlu0 %1176  ;;  %v5878_v39 = vcombine.low %v28_v41, %v5649_v61  ;;  %v4392_v61 = vld [vmem:[%s8401_s0 + $0x80] sm:$0xe]  ;;  %v5923_v51 = vld [vmem:[%s8401_s0 + $0x88] sm:$0xf] }
  0x78   :  { %1388 = vrot.lane.b32.xlu0 %v5832_v55, %s5234_s12  ;;  %v5875_v55 = vcombine.low %v29_v23, %v5626_v46  ;;  %v1136_v8 = vor.u32 %v1135_v4, %v1131_v29 }
  0x79   :  { %8523 = vst [vmem:[#allocation28_spill] sm:$0xff] %v5878_v39  ;;  %v317_v23 = vshll.u32 %v5878_v39, 16  ;;  %v315_v29 = vshrl.u32 %v5878_v39, 16 }
  0x7a   :  { %8522 = vst [vmem:[#allocation27_spill] sm:$0xff] %v5875_v55  ;;  %v324_v46 = vshll.u32 %v5875_v55, 16  ;;  %v322_v33 = vshrl.u32 %v5875_v55, 16 }
  0x7b   :  { %642 = vrot.lane.b32.xlu1 %v5846_v16, %s5234_s12  ;;  %v319_v4 = vrot.slane %v317_v23, 1  ;;  %v5945_v23 = vcombine.low %v5901_v54, %v4375_v35 }
  0x7c   :  { %640 = vrot.lane.b32.xlu0 %v5858_v57, %s5234_s12 }
  0x7d   :  { %v5880_v16 = vpop.permute.xlu1 %1148 }
  0x7e   :  { %v1145_v9 = vpop.permute.xlu0 %1144 }
  0x7f   :  { %1170 = vrot.lane.b32.xlu1 %v1129_v0, %s5233_s26  ;;  %v4391_v0 = vld [vmem:[%s8401_s0 + $0x78] sm:$0xe]  ;;  %v1401_v20 = vsel %vm660_vm0, %v5404_v18, %v1145_v9  ;;  %v5958_v18 = vcombine.low %v5923_v51, %v5932_v60 }
  0x80   :  { %1168 = vrot.lane.b32.xlu0 %v1122_v17, %s5233_s26  ;;  %v5925_v17 = vcombine.low %v4392_v61, %v4376_v3  ;;  %v5936_v61 = vcombine.low %v4391_v0, %v4375_v35  ;;  %v320_v35 = vor.u32 %v319_v4, %v315_v29  ;;  %v1433_v39 = vsel %vm709_vm1, %v1401_v20, %v5856_v15 }
  0x81   :  { %v1151_v57 = vpop.permute.xlu1 %1150  ;;  %v1405_v20 = vsel %vm660_vm0, %v5464_v56, %v5880_v16  ;;  %v4394_v56 = vld [vmem:[%s8401_s0 + $0x90] sm:$0xe] }
  0x82   :  { %v1147_v41 = vpop.permute.xlu0 %1146  ;;  %v1350_v9 = vshll.u32 %v5925_v17, 16  ;;  %v1343_v55 = vshll.u32 %v5936_v61, 16 }
  0x83   :  { %374 = vrot.lane.b32.xlu1 %v313_v45, %s5233_s26  ;;  %v1403_v26 = vsel %vm660_vm0, %v5397_v13, %v1147_v41  ;;  %v5954_v41 = vcombine.low %v5913_v31, %v5918_v24 }
  0x84   :  { %372 = vrot.lane.b32.xlu0 %v306_v34, %s5233_s26  ;;  %v326_v34 = vrot.slane %v324_v46, 1  ;;  %v5942_v46 = vcombine.low %v5892_v2, %v4376_v3  ;;  %v1352_v15 = vrot.slane %v1350_v9, 1 }
  0x85   :  { %v1183_v45 = vpop.permute.xlu1 %1182 }
  0x86   :  { %v1181_v30 = vpop.permute.xlu0 %1180  ;;  %v327_v63 = vor.u32 %v326_v34, %v322_v33  ;;  %v1407_v33 = vsel %vm660_vm0, %v5460_v50, %v1151_v57 }
  0x87   :  { %1174 = vrot.lane.b32.xlu1 %v1143_v7, %s5233_s26  ;;  %v1435_v7 = vsel %vm709_vm1, %v1403_v26, %v5850_v28 }
  0x88   :  { %1172 = vrot.lane.b32.xlu0 %v1136_v8, %s5233_s26 }
  0x89   :  { %v1371_v3 = vpop.permute.xlu1 %1370 }
  0x8a   :  { %v1467_v8 = vsel %vm742_vm2, %v1435_v7, %v1371_v3  ;;  %v1369_v13 = vpop.permute.xlu0 %1368  ;;  %v1437_v7 = vsel %vm709_vm1, %v1405_v20, %v1181_v30 }
  0x8b   :  { %v4541_v52 = vcombine.low %v1467_v8, %v1467_v8  ;;  %v4542_v38 = vcombine.high %v1467_v8, %v1467_v8  ;;  %v1465_v26 = vsel %vm742_vm2, %v1433_v39, %v1369_v13  ;;  %1202 = vrot.lane.b32.xlu1 %v5942_v46, %s5232_s5  ;;  %v1439_v39 = vsel %vm709_vm1, %v1407_v33, %v1183_v45 }
  0x8c   :  { %v4539_v34 = vcombine.low %v1465_v26, %v1465_v26  ;;  %v4540_v29 = vcombine.high %v1465_v26, %v1465_v26  ;;  %1200 = vrot.lane.b32.xlu0 %v5945_v23, %s5232_s5 }
  0x8d   :  { %v1594_v4 = vshrl.u32 %v4541_v52, 16  ;;  %v1597_v13 = vshll.u32 %v4541_v52, 16  ;;  %v1375_v3 = vpop.permute.xlu1 %1374  ;;  %v1603_v0 = vshll.u32 %v4542_v38, 16 }
  0x8e   :  { %v1580_v8 = vshrl.u32 %v4539_v34, 16  ;;  %v1583_v28 = vshll.u32 %v4539_v34, 16  ;;  %v1471_v57 = vsel %vm742_vm2, %v1439_v39, %v1375_v3  ;;  %v1373_v50 = vpop.permute.xlu0 %1372  ;;  %v1589_v45 = vshll.u32 %v4540_v29, 16 }
  0x8f   :  { %v1596_v26 = vrot.slane %v1594_v4, 4  ;;  %v1599_v59 = vrot.slane %v1597_v13, 5  ;;  %v4545_v9 = vcombine.low %v1471_v57, %v1471_v57  ;;  %378 = vrot.lane.b32.xlu1 %v327_v63, %s5233_s26  ;;  %v4546_v33 = vcombine.high %v1471_v57, %v1471_v57 }
  0x90   :  { %v1582_v16 = vrot.slane %v1580_v8, 4  ;;  %v1585_v52 = vrot.slane %v1583_v28, 5  ;;  %376 = vrot.lane.b32.xlu0 %v320_v35, %s5233_s26  ;;  %v1469_v20 = vsel %vm742_vm2, %v1437_v7, %v1373_v50  ;;  %v575_v3 = vshll.u32 %v5719_v44, 16  ;;  %v4393_v7 = vld [vmem:[%s8401_s0 + $0x88] sm:$0xe] }
  0x91   :  { %v1622_v30 = vshrl.u32 %v4545_v9, 16  ;;  %v1625_v34 = vshll.u32 %v4545_v9, 16  ;;  %v5989_v39 = vpop.permute.xlu1 %1154  ;;  %v1600_v38 = vor.u32 %v1599_v59, %v1596_v26  ;;  %v4543_v4 = vcombine.low %v1469_v20, %v1469_v20 }
  0x92   :  { %v4544_v13 = vcombine.high %v1469_v20, %v1469_v20  ;;  %v5991_v63 = vpop.permute.xlu0 %1152  ;;  %v5995_v8 = vcombine.low %v4394_v56, %v5918_v24  ;;  %v1586_v35 = vor.u32 %v1585_v52, %v1582_v16  ;;  %v1345_v57 = vrot.slane %v1343_v55, 1 }
  0x93   :  { %v1624_v28 = vrot.slane %v1622_v30, 4  ;;  %v1627_v29 = vrot.slane %v1625_v34, 5  ;;  %454 = vrot.lane.b32.xlu1 %v4468_v5, %s5232_s5  ;;  %v1605_v59 = vrot.slane %v1603_v0, 5  ;;  %v1631_v50 = vshll.u32 %v4546_v33, 16 }
  0x94   :  { %v1608_v26 = vshrl.u32 %v4543_v4, 16  ;;  %v1611_v9 = vshll.u32 %v4543_v4, 16  ;;  %v8524_v20 = vcombine.low %v5701_v6, %v5701_v6  ;;  %v1591_v5 = vrot.slane %v1589_v45, 5 }
  0x95   :  { %v1628_v55 = vor.u32 %v1627_v29, %v1624_v28  ;;  %v6011_v56 = vpop.permute.xlu1 %358  ;;  %v1587_v16 = vrot.slane %v1586_v35, 4  ;;  %v1601_v0 = vrot.slane %v1600_v38, 4  ;;  %v1617_v30 = vshll.u32 %v4544_v13, 16 }
  0x96   :  { %452 = vrot.lane.b32.xlu0 %v8524_v20, %s5232_s5  ;;  %v1610_v52 = vrot.slane %v1608_v26, 4  ;;  %v1613_v33 = vrot.slane %v1611_v9, 5  ;;  %v6013_v34 = vpop.permute.xlu0 %356  ;;  %v4537_v6 = vcombine.low %v4393_v7, %v5932_v60  ;;  %v8527_v28 = vshrl.u32 %v5925_v17, 16 }
  0x97   :  { %v1629_v4 = vrot.slane %v1628_v55, 4  ;;  %1206 = vrot.lane.b32.xlu1 %v5954_v41, %s5232_s5  ;;  %v1592_v20 = vsel %vm6007_vm5, %v1587_v16, %v1591_v5  ;;  %v1606_v45 = vsel %vm6007_vm5, %v1601_v0, %v1605_v59  ;;  %v1633_v29 = vrot.slane %v1631_v50, 5 }
  0x98   :  { %v6024_v38 = vor.u32 %v1352_v15, %v8527_v28  ;;  %v1614_v13 = vor.u32 %v1613_v33, %v1610_v52  ;;  %v4587_v60 = vcombine.low %v1592_v20, %v1606_v45  ;;  %v8528_v35 = vshrl.u32 %v5936_v61, 16  ;;  %v31_v20 = vld [vmem:[%s8401_s0 + $0x78] sm:$0xf] }
  0x99   :  { %v6032_v26 = vpop.permute.xlu1 %1158  ;;  %v1619_v5 = vrot.slane %v1617_v30, 5  ;;  %v1634_v17 = vsel %vm6007_vm5, %v1629_v4, %v1633_v29  ;;  %v4470_v15 = vcombine.low %v5732_v42, %v5732_v42  ;;  %v4469_v61 = vcombine.low %v5743_v47, %v5743_v47 }
  0x9a   :  { %1204 = vrot.lane.b32.xlu0 %v5958_v18, %s5232_s5  ;;  %v6030_v7 = vor.u32 %v1345_v57, %v8528_v35  ;;  %v1615_v9 = vrot.slane %v1614_v13, 4  ;;  %4875 = vmatprep.mubr.bf16.mxu1 %v4587_v60  ;;  %v6034_v59 = vpop.permute.xlu0 %1156  ;;  %v580_v57 = vshrl.u32 %v5714_v22, 16  ;;  %v8530_v50 = vshll.u32 %v5714_v22, 16 }
  0x9b   :  { %1394 = vrot.lane.b32.xlu1 %v6024_v38, %s5234_s12  ;;  %v1364_v16 = vshll.u32 %v5995_v8, 16  ;;  %v573_v42 = vshrl.u32 %v5719_v44, 16  ;;  %v577_v52 = vrot.slane %v575_v3, 1  ;;  %v1357_v33 = vshll.u32 %v4537_v6, 16 }
  0x9c   :  { %8529 = vst [vmem:[#allocation29_spill] sm:$0xff] %v6030_v7  ;;  %v584_v55 = vrot.slane %v8530_v50, 1  ;;  %v1620_v0 = vsel %vm6007_vm5, %v1615_v9, %v1619_v5  ;;  %v1362_v28 = vshrl.u32 %v5995_v8, 16  ;;  %v596_v13 = vshll.u32 %v5753_v10, 16  ;;  %v30_v5 = vld [vmem:[%s8401_s0 + $0x70] sm:$0xf] }
  0x9d   :  { %v4588_v30 = vcombine.low %v1620_v0, %v1634_v17  ;;  %v1187_v4 = vpop.permute.xlu1 %1186  ;;  %v1366_v29 = vrot.slane %v1364_v16, 1  ;;  %v6062_v3 = vor.u32 %v577_v52, %v573_v42  ;;  %v1355_v60 = vshrl.u32 %v4537_v6, 16 }
  0x9e   :  { %1392 = vrot.lane.b32.xlu0 %v6030_v7, %s5234_s12  ;;  %v1185_v47 = vpop.permute.xlu0 %1184  ;;  %v6057_v45 = vor.u32 %v584_v55, %v580_v57  ;;  %v1359_v35 = vrot.slane %v1357_v33, 1  ;;  %v589_v9 = vshll.u32 %v5760_v11, 16  ;;  %v594_v6 = vshrl.u32 %v5753_v10, 16  ;;  %v33_v33 = vld [vmem:[%s8401_s0 + $0x88] sm:$0xf] }
  0x9f   :  { %4876 = vmatmul.mubr.bf16.vlgmr.msra.gmra.mrb[0].mxu1 %v4588_v30  ;;  %458 = vrot.lane.b32.xlu1 %v4470_v15, %s5232_s5  ;;  %8532 = vst [vmem:[#allocation31_spill] sm:$0xff] %v6062_v3  ;;  %v6071_v15 = vcombine.low %v31_v20, %v5780_v36  ;;  %v598_v57 = vrot.slane %v596_v13, 1  ;;  %v6081_v50 = vcombine.low %v30_v5, %v5793_v1  ;;  %v587_v36 = vshrl.u32 %v5760_v11, 16  ;;  %v6113_v13 = vld [vmem:[%s8401_s0 + $0x18] sm:$0xf] }
  0xa0   :  { %8531 = vst [vmem:[#allocation30_spill] sm:$0xff] %v6057_v45  ;;  %v6085_v55 = vor.u32 %v1359_v35, %v1355_v60  ;;  %v591_v16 = vrot.slane %v589_v9, 1  ;;  %v6116_v60 = vcombine.low %v33_v33, %v5828_v43  ;;  %v1411_v43 = vsel %vm660_vm0, %v5629_v48, %v5989_v39  ;;  %v6141_v33 = vld [vmem:[%s8401_s0 + $0x10] sm:$0xf] }
  0xa1   :  { %v6068_v17 = vpop.permute.xlu1 %362  ;;  %v338_v52 = vshll.u32 %v6071_v15, 16  ;;  %v6098_v1 = vor.u32 %v598_v57, %v594_v6  ;;  %v331_v20 = vshll.u32 %v6081_v50, 16  ;;  %v336_v9 = vshrl.u32 %v6071_v15, 16  ;;  %v4412_v6 = vld [vmem:[%s8401_s0 + $0x1c] sm:$0x1] }
  0xa2   :  { %456 = vrot.lane.b32.xlu0 %v4469_v61, %s5232_s5  ;;  %v6073_v8 = vpop.permute.xlu0 %360  ;;  %v6077_v61 = vor.u32 %v1366_v29, %v1362_v28  ;;  %8534 = vst [vmem:[#allocation33_spill] sm:$0xff] %v6085_v55  ;;  %v6102_v30 = vor.u32 %v591_v16, %v587_v36  ;;  %v32_v28 = vld [vmem:[%s8401_s0 + $0x80] sm:$0xf]  ;;  %v4428_v57 = vld [vmem:[%s8401_s0 + $0x18] sm:$0xe]  ;;  %v329_v16 = vshrl.u32 %v6081_v50, 16  ;;  %v1443_v48 = vsel %vm709_vm1, %v1411_v43, %v1187_v4 }
  0xa3   :  { %646 = vrot.lane.b32.xlu1 %v6057_v45, %s5234_s12  ;;  %8535 = vst [vmem:[#allocation34_spill] sm:$0xff] %v6098_v1  ;;  %v340_v5 = vrot.slane %v338_v52, 1  ;;  %v6130_v36 = vcombine.low %v32_v28, %v5841_v62  ;;  %v333_v52 = vrot.slane %v331_v20, 1  ;;  %v4411_v62 = vld [vmem:[%s8401_s0 + $0x14] sm:$0x1]  ;;  %v1409_v28 = vsel %vm660_vm0, %v5632_v49, %v5991_v63 }
  0xa4   :  { %8533 = vst [vmem:[#allocation32_spill] sm:$0xff] %v6077_v61  ;;  %8536 = vst [vmem:[#allocation35_spill] sm:$0xff] %v6102_v30  ;;  %v6151_v11 = vcombine.low %v6113_v13, %v4412_v6  ;;  %v6153_v20 = vcombine.low %v4428_v57, %v4412_v6  ;;  %v4427_v10 = vld [vmem:[%s8401_s0 + $0x10] sm:$0xe]  ;;  %v1441_v44 = vsel %vm709_vm1, %v1409_v28, %v1185_v47  ;;  %v352_v49 = vshll.u32 %v6116_v60, 16 }
  0xa5   :  { %v6088_v0 = vpop.permute.xlu1 %438  ;;  %v6165_v6 = vcombine.low %v6141_v33, %v4411_v62  ;;  %v334_v47 = vor.u32 %v333_v52, %v329_v16  ;;  %v6169_v28 = vcombine.low %v4427_v10, %v4411_v62  ;;  %v5200_v52 = vld [vmem:[%s8401_s0 + $0x8] sm:$0xf] }
  0xa6   :  { %644 = vrot.lane.b32.xlu0 %v6062_v3, %s5234_s12  ;;  %v6090_v42 = vpop.permute.xlu0 %436  ;;  %v666_v62 = vsel %vm660_vm0, %v5200_v52, %v6011_v56 }
  0xa7   :  { %1398 = vrot.lane.b32.xlu1 %v6077_v61, %s5234_s12  ;;  %v354_v61 = vrot.slane %v352_v49, 1 }
  0xa9   :  { %v6108_v29 = vpop.permute.xlu1 %1190 }
  0xaa   :  { %1396 = vrot.lane.b32.xlu0 %v6085_v55, %s5234_s12  ;;  %v6118_v35 = vpop.permute.xlu0 %1188 }
  0xab   :  { %650 = vrot.lane.b32.xlu1 %v6098_v1, %s5234_s12  ;;  %v341_v1 = vor.u32 %v340_v5, %v336_v9 }
  0xad   :  { %v1379_v39 = vpop.permute.xlu1 %1378 }
  0xae   :  { %648 = vrot.lane.b32.xlu0 %v6102_v30, %s5234_s12  ;;  %v1475_v22 = vsel %vm742_vm2, %v1443_v48, %v1379_v39  ;;  %v1377_v30 = vpop.permute.xlu0 %1376 }
  0xaf   :  { %v4549_v63 = vcombine.low %v1475_v22, %v1475_v22  ;;  %v4550_v4 = vcombine.high %v1475_v22, %v1475_v22  ;;  %v1473_v43 = vsel %vm742_vm2, %v1441_v44, %v1377_v30  ;;  %2625 = vrot.lane.b32.xlu1 %v5401_v14, %s5233_s26  ;;  %v350_v22 = vshrl.u32 %v6116_v60, 16 }
  0xb0   :  { %v4547_v57 = vcombine.low %v1473_v43, %v1473_v43  ;;  %v4548_v55 = vcombine.high %v1473_v43, %v1473_v43  ;;  %v345_v44 = vshll.u32 %v6130_v36, 16  ;;  %v343_v43 = vshrl.u32 %v6130_v36, 16 }
  0xb1   :  { %v1650_v9 = vshrl.u32 %v4549_v63, 16  ;;  %v1653_v5 = vshll.u32 %v4549_v63, 16  ;;  %v6171_v48 = vpop.permute.xlu1 %442  ;;  %v1659_v16 = vshll.u32 %v4550_v4, 16  ;;  %v5201_v4 = vld [vmem:[%s8401_s0] sm:$0xf] }
  0xb2   :  { %2623 = vrot.lane.b32.xlu0 %v5408_v19, %s5233_s26  ;;  %v1636_v14 = vshrl.u32 %v4547_v57, 16  ;;  %v1639_v30 = vshll.u32 %v4547_v57, 16  ;;  %v6175_v39 = vpop.permute.xlu0 %440  ;;  %v1645_v49 = vshll.u32 %v4548_v55, 16  ;;  %v347_v45 = vrot.slane %v345_v44, 1 }
  0xb3   :  { %v1652_v3 = vrot.slane %v1650_v9, 4  ;;  %v1655_v19 = vrot.slane %v1653_v5, 5  ;;  %382 = vrot.lane.b32.xlu1 %v341_v1, %s5233_s26  ;;  %v663_v1 = vsel %vm660_vm0, %v5201_v4, %v6013_v34  ;;  %v713_v9 = vsel %vm709_vm1, %v666_v62, %v6088_v0 }
  0xb4   :  { %v1638_v63 = vrot.slane %v1636_v14, 4  ;;  %v1641_v57 = vrot.slane %v1639_v30, 5  ;;  %v711_v56 = vsel %vm709_vm1, %v663_v1, %v6090_v42  ;;  %v4471_v30 = vcombine.low %v5901_v54, %v5901_v54  ;;  %v5167_v1 = vld [vmem:[%s8402_s1 + $0xc8] sm:$0xff]   ;;  %v5169_v54 = vld [vmem:[%s8402_s1 + $0xd8] sm:$0xff]  }
  0xb5   :  { %v1656_v5 = vor.u32 %v1655_v19, %v1652_v3  ;;  %v631_v10 = vpop.permute.xlu1 %630  ;;  %v1661_v7 = vrot.slane %v1659_v16, 5  ;;  %v355_v3 = vor.u32 %v354_v61, %v350_v22  ;;  %v1415_v0 = vsel %vm660_vm0, %v5679_v40, %v6032_v26  ;;  %v5166_v16 = vld [vmem:[%s8402_s1 + $0xc0] sm:$0xff]  }
  0xb6   :  { %380 = vrot.lane.b32.xlu0 %v334_v47, %s5233_s26  ;;  %v1642_v14 = vor.u32 %v1641_v57, %v1638_v63  ;;  %v629_v55 = vpop.permute.xlu0 %628  ;;  %v746_v47 = vsel %vm742_vm2, %v713_v9, %v631_v10  ;;  %v1647_v44 = vrot.slane %v1645_v49, 5  ;;  %v1447_v61 = vsel %vm709_vm1, %v1415_v0, %v6108_v29  ;;  %4923 = vmatprep.subr.bf16.mxu1 %v5166_v16  ;;  %v5203_v9 = vld [vmem:[%s8401_s0 + $0x10] sm:$0xf] }
  0xb7   :  { %v1657_v52 = vrot.slane %v1656_v5, 4  ;;  %2629 = vrot.lane.b32.xlu1 %v5429_v25, %s5233_s26  ;;  %v744_v34 = vsel %vm742_vm2, %v711_v56, %v629_v55  ;;  %v1413_v25 = vsel %vm660_vm0, %v5683_v53, %v6034_v59  ;;  %v348_v26 = vor.u32 %v347_v45, %v343_v43  ;;  %v5202_v45 = vld [vmem:[%s8401_s0 + $0x18] sm:$0xf]  ;;  %4924 = vmatpush3.bf16.msra.mxu1 %v5166_v16 }
  0xb8   :  { %v1643_v42 = vrot.slane %v1642_v14, 4  ;;  %v4491_v19 = vcombine.low %v744_v34, %v746_v47  ;;  %v2745_v63 = vshll.u32 %v6153_v20, 16  ;;  %v2738_v4 = vshll.u32 %v6169_v28, 16  ;;  %4925 = vmatprep.subr.bf16.mxu1 %v5167_v1 }
  0xb9   :  { %v1383_v22 = vpop.permute.xlu1 %1382  ;;  %v1662_v40 = vsel %vm6007_vm5, %v1657_v52, %v1661_v7  ;;  %v669_v5 = vsel %vm660_vm0, %v5203_v9, %v6073_v8 }
  0xba   :  { %2627 = vrot.lane.b32.xlu0 %v5437_v32, %s5233_s26  ;;  %v1445_v32 = vsel %vm709_vm1, %v1413_v25, %v6118_v35  ;;  %v1479_v10 = vsel %vm742_vm2, %v1447_v61, %v1383_v22  ;;  %4843 = vmatprep.mubr.bf16.mxu0 %v4491_v19  ;;  %v1381_v62 = vpop.permute.xlu0 %1380  ;;  %v1648_v53 = vsel %vm6007_vm5, %v1643_v42, %v1647_v44 }
  0xbb   :  { %v4553_v59 = vcombine.low %v1479_v10, %v1479_v10  ;;  %v4554_v29 = vcombine.high %v1479_v10, %v1479_v10  ;;  %v1477_v57 = vsel %vm742_vm2, %v1445_v32, %v1381_v62  ;;  %2657 = vrot.lane.b32.xlu1 %v6151_v11, %s5232_s5  ;;  %v4589_v7 = vcombine.low %v1648_v53, %v1662_v40  ;;  %v4414_v40 = vld [vmem:[%s8401_s0 + $0x2c] sm:$0x1]  ;;  %v4413_v62 = vld [vmem:[%s8401_s0 + $0x24] sm:$0x1] }
  0xbc   :  { %v672_v35 = vsel %vm660_vm0, %v5202_v45, %v6068_v17  ;;  %v4551_v43 = vcombine.low %v1477_v57, %v1477_v57  ;;  %v4552_v49 = vcombine.high %v1477_v57, %v1477_v57  ;;  %v715_v47 = vsel %vm709_vm1, %v669_v5, %v6175_v39  ;;  %4926 = vmatpush3.bf16.msra.mxu1 %v5167_v1  ;;  %v4429_v5 = vld [vmem:[%s8401_s0 + $0x20] sm:$0xe] }
  0xbd   :  { %v717_v17 = vsel %vm709_vm1, %v672_v35, %v6171_v48  ;;  %v1678_v56 = vshrl.u32 %v4553_v59, 16  ;;  %v1681_v14 = vshll.u32 %v4553_v59, 16  ;;  %4879 = vmatprep.mubr.bf16.mxu1 %v4589_v7  ;;  %v635_v55 = vpop.permute.xlu1 %634  ;;  %v1687_v16 = vshll.u32 %v4554_v29, 16  ;;  %v6252_v48 = vld [vmem:[%s8401_s0 + $0x28] sm:$0xf] }
  0xbe   :  { %2655 = vrot.lane.b32.xlu0 %v6165_v6, %s5232_s5  ;;  %v1664_v52 = vshrl.u32 %v4551_v43, 16  ;;  %v1667_v34 = vshll.u32 %v4551_v43, 16  ;;  %v750_v0 = vsel %vm742_vm2, %v717_v17, %v635_v55  ;;  %v633_v42 = vpop.permute.xlu0 %632  ;;  %v1673_v61 = vshll.u32 %v4552_v49, 16 }
  0xbf   :  { %v1680_v44 = vrot.slane %v1678_v56, 4  ;;  %v1683_v19 = vrot.slane %v1681_v14, 5  ;;  %v748_v8 = vsel %vm742_vm2, %v715_v47, %v633_v42  ;;  %386 = vrot.lane.b32.xlu1 %v355_v3, %s5233_s26  ;;  %v6263_v3 = vld [vmem:[%s8401_s0 + $0x20] sm:$0xf]  ;;  %v2743_v59 = vshrl.u32 %v6153_v20, 16 }
  0xc0   :  { %v1666_v25 = vrot.slane %v1664_v52, 4  ;;  %v1669_v39 = vrot.slane %v1667_v34, 5  ;;  %v4492_v22 = vcombine.low %v748_v8, %v750_v0  ;;  %v2736_v29 = vshrl.u32 %v6169_v28, 16  ;;  %v4430_v28 = vld [vmem:[%s8401_s0 + $0x28] sm:$0xe]  ;;  %v5170_v42 = vld [vmem:[%s8402_s1 + $0xe0] sm:$0xff]  }
  0xc1   :  { %v1684_v32 = vor.u32 %v1683_v19, %v1680_v44  ;;  %v6258_v10 = vpop.permute.xlu1 %1162  ;;  %v1689_v45 = vrot.slane %v1687_v16, 5  ;;  %v2747_v35 = vrot.slane %v2745_v63, 1  ;;  %v8537_v43 = vcombine.low %v5892_v2, %v5892_v2 }
  0xc2   :  { %384 = vrot.lane.b32.xlu0 %v348_v26, %s5233_s26  ;;  %v5168_v26 = vld [vmem:[%s8402_s1 + $0xd0] sm:$0xff]   ;;  %v1670_v53 = vor.u32 %v1669_v39, %v1666_v25  ;;  %4844 = vmatmul.mubr.bf16.vlgmr.msra.gmra.mrb[0].mxu0 %v4492_v22  ;;  %v6273_v57 = vpop.permute.xlu0 %1160  ;;  %v6280_v49 = vcombine.low %v6252_v48, %v4414_v40  ;;  %v1675_v9 = vrot.slane %v1673_v61, 5  ;;  %v2740_v20 = vrot.slane %v2738_v4, 1 }
  0xc3   :  { %v1685_v7 = vrot.slane %v1684_v32, 4  ;;  %462 = vrot.lane.b32.xlu1 %v8537_v43, %s5232_s5  ;;  %4927 = vmatprep.subr.bf16.mxu1 %v5168_v26  ;;  %v6290_v63 = vcombine.low %v6263_v3, %v4413_v62  ;;  %v4670_v56 = vcombine.low %v4430_v28, %v4414_v40  ;;  %v2748_v55 = vor.u32 %v2747_v35, %v2743_v59 }
  0xc4   :  { %v1671_v1 = vrot.slane %v1670_v53, 4  ;;  %4928 = vmatpush3.bf16.msra.mxu1 %v5168_v26  ;;  %v610_v47 = vshll.u32 %v5942_v46, 16  ;;  %v4669_v52 = vcombine.low %v4429_v5, %v4413_v62  ;;  %v2741_v34 = vor.u32 %v2740_v20, %v2736_v29  ;;  %v5175_v26 = vld [vmem:[%s8402_s1 + $0xe8] sm:$0xff]  }
  0xc5   :  { %v6292_v2 = vpop.permute.xlu1 %366  ;;  %v1690_v4 = vsel %vm6007_vm5, %v1685_v7, %v1689_v45  ;;  %4929 = vmatprep.subr.bf16.mxu1 %v5169_v54  ;;  %v603_v0 = vshll.u32 %v5945_v23, 16  ;;  %v2759_v16 = vshll.u32 %v4670_v56, 16  ;;  %v4474_v8 = vcombine.low %v5913_v31, %v5913_v31 }
  0xc6   :  { %460 = vrot.lane.b32.xlu0 %v4471_v30, %s5232_s5  ;;  %v6302_v30 = vpop.permute.xlu0 %364  ;;  %v1676_v17 = vsel %vm6007_vm5, %v1671_v1, %v1675_v9  ;;  %v608_v25 = vshrl.u32 %v5942_v46, 16  ;;  %v612_v39 = vrot.slane %v610_v47, 1  ;;  %v2752_v61 = vshll.u32 %v4669_v52, 16  ;;  %v5176_v9 = vld [vmem:[%s8402_s1 + $0xf0] sm:$0xff]  }
  0xc7   :  { %2661 = vrot.lane.b32.xlu1 %v6280_v49, %s5232_s5  ;;  %v4590_v14 = vcombine.low %v1676_v17, %v1690_v4  ;;  %v4473_v22 = vcombine.low %v5923_v51, %v5923_v51  ;;  %v601_v40 = vshrl.u32 %v5945_v23, 16  ;;  %v605_v32 = vrot.slane %v603_v0, 1 }
  0xc8   :  { %4930 = vmatpush3.bf16.msra.mxu1 %v5169_v54  ;;  %v2757_v31 = vshrl.u32 %v4670_v56, 16  ;;  %v2761_v59 = vrot.slane %v2759_v16, 1  ;;  %v6331_v29 = vor.u32 %v612_v39, %v608_v25  ;;  %v624_v7 = vshll.u32 %v5954_v41, 16 }
  0xc9   :  { %4880 = vmatmul.mubr.bf16.gmra.mrb[4].mxu1 %v4590_v14  ;;  %v6315_v44 = vpop.permute.xlu1 %1166  ;;  %4931 = vmatprep.subr.bf16.mxu1 %v5170_v42  ;;  %v2750_v51 = vshrl.u32 %v4669_v52, 16  ;;  %v2754_v45 = vrot.slane %v2752_v61, 1  ;;  %v6335_v35 = vor.u32 %v605_v32, %v601_v40  ;;  %v617_v43 = vshll.u32 %v5958_v18, 16 }
  0xca   :  { %2659 = vrot.lane.b32.xlu0 %v6290_v63, %s5232_s5  ;;  %v6317_v19 = vpop.permute.xlu0 %1164  ;;  %v2762_v28 = vor.u32 %v2761_v59, %v2757_v31  ;;  %v622_v5 = vshrl.u32 %v5954_v41, 16  ;;  %v626_v4 = vrot.slane %v624_v7, 1  ;;  %v615_v17 = vshrl.u32 %v5958_v18, 16 }
  0xcb   :  { %2849 = vrot.lane.b32.xlu1 %v2748_v55, %s5234_s12  ;;  %v2755_v54 = vor.u32 %v2754_v45, %v2750_v51  ;;  %v619_v56 = vrot.slane %v617_v43, 1  ;;  %v5179_v55 = vld [vmem:[%s8402_s1 + $0xf8] sm:$0xff]   ;;  %v1419_v16 = vsel %vm660_vm0, %v5816_v37, %v6258_v10  ;;  %v6402_v43 = vld [vmem:[%s8401_s0 + $0x30] sm:$0xf] }
  0xcc   :  { %4932 = vmatpush3.bf16.msra.mxu1 %v5170_v42  ;;  %v6355_v52 = vor.u32 %v626_v4, %v622_v5 }
  0xcd   :  { %v1195_v62 = vpop.permute.xlu1 %1194  ;;  %4933 = vmatprep.subr.bf16.mxu1 %v5175_v26 }
  0xce   :  { %2847 = vrot.lane.b32.xlu0 %v2741_v34, %s5234_s12  ;;  %v1193_v53 = vpop.permute.xlu0 %1192  ;;  %v6358_v34 = vor.u32 %v619_v56, %v615_v17  ;;  %v1451_v25 = vsel %vm709_vm1, %v1419_v16, %v1195_v62  ;;  %v5186_v62 = vld [vmem:[%s8402_s1 + $0x80] sm:$0xff]   ;;  %v5204_v56 = vld [vmem:[%s8401_s0 + $0x28] sm:$0xf] }
  0xcf   :  { %466 = vrot.lane.b32.xlu1 %v4474_v8, %s5232_s5  ;;  %v1417_v8 = vsel %vm660_vm0, %v5819_v21, %v6273_v57  ;;  %v6385_v21 = vld [vmem:[%s8401_s0 + $0x38] sm:$0xf]  ;;  %v4416_v57 = vld [vmem:[%s8401_s0 + $0x3c] sm:$0x1]  ;;  %4891 = vmatprep.subr.bf16.mxu0 %v5186_v62 }
  0xd0   :  { %4934 = vmatpush3.bf16.msra.mxu1 %v5175_v26  ;;  %v1449_v61 = vsel %vm709_vm1, %v1417_v8, %v1193_v53  ;;  %v6413_v17 = vcombine.low %v6385_v21, %v4416_v57  ;;  %4892 = vmatpush3.bf16.msra.mxu0 %v5186_v62 }
  0xd1   :  { %v6338_v1 = vpop.permute.xlu1 %370  ;;  %4935 = vmatprep.subr.bf16.mxu1 %v5176_v9 }
  0xd2   :  { %464 = vrot.lane.b32.xlu0 %v4473_v22, %s5232_s5  ;;  %v6343_v20 = vpop.permute.xlu0 %368 }
  0xd3   :  { %654 = vrot.lane.b32.xlu1 %v6331_v29, %s5234_s12 }
  0xd4   :  { %4936 = vmatpush3.bf16.msra.mxu1 %v5176_v9  ;;  %v4415_v9 = vld [vmem:[%s8401_s0 + $0x34] sm:$0x1] }
  0xd5   :  { %v447_v14 = vpop.permute.xlu1 %446  ;;  %4937 = vmatprep.subr.bf16.mxu1 %v5179_v55 }
  0xd6   :  { %652 = vrot.lane.b32.xlu0 %v6335_v35, %s5234_s12  ;;  %v445_v47 = vpop.permute.xlu0 %444 }
  0xd7   :  { %2853 = vrot.lane.b32.xlu1 %v2762_v28, %s5234_s12 }
  0xd8   :  { %4938 = vmatpush3.bf16.msra.mxu1 %v5179_v55  ;;  %v678_v55 = vsel %vm660_vm0, %v5204_v56, %v6292_v2 }
  0xd9   :  { %v6360_v0 = vpop.permute.xlu1 %1198 }
  0xda   :  { %2851 = vrot.lane.b32.xlu0 %v2755_v54, %s5234_s12  ;;  %v6362_v42 = vpop.permute.xlu0 %1196  ;;  %v4432_v54 = vld [vmem:[%s8401_s0 + $0x38] sm:$0xe] }
  0xdb   :  { %658 = vrot.lane.b32.xlu1 %v6355_v52, %s5234_s12 }
  0xdd   :  { %v1387_v39 = vpop.permute.xlu1 %1386 }
  0xde   :  { %656 = vrot.lane.b32.xlu0 %v6358_v34, %s5234_s12  ;;  %v1483_v22 = vsel %vm742_vm2, %v1451_v25, %v1387_v39  ;;  %v1385_v40 = vpop.permute.xlu0 %1384  ;;  %v4431_v39 = vld [vmem:[%s8401_s0 + $0x30] sm:$0xe] }
  0xdf   :  { %v4557_v32 = vcombine.low %v1483_v22, %v1483_v22  ;;  %v4558_v26 = vcombine.high %v1483_v22, %v1483_v22  ;;  %v1481_v31 = vsel %vm742_vm2, %v1449_v61, %v1385_v40  ;;  %2633 = vrot.lane.b32.xlu1 %v5564_v58, %s5233_s26  ;;  %v5205_v61 = vld [vmem:[%s8401_s0 + $0x20] sm:$0xf]  ;;  %v721_v40 = vsel %vm709_vm1, %v678_v55, %v447_v14  ;;  %v8541_v55 = vld [vmem:[#allocation12_spill] sm:$0xff] }
  0xe0   :  { %v4555_v37 = vcombine.low %v1481_v31, %v1481_v31  ;;  %v4556_v10 = vcombine.high %v1481_v31, %v1481_v31  ;;  %v675_v22 = vsel %vm660_vm0, %v5205_v61, %v6302_v30 }
  0xe1   :  { %v1706_v53 = vshrl.u32 %v4557_v32, 16  ;;  %v1709_v58 = vshll.u32 %v4557_v32, 16  ;;  %v6393_v59 = vpop.permute.xlu1 %450  ;;  %v1715_v4 = vshll.u32 %v4558_v26, 16  ;;  %v6432_v26 = vcombine.low %v6402_v43, %v4415_v9 }
  0xe2   :  { %2631 = vrot.lane.b32.xlu0 %v5571_v12, %s5233_s26  ;;  %v4604_v12 = vcombine.low %v6113_v13, %v6113_v13  ;;  %v1692_v7 = vshrl.u32 %v4555_v37, 16  ;;  %v1695_v51 = vshll.u32 %v4555_v37, 16  ;;  %v6397_v45 = vpop.permute.xlu0 %448  ;;  %v1701_v25 = vshll.u32 %v4556_v10, 16 }
  0xe3   :  { %v1708_v28 = vrot.slane %v1706_v53, 4  ;;  %v1711_v5 = vrot.slane %v1709_v58, 5  ;;  %1999 = vrot.lane.b32.xlu1 %v5603_v27, %s5233_s26  ;;  %v8538_v27 = vld [vmem:[#allocation10_spill] sm:$0xff]  ;;  %v719_v31 = vsel %vm709_vm1, %v675_v22, %v445_v47  ;;  %v6436_v53 = vcombine.low %v4432_v54, %v4416_v57  ;;  %v5187_v58 = vld [vmem:[%s8402_s1 + $0x88] sm:$0xff]  }
  0xe4   :  { %v1694_v16 = vrot.slane %v1692_v7, 4  ;;  %v1697_v8 = vrot.slane %v1695_v51, 5  ;;  %v1717_v7 = vrot.slane %v1715_v4, 5  ;;  %v8539_v51 = vld [vmem:[#allocation11_spill] sm:$0xff]  ;;  %v1703_v57 = vrot.slane %v1701_v25, 5  ;;  %4893 = vmatprep.subr.bf16.mxu0 %v5187_v58 }
  0xe5   :  { %v1712_v2 = vor.u32 %v1711_v5, %v1708_v28  ;;  %v639_v32 = vpop.permute.xlu1 %638  ;;  %v6444_v28 = vcombine.low %v4431_v39, %v4415_v9  ;;  %v8540_v47 = vld [vmem:[#allocation27_spill] sm:$0xff]  ;;  %v4603_v4 = vcombine.low %v6141_v33, %v6141_v33  ;;  %4894 = vmatpush3.bf16.msra.mxu0 %v5187_v58 }
  0xe6   :  { %1997 = vrot.lane.b32.xlu0 %v8538_v27, %s5233_s26  ;;  %v1698_v37 = vor.u32 %v1697_v8, %v1694_v16  ;;  %v754_v10 = vsel %vm742_vm2, %v721_v40, %v639_v32  ;;  %v637_v62 = vpop.permute.xlu0 %636  ;;  %v1423_v5 = vsel %vm660_vm0, %v8540_v47, %v6315_v44  ;;  %v8542_v16 = vld [vmem:[#allocation28_spill] sm:$0xff] }
  0xe7   :  { %v1713_v30 = vrot.slane %v1712_v2, 4  ;;  %v752_v14 = vsel %vm742_vm2, %v719_v31, %v637_v62  ;;  %2637 = vrot.lane.b32.xlu1 %v8539_v51, %s5233_s26  ;;  %v1421_v8 = vsel %vm660_vm0, %v8542_v16, %v6317_v19  ;;  %v1455_v9 = vsel %vm709_vm1, %v1423_v5, %v6360_v0  ;;  %v5188_v0 = vld [vmem:[%s8402_s1 + $0x90] sm:$0xff]   ;;  %v5206_v31 = vld [vmem:[%s8401_s0 + $0x38] sm:$0xf]  ;;  %v6490_v5 = vld [vmem:[%s8401_s0 + $0x48] sm:$0xf] }
  0xe8   :  { %v1699_v56 = vrot.slane %v1698_v37, 4  ;;  %v4493_v54 = vcombine.low %v752_v14, %v754_v10  ;;  %v1453_v25 = vsel %vm709_vm1, %v1421_v8, %v6362_v42  ;;  %v2773_v19 = vshll.u32 %v6436_v53, 16  ;;  %4895 = vmatprep.subr.bf16.mxu0 %v5188_v0  ;;  %v6501_v16 = vld [vmem:[%s8401_s0 + $0x40] sm:$0xf]  ;;  %v5189_v8 = vld [vmem:[%s8402_s1 + $0x98] sm:$0xff]  }
  0xe9   :  { %v1391_v27 = vpop.permute.xlu1 %1390  ;;  %v1718_v44 = vsel %vm6007_vm5, %v1713_v30, %v1717_v7  ;;  %v684_v37 = vsel %vm660_vm0, %v5206_v31, %v6338_v1  ;;  %v2766_v58 = vshll.u32 %v6444_v28, 16  ;;  %v5207_v30 = vld [vmem:[%s8401_s0 + $0x30] sm:$0xf]  ;;  %4896 = vmatpush3.bf16.msra.mxu0 %v5188_v0 }
  0xea   :  { %2635 = vrot.lane.b32.xlu0 %v8541_v55, %s5233_s26  ;;  %v1487_v39 = vsel %vm742_vm2, %v1455_v9, %v1391_v27  ;;  %4847 = vmatprep.mubr.bf16.mxu0 %v4493_v54  ;;  %v1389_v61 = vpop.permute.xlu0 %1388  ;;  %v1704_v22 = vsel %vm6007_vm5, %v1699_v56, %v1703_v57  ;;  %v681_v7 = vsel %vm660_vm0, %v5207_v30, %v6343_v20  ;;  %v4418_v56 = vld [vmem:[%s8401_s0 + $0x4c] sm:$0x1] }
  0xeb   :  { %v4561_v40 = vcombine.low %v1487_v39, %v1487_v39  ;;  %v4562_v2 = vcombine.high %v1487_v39, %v1487_v39  ;;  %v1485_v32 = vsel %vm742_vm2, %v1453_v25, %v1389_v61  ;;  %2665 = vrot.lane.b32.xlu1 %v6413_v17, %s5232_s5  ;;  %v4591_v42 = vcombine.low %v1704_v22, %v1718_v44  ;;  %v4417_v39 = vld [vmem:[%s8401_s0 + $0x44] sm:$0x1] }
  0xec   :  { %v4559_v10 = vcombine.low %v1485_v32, %v1485_v32  ;;  %v4560_v62 = vcombine.high %v1485_v32, %v1485_v32  ;;  %v725_v14 = vsel %vm709_vm1, %v684_v37, %v6393_v59  ;;  %v723_v20 = vsel %vm709_vm1, %v681_v7, %v6397_v45  ;;  %v8543_v45 = vld [vmem:[#allocation13_spill] sm:$0xff]  ;;  %v8544_v32 = vld [vmem:[#allocation14_spill] sm:$0xff]  ;;  %4897 = vmatprep.subr.bf16.mxu0 %v5189_v8 }
  0xed   :  { %v1734_v51 = vshrl.u32 %v4561_v40, 16  ;;  %v1737_v1 = vshll.u32 %v4561_v40, 16  ;;  %4883 = vmatprep.mubr.bf16.mxu1 %v4591_v42  ;;  %v643_v47 = vpop.permute.xlu1 %642  ;;  %v1743_v44 = vshll.u32 %v4562_v2, 16  ;;  %4898 = vmatpush3.bf16.msra.mxu0 %v5189_v8  ;;  %v6522_v30 = vcombine.low %v6501_v16, %v4417_v39 }
  0xee   :  { %2663 = vrot.lane.b32.xlu0 %v6432_v26, %s5232_s5  ;;  %v1720_v57 = vshrl.u32 %v4559_v10, 16  ;;  %v1723_v54 = vshll.u32 %v4559_v10, 16  ;;  %v758_v59 = vsel %vm742_vm2, %v725_v14, %v643_v47  ;;  %v641_v55 = vpop.permute.xlu0 %640  ;;  %v1729_v0 = vshll.u32 %v4560_v62, 16  ;;  %v5190_v62 = vld [vmem:[%s8402_s1 + $0xa0] sm:$0xff]  }
  0xef   :  { %v1736_v9 = vrot.slane %v1734_v51, 4  ;;  %v1739_v27 = vrot.slane %v1737_v1, 5  ;;  %v756_v25 = vsel %vm742_vm2, %v723_v20, %v641_v55  ;;  %2003 = vrot.lane.b32.xlu1 %v8543_v45, %s5233_s26  ;;  %v6519_v10 = vcombine.low %v6490_v5, %v4418_v56  ;;  %4899 = vmatprep.subr.bf16.mxu0 %v5190_v62 }
  0xf0   :  { %v1722_v61 = vrot.slane %v1720_v57, 4  ;;  %v1725_v22 = vrot.slane %v1723_v54, 5  ;;  %v4494_v40 = vcombine.low %v756_v25, %v758_v59  ;;  %v1745_v14 = vrot.slane %v1743_v44, 5  ;;  %v4434_v57 = vld [vmem:[%s8401_s0 + $0x48] sm:$0xe] }
  0xf1   :  { %v1740_v42 = vor.u32 %v1739_v27, %v1736_v9  ;;  %v6514_v31 = vpop.permute.xlu1 %1170  ;;  %v2771_v51 = vshrl.u32 %v6436_v53, 16  ;;  %v2775_v1 = vrot.slane %v2773_v19, 1  ;;  %v1731_v20 = vrot.slane %v1729_v0, 5  ;;  %4900 = vmatpush3.bf16.msra.mxu0 %v5190_v62 }
  0xf2   :  { %2001 = vrot.lane.b32.xlu0 %v8544_v32, %s5233_s26  ;;  %v1726_v2 = vor.u32 %v1725_v22, %v1722_v61  ;;  %4848 = vmatmul.mubr.bf16.gmra.mrb[4].mxu0 %v4494_v40  ;;  %v6516_v37 = vpop.permute.xlu0 %1168  ;;  %v2764_v54 = vshrl.u32 %v6444_v28, 16  ;;  %v2768_v59 = vrot.slane %v2766_v58, 1  ;;  %v5191_v28 = vld [vmem:[%s8402_s1 + $0xa8] sm:$0xff]   ;;  %v2167_v19 = vshll.u32 %v6151_v11, 16 }
  0xf3   :  { %v1741_v7 = vrot.slane %v1740_v42, 4  ;;  %2079 = vrot.lane.b32.xlu1 %v4604_v12, %s5232_s5  ;;  %v4433_v12 = vld [vmem:[%s8401_s0 + $0x40] sm:$0xe]  ;;  %v4674_v58 = vcombine.low %v4434_v57, %v4418_v56  ;;  %v2776_v8 = vor.u32 %v2775_v1, %v2771_v51  ;;  %v2160_v9 = vshll.u32 %v6165_v6, 16  ;;  %4901 = vmatprep.subr.bf16.mxu0 %v5191_v28  ;;  %v5194_v56 = vld [vmem:[%s8402_s1 + $0xb0] sm:$0xff]  }
  0xf4   :  { %v1727_v47 = vrot.slane %v1726_v2, 4  ;;  %v4673_v27 = vcombine.low %v4433_v12, %v4417_v39  ;;  %v2769_v44 = vor.u32 %v2768_v59, %v2764_v54  ;;  %v2165_v61 = vshrl.u32 %v6151_v11, 16 }
  0xf5   :  { %v6540_v13 = vpop.permute.xlu1 %374  ;;  %v1746_v53 = vsel %vm6007_vm5, %v1741_v7, %v1745_v14  ;;  %4902 = vmatpush3.bf16.msra.mxu0 %v5191_v28  ;;  %v2169_v22 = vrot.slane %v2167_v19, 1  ;;  %v4606_v39 = vcombine.low %v6252_v48, %v6252_v48  ;;  %v2787_v0 = vshll.u32 %v4674_v58, 16  ;;  %v5197_v48 = vld [vmem:[%s8402_s1 + $0xb8] sm:$0xff]  }
  0xf6   :  { %2077 = vrot.lane.b32.xlu0 %v4603_v4, %s5232_s5  ;;  %v6547_v33 = vpop.permute.xlu0 %372  ;;  %v1732_v4 = vsel %vm6007_vm5, %v1727_v47, %v1731_v20  ;;  %v2158_v40 = vshrl.u32 %v6165_v6, 16  ;;  %v2162_v32 = vrot.slane %v2160_v9, 1  ;;  %v4605_v42 = vcombine.low %v6263_v3, %v6263_v3  ;;  %4903 = vmatprep.subr.bf16.mxu0 %v5194_v56 }
  0xf7   :  { %2669 = vrot.lane.b32.xlu1 %v6519_v10, %s5232_s5  ;;  %v4592_v55 = vcombine.low %v1732_v4, %v1746_v53  ;;  %v2780_v2 = vshll.u32 %v4673_v27, 16  ;;  %v2181_v7 = vshll.u32 %v6280_v49, 16  ;;  %v2170_v6 = vor.u32 %v2169_v22, %v2165_v61 }
  0xf8   :  { %v2785_v14 = vshrl.u32 %v4674_v58, 16  ;;  %v2789_v51 = vrot.slane %v2787_v0, 1  ;;  %v2174_v3 = vshll.u32 %v6290_v63, 16  ;;  %v2163_v1 = vor.u32 %v2162_v32, %v2158_v40 }
  0xf9   :  { %4884 = vmatmul.mubr.bf16.gmra.mrb[8].mxu1 %v4592_v55  ;;  %v6560_v25 = vpop.permute.xlu1 %1174  ;;  %4904 = vmatpush3.bf16.msra.mxu0 %v5194_v56  ;;  %v2778_v47 = vshrl.u32 %v4673_v27, 16  ;;  %v2782_v20 = vrot.slane %v2780_v2, 1  ;;  %v2179_v59 = vshrl.u32 %v6280_v49, 16  ;;  %v2183_v12 = vrot.slane %v2181_v7, 1 }
  0xfa   :  { %2667 = vrot.lane.b32.xlu0 %v6522_v30, %s5232_s5  ;;  %v6562_v45 = vpop.permute.xlu0 %1172  ;;  %4905 = vmatprep.subr.bf16.mxu0 %v5197_v48  ;;  %v2790_v53 = vor.u32 %v2789_v51, %v2785_v14  ;;  %v2172_v4 = vshrl.u32 %v6290_v63, 16  ;;  %v2176_v28 = vrot.slane %v2174_v3, 1  ;;  %v1427_v63 = vsel %vm660_vm0, %v6071_v15, %v6514_v31  ;;  %v8545_v15 = vld [vmem:[#allocation19_spill] sm:$0xff] }
  0xfb   :  { %2857 = vrot.lane.b32.xlu1 %v2776_v8, %s5234_s12  ;;  %v2783_v19 = vor.u32 %v2782_v20, %v2778_v47  ;;  %v2184_v8 = vor.u32 %v2183_v12, %v2179_v59  ;;  %v6613_v31 = vld [vmem:[%s8401_s0 + $0x68] sm:$0xf] }
  0xfc   :  { %v2177_v9 = vor.u32 %v2176_v28, %v2172_v4  ;;  %v4436_v4 = vld [vmem:[%s8401_s0 + $0x68] sm:$0xe] }
  0xfd   :  { %v1203_v62 = vpop.permute.xlu1 %1202  ;;  %4906 = vmatpush3.bf16.msra.mxu0 %v5197_v48  ;;  %v4419_v48 = vld [vmem:[%s8401_s0 + $0x64] sm:$0x1] }
  0xfe   :  { %2855 = vrot.lane.b32.xlu0 %v2769_v44, %s5234_s12  ;;  %v1201_v11 = vpop.permute.xlu0 %1200  ;;  %v1425_v44 = vsel %vm660_vm0, %v6081_v50, %v6516_v37  ;;  %v1459_v56 = vsel %vm709_vm1, %v1427_v63, %v1203_v62  ;;  %v4420_v50 = vld [vmem:[%s8401_s0 + $0x6c] sm:$0x1]  ;;  %v8546_v62 = vld [vmem:[#allocation20_spill] sm:$0xff] }
  0xff   :  { %2083 = vrot.lane.b32.xlu1 %v4606_v39, %s5232_s5  ;;  %v1457_v22 = vsel %vm709_vm1, %v1425_v44, %v1201_v11  ;;  %v6623_v11 = vld [vmem:[%s8401_s0 + $0x60] sm:$0xf]  ;;  %v6633_v47 = vcombine.low %v6613_v31, %v4420_v50 }
 0x100   :  { %v6641_v28 = vcombine.low %v6623_v11, %v4419_v48 }
 0x101   :  { %v6582_v57 = vpop.permute.xlu1 %378 }
 0x102   :  { %2081 = vrot.lane.b32.xlu0 %v4605_v42, %s5232_s5  ;;  %v6584_v54 = vpop.permute.xlu0 %376 }
 0x103   :  { %2271 = vrot.lane.b32.xlu1 %v2170_v6, %s5234_s12 }
 0x105   :  { %v455_v58 = vpop.permute.xlu1 %454 }
 0x106   :  { %2269 = vrot.lane.b32.xlu0 %v2163_v1, %s5234_s12 }
 0x107   :  { %2861 = vrot.lane.b32.xlu1 %v2790_v53, %s5234_s12  ;;  %v8547_v53 = vld [vmem:[#allocation21_spill] sm:$0xff] }
 0x108   :  { %v453_v55 = vpop.permute.xlu0 %452 }
 0x109   :  { %v6592_v27 = vpop.permute.xlu1 %1206 }
 0x10a   :  { %2859 = vrot.lane.b32.xlu0 %v2783_v19, %s5234_s12  ;;  %v5208_v19 = vld [vmem:[%s8401_s0 + $0x58] sm:$0xf] }
 0x10b   :  { %2275 = vrot.lane.b32.xlu1 %v2184_v8, %s5234_s12  ;;  %v690_v8 = vsel %vm660_vm0, %v5208_v19, %v6540_v13 }
 0x10c   :  { %v6594_v49 = vpop.permute.xlu0 %1204 }
 0x10d   :  { %v1395_v61 = vpop.permute.xlu1 %1394 }
 0x10e   :  { %2273 = vrot.lane.b32.xlu0 %v2177_v9, %s5234_s12  ;;  %v1491_v39 = vsel %vm742_vm2, %v1459_v56, %v1395_v61  ;;  %v8548_v56 = vld [vmem:[#allocation22_spill] sm:$0xff] }
 0x10f   :  { %v4565_v40 = vcombine.low %v1491_v39, %v1491_v39  ;;  %v4566_v32 = vcombine.high %v1491_v39, %v1491_v39  ;;  %2641 = vrot.lane.b32.xlu1 %v8545_v15, %s5233_s26  ;;  %v4435_v61 = vld [vmem:[%s8401_s0 + $0x60] sm:$0xe] }
 0x110   :  { %v1393_v0 = vpop.permute.xlu0 %1392 }
 0x111   :  { %v1489_v42 = vsel %vm742_vm2, %v1457_v22, %v1393_v0  ;;  %v1762_v7 = vshrl.u32 %v4565_v40, 16  ;;  %v1765_v6 = vshll.u32 %v4565_v40, 16  ;;  %v6628_v14 = vpop.permute.xlu1 %458  ;;  %v1771_v12 = vshll.u32 %v4566_v32, 16  ;;  %v5209_v22 = vld [vmem:[%s8401_s0 + $0x50] sm:$0xf] }
 0x112   :  { %v4563_v37 = vcombine.low %v1489_v42, %v1489_v42  ;;  %v4564_v2 = vcombine.high %v1489_v42, %v1489_v42  ;;  %2639 = vrot.lane.b32.xlu0 %v8546_v62, %s5233_s26  ;;  %v687_v39 = vsel %vm660_vm0, %v5209_v22, %v6547_v33  ;;  %v729_v0 = vsel %vm709_vm1, %v690_v8, %v455_v58  ;;  %v8549_v33 = vld [vmem:[#allocation23_spill] sm:$0xff] }
 0x113   :  { %v1764_v20 = vrot.slane %v1762_v7, 4  ;;  %v1767_v59 = vrot.slane %v1765_v6, 5  ;;  %2007 = vrot.lane.b32.xlu1 %v8547_v53, %s5233_s26  ;;  %v4608_v32 = vcombine.low %v6385_v21, %v6385_v21  ;;  %v727_v42 = vsel %vm709_vm1, %v687_v39, %v453_v55  ;;  %v8550_v53 = vld [vmem:[#allocation24_spill] sm:$0xff]  ;;  %v5211_v39 = vld [vmem:[%s8401_s0 + $0x60] sm:$0xf] }
 0x114   :  { %v1748_v51 = vshrl.u32 %v4563_v37, 16  ;;  %v1751_v3 = vshll.u32 %v4563_v37, 16  ;;  %v6630_v1 = vpop.permute.xlu0 %456  ;;  %v1757_v44 = vshll.u32 %v4564_v2, 16  ;;  %v6663_v62 = vcombine.low %v4436_v4, %v4420_v50  ;;  %v4437_v21 = vld [vmem:[%s8401_s0 + $0x70] sm:$0xe] }
 0x115   :  { %v1768_v13 = vor.u32 %v1767_v59, %v1764_v20  ;;  %v647_v40 = vpop.permute.xlu1 %646  ;;  %v1773_v6 = vrot.slane %v1771_v12, 5  ;;  %v6668_v58 = vcombine.low %v4435_v61, %v4419_v48  ;;  %v1429_v50 = vsel %vm660_vm0, %v6130_v36, %v6562_v45 }
 0x116   :  { %v1750_v9 = vrot.slane %v1748_v51, 4  ;;  %v1753_v63 = vrot.slane %v1751_v3, 5  ;;  %2005 = vrot.lane.b32.xlu0 %v8548_v56, %s5233_s26  ;;  %v762_v37 = vsel %vm742_vm2, %v729_v0, %v647_v40  ;;  %v1431_v3 = vsel %vm660_vm0, %v6116_v60, %v6560_v25 }
 0x117   :  { %v1769_v7 = vrot.slane %v1768_v13, 4  ;;  %2645 = vrot.lane.b32.xlu1 %v8549_v33, %s5233_s26  ;;  %v1759_v20 = vrot.slane %v1757_v44, 5  ;;  %v1463_v12 = vsel %vm709_vm1, %v1431_v3, %v6592_v27  ;;  %v4607_v60 = vcombine.low %v6402_v43, %v6402_v43 }
 0x118   :  { %v1754_v15 = vor.u32 %v1753_v63, %v1750_v9  ;;  %v645_v2 = vpop.permute.xlu0 %644  ;;  %v1461_v25 = vsel %vm709_vm1, %v1429_v50, %v6594_v49  ;;  %v2801_v45 = vshll.u32 %v6663_v62, 16  ;;  %v5210_v49 = vld [vmem:[%s8401_s0 + $0x68] sm:$0xf]  ;;  %v2794_v22 = vshll.u32 %v6668_v58, 16 }
 0x119   :  { %v760_v51 = vsel %vm742_vm2, %v727_v42, %v645_v2  ;;  %v1399_v4 = vpop.permute.xlu1 %1398  ;;  %v1774_v48 = vsel %vm6007_vm5, %v1769_v7, %v1773_v6  ;;  %v696_v44 = vsel %vm660_vm0, %v5210_v49, %v6582_v57  ;;  %v693_v0 = vsel %vm660_vm0, %v5211_v39, %v6584_v54  ;;  %v4438_v39 = vld [vmem:[%s8401_s0 + $0x78] sm:$0xe] }
 0x11a   :  { %v1755_v55 = vrot.slane %v1754_v15, 4  ;;  %v4495_v59 = vcombine.low %v760_v51, %v762_v37  ;;  %2643 = vrot.lane.b32.xlu0 %v8550_v53, %s5233_s26  ;;  %v1495_v19 = vsel %vm742_vm2, %v1463_v12, %v1399_v4  ;;  %v733_v13 = vsel %vm709_vm1, %v696_v44, %v6628_v14  ;;  %v6711_v15 = vld [vmem:[%s8401_s0 + $0x78] sm:$0xf]  ;;  %v4422_v14 = vld [vmem:[%s8401_s0 + $0x7c] sm:$0x1] }
 0x11b   :  { %v4569_v27 = vcombine.low %v1495_v19, %v1495_v19  ;;  %v4570_v9 = vcombine.high %v1495_v19, %v1495_v19  ;;  %2673 = vrot.lane.b32.xlu1 %v6633_v47, %s5232_s5  ;;  %v731_v37 = vsel %vm709_vm1, %v693_v0, %v6630_v1  ;;  %v6722_v51 = vld [vmem:[%s8401_s0 + $0x70] sm:$0xf]  ;;  %v8551_v1 = vld [vmem:[#allocation25_spill] sm:$0xff]  ;;  %v2799_v49 = vshrl.u32 %v6663_v62, 16 }
 0x11c   :  { %4851 = vmatprep.mubr.bf16.mxu0 %v4495_v59  ;;  %v1397_v8 = vpop.permute.xlu0 %1396  ;;  %v1760_v36 = vsel %vm6007_vm5, %v1755_v55, %v1759_v20  ;;  %v4421_v59 = vld [vmem:[%s8401_s0 + $0x74] sm:$0x1]  ;;  %v2803_v44 = vrot.slane %v2801_v45, 1  ;;  %v2792_v0 = vshrl.u32 %v6668_v58, 16  ;;  %v4678_v45 = vcombine.low %v4438_v39, %v4422_v14 }
 0x11d   :  { %v1493_v63 = vsel %vm742_vm2, %v1461_v25, %v1397_v8  ;;  %v4593_v43 = vcombine.low %v1760_v36, %v1774_v48  ;;  %v1790_v40 = vshrl.u32 %v4569_v27, 16  ;;  %v1793_v42 = vshll.u32 %v4569_v27, 16  ;;  %v651_v57 = vpop.permute.xlu1 %650  ;;  %v8552_v48 = vld [vmem:[#allocation26_spill] sm:$0xff] }
 0x11e   :  { %v4567_v56 = vcombine.low %v1493_v63, %v1493_v63  ;;  %v4568_v61 = vcombine.high %v1493_v63, %v1493_v63  ;;  %2671 = vrot.lane.b32.xlu0 %v6641_v28, %s5232_s5  ;;  %v766_v6 = vsel %vm742_vm2, %v733_v13, %v651_v57  ;;  %v1799_v55 = vshll.u32 %v4570_v9, 16 }
 0x11f   :  { %4887 = vmatprep.mubr.bf16.mxu1 %v4593_v43  ;;  %v1792_v33 = vrot.slane %v1790_v40, 4  ;;  %v1795_v3 = vrot.slane %v1793_v42, 5  ;;  %2011 = vrot.lane.b32.xlu1 %v8551_v1, %s5233_s26  ;;  %v6737_v27 = vcombine.low %v6711_v15, %v4422_v14  ;;  %v6740_v9 = vcombine.low %v6722_v51, %v4421_v59 }
 0x120   :  { %v1776_v2 = vshrl.u32 %v4567_v56, 16  ;;  %v1779_v7 = vshll.u32 %v4567_v56, 16  ;;  %v649_v54 = vpop.permute.xlu0 %648  ;;  %v1785_v12 = vshll.u32 %v4568_v61, 16  ;;  %v1801_v43 = vrot.slane %v1799_v55, 5 }
 0x121   :  { %v764_v20 = vsel %vm742_vm2, %v731_v37, %v649_v54  ;;  %v1796_v25 = vor.u32 %v1795_v3, %v1792_v33  ;;  %v6732_v19 = vpop.permute.xlu1 %2625  ;;  %v2796_v13 = vrot.slane %v2794_v22, 1  ;;  %v2804_v22 = vor.u32 %v2803_v44, %v2799_v49 }
 0x122   :  { %v1778_v53 = vrot.slane %v1776_v2, 4  ;;  %v1781_v50 = vrot.slane %v1779_v7, 5  ;;  %v4496_v4 = vcombine.low %v764_v20, %v766_v6  ;;  %2009 = vrot.lane.b32.xlu0 %v8552_v48, %s5233_s26  ;;  %v1787_v61 = vrot.slane %v1785_v12, 5 }
 0x123   :  { %v1797_v63 = vrot.slane %v1796_v25, 4  ;;  %2087 = vrot.lane.b32.xlu1 %v4608_v32, %s5232_s5  ;;  %v2195_v42 = vshll.u32 %v6413_v17, 16  ;;  %v4677_v57 = vcombine.low %v4437_v21, %v4421_v59  ;;  %v2797_v37 = vor.u32 %v2796_v13, %v2792_v0 }
 0x124   :  { %v1782_v8 = vor.u32 %v1781_v50, %v1778_v53  ;;  %4852 = vmatmul.mubr.bf16.gmra.mrb[8].mxu0 %v4496_v4  ;;  %v6734_v36 = vpop.permute.xlu0 %2623  ;;  %v2188_v2 = vshll.u32 %v6432_v26, 16  ;;  %v4610_v54 = vcombine.low %v6490_v5, %v6490_v5  ;;  %v2193_v14 = vshrl.u32 %v6413_v17, 16 }
 0x125   :  { %v6752_v40 = vpop.permute.xlu1 %382  ;;  %v1802_v32 = vsel %vm6007_vm5, %v1797_v63, %v1801_v43  ;;  %v2197_v33 = vrot.slane %v2195_v42, 1  ;;  %v2815_v3 = vshll.u32 %v4678_v45, 16  ;;  %v4609_v55 = vcombine.low %v6501_v16, %v6501_v16 }
 0x126   :  { %v1783_v56 = vrot.slane %v1782_v8, 4  ;;  %2085 = vrot.lane.b32.xlu0 %v4607_v60, %s5232_s5  ;;  %v2186_v20 = vshrl.u32 %v6432_v26, 16  ;;  %v2190_v1 = vrot.slane %v2188_v2, 1  ;;  %v2808_v59 = vshll.u32 %v4677_v57, 16 }
 0x127   :  { %2677 = vrot.lane.b32.xlu1 %v6737_v27, %s5232_s5  ;;  %v2198_v12 = vor.u32 %v2197_v33, %v2193_v14  ;;  %v2813_v4 = vshrl.u32 %v4678_v45, 16  ;;  %v2817_v5 = vrot.slane %v2815_v3, 1  ;;  %v2209_v17 = vshll.u32 %v6519_v10, 16 }
 0x128   :  { %v6759_v62 = vpop.permute.xlu0 %380  ;;  %v1788_v60 = vsel %vm6007_vm5, %v1783_v56, %v1787_v61  ;;  %v2191_v48 = vor.u32 %v2190_v1, %v2186_v20  ;;  %v2806_v25 = vshrl.u32 %v4677_v57, 16  ;;  %v2810_v8 = vrot.slane %v2808_v59, 1  ;;  %v8555_v1 = vld [vmem:[#allocation29_spill] sm:$0xff]  ;;  %v6826_v59 = vld [vmem:[%s8401_s0 + $0x80] sm:$0xf] }
 0x129   :  { %v4594_v58 = vcombine.low %v1788_v60, %v1802_v32  ;;  %v6769_v7 = vpop.permute.xlu1 %2629  ;;  %v2202_v16 = vshll.u32 %v6522_v30, 16  ;;  %v2818_v43 = vor.u32 %v2817_v5, %v2813_v4  ;;  %v2207_v49 = vshrl.u32 %v6519_v10, 16  ;;  %v8553_v10 = vld [vmem:[#allocation2_spill] sm:$0xff] }
 0x12a   :  { %2675 = vrot.lane.b32.xlu0 %v6740_v9, %s5232_s5  ;;  %v2211_v44 = vrot.slane %v2209_v17, 1  ;;  %v2811_v56 = vor.u32 %v2810_v8, %v2806_v25  ;;  %v2200_v61 = vshrl.u32 %v6522_v30, 16  ;;  %v8554_v30 = vld [vmem:[#allocation3_spill] sm:$0xff] }
 0x12b   :  { %4888 = vmatmul.mubr.bf16.gmra.mrb[12].mxu1 %v4594_v58  ;;  %2865 = vrot.lane.b32.xlu1 %v2804_v22, %s5234_s12  ;;  %v2204_v39 = vrot.slane %v2202_v16, 1  ;;  %v2882_v58 = vsel %vm660_vm0, %v8553_v10, %v6732_v19  ;;  %v2880_v22 = vsel %vm660_vm0, %v8554_v30, %v6734_v36  ;;  %v6816_v19 = vld [vmem:[%s8401_s0 + $0x88] sm:$0xf]  ;;  %v4424_v36 = vld [vmem:[%s8401_s0 + $0x8c] sm:$0x1] }
 0x12c   :  { %v6771_v6 = vpop.permute.xlu0 %2627  ;;  %v2212_v21 = vor.u32 %v2211_v44, %v2207_v49  ;;  %v4440_v49 = vld [vmem:[%s8401_s0 + $0x88] sm:$0xe]  ;;  %v5213_v30 = vld [vmem:[%s8401_s0 + $0x70] sm:$0xf] }
 0x12d   :  { %v2658_v53 = vpop.permute.xlu1 %2657  ;;  %v2205_v32 = vor.u32 %v2204_v39, %v2200_v61  ;;  %v8557_v10 = vld [vmem:[#allocation31_spill] sm:$0xff] }
 0x12e   :  { %2863 = vrot.lane.b32.xlu0 %v2797_v37, %s5234_s12  ;;  %v2914_v42 = vsel %vm709_vm1, %v2882_v58, %v2658_v53  ;;  %v4439_v58 = vld [vmem:[%s8401_s0 + $0x80] sm:$0xe] }
 0x12f   :  { %2091 = vrot.lane.b32.xlu1 %v4610_v54, %s5232_s5 }
 0x130   :  { %v2656_v50 = vpop.permute.xlu0 %2655 }
 0x131   :  { %v6785_v63 = vpop.permute.xlu1 %386  ;;  %v2912_v37 = vsel %vm709_vm1, %v2880_v22, %v2656_v50  ;;  %v699_v22 = vsel %vm660_vm0, %v5213_v30, %v6759_v62  ;;  %v8558_v62 = vld [vmem:[#allocation32_spill] sm:$0xff] }
 0x132   :  { %2089 = vrot.lane.b32.xlu0 %v4609_v55, %s5232_s5 }
 0x133   :  { %2279 = vrot.lane.b32.xlu1 %v2198_v12, %s5234_s12 }
 0x134   :  { %v6787_v26 = vpop.permute.xlu0 %384 }
 0x135   :  { %v463_v0 = vpop.permute.xlu1 %462 }
 0x136   :  { %2277 = vrot.lane.b32.xlu0 %v2191_v48, %s5234_s12  ;;  %v6836_v48 = vcombine.low %v6816_v19, %v4424_v36 }
 0x137   :  { %2869 = vrot.lane.b32.xlu1 %v2818_v43, %s5234_s12  ;;  %v8556_v43 = vld [vmem:[#allocation30_spill] sm:$0xff] }
 0x138   :  { %v461_v13 = vpop.permute.xlu0 %460 }
 0x139   :  { %v6795_v60 = vpop.permute.xlu1 %2661 }
 0x13a   :  { %2867 = vrot.lane.b32.xlu0 %v2811_v56, %s5234_s12  ;;  %v5212_v56 = vld [vmem:[%s8401_s0 + $0x78] sm:$0xf] }
 0x13b   :  { %2283 = vrot.lane.b32.xlu1 %v2212_v21, %s5234_s12  ;;  %v702_v61 = vsel %vm660_vm0, %v5212_v56, %v6752_v40 }
 0x13c   :  { %v6797_v45 = vpop.permute.xlu0 %2659 }
 0x13d   :  { %v2850_v57 = vpop.permute.xlu1 %2849 }
 0x13e   :  { %2281 = vrot.lane.b32.xlu0 %v2205_v32, %s5234_s12  ;;  %v2946_v2 = vsel %vm742_vm2, %v2914_v42, %v2850_v57  ;;  %v737_v42 = vsel %vm709_vm1, %v702_v61, %v463_v0 }
 0x13f   :  { %v4685_v14 = vcombine.low %v2946_v2, %v2946_v2  ;;  %v4686_v33 = vcombine.high %v2946_v2, %v2946_v2  ;;  %2649 = vrot.lane.b32.xlu1 %v6024_v38, %s5233_s26  ;;  %v4423_v38 = vld [vmem:[%s8401_s0 + $0x84] sm:$0x1]  ;;  %v735_v2 = vsel %vm709_vm1, %v699_v22, %v461_v13 }
 0x140   :  { %v2848_v54 = vpop.permute.xlu0 %2847  ;;  %v6844_v44 = vcombine.low %v6826_v59, %v4423_v38  ;;  %v6871_v0 = vcombine.low %v4439_v58, %v4423_v38 }
 0x141   :  { %v2944_v3 = vsel %vm742_vm2, %v2912_v37, %v2848_v54  ;;  %v3070_v53 = vshrl.u32 %v4685_v14, 16  ;;  %v3073_v50 = vshll.u32 %v4685_v14, 16  ;;  %v6831_v12 = vpop.permute.xlu1 %466  ;;  %v3079_v16 = vshll.u32 %v4686_v33, 16 }
 0x142   :  { %v4683_v55 = vcombine.low %v2944_v3, %v2944_v3  ;;  %v4684_v20 = vcombine.high %v2944_v3, %v2944_v3  ;;  %2647 = vrot.lane.b32.xlu0 %v8555_v1, %s5233_s26  ;;  %v4612_v37 = vcombine.low %v6613_v31, %v6613_v31  ;;  %v6866_v3 = vcombine.low %v4440_v49, %v4424_v36  ;;  %v8561_v36 = vld [vmem:[#allocation5_spill] sm:$0xff]  ;;  %v4441_v31 = vld [vmem:[%s8401_s0 + $0x90] sm:$0xe] }
 0x143   :  { %v3072_v25 = vrot.slane %v3070_v53, 4  ;;  %v3075_v8 = vrot.slane %v3073_v50, 5  ;;  %2015 = vrot.lane.b32.xlu1 %v8556_v43, %s5233_s26  ;;  %v8559_v53 = vld [vmem:[#allocation4_spill] sm:$0xff]  ;;  %v2822_v22 = vshll.u32 %v6871_v0, 16 }
 0x144   :  { %v3056_v4 = vshrl.u32 %v4683_v55, 16  ;;  %v3059_v5 = vshll.u32 %v4683_v55, 16  ;;  %v6833_v17 = vpop.permute.xlu0 %464  ;;  %v3065_v32 = vshll.u32 %v4684_v20, 16  ;;  %v3081_v20 = vrot.slane %v3079_v16, 5 }
 0x145   :  { %v3076_v40 = vor.u32 %v3075_v8, %v3072_v25  ;;  %v655_v57 = vpop.permute.xlu1 %654  ;;  %v2886_v50 = vsel %vm660_vm0, %v8559_v53, %v6769_v7  ;;  %v8560_v25 = vld [vmem:[#allocation33_spill] sm:$0xff]  ;;  %v2884_v8 = vsel %vm660_vm0, %v8561_v36, %v6771_v6  ;;  %v4611_v7 = vcombine.low %v6623_v11, %v6623_v11 }
 0x146   :  { %v3058_v39 = vrot.slane %v3056_v4, 4  ;;  %v3061_v21 = vrot.slane %v3059_v5, 5  ;;  %2013 = vrot.lane.b32.xlu0 %v8557_v10, %s5233_s26  ;;  %v770_v14 = vsel %vm742_vm2, %v737_v42, %v655_v57  ;;  %v3067_v4 = vrot.slane %v3065_v32, 5  ;;  %v5215_v42 = vld [vmem:[%s8401_s0 + $0x80] sm:$0xf] }
 0x147   :  { %v3077_v55 = vrot.slane %v3076_v40, 4  ;;  %2653 = vrot.lane.b32.xlu1 %v8558_v62, %s5233_s26  ;;  %v2918_v16 = vsel %vm709_vm1, %v2886_v50, %v6795_v60  ;;  %v2916_v49 = vsel %vm709_vm1, %v2884_v8, %v6797_v45  ;;  %v5214_v45 = vld [vmem:[%s8401_s0 + $0x88] sm:$0xf]  ;;  %v705_v40 = vsel %vm660_vm0, %v5215_v42, %v6787_v26  ;;  %v6925_v62 = vld [vmem:[%s8401_s0 + $0x90] sm:$0xf] }
 0x148   :  { %v3062_v54 = vor.u32 %v3061_v21, %v3058_v39  ;;  %v653_v33 = vpop.permute.xlu0 %652  ;;  %v2829_v39 = vshll.u32 %v6866_v3, 16  ;;  %v708_v10 = vsel %vm660_vm0, %v5214_v45, %v6785_v63  ;;  %v2820_v42 = vshrl.u32 %v6871_v0, 16 }
 0x149   :  { %v768_v1 = vsel %vm742_vm2, %v735_v2, %v653_v33  ;;  %v2854_v43 = vpop.permute.xlu1 %2853  ;;  %v3082_v38 = vsel %vm6007_vm5, %v3077_v55, %v3081_v20  ;;  %v741_v57 = vsel %vm709_vm1, %v708_v10, %v6831_v12  ;;  %v739_v33 = vsel %vm709_vm1, %v705_v40, %v6833_v17  ;;  %v4426_v12 = vld [vmem:[%s8401_s0 + $0x9c] sm:$0x1]  ;;  %v8562_v17 = vld [vmem:[#allocation34_spill] sm:$0xff] }
 0x14a   :  { %v3063_v13 = vrot.slane %v3062_v54, 4  ;;  %v4497_v5 = vcombine.low %v768_v1, %v770_v14  ;;  %2651 = vrot.lane.b32.xlu0 %v8560_v25, %s5233_s26  ;;  %v2950_v56 = vsel %vm742_vm2, %v2918_v16, %v2854_v43  ;;  %v6914_v14 = vld [vmem:[%s8401_s0 + $0x98] sm:$0xf]  ;;  %v8563_v43 = vld [vmem:[#allocation35_spill] sm:$0xff]  ;;  %v2831_v45 = vrot.slane %v2829_v39, 1 }
 0x14b   :  { %v4689_v60 = vcombine.low %v2950_v56, %v2950_v56  ;;  %v4690_v21 = vcombine.high %v2950_v56, %v2950_v56  ;;  %2681 = vrot.lane.b32.xlu1 %v6836_v48, %s5232_s5  ;;  %v2824_v40 = vrot.slane %v2822_v22, 1  ;;  %v2223_v22 = vshll.u32 %v6633_v47, 16 }
 0x14c   :  { %4855 = vmatprep.mubr.bf16.mxu0 %v4497_v5  ;;  %v2852_v61 = vpop.permute.xlu0 %2851  ;;  %v3068_v6 = vsel %vm6007_vm5, %v3063_v13, %v3067_v4  ;;  %v4425_v5 = vld [vmem:[%s8401_s0 + $0x94] sm:$0x1] }
 0x14d   :  { %v2948_v32 = vsel %vm742_vm2, %v2916_v49, %v2852_v61  ;;  %v4731_v11 = vcombine.low %v3068_v6, %v3082_v38  ;;  %v3098_v2 = vshrl.u32 %v4689_v60, 16  ;;  %v3101_v54 = vshll.u32 %v4689_v60, 16  ;;  %v659_v63 = vpop.permute.xlu1 %658 }
 0x14e   :  { %v4687_v58 = vcombine.low %v2948_v32, %v2948_v32  ;;  %v4688_v30 = vcombine.high %v2948_v32, %v2948_v32  ;;  %2679 = vrot.lane.b32.xlu0 %v6844_v44, %s5232_s5  ;;  %v774_v1 = vsel %vm742_vm2, %v741_v57, %v659_v63  ;;  %v3107_v13 = vshll.u32 %v4690_v21, 16 }
 0x14f   :  { %4939 = vmatprep.mubr.bf16.mxu1 %v4731_v11  ;;  %v3100_v53 = vrot.slane %v3098_v2, 4  ;;  %v3103_v50 = vrot.slane %v3101_v54, 5  ;;  %2019 = vrot.lane.b32.xlu1 %v8562_v17, %s5233_s26  ;;  %v6940_v6 = vcombine.low %v6914_v14, %v4426_v12  ;;  %v6943_v60 = vcombine.low %v6925_v62, %v4425_v5 }
 0x150   :  { %v3084_v55 = vshrl.u32 %v4687_v58, 16  ;;  %v3087_v20 = vshll.u32 %v4687_v58, 16  ;;  %v657_v26 = vpop.permute.xlu0 %656  ;;  %v3093_v8 = vshll.u32 %v4688_v30, 16  ;;  %v3109_v32 = vrot.slane %v3107_v13, 5  ;;  %v4442_v30 = vld [vmem:[%s8401_s0 + $0x98] sm:$0xe] }
 0x151   :  { %v772_v4 = vsel %vm742_vm2, %v739_v33, %v657_v26  ;;  %v3104_v38 = vor.u32 %v3103_v50, %v3100_v53  ;;  %v6935_v49 = vpop.permute.xlu1 %2633  ;;  %v2827_v11 = vshrl.u32 %v6866_v3, 16  ;;  %v4682_v39 = vcombine.low %v4442_v30, %v4426_v12 }
 0x152   :  { %v3086_v25 = vrot.slane %v3084_v55, 4  ;;  %v3089_v36 = vrot.slane %v3087_v20, 5  ;;  %v4498_v16 = vcombine.low %v772_v4, %v774_v1  ;;  %2017 = vrot.lane.b32.xlu0 %v8563_v43, %s5233_s26  ;;  %v3095_v58 = vrot.slane %v3093_v8, 5 }
 0x153   :  { %v3105_v21 = vrot.slane %v3104_v38, 4  ;;  %2095 = vrot.lane.b32.xlu1 %v4612_v37, %s5232_s5  ;;  %v2832_v0 = vor.u32 %v2831_v45, %v2827_v11  ;;  %v4681_v54 = vcombine.low %v4441_v31, %v4425_v5  ;;  %v2825_v63 = vor.u32 %v2824_v40, %v2820_v42 }
 0x154   :  { %v3090_v56 = vor.u32 %v3089_v36, %v3086_v25  ;;  %4856 = vmatmul.mubr.bf16.gmra.mrb[12].mxu0 %v4498_v16  ;;  %v6937_v61 = vpop.permute.xlu0 %2631  ;;  %v2216_v33 = vshll.u32 %v6641_v28, 16  ;;  %v4614_v1 = vcombine.low %v6711_v15, %v6711_v15  ;;  %v2221_v26 = vshrl.u32 %v6633_v47, 16 }
 0x155   :  { %v3110_v57 = vsel %vm6007_vm5, %v3105_v21, %v3109_v32  ;;  %v6957_v2 = vpop.permute.xlu1 %1999  ;;  %v2225_v12 = vrot.slane %v2223_v22, 1  ;;  %v2843_v53 = vshll.u32 %v4682_v39, 16  ;;  %v4613_v50 = vcombine.low %v6722_v51, %v6722_v51 }
 0x156   :  { %v3091_v10 = vrot.slane %v3090_v56, 4  ;;  %2093 = vrot.lane.b32.xlu0 %v4611_v7, %s5232_s5  ;;  %v2214_v13 = vshrl.u32 %v6641_v28, 16  ;;  %v2218_v4 = vrot.slane %v2216_v33, 1  ;;  %v2836_v17 = vshll.u32 %v4681_v54, 16 }
 0x157   :  { %2685 = vrot.lane.b32.xlu1 %v6940_v6, %s5232_s5  ;;  %v2226_v36 = vor.u32 %v2225_v12, %v2221_v26  ;;  %v2841_v8 = vshrl.u32 %v4682_v39, 16  ;;  %v2845_v15 = vrot.slane %v2843_v53, 1  ;;  %v2237_v47 = vshll.u32 %v6737_v27, 16  ;;  %v8565_v12 = vld [vmem:[#allocation7_spill] sm:$0xff] }
 0x158   :  { %v3096_v37 = vsel %vm6007_vm5, %v3091_v10, %v3095_v58  ;;  %v6964_v3 = vpop.permute.xlu0 %1997  ;;  %v2219_v16 = vor.u32 %v2218_v4, %v2214_v13  ;;  %v2834_v43 = vshrl.u32 %v4681_v54, 16  ;;  %v2838_v38 = vrot.slane %v2836_v17, 1  ;;  %v8564_v54 = vld [vmem:[#allocation6_spill] sm:$0xff] }
 0x159   :  { %v4732_v7 = vcombine.low %v3096_v37, %v3110_v57  ;;  %v6972_v55 = vpop.permute.xlu1 %2637  ;;  %v2230_v51 = vshll.u32 %v6740_v9, 16  ;;  %v2846_v21 = vor.u32 %v2845_v15, %v2841_v8  ;;  %v2235_v32 = vshrl.u32 %v6737_v27, 16 }
 0x15a   :  { %2683 = vrot.lane.b32.xlu0 %v6943_v60, %s5232_s5  ;;  %v2239_v11 = vrot.slane %v2237_v47, 1  ;;  %v2839_v45 = vor.u32 %v2838_v38, %v2834_v43  ;;  %v2228_v10 = vshrl.u32 %v6740_v9, 16  ;;  %v2251_v31 = vshll.u32 %v6836_v48, 16 }
 0x15b   :  { %4940 = vmatmul.mubr.bf16.vlgmr.msra.gmra.mrb[16].mxu1 %v4732_v7  ;;  %2873 = vrot.lane.b32.xlu1 %v2832_v0, %s5234_s12  ;;  %v2232_v58 = vrot.slane %v2230_v51, 1  ;;  %v2244_v27 = vshll.u32 %v6844_v44, 16  ;;  %v2265_v7 = vshll.u32 %v6940_v6, 16  ;;  %v2258_v39 = vshll.u32 %v6943_v60, 16 }
 0x15c   :  { %v6974_v20 = vpop.permute.xlu0 %2635  ;;  %v2240_v40 = vor.u32 %v2239_v11, %v2235_v32  ;;  %v4616_v0 = vcombine.low %v6816_v19, %v6816_v19  ;;  %v2249_v22 = vshrl.u32 %v6836_v48, 16  ;;  %v2253_v33 = vrot.slane %v2251_v31, 1 }
 0x15d   :  { %v2666_v5 = vpop.permute.xlu1 %2665  ;;  %v2233_v57 = vor.u32 %v2232_v58, %v2228_v10  ;;  %v2246_v26 = vrot.slane %v2244_v27, 1  ;;  %v2888_v53 = vsel %vm660_vm0, %v8565_v12, %v6937_v61  ;;  %v2263_v4 = vshrl.u32 %v6940_v6, 16  ;;  %v5216_v58 = vld [vmem:[%s8401_s0 + $0x10] sm:$0xf] }
 0x15e   :  { %2871 = vrot.lane.b32.xlu0 %v2825_v63, %s5234_s12  ;;  %v2890_v63 = vsel %vm660_vm0, %v8564_v54, %v6935_v49  ;;  %v2267_v48 = vrot.slane %v2265_v7, 1  ;;  %v2256_v8 = vshrl.u32 %v6943_v60, 16  ;;  %v2260_v15 = vrot.slane %v2258_v39, 1  ;;  %v5217_v39 = vld [vmem:[%s8401_s0 + $0x8] sm:$0xf] }
 0x15f   :  { %2099 = vrot.lane.b32.xlu1 %v4614_v1, %s5232_s5  ;;  %v2242_v1 = vshrl.u32 %v6844_v44, 16  ;;  %v4615_v61 = vcombine.low %v6826_v59, %v6826_v59  ;;  %v4617_v60 = vcombine.low %v6925_v62, %v6925_v62 }
 0x160   :  { %v2664_v25 = vpop.permute.xlu0 %2663  ;;  %v7050_v10 = vor.u32 %v2260_v15, %v2256_v8 }
 0x161   :  { %v6988_v56 = vpop.permute.xlu1 %2003  ;;  %v2920_v17 = vsel %vm709_vm1, %v2888_v53, %v2664_v25  ;;  %v4618_v25 = vcombine.low %v6914_v14, %v6914_v14  ;;  %v5219_v14 = vld [vmem:[%s8401_s0 + $0x18] sm:$0xf] }
 0x162   :  { %2097 = vrot.lane.b32.xlu0 %v4613_v50, %s5232_s5  ;;  %v2922_v50 = vsel %vm709_vm1, %v2890_v63, %v2666_v5 }
 0x163   :  { %2287 = vrot.lane.b32.xlu1 %v2226_v36, %s5234_s12 }
 0x164   :  { %v6990_v28 = vpop.permute.xlu0 %2001 }
 0x165   :  { %v6996_v30 = vpop.permute.xlu1 %2079 }
 0x166   :  { %2285 = vrot.lane.b32.xlu0 %v2219_v16, %s5234_s12 }
 0x167   :  { %2877 = vrot.lane.b32.xlu1 %v2846_v21, %s5234_s12  ;;  %v7040_v21 = vor.u32 %v2253_v33, %v2249_v22  ;;  %v2303_v22 = vsel %vm660_vm0, %v5217_v39, %v6964_v3 }
 0x168   :  { %v6998_v42 = vpop.permute.xlu0 %2077 }
 0x169   :  { %v7004_v37 = vpop.permute.xlu1 %2669  ;;  %v2350_v12 = vsel %vm709_vm1, %v2303_v22, %v6998_v42 }
 0x16a   :  { %2875 = vrot.lane.b32.xlu0 %v2839_v45, %s5234_s12 }
 0x16b   :  { %2291 = vrot.lane.b32.xlu1 %v2240_v40, %s5234_s12  ;;  %v2306_v40 = vsel %vm660_vm0, %v5216_v58, %v6957_v2  ;;  %v8568_v2 = vld [vmem:[#allocation8_spill] sm:$0xff] }
 0x16c   :  { %v7007_v9 = vpop.permute.xlu0 %2667 }
 0x16d   :  { %v2858_v13 = vpop.permute.xlu1 %2857 }
 0x16e   :  { %2289 = vrot.lane.b32.xlu0 %v2233_v57, %s5234_s12  ;;  %v2954_v49 = vsel %vm742_vm2, %v2922_v50, %v2858_v13 }
 0x16f   :  { %v4693_v44 = vcombine.low %v2954_v49, %v2954_v49  ;;  %v4694_v47 = vcombine.high %v2954_v49, %v2954_v49  ;;  %2023 = vrot.lane.b32.xlu1 %v6331_v29, %s5233_s26  ;;  %v7042_v29 = vor.u32 %v2246_v26, %v2242_v1  ;;  %v2894_v26 = vsel %vm660_vm0, %v8568_v2, %v6972_v55 }
 0x170   :  { %v2856_v36 = vpop.permute.xlu0 %2855 }
 0x171   :  { %v2952_v16 = vsel %vm742_vm2, %v2920_v17, %v2856_v36  ;;  %v3126_v43 = vshrl.u32 %v4693_v44, 16  ;;  %v3129_v38 = vshll.u32 %v4693_v44, 16  ;;  %v7038_v51 = vpop.permute.xlu1 %2083  ;;  %v3135_v27 = vshll.u32 %v4694_v47, 16  ;;  %v8570_v47 = vld [vmem:[#allocation9_spill] sm:$0xff] }
 0x172   :  { %v4691_v6 = vcombine.low %v2952_v16, %v2952_v16  ;;  %v4692_v5 = vcombine.high %v2952_v16, %v2952_v16  ;;  %2021 = vrot.lane.b32.xlu0 %v6335_v35, %s5233_s26  ;;  %v7044_v11 = vpop.f32.mrb[0].mxu1  ;;  %v7048_v35 = vor.u32 %v2267_v48, %v2263_v4  ;;  %v2892_v16 = vsel %vm660_vm0, %v8570_v47, %v6974_v20 }
 0x173   :  { %8566 = vst [vmem:[#allocation10_spill] sm:$0xff] %v7044_v11  ;;  %v3128_v57 = vrot.slane %v3126_v43, 4  ;;  %v3131_v31 = vrot.slane %v3129_v38, 5  ;;  %v7057_v7 = vpop.f32.mrb[1].mxu1  ;;  %2027 = vrot.lane.b32.xlu1 %v6355_v52, %s5233_s26  ;;  %v2352_v52 = vsel %vm709_vm1, %v2306_v40, %v6996_v30  ;;  %v3137_v49 = vrot.slane %v3135_v27, 5 }
 0x174   :  { %v3112_v59 = vshrl.u32 %v4691_v6, 16  ;;  %v3115_v32 = vshll.u32 %v4691_v6, 16  ;;  %v7046_v45 = vpop.permute.xlu0 %2081  ;;  %8567 = vst [vmem:[#allocation11_spill] sm:$0xff] %v7057_v7  ;;  %v3121_v33 = vshll.u32 %v4692_v5, 16  ;;  %v7066_v1 = vpop.f32.mrb[2].mxu1  ;;  %v3511_v4 = vsel %vm709_vm1, %v7057_v7, 0.0 }
 0x175   :  { %v3132_v53 = vor.u32 %v3131_v31, %v3128_v57  ;;  %v7077_v3 = vpop.f32.mrb[3].mxu1  ;;  %v2272_v50 = vpop.permute.xlu1 %2271  ;;  %v3514_v15 = vsel %vm709_vm1, %v7044_v11, 0.0  ;;  %v2926_v6 = vsel %vm709_vm1, %v2894_v26, %v7004_v37  ;;  %v3516_v38 = vsel %vm709_vm1, %v7066_v1, 0.0  ;;  %v5218_v40 = vld [vmem:[%s8401_s0 + $0x20] sm:$0xf] }
 0x176   :  { %v3114_v54 = vrot.slane %v3112_v59, 4  ;;  %v3117_v63 = vrot.slane %v3115_v32, 5  ;;  %2025 = vrot.lane.b32.xlu0 %v6358_v34, %s5233_s26  ;;  %8569 = vst [vmem:[#allocation27_spill] sm:$0xff] %v7077_v3  ;;  %v3512_v34 = vsel %vm709_vm1, %v7077_v3, 0.0  ;;  %v2384_v48 = vsel %vm742_vm2, %v2352_v52, %v2272_v50 }
 0x177   :  { %v3133_v17 = vrot.slane %v3132_v53, 4  ;;  %v3513_v30 = vadd.f32 %v3512_v34, %v3511_v4  ;;  %2103 = vrot.lane.b32.xlu1 %v4616_v0, %s5232_s5  ;;  %v3123_v8 = vrot.slane %v3121_v33, 5  ;;  %v2924_v0 = vsel %vm709_vm1, %v2892_v16, %v7007_v9 }
 0x178   :  { %v3118_v13 = vor.u32 %v3117_v63, %v3114_v54  ;;  %v2270_v55 = vpop.permute.xlu0 %2269  ;;  %v2312_v57 = vsel %vm660_vm0, %v5218_v40, %v6988_v56  ;;  %v8571_v40 = vld [vmem:[#allocation15_spill] sm:$0xff] }
 0x179   :  { %v2382_v36 = vsel %vm742_vm2, %v2350_v12, %v2270_v55  ;;  %v3515_v5 = vadd.f32 %v3514_v15, %v3513_v30  ;;  %v2862_v43 = vpop.permute.xlu1 %2861  ;;  %v3138_v19 = vsel %vm6007_vm5, %v3133_v17, %v3137_v49  ;;  %v2356_v22 = vsel %vm709_vm1, %v2312_v57, %v7038_v51 }
 0x17a   :  { %v3119_v42 = vrot.slane %v3118_v13, 4  ;;  %v4651_v44 = vcombine.low %v2382_v36, %v2384_v48  ;;  %2101 = vrot.lane.b32.xlu0 %v4615_v61, %s5232_s5  ;;  %v2958_v61 = vsel %vm742_vm2, %v2926_v6, %v2862_v43 }
 0x17b   :  { %v4697_v32 = vcombine.low %v2958_v61, %v2958_v61  ;;  %v4698_v37 = vcombine.high %v2958_v61, %v2958_v61  ;;  %2107 = vrot.lane.b32.xlu1 %v4618_v25, %s5232_s5  ;;  %v7120_v39 = vadd.f32 %v3516_v38, %v3515_v5  ;;  %v2309_v25 = vsel %vm660_vm0, %v5219_v14, %v6990_v28 }
 0x17c   :  { %4907 = vmatprep.mubr.bf16.mxu0 %v4651_v44  ;;  %v2860_v59 = vpop.permute.xlu0 %2859  ;;  %v3124_v20 = vsel %vm6007_vm5, %v3119_v42, %v3123_v8  ;;  %v2354_v62 = vsel %vm709_vm1, %v2309_v25, %v7046_v45 }
 0x17d   :  { %v2956_v58 = vsel %vm742_vm2, %v2924_v0, %v2860_v59  ;;  %v4733_v9 = vcombine.low %v3124_v20, %v3138_v19  ;;  %v3154_v56 = vshrl.u32 %v4697_v32, 16  ;;  %v3157_v54 = vshll.u32 %v4697_v32, 16  ;;  %v2276_v63 = vpop.permute.xlu1 %2275 }
 0x17e   :  { %v4695_v31 = vcombine.low %v2956_v58, %v2956_v58  ;;  %v4696_v27 = vcombine.high %v2956_v58, %v2956_v58  ;;  %2105 = vrot.lane.b32.xlu0 %v4617_v60, %s5232_s5  ;;  %v2388_v2 = vsel %vm742_vm2, %v2356_v22, %v2276_v63  ;;  %v3163_v53 = vshll.u32 %v4698_v37, 16 }
 0x17f   :  { %4943 = vmatprep.mubr.bf16.mxu1 %v4733_v9  ;;  %v3156_v52 = vrot.slane %v3154_v56, 4  ;;  %v3159_v12 = vrot.slane %v3157_v54, 5  ;;  %2295 = vrot.lane.b32.xlu1 %v7040_v21, %s5234_s12  ;;  %v8572_v54 = vld [vmem:[#allocation16_spill] sm:$0xff] }
 0x180   :  { %v3140_v60 = vshrl.u32 %v4695_v31, 16  ;;  %v3143_v33 = vshll.u32 %v4695_v31, 16  ;;  %v2274_v26 = vpop.permute.xlu0 %2273  ;;  %v3149_v13 = vshll.u32 %v4696_v27, 16  ;;  %v3165_v49 = vrot.slane %v3163_v53, 5 }
 0x181   :  { %v2386_v28 = vsel %vm742_vm2, %v2354_v62, %v2274_v26  ;;  %v3160_v45 = vor.u32 %v3159_v12, %v3156_v52  ;;  %v2642_v34 = vpop.permute.xlu1 %2641 }
 0x182   :  { %v3142_v51 = vrot.slane %v3140_v60, 4  ;;  %v3145_v50 = vrot.slane %v3143_v33, 5  ;;  %v4652_v4 = vcombine.low %v2386_v28, %v2388_v2  ;;  %2293 = vrot.lane.b32.xlu0 %v7042_v29, %s5234_s12  ;;  %v3151_v36 = vrot.slane %v3149_v13, 5 }
 0x183   :  { %v3161_v17 = vrot.slane %v3160_v45, 4  ;;  %2299 = vrot.lane.b32.xlu1 %v7048_v35, %s5234_s12  ;;  %v2898_v57 = vsel %vm660_vm0, %v8571_v40, %v2642_v34 }
 0x184   :  { %v3146_v48 = vor.u32 %v3145_v50, %v3142_v51  ;;  %4908 = vmatmul.mubr.bf16.vlgmr.msra.gmra.mrb[16].mxu0 %v4652_v4  ;;  %v2640_v55 = vpop.permute.xlu0 %2639 }
 0x185   :  { %v2008_v21 = vpop.permute.xlu1 %2007  ;;  %v3166_v42 = vsel %vm6007_vm5, %v3161_v17, %v3165_v49  ;;  %v2896_v63 = vsel %vm660_vm0, %v8572_v54, %v2640_v55  ;;  %v5220_v55 = vld [vmem:[%s8401_s0 + $0x30] sm:$0xf] }
 0x186   :  { %v3147_v30 = vrot.slane %v3146_v48, 4  ;;  %2297 = vrot.lane.b32.xlu0 %v7050_v10, %s5234_s12  ;;  %v2318_v17 = vsel %vm660_vm0, %v5220_v55, %v2008_v21 }
 0x188   :  { %v2006_v29 = vpop.permute.xlu0 %2005  ;;  %v3152_v8 = vsel %vm6007_vm5, %v3147_v30, %v3151_v36 }
 0x189   :  { %v4734_v15 = vcombine.low %v3152_v8, %v3166_v42  ;;  %v7145_v44 = vpop.permute.xlu1 %2645 }
 0x18b   :  { %4944 = vmatmul.mubr.bf16.gmra.mrb[20].mxu1 %v4734_v15 }
 0x18c   :  { %v7147_v47 = vpop.permute.xlu0 %2643 }
 0x18d   :  { %v2674_v35 = vpop.permute.xlu1 %2673 }
 0x18e   :  { %v2930_v14 = vsel %vm709_vm1, %v2898_v57, %v2674_v35 }
 0x190   :  { %v2672_v16 = vpop.permute.xlu0 %2671 }
 0x191   :  { %v7149_v6 = vpop.permute.xlu1 %2011  ;;  %v2928_v52 = vsel %vm709_vm1, %v2896_v63, %v2672_v16 }
 0x194   :  { %v7151_v5 = vpop.permute.xlu0 %2009 }
 0x195   :  { %v7153_v10 = vpop.f32.mrb[0].mxu0  ;;  %v2088_v43 = vpop.permute.xlu1 %2087 }
 0x196   :  { %v7155_v19 = vpop.f32.mrb[1].mxu0  ;;  %v3476_v9 = vsel %vm709_vm1, %v7153_v10, 0.0 }
 0x197   :  { %v7157_v38 = vpop.f32.mrb[2].mxu0  ;;  %v3473_v59 = vsel %vm709_vm1, %v7155_v19, 0.0 }
 0x198   :  { %v2086_v0 = vpop.permute.xlu0 %2085  ;;  %v7159_v61 = vpop.f32.mrb[3].mxu0  ;;  %v3478_v25 = vsel %vm709_vm1, %v7157_v38, 0.0 }
 0x199   :  { %v3474_v20 = vsel %vm709_vm1, %v7159_v61, 0.0  ;;  %v2678_v32 = vpop.permute.xlu1 %2677 }
 0x19a   :  { %v3475_v37 = vadd.f32 %v3474_v20, %v3473_v59  ;;  %v2360_v59 = vsel %vm709_vm1, %v2318_v17, %v2088_v43  ;;  %v8573_v43 = vld [vmem:[#allocation17_spill] sm:$0xff] }
 0x19c   :  { %v2676_v58 = vpop.permute.xlu0 %2675  ;;  %v3477_v31 = vadd.f32 %v3476_v9, %v3475_v37  ;;  %v7169_v27 = vpop.f32.mrb[4].mxu1 }
 0x19d   :  { %v7174_v22 = vpop.f32.mrb[5].mxu1  ;;  %v2866_v56 = vpop.permute.xlu1 %2865  ;;  %v3522_v8 = vsel %vm709_vm1, %v7169_v27, 0.0 }
 0x19e   :  { %v3518_v62 = vsel %vm709_vm1, %v7174_v22, 0.0  ;;  %v2962_v60 = vsel %vm742_vm2, %v2930_v14, %v2866_v56  ;;  %v7181_v33 = vpop.f32.mrb[6].mxu1  ;;  %v7183_v26 = vadd.f32 %v3478_v25, %v3477_v31 }
 0x19f   :  { %v3519_v12 = vadd.f32 %v3518_v62, %v7120_v39  ;;  %v4701_v53 = vcombine.low %v2962_v60, %v2962_v60  ;;  %v7187_v28 = vpop.f32.mrb[7].mxu1  ;;  %v4702_v51 = vcombine.high %v2962_v60, %v2962_v60  ;;  %v5221_v39 = vld [vmem:[%s8401_s0 + $0x28] sm:$0xf]  ;;  %v2902_v62 = vsel %vm660_vm0, %v8573_v43, %v7145_v44 }
 0x1a0   :  { %v2864_v2 = vpop.permute.xlu0 %2863  ;;  %v3520_v13 = vsel %vm709_vm1, %v7187_v28, 0.0  ;;  %v2315_v49 = vsel %vm660_vm0, %v5221_v39, %v2006_v29  ;;  %v3524_v29 = vsel %vm709_vm1, %v7181_v33, 0.0 }
 0x1a1   :  { %v2960_v50 = vsel %vm742_vm2, %v2928_v52, %v2864_v2  ;;  %v3182_v4 = vshrl.u32 %v4701_v53, 16  ;;  %v3185_v45 = vshll.u32 %v4701_v53, 16  ;;  %v2092_v48 = vpop.permute.xlu1 %2091  ;;  %v3521_v36 = vadd.f32 %v3520_v13, %v3519_v12  ;;  %v8574_v2 = vld [vmem:[#allocation18_spill] sm:$0xff] }
 0x1a2   :  { %v4699_v34 = vcombine.low %v2960_v50, %v2960_v50  ;;  %v4700_v30 = vcombine.high %v2960_v50, %v2960_v50  ;;  %v3191_v20 = vshll.u32 %v4702_v51, 16  ;;  %v2358_v9 = vsel %vm709_vm1, %v2315_v49, %v2086_v0 }
 0x1a3   :  { %v3184_v15 = vrot.slane %v3182_v4, 4  ;;  %v3187_v35 = vrot.slane %v3185_v45, 5  ;;  %v3523_v21 = vadd.f32 %v3522_v8, %v3521_v36  ;;  %v2900_v52 = vsel %vm660_vm0, %v8574_v2, %v7147_v47  ;;  %v5222_v47 = vld [vmem:[%s8401_s0 + $0x40] sm:$0xf] }
 0x1a4   :  { %v2090_v42 = vpop.permute.xlu0 %2089  ;;  %v3168_v16 = vshrl.u32 %v4699_v34, 16  ;;  %v3171_v37 = vshll.u32 %v4699_v34, 16  ;;  %v3177_v25 = vshll.u32 %v4700_v30, 16  ;;  %v3193_v12 = vrot.slane %v3191_v20, 5  ;;  %v5223_v30 = vld [vmem:[%s8401_s0 + $0x38] sm:$0xf] }
 0x1a5   :  { %v3188_v40 = vor.u32 %v3187_v35, %v3184_v15  ;;  %v2280_v31 = vpop.permute.xlu1 %2279  ;;  %v7207_v63 = vadd.f32 %v3524_v29, %v3523_v21  ;;  %v2934_v50 = vsel %vm709_vm1, %v2902_v62, %v2678_v32  ;;  %v2932_v13 = vsel %vm709_vm1, %v2900_v52, %v2676_v58 }
 0x1a6   :  { %v3170_v57 = vrot.slane %v3168_v16, 4  ;;  %v3173_v14 = vrot.slane %v3171_v37, 5  ;;  %v2392_v56 = vsel %vm742_vm2, %v2360_v59, %v2280_v31  ;;  %v3179_v34 = vrot.slane %v3177_v25, 5 }
 0x1a7   :  { %v3189_v60 = vrot.slane %v3188_v40, 4  ;;  %v2324_v39 = vsel %vm660_vm0, %v5222_v47, %v7149_v6  ;;  %v2321_v36 = vsel %vm660_vm0, %v5223_v30, %v7151_v5 }
 0x1a8   :  { %v2278_v54 = vpop.permute.xlu0 %2277  ;;  %v3174_v53 = vor.u32 %v3173_v14, %v3170_v57  ;;  %v2364_v16 = vsel %vm709_vm1, %v2324_v39, %v2092_v48  ;;  %v2362_v21 = vsel %vm709_vm1, %v2321_v36, %v2090_v42 }
 0x1a9   :  { %v2390_v0 = vsel %vm742_vm2, %v2358_v9, %v2278_v54  ;;  %v2870_v4 = vpop.permute.xlu1 %2869  ;;  %v3194_v17 = vsel %vm6007_vm5, %v3189_v60, %v3193_v12 }
 0x1aa   :  { %v4653_v51 = vcombine.low %v2390_v0, %v2392_v56  ;;  %v3175_v45 = vrot.slane %v3174_v53, 4  ;;  %v2966_v55 = vsel %vm742_vm2, %v2934_v50, %v2870_v4 }
 0x1ab   :  { %v4705_v32 = vcombine.low %v2966_v55, %v2966_v55  ;;  %v4706_v49 = vcombine.high %v2966_v55, %v2966_v55 }
 0x1ac   :  { %4911 = vmatprep.mubr.bf16.mxu0 %v4653_v51  ;;  %v2868_v44 = vpop.permute.xlu0 %2867  ;;  %v3180_v35 = vsel %vm6007_vm5, %v3175_v45, %v3179_v34 }
 0x1ad   :  { %v2964_v58 = vsel %vm742_vm2, %v2932_v13, %v2868_v44  ;;  %v3210_v59 = vshrl.u32 %v4705_v32, 16  ;;  %v3213_v6 = vshll.u32 %v4705_v32, 16  ;;  %v4735_v20 = vcombine.low %v3180_v35, %v3194_v17  ;;  %v2284_v37 = vpop.permute.xlu1 %2283 }
 0x1ae   :  { %v4703_v8 = vcombine.low %v2964_v58, %v2964_v58  ;;  %v4704_v15 = vcombine.high %v2964_v58, %v2964_v58  ;;  %v2396_v29 = vsel %vm742_vm2, %v2364_v16, %v2284_v37  ;;  %v3219_v14 = vshll.u32 %v4706_v49, 16 }
 0x1af   :  { %v3212_v31 = vrot.slane %v3210_v59, 4  ;;  %v3215_v5 = vrot.slane %v3213_v6, 5  ;;  %4947 = vmatprep.mubr.bf16.mxu1 %v4735_v20 }
 0x1b0   :  { %v3196_v9 = vshrl.u32 %v4703_v8, 16  ;;  %v3199_v40 = vshll.u32 %v4703_v8, 16  ;;  %v2282_v57 = vpop.permute.xlu0 %2281  ;;  %v3205_v48 = vshll.u32 %v4704_v15, 16  ;;  %v3221_v52 = vrot.slane %v3219_v14, 5 }
 0x1b1   :  { %v2394_v25 = vsel %vm742_vm2, %v2362_v21, %v2282_v57  ;;  %v3216_v62 = vor.u32 %v3215_v5, %v3212_v31  ;;  %v2650_v60 = vpop.permute.xlu1 %2649 }
 0x1b2   :  { %v3198_v56 = vrot.slane %v3196_v9, 4  ;;  %v3201_v54 = vrot.slane %v3199_v40, 5  ;;  %v4654_v43 = vcombine.low %v2394_v25, %v2396_v29  ;;  %v3207_v53 = vrot.slane %v3205_v48, 5 }
 0x1b3   :  { %v3217_v2 = vrot.slane %v3216_v62, 4  ;;  %v2906_v21 = vsel %vm660_vm0, %v5942_v46, %v2650_v60 }
 0x1b4   :  { %v3202_v0 = vor.u32 %v3201_v54, %v3198_v56  ;;  %4912 = vmatmul.mubr.bf16.gmra.mrb[20].mxu0 %v4654_v43  ;;  %v2648_v42 = vpop.permute.xlu0 %2647 }
 0x1b5   :  { %v2016_v51 = vpop.permute.xlu1 %2015  ;;  %v3222_v50 = vsel %vm6007_vm5, %v3217_v2, %v3221_v52  ;;  %v2904_v5 = vsel %vm660_vm0, %v5945_v23, %v2648_v42 }
 0x1b6   :  { %v3203_v12 = vrot.slane %v3202_v0, 4 }
 0x1b8   :  { %v2014_v13 = vpop.permute.xlu0 %2013  ;;  %v3208_v4 = vsel %vm6007_vm5, %v3203_v12, %v3207_v53 }
 0x1b9   :  { %v4736_v45 = vcombine.low %v3208_v4, %v3222_v50  ;;  %v7242_v34 = vpop.permute.xlu1 %2653  ;;  %v5224_v50 = vld [vmem:[%s8401_s0 + $0x60] sm:$0xf] }
 0x1ba   :  { %v2330_v4 = vsel %vm660_vm0, %v5224_v50, %v2016_v51 }
 0x1bb   :  { %4948 = vmatmul.mubr.bf16.gmra.mrb[24].mxu1 %v4736_v45 }
 0x1bc   :  { %v7244_v55 = vpop.permute.xlu0 %2651 }
 0x1bd   :  { %v2682_v44 = vpop.permute.xlu1 %2681 }
 0x1be   :  { %v2938_v29 = vsel %vm709_vm1, %v2906_v21, %v2682_v44 }
 0x1c0   :  { %v2680_v17 = vpop.permute.xlu0 %2679 }
 0x1c1   :  { %v7246_v47 = vpop.permute.xlu1 %2019  ;;  %v2936_v48 = vsel %vm709_vm1, %v2904_v5, %v2680_v17 }
 0x1c4   :  { %v7248_v39 = vpop.permute.xlu0 %2017 }
 0x1c5   :  { %v7250_v32 = vpop.f32.mrb[4].mxu0  ;;  %v2096_v49 = vpop.permute.xlu1 %2095 }
 0x1c6   :  { %v7252_v58 = vpop.f32.mrb[5].mxu0  ;;  %v3484_v37 = vsel %vm709_vm1, %v7250_v32, 0.0  ;;  %v2368_v21 = vsel %vm709_vm1, %v2330_v4, %v2096_v49  ;;  %v2910_v49 = vsel %vm660_vm0, %v5954_v41, %v7242_v34 }
 0x1c7   :  { %v3480_v36 = vsel %vm709_vm1, %v7252_v58, 0.0  ;;  %v7256_v8 = vpop.f32.mrb[6].mxu0 }
 0x1c8   :  { %v2094_v30 = vpop.permute.xlu0 %2093  ;;  %v3481_v15 = vadd.f32 %v3480_v36, %v7183_v26  ;;  %v7259_v35 = vpop.f32.mrb[7].mxu0  ;;  %v3486_v26 = vsel %vm709_vm1, %v7256_v8, 0.0 }
 0x1c9   :  { %v3482_v16 = vsel %vm709_vm1, %v7259_v35, 0.0  ;;  %v2686_v59 = vpop.permute.xlu1 %2685 }
 0x1ca   :  { %v3483_v6 = vadd.f32 %v3482_v16, %v3481_v15 }
 0x1cc   :  { %v2684_v20 = vpop.permute.xlu0 %2683  ;;  %v3485_v9 = vadd.f32 %v3484_v37, %v3483_v6  ;;  %v7267_v40 = vpop.f32.mrb[8].mxu1 }
 0x1cd   :  { %v7272_v57 = vpop.f32.mrb[9].mxu1  ;;  %v2874_v31 = vpop.permute.xlu1 %2873  ;;  %v3530_v15 = vsel %vm709_vm1, %v7267_v40, 0.0 }
 0x1ce   :  { %v3526_v14 = vsel %vm709_vm1, %v7272_v57, 0.0  ;;  %v2970_v25 = vsel %vm742_vm2, %v2938_v29, %v2874_v31  ;;  %v7279_v46 = vpop.f32.mrb[10].mxu1  ;;  %v7281_v54 = vadd.f32 %v3486_v26, %v3485_v9 }
 0x1cf   :  { %v3527_v43 = vadd.f32 %v3526_v14, %v7207_v63  ;;  %v4709_v62 = vcombine.low %v2970_v25, %v2970_v25  ;;  %v7285_v60 = vpop.f32.mrb[11].mxu1  ;;  %v4710_v0 = vcombine.high %v2970_v25, %v2970_v25  ;;  %v5225_v63 = vld [vmem:[%s8401_s0 + $0x58] sm:$0xf] }
 0x1d0   :  { %v2872_v56 = vpop.permute.xlu0 %2871  ;;  %v3528_v42 = vsel %vm709_vm1, %v7285_v60, 0.0  ;;  %v2327_v45 = vsel %vm660_vm0, %v5225_v63, %v2014_v13  ;;  %v3532_v13 = vsel %vm709_vm1, %v7279_v46, 0.0 }
 0x1d1   :  { %v2968_v23 = vsel %vm742_vm2, %v2936_v48, %v2872_v56  ;;  %v3238_v2 = vshrl.u32 %v4709_v62, 16  ;;  %v3241_v52 = vshll.u32 %v4709_v62, 16  ;;  %v2100_v53 = vpop.permute.xlu1 %2099  ;;  %v3529_v17 = vadd.f32 %v3528_v42, %v3527_v43 }
 0x1d2   :  { %v4707_v12 = vcombine.low %v2968_v23, %v2968_v23  ;;  %v4708_v44 = vcombine.high %v2968_v23, %v2968_v23  ;;  %v3247_v9 = vshll.u32 %v4710_v0, 16  ;;  %v2366_v26 = vsel %vm709_vm1, %v2327_v45, %v2094_v30 }
 0x1d3   :  { %v3240_v16 = vrot.slane %v3238_v2, 4  ;;  %v3243_v6 = vrot.slane %v3241_v52, 5  ;;  %v3531_v51 = vadd.f32 %v3530_v15, %v3529_v17  ;;  %v2908_v23 = vsel %vm660_vm0, %v5958_v18, %v7244_v55  ;;  %v5226_v18 = vld [vmem:[%s8401_s0 + $0x70] sm:$0xf]  ;;  %v5227_v15 = vld [vmem:[%s8401_s0 + $0x68] sm:$0xf] }
 0x1d4   :  { %v2098_v36 = vpop.permute.xlu0 %2097  ;;  %v3224_v37 = vshrl.u32 %v4707_v12, 16  ;;  %v3227_v29 = vshll.u32 %v4707_v12, 16  ;;  %v3233_v56 = vshll.u32 %v4708_v44, 16  ;;  %v3249_v42 = vrot.slane %v3247_v9, 5 }
 0x1d5   :  { %v3244_v31 = vor.u32 %v3243_v6, %v3240_v16  ;;  %v2288_v14 = vpop.permute.xlu1 %2287  ;;  %v7305_v62 = vadd.f32 %v3532_v13, %v3531_v51  ;;  %v2942_v12 = vsel %vm709_vm1, %v2910_v49, %v2686_v59  ;;  %v2940_v50 = vsel %vm709_vm1, %v2908_v23, %v2684_v20 }
 0x1d6   :  { %v3226_v5 = vrot.slane %v3224_v37, 4  ;;  %v3229_v25 = vrot.slane %v3227_v29, 5  ;;  %v2400_v48 = vsel %vm742_vm2, %v2368_v21, %v2288_v14  ;;  %v3235_v45 = vrot.slane %v3233_v56, 5 }
 0x1d7   :  { %v3245_v0 = vrot.slane %v3244_v31, 4  ;;  %v2336_v55 = vsel %vm660_vm0, %v5226_v18, %v7246_v47  ;;  %v2333_v16 = vsel %vm660_vm0, %v5227_v15, %v7248_v39 }
 0x1d8   :  { %v2286_v43 = vpop.permute.xlu0 %2285  ;;  %v3230_v2 = vor.u32 %v3229_v25, %v3226_v5  ;;  %v2372_v9 = vsel %vm709_vm1, %v2336_v55, %v2100_v53  ;;  %v2370_v31 = vsel %vm709_vm1, %v2333_v16, %v2098_v36  ;;  %v5229_v16 = vld [vmem:[%s8401_s0 + $0x78] sm:$0xf] }
 0x1d9   :  { %v2398_v30 = vsel %vm742_vm2, %v2366_v26, %v2286_v43  ;;  %v2878_v4 = vpop.permute.xlu1 %2877  ;;  %v3250_v34 = vsel %vm6007_vm5, %v3245_v0, %v3249_v42 }
 0x1da   :  { %v4655_v52 = vcombine.low %v2398_v30, %v2400_v48  ;;  %v3231_v63 = vrot.slane %v3230_v2, 4  ;;  %v2974_v44 = vsel %vm742_vm2, %v2942_v12, %v2878_v4 }
 0x1db   :  { %v4713_v59 = vcombine.low %v2974_v44, %v2974_v44  ;;  %v4714_v17 = vcombine.high %v2974_v44, %v2974_v44 }
 0x1dc   :  { %4915 = vmatprep.mubr.bf16.mxu0 %v4655_v52  ;;  %v2876_v41 = vpop.permute.xlu0 %2875  ;;  %v3236_v21 = vsel %vm6007_vm5, %v3231_v63, %v3235_v45 }
 0x1dd   :  { %v2972_v20 = vsel %vm742_vm2, %v2940_v50, %v2876_v41  ;;  %v3266_v29 = vshrl.u32 %v4713_v59, 16  ;;  %v3269_v47 = vshll.u32 %v4713_v59, 16  ;;  %v4737_v51 = vcombine.low %v3236_v21, %v3250_v34  ;;  %v2292_v26 = vpop.permute.xlu1 %2291 }
 0x1de   :  { %v4711_v6 = vcombine.low %v2972_v20, %v2972_v20  ;;  %v4712_v37 = vcombine.high %v2972_v20, %v2972_v20  ;;  %v2404_v14 = vsel %vm742_vm2, %v2372_v9, %v2292_v26  ;;  %v3275_v48 = vshll.u32 %v4714_v17, 16  ;;  %v5228_v20 = vld [vmem:[%s8401_s0 + $0x80] sm:$0xf] }
 0x1df   :  { %v3268_v56 = vrot.slane %v3266_v29, 4  ;;  %v3271_v39 = vrot.slane %v3269_v47, 5  ;;  %4951 = vmatprep.mubr.bf16.mxu1 %v4737_v51  ;;  %v5230_v51 = vld [vmem:[%s8401_s0 + $0x90] sm:$0xf] }
 0x1e0   :  { %v3252_v13 = vshrl.u32 %v4711_v6, 16  ;;  %v3255_v5 = vshll.u32 %v4711_v6, 16  ;;  %v2290_v25 = vpop.permute.xlu0 %2289  ;;  %v3261_v53 = vshll.u32 %v4712_v37, 16  ;;  %v3277_v12 = vrot.slane %v3275_v48, 5 }
 0x1e1   :  { %v2402_v43 = vsel %vm742_vm2, %v2370_v31, %v2290_v25  ;;  %v3272_v23 = vor.u32 %v3271_v39, %v3268_v56  ;;  %v2024_v42 = vpop.permute.xlu1 %2023 }
 0x1e2   :  { %v3254_v49 = vrot.slane %v3252_v13, 4  ;;  %v3257_v0 = vrot.slane %v3255_v5, 5  ;;  %v4656_v30 = vcombine.low %v2402_v43, %v2404_v14  ;;  %v3263_v4 = vrot.slane %v3261_v53, 5  ;;  %v5231_v13 = vld [vmem:[%s8401_s0 + $0x88] sm:$0xf] }
 0x1e3   :  { %v3273_v52 = vrot.slane %v3272_v23, 4  ;;  %v2342_v15 = vsel %vm660_vm0, %v5228_v20, %v2024_v42 }
 0x1e4   :  { %v3258_v2 = vor.u32 %v3257_v0, %v3254_v49  ;;  %4916 = vmatmul.mubr.bf16.gmra.mrb[24].mxu0 %v4656_v30  ;;  %v2022_v36 = vpop.permute.xlu0 %2021 }
 0x1e5   :  { %v2028_v63 = vpop.permute.xlu1 %2027  ;;  %v3278_v45 = vsel %vm6007_vm5, %v3273_v52, %v3277_v12  ;;  %v2339_v6 = vsel %vm660_vm0, %v5229_v16, %v2022_v36 }
 0x1e6   :  { %v3259_v50 = vrot.slane %v3258_v2, 4  ;;  %v2348_v26 = vsel %vm660_vm0, %v5230_v51, %v2028_v63 }
 0x1e8   :  { %v2026_v44 = vpop.permute.xlu0 %2025  ;;  %v3264_v41 = vsel %vm6007_vm5, %v3259_v50, %v3263_v4 }
 0x1e9   :  { %v4738_v34 = vcombine.low %v3264_v41, %v3278_v45  ;;  %v2104_v18 = vpop.permute.xlu1 %2103  ;;  %v2345_v5 = vsel %vm660_vm0, %v5231_v13, %v2026_v44 }
 0x1ea   :  { %v2376_v24 = vsel %vm709_vm1, %v2342_v15, %v2104_v18 }
 0x1eb   :  { %4952 = vmatmul.mubr.bf16.gmra.mrb[28].mxu1 %v4738_v34 }
 0x1ec   :  { %v2102_v55 = vpop.permute.xlu0 %2101 }
 0x1ed   :  { %v2108_v59 = vpop.permute.xlu1 %2107  ;;  %v2374_v21 = vsel %vm709_vm1, %v2339_v6, %v2102_v55 }
 0x1ee   :  { %v2380_v14 = vsel %vm709_vm1, %v2348_v26, %v2108_v59 }
 0x1f0   :  { %v2106_v17 = vpop.permute.xlu0 %2105 }
 0x1f1   :  { %v2296_v37 = vpop.permute.xlu1 %2295  ;;  %v2378_v39 = vsel %vm709_vm1, %v2345_v5, %v2106_v17 }
 0x1f2   :  { %v2408_v9 = vsel %vm742_vm2, %v2376_v24, %v2296_v37 }
 0x1f4   :  { %v2294_v29 = vpop.permute.xlu0 %2293 }
 0x1f5   :  { %v2406_v47 = vsel %vm742_vm2, %v2374_v21, %v2294_v29  ;;  %v2300_v56 = vpop.permute.xlu1 %2299 }
 0x1f6   :  { %v4657_v31 = vcombine.low %v2406_v47, %v2408_v9  ;;  %v2412_v48 = vsel %vm742_vm2, %v2380_v14, %v2300_v56 }
 0x1f7   :  { %v7361_v25 = vpop.f32.mrb[8].mxu0 }
 0x1f8   :  { %v7365_v43 = vpop.f32.mrb[9].mxu0  ;;  %4919 = vmatprep.mubr.bf16.mxu0 %v4657_v31  ;;  %v2298_v49 = vpop.permute.xlu0 %2297  ;;  %v3492_v12 = vsel %vm709_vm1, %v7361_v25, 0.0 }
 0x1f9   :  { %v3488_v0 = vsel %vm709_vm1, %v7365_v43, 0.0  ;;  %v2410_v53 = vsel %vm742_vm2, %v2378_v39, %v2298_v49  ;;  %v7370_v30 = vpop.f32.mrb[10].mxu0 }
 0x1fa   :  { %8575 = vst [vmem:[#allocation12_spill] sm:$0xff] %v7370_v30  ;;  %v3489_v23 = vadd.f32 %v3488_v0, %v7281_v54  ;;  %v4658_v42 = vcombine.low %v2410_v53, %v2412_v48  ;;  %v7373_v2 = vpop.f32.mrb[11].mxu0  ;;  %v3494_v63 = vsel %vm709_vm1, %v7370_v30, 0.0 }
 0x1fb   :  { %v3490_v36 = vsel %vm709_vm1, %v7373_v2, 0.0 }
 0x1fc   :  { %v3491_v52 = vadd.f32 %v3490_v36, %v3489_v23  ;;  %4920 = vmatmul.mubr.bf16.gmra.mrb[28].mxu0 %v4658_v42 }
 0x1fe   :  { %v3493_v50 = vadd.f32 %v3492_v12, %v3491_v52  ;;  %v7379_v4 = vpop.f32.mrb[12].mxu1 }
 0x1ff   :  { %v7383_v45 = vpop.f32.mrb[13].mxu1  ;;  %v3538_v17 = vsel %vm709_vm1, %v7379_v4, 0.0 }
 0x200   :  { %v3534_v54 = vsel %vm709_vm1, %v7383_v45, 0.0  ;;  %v7387_v44 = vpop.f32.mrb[14].mxu1  ;;  %v3495_v41 = vadd.f32 %v3494_v63, %v3493_v50 }
 0x201   :  { %v3535_v34 = vadd.f32 %v3534_v54, %v7305_v62  ;;  %v7390_v18 = vpop.f32.mrb[15].mxu1  ;;  %v3540_v15 = vsel %vm709_vm1, %v7387_v44, 0.0 }
 0x202   :  { %v3536_v55 = vsel %vm709_vm1, %v7390_v18, 0.0 }
 0x203   :  { %v3537_v59 = vadd.f32 %v3536_v55, %v3535_v34 }
 0x205   :  { %v3539_v20 = vadd.f32 %v3538_v17, %v3537_v59 }
 0x207   :  { %v3541_v16 = vadd.f32 %v3540_v15, %v3539_v20 }
 0x209   :  { %v3542_v24 = vrot.slane %v3541_v16, 4 }
 0x20b   :  { %v3543_v51 = vadd.f32 %v3542_v24, %v3541_v16 }
 0x20d   :  { %v3544_v39 = vrot.slane %v3543_v51, 2 }
 0x20f   :  { %v3545_v52 = vadd.f32 %v3544_v39, %v3543_v51 }
 0x211   :  { %v3546_v55 = vrot.slane %v3545_v52, 1 }
 0x213   :  { %v3547_v20 = vadd.f32 %v3546_v55, %v3545_v52 }
 0x227   :  { %v7398_v6 = vpop.f32.mrb[12].mxu0 }
 0x228   :  { %8576 = vst [vmem:[#allocation28_spill] sm:$0xff] %v7398_v6  ;;  %v7400_v37 = vpop.f32.mrb[13].mxu0  ;;  %v3500_v31 = vsel %vm709_vm1, %v7398_v6, 0.0 }
 0x229   :  { %8577 = vst [vmem:[#allocation13_spill] sm:$0xff] %v7400_v37  ;;  %v3496_v62 = vsel %vm709_vm1, %v7400_v37, 0.0  ;;  %v7404_v21 = vpop.f32.mrb[14].mxu0 }
 0x22a   :  { %8578 = vst [vmem:[#allocation14_spill] sm:$0xff] %v7404_v21  ;;  %v3497_v9 = vadd.f32 %v3496_v62, %v3495_v41  ;;  %v7406_v29 = vpop.f32.mrb[15].mxu0  ;;  %v3502_v14 = vsel %vm709_vm1, %v7404_v21, 0.0 }
 0x22b   :  { %8579 = vst [vmem:[#allocation19_spill] sm:$0xff] %v7406_v29  ;;  %v3498_v47 = vsel %vm709_vm1, %v7406_v29, 0.0 }
 0x22c   :  { %v3499_v26 = vadd.f32 %v3498_v47, %v3497_v9 }
 0x22e   :  { %v3501_v13 = vadd.f32 %v3500_v31, %v3499_v26  ;;  %v7412_v5 = vpop.f32.mrb[16].mxu1 }
 0x22f   :  { %8580 = vst [vmem:[#allocation20_spill] sm:$0xff] %v7412_v5  ;;  %v7416_v56 = vpop.f32.mrb[17].mxu1  ;;  %v3590_v50 = vsel %vm709_vm1, %v7412_v5, 0.0 }
 0x230   :  { %8581 = vst [vmem:[#allocation21_spill] sm:$0xff] %v7416_v56  ;;  %v3503_v48 = vadd.f32 %v3502_v14, %v3501_v13  ;;  %v7418_v49 = vpop.f32.mrb[18].mxu1  ;;  %v3587_v23 = vsel %vm709_vm1, %v7416_v56, 0.0 }
 0x231   :  { %8582 = vst [vmem:[#allocation22_spill] sm:$0xff] %v7418_v49  ;;  %v7420_v0 = vpop.f32.mrb[19].mxu1  ;;  %v3592_v41 = vsel %vm709_vm1, %v7418_v49, 0.0 }
 0x232   :  { %8583 = vst [vmem:[#allocation23_spill] sm:$0xff] %v7420_v0  ;;  %v3504_v53 = vrot.slane %v3503_v48, 4  ;;  %v3588_v42 = vsel %vm709_vm1, %v7420_v0, 0.0 }
 0x233   :  { %v3589_v36 = vadd.f32 %v3588_v42, %v3587_v23 }
 0x234   :  { %v3505_v12 = vadd.f32 %v3504_v53, %v3503_v48 }
 0x235   :  { %v3591_v63 = vadd.f32 %v3590_v50, %v3589_v36 }
 0x236   :  { %v3506_v54 = vrot.slane %v3505_v12, 2 }
 0x237   :  { %v3593_v34 = vadd.f32 %v3592_v41, %v3591_v63 }
 0x238   :  { %v3507_v59 = vadd.f32 %v3506_v54, %v3505_v12 }
 0x23a   :  { %v3508_v17 = vrot.slane %v3507_v59, 1 }
 0x23c   :  { %v3509_v15 = vadd.f32 %v3508_v17, %v3507_v59 }
 0x23e   :  { %v7430_v16 = vadd.f32 %v3547_v20, %v3509_v15 }
 0x257   :  { %v7432_v24 = vpop.f32.mrb[16].mxu0 }
 0x258   :  { %8584 = vst [vmem:[#allocation24_spill] sm:$0xff] %v7432_v24  ;;  %v7434_v62 = vpop.f32.mrb[17].mxu0  ;;  %v3552_v13 = vsel %vm709_vm1, %v7432_v24, 0.0 }
 0x259   :  { %v7436_v9 = vpop.f32.mrb[18].mxu0  ;;  %v3549_v51 = vsel %vm709_vm1, %v7434_v62, 0.0 }
 0x25a   :  { %v7438_v47 = vpop.f32.mrb[19].mxu0  ;;  %v3554_v48 = vsel %vm709_vm1, %v7436_v9, 0.0 }
 0x25b   :  { %8585 = vst [vmem:[#allocation25_spill] sm:$0xff] %v7438_v47  ;;  %v3550_v26 = vsel %vm709_vm1, %v7438_v47, 0.0 }
 0x25c   :  { %v3551_v31 = vadd.f32 %v3550_v26, %v3549_v51 }
 0x25e   :  { %v3553_v14 = vadd.f32 %v3552_v13, %v3551_v31  ;;  %v7446_v39 = vpop.f32.mrb[20].mxu1 }
 0x25f   :  { %8586 = vst [vmem:[#allocation26_spill] sm:$0xff] %v7446_v39  ;;  %v7450_v53 = vpop.f32.mrb[21].mxu1  ;;  %v3598_v54 = vsel %vm709_vm1, %v7446_v39, 0.0 }
 0x260   :  { %8587 = vst [vmem:[#allocation2_spill] sm:$0xff] %v7450_v53  ;;  %v3594_v23 = vsel %vm709_vm1, %v7450_v53, 0.0  ;;  %v7454_v42 = vpop.f32.mrb[22].mxu1  ;;  %v3555_v36 = vadd.f32 %v3554_v48, %v3553_v14 }
 0x261   :  { %8588 = vst [vmem:[#allocation3_spill] sm:$0xff] %v7454_v42  ;;  %v3595_v52 = vadd.f32 %v3594_v23, %v3593_v34  ;;  %v7456_v12 = vpop.f32.mrb[23].mxu1  ;;  %v3600_v55 = vsel %vm709_vm1, %v7454_v42, 0.0 }
 0x262   :  { %8589 = vst [vmem:[#allocation29_spill] sm:$0xff] %v7456_v12  ;;  %v3596_v50 = vsel %vm709_vm1, %v7456_v12, 0.0 }
 0x263   :  { %v3597_v63 = vadd.f32 %v3596_v50, %v3595_v52 }
 0x265   :  { %v3599_v41 = vadd.f32 %v3598_v54, %v3597_v63 }
 0x267   :  { %v3601_v59 = vadd.f32 %v3600_v55, %v3599_v41 }
 0x287   :  { %v7464_v17 = vpop.f32.mrb[20].mxu0 }
 0x288   :  { %v7466_v20 = vpop.f32.mrb[21].mxu0  ;;  %v3560_v14 = vsel %vm709_vm1, %v7464_v17, 0.0 }
 0x289   :  { %v3556_v34 = vsel %vm709_vm1, %v7466_v20, 0.0  ;;  %v7470_v15 = vpop.f32.mrb[22].mxu0 }
 0x28a   :  { %8590 = vst [vmem:[#allocation30_spill] sm:$0xff] %v7470_v15  ;;  %v3557_v51 = vadd.f32 %v3556_v34, %v3555_v36  ;;  %v7472_v26 = vpop.f32.mrb[23].mxu0  ;;  %v3562_v52 = vsel %vm709_vm1, %v7470_v15, 0.0 }
 0x28b   :  { %v3558_v31 = vsel %vm709_vm1, %v7472_v26, 0.0 }
 0x28c   :  { %v3559_v13 = vadd.f32 %v3558_v31, %v3557_v51 }
 0x28e   :  { %v3561_v48 = vadd.f32 %v3560_v14, %v3559_v13  ;;  %v7478_v23 = vpop.f32.mrb[24].mxu1 }
 0x28f   :  { %8591 = vst [vmem:[#allocation31_spill] sm:$0xff] %v7478_v23  ;;  %v7482_v50 = vpop.f32.mrb[25].mxu1  ;;  %v3606_v31 = vsel %vm709_vm1, %v7478_v23, 0.0 }
 0x290   :  { %8592 = vst [vmem:[#allocation32_spill] sm:$0xff] %v7482_v50  ;;  %v3602_v36 = vsel %vm709_vm1, %v7482_v50, 0.0  ;;  %v7486_v63 = vpop.f32.mrb[26].mxu1  ;;  %v3563_v54 = vadd.f32 %v3562_v52, %v3561_v48 }
 0x291   :  { %8593 = vst [vmem:[#allocation4_spill] sm:$0xff] %v7486_v63  ;;  %v3603_v41 = vadd.f32 %v3602_v36, %v3601_v59  ;;  %v7488_v55 = vpop.f32.mrb[27].mxu1  ;;  %v3608_v14 = vsel %vm709_vm1, %v7486_v63, 0.0 }
 0x292   :  { %8594 = vst [vmem:[#allocation33_spill] sm:$0xff] %v7488_v55  ;;  %v3604_v34 = vsel %vm709_vm1, %v7488_v55, 0.0 }
 0x293   :  { %v3605_v51 = vadd.f32 %v3604_v34, %v3603_v41 }
 0x295   :  { %v3607_v13 = vadd.f32 %v3606_v31, %v3605_v51 }
 0x297   :  { %v3609_v42 = vadd.f32 %v3608_v14, %v3607_v13 }
 0x2b7   :  { %v7496_v39 = vpop.f32.mrb[24].mxu0 }
 0x2b8   :  { %8595 = vst [vmem:[#allocation5_spill] sm:$0xff] %v7496_v39  ;;  %v7498_v50 = vpop.f32.mrb[25].mxu0  ;;  %v3568_v51 = vsel %vm709_vm1, %v7496_v39, 0.0 }
 0x2b9   :  { %8596 = vst [vmem:[#allocation34_spill] sm:$0xff] %v7498_v50  ;;  %v3564_v59 = vsel %vm709_vm1, %v7498_v50, 0.0  ;;  %v7502_v48 = vpop.f32.mrb[26].mxu0 }
 0x2ba   :  { %8597 = vst [vmem:[#allocation35_spill] sm:$0xff] %v7502_v48  ;;  %v3565_v52 = vadd.f32 %v3564_v59, %v3563_v54  ;;  %v7504_v36 = vpop.f32.mrb[27].mxu0  ;;  %v3570_v14 = vsel %vm709_vm1, %v7502_v48, 0.0 }
 0x2bb   :  { %8598 = vst [vmem:[#allocation6_spill] sm:$0xff] %v7504_v36  ;;  %v3566_v41 = vsel %vm709_vm1, %v7504_v36, 0.0 }
 0x2bc   :  { %v3567_v34 = vadd.f32 %v3566_v41, %v3565_v52 }
 0x2be   :  { %v3569_v31 = vadd.f32 %v3568_v51, %v3567_v34  ;;  %v7510_v13 = vpop.f32.mrb[28].mxu1 }
 0x2bf   :  { %8599 = vst [vmem:[#allocation7_spill] sm:$0xff] %v7510_v13  ;;  %v7514_v63 = vpop.f32.mrb[29].mxu1  ;;  %v3614_v34 = vsel %vm709_vm1, %v7510_v13, 0.0 }
 0x2c0   :  { %8600 = vst [vmem:[#allocation8_spill] sm:$0xff] %v7514_v63  ;;  %v3610_v54 = vsel %vm709_vm1, %v7514_v63, 0.0  ;;  %v7518_v59 = vpop.f32.mrb[30].mxu1  ;;  %v3571_v23 = vadd.f32 %v3570_v14, %v3569_v31 }
 0x2c1   :  { %8601 = vst [vmem:[#allocation9_spill] sm:$0xff] %v7518_v59  ;;  %v3611_v55 = vadd.f32 %v3610_v54, %v3609_v42  ;;  %v7520_v12 = vpop.f32.mrb[31].mxu1  ;;  %v3616_v53 = vsel %vm709_vm1, %v7518_v59, 0.0 }
 0x2c2   :  { %8602 = vst [vmem:[#allocation15_spill] sm:$0xff] %v7520_v12  ;;  %v3612_v52 = vsel %vm709_vm1, %v7520_v12, 0.0 }
 0x2c3   :  { %v3613_v41 = vadd.f32 %v3612_v52, %v3611_v55 }
 0x2c5   :  { %v3615_v51 = vadd.f32 %v3614_v34, %v3613_v41 }
 0x2c7   :  { %v3617_v49 = vadd.f32 %v3616_v53, %v3615_v51 }
 0x2c9   :  { %v3618_v14 = vrot.slane %v3617_v49, 4 }
 0x2cb   :  { %v3619_v34 = vadd.f32 %v3618_v14, %v3617_v49 }
 0x2cd   :  { %v3620_v12 = vrot.slane %v3619_v34, 2 }
 0x2cf   :  { %v7528_v5 = vpop.f32.mrb[28].mxu0 }
 0x2d0   :  { %8603 = vst [vmem:[#allocation16_spill] sm:$0xff] %v7528_v5  ;;  %v7530_v63 = vpop.f32.mrb[29].mxu0  ;;  %v3576_v53 = vsel %vm709_vm1, %v7528_v5, 0.0 }
 0x2d1   :  { %8604 = vst [vmem:[#allocation17_spill] sm:$0xff] %v7530_v63  ;;  %v3572_v42 = vsel %vm709_vm1, %v7530_v63, 0.0  ;;  %v7534_v31 = vpop.f32.mrb[30].mxu0  ;;  %v3621_v63 = vadd.f32 %v3620_v12, %v3619_v34 }
 0x2d2   :  { %8605 = vst [vmem:[#allocation18_spill] sm:$0xff] %v7534_v31  ;;  %v3573_v54 = vadd.f32 %v3572_v42, %v3571_v23  ;;  %v7536_v55 = vpop.f32.mrb[31].mxu0  ;;  %v3578_v59 = vsel %vm709_vm1, %v7534_v31, 0.0 }
 0x2d3   :  { %8606 = vst [vmem:[#allocation36_spill] sm:$0xff] %v7536_v55  ;;  %v3574_v52 = vsel %vm709_vm1, %v7536_v55, 0.0  ;;  %v3622_v48 = vrot.slane %v3621_v63, 1 }
 0x2d4   :  { %v3575_v41 = vadd.f32 %v3574_v52, %v3573_v54 }
 0x2d5   :  { %v3623_v55 = vadd.f32 %v3622_v48, %v3621_v63 }
 0x2d6   :  { %v3577_v51 = vadd.f32 %v3576_v53, %v3575_v41 }
 0x2d8   :  { %v3579_v13 = vadd.f32 %v3578_v59, %v3577_v51 }
 0x2da   :  { %v3580_v0 = vrot.slane %v3579_v13, 4 }
 0x2dc   :  { %v3581_v56 = vadd.f32 %v3580_v0, %v3579_v13 }
 0x2de   :  { %v3582_v23 = vrot.slane %v3581_v56, 2 }
 0x2e0   :  { %v3583_v42 = vadd.f32 %v3582_v23, %v3581_v56 }
 0x2e2   :  { %v3584_v39 = vrot.slane %v3583_v42, 1 }
 0x2e4   :  { %v3585_v36 = vadd.f32 %v3584_v39, %v3583_v42 }
 0x2e6   :  { %v3586_v54 = vadd.f32 %v3585_v36, %v7430_v16 }
 0x2e8   :  { %v3624_v52 = vadd.f32 %v3623_v55, %v3586_v54 }
 0x2ea   :  { %v7545_v5 = vmul.f32 0.001953125, %v3624_v52 }
 0x2ec   :  { %v3626_v49 = vsub.f32 %v7155_v19, %v7545_v5  ;;  %v3627_v59 = vsub.f32 %v7159_v61, %v7545_v5  ;;  %v3628_v0 = vsub.f32 %v7153_v10, %v7545_v5  ;;  %v3629_v56 = vsub.f32 %v7157_v38, %v7545_v5 }
 0x2ed   :  { %v3630_v16 = vsub.f32 %v7252_v58, %v7545_v5  ;;  %v3631_v48 = vsub.f32 %v7259_v35, %v7545_v5  ;;  %v3632_v41 = vsub.f32 %v7250_v32, %v7545_v5  ;;  %v3633_v23 = vsub.f32 %v7256_v8, %v7545_v5 }
 0x2ee   :  { %v3642_v12 = vmul.f32 %v3626_v49, %v3626_v49  ;;  %v3643_v39 = vmul.f32 %v3627_v59, %v3627_v59  ;;  %v3644_v63 = vmul.f32 %v3628_v0, %v3628_v0  ;;  %v3645_v36 = vmul.f32 %v3629_v56, %v3629_v56 }
 0x2ef   :  { %v3646_v53 = vmul.f32 %v3630_v16, %v3630_v16  ;;  %v3647_v42 = vmul.f32 %v3631_v48, %v3631_v48  ;;  %v3634_v52 = vsub.f32 %v7365_v43, %v7545_v5  ;;  %v3696_v59 = vsub.f32 %v7057_v7, %v7545_v5 }
 0x2f0   :  { %v3658_v13 = vsel %vm709_vm1, %v3642_v12, 0.0  ;;  %v3659_v14 = vsel %vm709_vm1, %v3643_v39, 0.0  ;;  %v3661_v34 = vsel %vm709_vm1, %v3644_v63, 0.0  ;;  %v3663_v54 = vsel %vm709_vm1, %v3645_v36, 0.0 }
 0x2f1   :  { %v3660_v55 = vadd.f32 %v3659_v14, %v3658_v13  ;;  %v3635_v0 = vsub.f32 %v7373_v2, %v7545_v5  ;;  %v3648_v56 = vmul.f32 %v3632_v41, %v3632_v41  ;;  %v3665_v12 = vsel %vm709_vm1, %v3646_v53, 0.0 }
 0x2f2   :  { %v3697_v39 = vsub.f32 %v7077_v3, %v7545_v5  ;;  %v3636_v16 = vsub.f32 %v7361_v25, %v7545_v5  ;;  %v3637_v63 = vsub.f32 %v7370_v30, %v7545_v5  ;;  %v3638_v48 = vsub.f32 %v7400_v37, %v7545_v5 }
 0x2f3   :  { %v3662_v51 = vadd.f32 %v3661_v34, %v3660_v55  ;;  %v3639_v13 = vsub.f32 %v7406_v29, %v7545_v5  ;;  %v3649_v14 = vmul.f32 %v3633_v23, %v3633_v23  ;;  %v3667_v55 = vsel %vm709_vm1, %v3647_v42, 0.0 }
 0x2f4   :  { %v3698_v41 = vsub.f32 %v7044_v11, %v7545_v5  ;;  %v3640_v53 = vsub.f32 %v7398_v6, %v7545_v5  ;;  %v3641_v34 = vsub.f32 %v7404_v21, %v7545_v5  ;;  %v3650_v3 = vmul.f32 %v3634_v52, %v3634_v52 }
 0x2f5   :  { %v3664_v49 = vadd.f32 %v3663_v54, %v3662_v51  ;;  %v3712_v54 = vmul.f32 %v3696_v59, %v3696_v59  ;;  %v3713_v23 = vmul.f32 %v3697_v39, %v3697_v39  ;;  %v3651_v7 = vmul.f32 %v3635_v0, %v3635_v0 }
 0x2f6   :  { %v3652_v42 = vmul.f32 %v3636_v16, %v3636_v16  ;;  %v3653_v29 = vmul.f32 %v3637_v63, %v3637_v63  ;;  %v3654_v11 = vmul.f32 %v3638_v48, %v3638_v48  ;;  %v3671_v30 = vsel %vm709_vm1, %v3649_v14, 0.0 }
 0x2f7   :  { %v3666_v36 = vadd.f32 %v3665_v12, %v3664_v49  ;;  %v3669_v49 = vsel %vm709_vm1, %v3648_v56, 0.0  ;;  %v3699_v12 = vsub.f32 %v7066_v1, %v7545_v5  ;;  %v3700_v6 = vsub.f32 %v7174_v22, %v7545_v5 }
 0x2f8   :  { %v3714_v21 = vmul.f32 %v3698_v41, %v3698_v41  ;;  %v3656_v59 = vmul.f32 %v3640_v53, %v3640_v53  ;;  %v3728_v56 = vsel %vm709_vm1, %v3712_v54, 0.0  ;;  %v3701_v0 = vsub.f32 %v7187_v28, %v7545_v5 }
 0x2f9   :  { %v3668_v51 = vadd.f32 %v3667_v55, %v3666_v36  ;;  %v3655_v36 = vmul.f32 %v3639_v13, %v3639_v13  ;;  %v3673_v55 = vsel %vm709_vm1, %v3650_v3, 0.0  ;;  %v3715_v39 = vmul.f32 %v3699_v12, %v3699_v12 }
 0x2fa   :  { %v3729_v16 = vsel %vm709_vm1, %v3713_v23, 0.0  ;;  %v3657_v63 = vmul.f32 %v3641_v34, %v3641_v34  ;;  %v3675_v14 = vsel %vm709_vm1, %v3651_v7, 0.0  ;;  %v3677_v41 = vsel %vm709_vm1, %v3652_v42, 0.0 }
 0x2fb   :  { %v3670_v37 = vadd.f32 %v3669_v49, %v3668_v51  ;;  %v3730_v51 = vadd.f32 %v3729_v16, %v3728_v56  ;;  %v3731_v13 = vsel %vm709_vm1, %v3714_v21, 0.0  ;;  %v3679_v53 = vsel %vm709_vm1, %v3653_v29, 0.0 }
 0x2fc   :  { %v3681_v54 = vsel %vm709_vm1, %v3654_v11, 0.0  ;;  %v3683_v34 = vsel %vm709_vm1, %v3655_v36, 0.0  ;;  %v3703_v7 = vsub.f32 %v7181_v33, %v7545_v5  ;;  %v3717_v12 = vmul.f32 %v3701_v0, %v3701_v0 }
 0x2fd   :  { %v3672_v52 = vadd.f32 %v3671_v30, %v3670_v37  ;;  %v3702_v30 = vsub.f32 %v7169_v27, %v7545_v5  ;;  %v3716_v37 = vmul.f32 %v3700_v6, %v3700_v6  ;;  %v3732_v49 = vadd.f32 %v3731_v13, %v3730_v51 }
 0x2fe   :  { %v3733_v23 = vsel %vm709_vm1, %v3715_v39, 0.0  ;;  %v3687_v6 = vsel %vm709_vm1, %v3657_v63, 0.0  ;;  %v3704_v29 = vsub.f32 %v7272_v57, %v7545_v5  ;;  %v3705_v11 = vsub.f32 %v7285_v60, %v7545_v5 }
 0x2ff   :  { %v3674_v48 = vadd.f32 %v3673_v55, %v3672_v52  ;;  %v3685_v52 = vsel %vm709_vm1, %v3656_v59, 0.0  ;;  %v3734_v21 = vadd.f32 %v3733_v23, %v3732_v49  ;;  %v3718_v56 = vmul.f32 %v3702_v30, %v3702_v30 }
 0x300   :  { %v3735_v36 = vsel %vm709_vm1, %v3716_v37, 0.0  ;;  %v3706_v0 = vsub.f32 %v7267_v40, %v7545_v5  ;;  %v3766_v59 = vsub.f32 %v7434_v62, %v7545_v5  ;;  %v3707_v16 = vsub.f32 %v7279_v46, %v7545_v5 }
 0x301   :  { %v3676_v3 = vadd.f32 %v3675_v14, %v3674_v48  ;;  %v3736_v39 = vadd.f32 %v3735_v36, %v3734_v21  ;;  %v3719_v63 = vmul.f32 %v3703_v7, %v3703_v7  ;;  %v3737_v48 = vsel %vm709_vm1, %v3717_v12, 0.0 }
 0x302   :  { %v3767_v14 = vsub.f32 %v7438_v47, %v7545_v5  ;;  %v3709_v30 = vsub.f32 %v7390_v18, %v7545_v5  ;;  %v3710_v13 = vsub.f32 %v7379_v4, %v7545_v5  ;;  %v3768_v49 = vsub.f32 %v7432_v24, %v7545_v5 }
 0x303   :  { %v3678_v42 = vadd.f32 %v3677_v41, %v3676_v3  ;;  %v3708_v41 = vsub.f32 %v7383_v45, %v7545_v5  ;;  %v3738_v37 = vadd.f32 %v3737_v48, %v3736_v39  ;;  %v3720_v3 = vmul.f32 %v3704_v29, %v3704_v29 }
 0x304   :  { %v3782_v23 = vmul.f32 %v3766_v59, %v3766_v59  ;;  %v3741_v21 = vsel %vm709_vm1, %v3719_v63, 0.0  ;;  %v3769_v36 = vsub.f32 %v7436_v9, %v7545_v5  ;;  %v3722_v29 = vmul.f32 %v3706_v0, %v3706_v0 }
 0x305   :  { %v3680_v55 = vadd.f32 %v3679_v53, %v3678_v42  ;;  %v3739_v53 = vsel %vm709_vm1, %v3718_v56, 0.0  ;;  %v3721_v42 = vmul.f32 %v3705_v11, %v3705_v11  ;;  %v3723_v48 = vmul.f32 %v3707_v16, %v3707_v16 }
 0x306   :  { %v3740_v12 = vadd.f32 %v3739_v53, %v3738_v37  ;;  %v3724_v47 = vmul.f32 %v3708_v41, %v3708_v41  ;;  %v3743_v24 = vsel %vm709_vm1, %v3720_v3, 0.0  ;;  %v3725_v59 = vmul.f32 %v3709_v30, %v3709_v30 }
 0x307   :  { %v3682_v51 = vadd.f32 %v3681_v54, %v3680_v55  ;;  %v3711_v54 = vsub.f32 %v7387_v44, %v7545_v5  ;;  %v3783_v55 = vmul.f32 %v3767_v14, %v3767_v14  ;;  %v3798_v63 = vsel %vm709_vm1, %v3782_v23, 0.0 }
 0x308   :  { %v3742_v56 = vadd.f32 %v3741_v21, %v3740_v12  ;;  %v3745_v53 = vsel %vm709_vm1, %v3721_v42, 0.0  ;;  %v3785_v0 = vmul.f32 %v3769_v36, %v3769_v36  ;;  %v3726_v14 = vmul.f32 %v3710_v13, %v3710_v13 }
 0x309   :  { %v3684_v7 = vadd.f32 %v3683_v34, %v3682_v51  ;;  %v3770_v34 = vsub.f32 %v7466_v20, %v7545_v5  ;;  %v3784_v51 = vmul.f32 %v3768_v49, %v3768_v49  ;;  %v3799_v16 = vsel %vm709_vm1, %v3783_v55, 0.0 }
 0x30a   :  { %v3744_v11 = vadd.f32 %v3743_v24, %v3742_v56  ;;  %v3727_v41 = vmul.f32 %v3711_v54, %v3711_v54  ;;  %v3747_v12 = vsel %vm709_vm1, %v3722_v29, 0.0  ;;  %v3749_v42 = vsel %vm709_vm1, %v3723_v48, 0.0 }
 0x30b   :  { %v3686_v39 = vadd.f32 %v3685_v52, %v3684_v7  ;;  %v3771_v52 = vsub.f32 %v7472_v26, %v7545_v5  ;;  %v3800_v7 = vadd.f32 %v3799_v16, %v3798_v63  ;;  %v3786_v24 = vmul.f32 %v3770_v34, %v3770_v34 }
 0x30c   :  { %v3746_v3 = vadd.f32 %v3745_v53, %v3744_v11  ;;  %v3801_v30 = vsel %vm709_vm1, %v3784_v51, 0.0  ;;  %v3751_v36 = vsel %vm709_vm1, %v3724_v47, 0.0  ;;  %v3773_v13 = vsub.f32 %v7470_v15, %v7545_v5 }
 0x30d   :  { %v3688_v37 = vadd.f32 %v3687_v6, %v3686_v39  ;;  %v3772_v6 = vsub.f32 %v7464_v17, %v7545_v5  ;;  %v3802_v21 = vadd.f32 %v3801_v30, %v3800_v7  ;;  %v3787_v54 = vmul.f32 %v3771_v52, %v3771_v52  ;;  %v8607_v52 = vld [vmem:[#allocation6_spill] sm:$0xff] }
 0x30e   :  { %v3748_v23 = vadd.f32 %v3747_v12, %v3746_v3  ;;  %v3803_v55 = vsel %vm709_vm1, %v3785_v0, 0.0  ;;  %v3753_v29 = vsel %vm709_vm1, %v3725_v59, 0.0  ;;  %v3755_v56 = vsel %vm709_vm1, %v3726_v14, 0.0  ;;  %v8608_v3 = vld [vmem:[#allocation5_spill] sm:$0xff]  ;;  %v8609_v14 = vld [vmem:[#allocation35_spill] sm:$0xff] }
 0x30f   :  { %v3689_v49 = vrot.slane %v3688_v37, 4  ;;  %v3804_v34 = vadd.f32 %v3803_v55, %v3802_v21  ;;  %v3757_v51 = vsel %vm709_vm1, %v3727_v41, 0.0  ;;  %v3774_v48 = vsub.f32 %v7498_v50, %v7545_v5 }
 0x310   :  { %v3750_v39 = vadd.f32 %v3749_v42, %v3748_v23  ;;  %v3788_v11 = vmul.f32 %v3772_v6, %v3772_v6  ;;  %v3805_v47 = vsel %vm709_vm1, %v3786_v24, 0.0  ;;  %v3775_v16 = vsub.f32 %v8607_v52, %v7545_v5  ;;  %v8610_v6 = vld [vmem:[#allocation17_spill] sm:$0xff]  ;;  %v8612_v42 = vld [vmem:[#allocation36_spill] sm:$0xff] }
 0x311   :  { %v3690_v63 = vadd.f32 %v3689_v49, %v3688_v37  ;;  %v3806_v0 = vadd.f32 %v3805_v47, %v3804_v34  ;;  %v3776_v59 = vsub.f32 %v8608_v3, %v7545_v5  ;;  %v3777_v7 = vsub.f32 %v8609_v14, %v7545_v5  ;;  %v8611_v37 = vld [vmem:[#allocation21_spill] sm:$0xff] }
 0x312   :  { %v3752_v53 = vadd.f32 %v3751_v36, %v3750_v39  ;;  %v3789_v12 = vmul.f32 %v3773_v13, %v3773_v13  ;;  %v3807_v41 = vsel %vm709_vm1, %v3787_v54, 0.0  ;;  %v3778_v23 = vsub.f32 %v8610_v6, %v7545_v5  ;;  %v8613_v39 = vld [vmem:[#allocation23_spill] sm:$0xff]  ;;  %v8614_v54 = vld [vmem:[#allocation16_spill] sm:$0xff] }
 0x313   :  { %v3808_v24 = vadd.f32 %v3807_v41, %v3806_v0  ;;  %v3836_v49 = vsub.f32 %v8611_v37, %v7545_v5  ;;  %v3779_v21 = vsub.f32 %v8612_v42, %v7545_v5  ;;  %v3790_v36 = vmul.f32 %v3774_v48, %v3774_v48  ;;  %v8615_v6 = vld [vmem:[#allocation20_spill] sm:$0xff] }
 0x314   :  { %v3754_v30 = vadd.f32 %v3753_v29, %v3752_v53  ;;  %v3809_v55 = vsel %vm709_vm1, %v3788_v11, 0.0  ;;  %v3837_v34 = vsub.f32 %v8613_v39, %v7545_v5  ;;  %v3691_v13 = vrot.slane %v3690_v63, 2 }
 0x315   :  { %v3780_v29 = vsub.f32 %v8614_v54, %v7545_v5  ;;  %v3810_v53 = vadd.f32 %v3809_v55, %v3808_v24  ;;  %v3781_v0 = vsub.f32 %v7534_v31, %v7545_v5  ;;  %v3791_v41 = vmul.f32 %v3775_v16, %v3775_v16 }
 0x316   :  { %v3756_v47 = vadd.f32 %v3755_v56, %v3754_v30  ;;  %v3811_v37 = vsel %vm709_vm1, %v3789_v12, 0.0  ;;  %v3838_v48 = vsub.f32 %v8615_v6, %v7545_v5  ;;  %v3792_v11 = vmul.f32 %v3776_v59, %v3776_v59  ;;  %v8616_v30 = vld [vmem:[#allocation22_spill] sm:$0xff] }
 0x317   :  { %v3812_v3 = vadd.f32 %v3811_v37, %v3810_v53  ;;  %v3852_v52 = vmul.f32 %v3836_v49, %v3836_v49  ;;  %v3793_v39 = vmul.f32 %v3777_v7, %v3777_v7  ;;  %v3813_v56 = vsel %vm709_vm1, %v3790_v36, 0.0  ;;  %v8617_v6 = vld [vmem:[#allocation2_spill] sm:$0xff] }
 0x318   :  { %v3758_v14 = vadd.f32 %v3757_v51, %v3756_v47  ;;  %v3839_v54 = vsub.f32 %v8616_v30, %v7545_v5  ;;  %v3853_v24 = vmul.f32 %v3837_v34, %v3837_v34  ;;  %v3692_v55 = vadd.f32 %v3691_v13, %v3690_v63  ;;  %v8618_v34 = vld [vmem:[#allocation29_spill] sm:$0xff] }
 0x319   :  { %v3794_v31 = vmul.f32 %v3778_v23, %v3778_v23  ;;  %v3814_v16 = vadd.f32 %v3813_v56, %v3812_v3  ;;  %v3795_v15 = vmul.f32 %v3779_v21, %v3779_v21  ;;  %v3815_v12 = vsel %vm709_vm1, %v3791_v41, 0.0 }
 0x31a   :  { %v3759_v50 = vrot.slane %v3758_v14, 4  ;;  %v3840_v51 = vsub.f32 %v8617_v6, %v7545_v5  ;;  %v3854_v59 = vmul.f32 %v3838_v48, %v3838_v48  ;;  %v3796_v49 = vmul.f32 %v3780_v29, %v3780_v29 }
 0x31b   :  { %v3816_v7 = vadd.f32 %v3815_v12, %v3814_v16  ;;  %v3868_v36 = vsel %vm709_vm1, %v3852_v52, 0.0  ;;  %v3817_v47 = vsel %vm709_vm1, %v3792_v11, 0.0  ;;  %v3841_v63 = vsub.f32 %v8618_v34, %v7545_v5 }
 0x31c   :  { %v3760_v37 = vadd.f32 %v3759_v50, %v3758_v14  ;;  %v3855_v13 = vmul.f32 %v3839_v54, %v3839_v54  ;;  %v3869_v3 = vsel %vm709_vm1, %v3853_v24, 0.0  ;;  %v3693_v23 = vrot.slane %v3692_v55, 1  ;;  %v8619_v50 = vld [vmem:[#allocation26_spill] sm:$0xff]  ;;  %v8620_v24 = vld [vmem:[#allocation3_spill] sm:$0xff] }
 0x31d   :  { %v3818_v53 = vadd.f32 %v3817_v47, %v3816_v7  ;;  %v3870_v41 = vadd.f32 %v3869_v3, %v3868_v36  ;;  %v3819_v56 = vsel %vm709_vm1, %v3793_v39, 0.0  ;;  %v3842_v14 = vsub.f32 %v8619_v50, %v7545_v5 }
 0x31e   :  { %v3761_v21 = vrot.slane %v3760_v37, 2  ;;  %v3856_v29 = vmul.f32 %v3840_v51, %v3840_v51  ;;  %v3871_v52 = vsel %vm709_vm1, %v3854_v59, 0.0  ;;  %v3797_v11 = vmul.f32 %v3781_v0, %v3781_v0  ;;  %v8621_v59 = vld [vmem:[#allocation32_spill] sm:$0xff] }
 0x31f   :  { %v3820_v16 = vadd.f32 %v3819_v56, %v3818_v53  ;;  %v3872_v12 = vadd.f32 %v3871_v52, %v3870_v41  ;;  %v3821_v54 = vsel %vm709_vm1, %v3794_v31, 0.0  ;;  %v3843_v34 = vsub.f32 %v8620_v24, %v7545_v5 }
 0x320   :  { %v3762_v48 = vadd.f32 %v3761_v21, %v3760_v37  ;;  %v3857_v6 = vmul.f32 %v3841_v63, %v3841_v63  ;;  %v3873_v7 = vsel %vm709_vm1, %v3855_v13, 0.0  ;;  %v3694_v36 = vadd.f32 %v3693_v23, %v3692_v55  ;;  %v8622_v63 = vld [vmem:[#allocation33_spill] sm:$0xff] }
 0x321   :  { %v3822_v47 = vadd.f32 %v3821_v54, %v3820_v16  ;;  %v3874_v3 = vadd.f32 %v3873_v7, %v3872_v12  ;;  %v3823_v51 = vsel %vm709_vm1, %v3795_v15, 0.0  ;;  %v3844_v37 = vsub.f32 %v8621_v59, %v7545_v5 }
 0x322   :  { %v3763_v39 = vrot.slane %v3762_v48, 1  ;;  %v3858_v0 = vmul.f32 %v3842_v14, %v3842_v14  ;;  %v3875_v21 = vsel %vm709_vm1, %v3856_v29, 0.0  ;;  %v3825_v56 = vsel %vm709_vm1, %v3796_v49, 0.0  ;;  %v8623_v14 = vld [vmem:[#allocation31_spill] sm:$0xff]  ;;  %v8624_v49 = vld [vmem:[#allocation4_spill] sm:$0xff] }
 0x323   :  { %v3824_v31 = vadd.f32 %v3823_v51, %v3822_v47  ;;  %v3876_v41 = vadd.f32 %v3875_v21, %v3874_v3  ;;  %v3845_v13 = vsub.f32 %v8622_v63, %v7545_v5  ;;  %v3859_v55 = vmul.f32 %v3843_v34, %v3843_v34  ;;  %v8625_v51 = vld [vmem:[#allocation8_spill] sm:$0xff] }
 0x324   :  { %v3764_v53 = vadd.f32 %v3763_v39, %v3762_v48  ;;  %v3877_v23 = vsel %vm709_vm1, %v3857_v6, 0.0  ;;  %v3827_v12 = vsel %vm709_vm1, %v3797_v11, 0.0  ;;  %v3846_v54 = vsub.f32 %v8623_v14, %v7545_v5 }
 0x325   :  { %v3826_v16 = vadd.f32 %v3825_v56, %v3824_v31  ;;  %v3878_v15 = vadd.f32 %v3877_v23, %v3876_v41  ;;  %v3860_v29 = vmul.f32 %v3844_v37, %v3844_v37  ;;  %v3879_v48 = vsel %vm709_vm1, %v3858_v0, 0.0  ;;  %v8626_v0 = vld [vmem:[#allocation15_spill] sm:$0xff] }
 0x326   :  { %v3765_v52 = vadd.f32 %v3764_v53, %v3694_v36  ;;  %v3847_v47 = vsub.f32 %v8624_v49, %v7545_v5  ;;  %v3861_v3 = vmul.f32 %v3845_v13, %v3845_v13  ;;  %v3881_v34 = vsel %vm709_vm1, %v3859_v55, 0.0  ;;  %v8627_v55 = vld [vmem:[#allocation7_spill] sm:$0xff] }
 0x327   :  { %v3828_v7 = vadd.f32 %v3827_v12, %v3826_v16  ;;  %v3880_v39 = vadd.f32 %v3879_v48, %v3878_v15  ;;  %v3848_v21 = vsub.f32 %v8625_v51, %v7545_v5  ;;  %v3862_v11 = vmul.f32 %v3846_v54, %v3846_v54 }
 0x328   :  { %v3883_v53 = vsel %vm709_vm1, %v3860_v29, 0.0  ;;  %v3849_v41 = vsub.f32 %v8626_v0, %v7545_v5  ;;  %v3863_v56 = vmul.f32 %v3847_v47, %v3847_v47  ;;  %v3885_v23 = vsel %vm709_vm1, %v3861_v3, 0.0  ;;  %v8628_v29 = vld [vmem:[#allocation9_spill] sm:$0xff] }
 0x329   :  { %v3829_v6 = vrot.slane %v3828_v7, 4  ;;  %v3882_v36 = vadd.f32 %v3881_v34, %v3880_v39  ;;  %v3850_v15 = vsub.f32 %v8627_v55, %v7545_v5  ;;  %v3864_v12 = vmul.f32 %v3848_v21, %v3848_v21 }
 0x32a   :  { %v3887_v48 = vsel %vm709_vm1, %v3862_v11, 0.0  ;;  %v3865_v34 = vmul.f32 %v3849_v41, %v3849_v41 }
 0x32b   :  { %v3830_v31 = vadd.f32 %v3829_v6, %v3828_v7  ;;  %v3884_v37 = vadd.f32 %v3883_v53, %v3882_v36  ;;  %v3851_v7 = vsub.f32 %v8628_v29, %v7545_v5  ;;  %v3889_v6 = vsel %vm709_vm1, %v3863_v56, 0.0 }
 0x32c   :  { %v3866_v53 = vmul.f32 %v3850_v15, %v3850_v15  ;;  %v3891_v3 = vsel %vm709_vm1, %v3864_v12, 0.0  ;;  %v3893_v21 = vsel %vm709_vm1, %v3865_v34, 0.0 }
 0x32d   :  { %v3831_v16 = vrot.slane %v3830_v31, 2  ;;  %v3886_v13 = vadd.f32 %v3885_v23, %v3884_v37  ;;  %v3867_v0 = vmul.f32 %v3851_v7, %v3851_v7  ;;  %v3915_v7 = vlaneseq }
 0x32f   :  { %v3832_v39 = vadd.f32 %v3831_v16, %v3830_v31  ;;  %v3888_v54 = vadd.f32 %v3887_v48, %v3886_v13  ;;  %v3895_v31 = vsel %vm709_vm1, %v3866_v53, 0.0  ;;  %v3897_v13 = vsel %vm709_vm1, %v3867_v0, 0.0 }
 0x330   :  { %v3916_v34 = vshrl.u32 %v3915_v7, 7  ;;  %v8637_v7 = vld [vmem:[#allocation10_spill] sm:$0xff] }
 0x331   :  { %v3833_v36 = vrot.slane %v3832_v39, 1  ;;  %v3890_v47 = vadd.f32 %v3889_v6, %v3888_v54 }
 0x333   :  { %v3834_v37 = vadd.f32 %v3833_v36, %v3832_v39  ;;  %v3892_v23 = vadd.f32 %v3891_v3, %v3890_v47  ;;  %v3917_v47 = vsub.s32 0, %v3916_v34  ;;  %v3911_v3 = vld [vmem:[%s8404_s3] sm:$0x1] }
 0x335   :  { %v3835_v55 = vadd.f32 %v3834_v37, %v3765_v52  ;;  %v3894_v11 = vadd.f32 %v3893_v21, %v3892_v23  ;;  %v3907_v52 = vld [vmem:[%s8403_s2] sm:$0x1] }
 0x337   :  { %v3896_v16 = vadd.f32 %v3895_v31, %v3894_v11 }
 0x339   :  { %v3898_v41 = vadd.f32 %v3897_v13, %v3896_v16  ;;  %v8629_v13 = vld [vmem:[#allocation12_spill] sm:$0xff] }
 0x33b   :  { %v3899_v48 = vrot.slane %v3898_v41, 4 }
 0x33d   :  { %v3900_v56 = vadd.f32 %v3899_v48, %v3898_v41  ;;  %v8630_v41 = vld [vmem:[#allocation13_spill] sm:$0xff] }
 0x33f   :  { %v3901_v29 = vrot.slane %v3900_v56, 2 }
 0x341   :  { %v3902_v54 = vadd.f32 %v3901_v29, %v3900_v56 }
 0x343   :  { %v3903_v15 = vrot.slane %v3902_v54, 1 }
 0x345   :  { %v3904_v6 = vadd.f32 %v3903_v15, %v3902_v54 }
 0x347   :  { %v3905_v12 = vadd.f32 %v3904_v6, %v3835_v55  ;;  %v8635_v6 = vld [vmem:[#allocation11_spill] sm:$0xff] }
 0x349   :  { %v3906_v39 = vmul.f32 0.001953125, %v3905_v12 }
 0x34b   :  { %v3908_v36 = vadd.f32 1e-05, %v3906_v39  ;;  %v8636_v39 = vld [vmem:[#allocation27_spill] sm:$0xff] }
 0x34d   :  { %5198 = vrsqrt.f32 %v3908_v36 }
 0x357   :  { %v5199_v53 = vpop.eup %5198 }
 0x358   :  { %v3910_v0 = vmul.f32 %v5199_v53, %v3907_v52 }
 0x35a   :  { %v3912_v29 = vmul.f32 %v3910_v0, %v7545_v5  ;;  %v7746_v37 = vrot.slane %v3910_v0, %v3917_v47 }
 0x35c   :  { %v3913_v55 = vsub.f32 %v3911_v3, %v3912_v29  ;;  %v4147_v23 = vmul.f32 %v7746_v37, %v8612_v42  ;;  %v7752_v21 = vmul.f32 %v7746_v37, %v7155_v19  ;;  %v7756_v11 = vmul.f32 %v7746_v37, %v7159_v61 }
 0x35d   :  { %v7760_v31 = vmul.f32 %v7153_v10, %v7746_v37  ;;  %v7764_v5 = vmul.f32 %v7157_v38, %v7746_v37  ;;  %v7768_v16 = vmul.f32 %v7746_v37, %v7252_v58  ;;  %v7772_v19 = vmul.f32 %v7746_v37, %v7259_v35 }
 0x35e   :  { %v7774_v42 = vrot.slane %v3913_v55, %v3917_v47  ;;  %v7778_v61 = vmul.f32 %v7250_v32, %v7746_v37  ;;  %v7782_v10 = vmul.f32 %v7256_v8, %v7746_v37  ;;  %v7786_v38 = vmul.f32 %v7746_v37, %v7365_v43  ;;  %v8632_v43 = vld [vmem:[#allocation19_spill] sm:$0xff]  ;;  %v8639_v55 = vld [vmem:[#allocation24_spill] sm:$0xff] }
 0x35f   :  { %v7790_v58 = vmul.f32 %v7746_v37, %v7373_v2  ;;  %v7794_v35 = vmul.f32 %v7361_v25, %v7746_v37  ;;  %v7798_v32 = vmul.f32 %v8629_v13, %v7746_v37  ;;  %v7802_v8 = vmul.f32 %v7746_v37, %v8630_v41  ;;  %v8633_v2 = vld [vmem:[#allocation28_spill] sm:$0xff]  ;;  %v8634_v25 = vld [vmem:[#allocation14_spill] sm:$0xff] }
 0x360   :  { %v7805_v48 = vadd.f32 %v4147_v23, %v7774_v42  ;;  %v7809_v56 = vmul.f32 %v7746_v37, %v8632_v43  ;;  %v7813_v54 = vmul.f32 %v8633_v2, %v7746_v37  ;;  %v7817_v15 = vmul.f32 %v8634_v25, %v7746_v37  ;;  %v8640_v13 = vld [vmem:[#allocation30_spill] sm:$0xff]  ;;  %v8643_v25 = vld [vmem:[#allocation5_spill] sm:$0xff] }
 0x361   :  { %v7821_v12 = vmul.f32 %v7746_v37, %v8635_v6  ;;  %v7825_v36 = vmul.f32 %v7746_v37, %v8636_v39  ;;  %v3976_v34 = vmul.f32 %v8637_v7, %v7746_v37  ;;  %v3977_v52 = vmul.f32 %v7066_v1, %v7746_v37  ;;  %v8641_v43 = vld [vmem:[#allocation34_spill] sm:$0xff]  ;;  %v8644_v6 = vld [vmem:[#allocation35_spill] sm:$0xff]  ;;  %v8646_v39 = vld [vmem:[#allocation17_spill] sm:$0xff] }
 0x362   :  { %8631 = vst [vmem:[#allocation36_spill] sm:$0xff] %v7805_v48  ;;  %v7833_v47 = vmul.f32 %v7746_v37, %v7174_v22  ;;  %v7837_v53 = vmul.f32 %v7746_v37, %v7187_v28  ;;  %v7841_v0 = vmul.f32 %v7169_v27, %v7746_v37  ;;  %v7845_v3 = vmul.f32 %v7181_v33, %v7746_v37  ;;  %v8642_v2 = vld [vmem:[#allocation6_spill] sm:$0xff]  ;;  %v8652_v48 = vld [vmem:[#allocation23_spill] sm:$0xff] }
 0x363   :  { %v7849_v29 = vmul.f32 %v7746_v37, %v7272_v57  ;;  %v7853_v1 = vmul.f32 %v7746_v37, %v7285_v60  ;;  %v7857_v22 = vmul.f32 %v7267_v40, %v7746_v37  ;;  %v7861_v27 = vmul.f32 %v7279_v46, %v7746_v37  ;;  %v8638_v60 = vld [vmem:[#allocation25_spill] sm:$0xff] }
 0x364   :  { %v7865_v33 = vmul.f32 %v7746_v37, %v7383_v45  ;;  %v7869_v28 = vmul.f32 %v7746_v37, %v7390_v18  ;;  %v7873_v57 = vmul.f32 %v7379_v4, %v7746_v37  ;;  %v7877_v40 = vmul.f32 %v7387_v44, %v7746_v37 }
 0x365   :  { %v7881_v46 = vmul.f32 %v7746_v37, %v7434_v62  ;;  %v7885_v45 = vmul.f32 %v7746_v37, %v8638_v60  ;;  %v7889_v18 = vmul.f32 %v8639_v55, %v7746_v37  ;;  %v7893_v4 = vmul.f32 %v7436_v9, %v7746_v37  ;;  %v8647_v60 = vld [vmem:[#allocation16_spill] sm:$0xff] }
 0x366   :  { %v7897_v44 = vmul.f32 %v7746_v37, %v7466_v20  ;;  %v7901_v62 = vmul.f32 %v7746_v37, %v7472_v26  ;;  %v7905_v23 = vmul.f32 %v7464_v17, %v7746_v37  ;;  %v7909_v41 = vmul.f32 %v8640_v13, %v7746_v37  ;;  %v8649_v13 = vld [vmem:[#allocation18_spill] sm:$0xff] }
 0x367   :  { %v7913_v9 = vmul.f32 %v7746_v37, %v8641_v43  ;;  %v7917_v20 = vmul.f32 %v7746_v37, %v8642_v2  ;;  %v7921_v26 = vmul.f32 %v8643_v25, %v7746_v37  ;;  %v7925_v17 = vmul.f32 %v8644_v6, %v7746_v37  ;;  %v8651_v2 = vld [vmem:[#allocation21_spill] sm:$0xff] }
 0x368   :  { %v7929_v7 = vmul.f32 %v7746_v37, %v8646_v39  ;;  %v7933_v55 = vmul.f32 %v8647_v60, %v7746_v37  ;;  %v7937_v43 = vmul.f32 %v8649_v13, %v7746_v37  ;;  %v7941_v25 = vmul.f32 %v7746_v37, %v8651_v2 }
 0x369   :  { %8645 = vst [vmem:[#allocation22_spill] sm:$0xff] %v7925_v17  ;;  %v7945_v6 = vmul.f32 %v7746_v37, %v8652_v48  ;;  %v8653_v17 = vld [vmem:[#allocation20_spill] sm:$0xff]  ;;  %v7953_v60 = vmul.f32 %v8616_v30, %v7746_v37  ;;  %v7965_v48 = vmul.f32 %v8619_v50, %v7746_v37  ;;  %v7973_v30 = vmul.f32 %v7746_v37, %v8621_v59 }
 0x36a   :  { %8648 = vst [vmem:[#allocation26_spill] sm:$0xff] %v7933_v55  ;;  %8650 = vst [vmem:[#allocation3_spill] sm:$0xff] %v7937_v43  ;;  %v7949_v39 = vmul.f32 %v8653_v17, %v7746_v37  ;;  %v8654_v55 = vld [vmem:[#allocation2_spill] sm:$0xff]  ;;  %v8655_v43 = vld [vmem:[#allocation29_spill] sm:$0xff]  ;;  %v7969_v17 = vmul.f32 %v8620_v24, %v7746_v37  ;;  %v7985_v50 = vmul.f32 %v8624_v49, %v7746_v37 }
 0x36b   :  { %v7957_v13 = vmul.f32 %v7746_v37, %v8654_v55  ;;  %v7961_v2 = vmul.f32 %v7746_v37, %v8655_v43  ;;  %8657 = vst [vmem:[#allocation33_spill] sm:$0xff] %v7973_v30  ;;  %v7977_v55 = vmul.f32 %v7746_v37, %v8622_v63  ;;  %v7981_v43 = vmul.f32 %v8623_v14, %v7746_v37  ;;  %v8661_v30 = vld [vmem:[#allocation7_spill] sm:$0xff] }
 0x36c   :  { %8656 = vst [vmem:[#allocation32_spill] sm:$0xff] %v7969_v17  ;;  %v7989_v24 = vmul.f32 %v7746_v37, %v8625_v51  ;;  %v8660_v17 = vld [vmem:[#allocation15_spill] sm:$0xff]  ;;  %v7997_v63 = vmul.f32 %v8661_v30, %v7746_v37  ;;  %v3993_v49 = vadd.f32 %v3977_v52, %v7774_v42  ;;  %v8007_v51 = vadd.f32 %v7774_v42, %v7752_v21 }
 0x36d   :  { %8658 = vst [vmem:[#allocation31_spill] sm:$0xff] %v7977_v55  ;;  %8659 = vst [vmem:[#allocation4_spill] sm:$0xff] %v7981_v43  ;;  %v7993_v59 = vmul.f32 %v7746_v37, %v8660_v17  ;;  %v8662_v55 = vld [vmem:[#allocation9_spill] sm:$0xff]  ;;  %v3992_v43 = vadd.f32 %v3976_v34, %v7774_v42  ;;  %v8011_v17 = vadd.f32 %v7774_v42, %v7756_v11 }
 0x36e   :  { %v8001_v14 = vmul.f32 %v8662_v55, %v7746_v37  ;;  %v8015_v30 = vadd.f32 %v7774_v42, %v7760_v31  ;;  %v8019_v37 = vadd.f32 %v7774_v42, %v7764_v5  ;;  %v8023_v34 = vadd.f32 %v7774_v42, %v7768_v16 }
 0x36f   :  { %v8027_v21 = vadd.f32 %v7774_v42, %v7772_v19  ;;  %v4008_v52 = vmax.f32 %v3992_v43, 0.0  ;;  %v4009_v55 = vmax.f32 %v3993_v49, 0.0  ;;  %v8031_v11 = vadd.f32 %v7774_v42, %v7778_v61 }
 0x370   :  { %v8035_v31 = vadd.f32 %v7774_v42, %v7782_v10  ;;  %v8039_v5 = vadd.f32 %v7774_v42, %v7786_v38  ;;  %v8043_v16 = vadd.f32 %v7774_v42, %v7790_v58  ;;  %v8047_v19 = vadd.f32 %v7774_v42, %v7794_v35 }
 0x371   :  { %v8051_v61 = vadd.f32 %v7774_v42, %v7798_v32  ;;  %v4963_v43 = vpack.i.bf16 %v4009_v55, %v4008_v52  ;;  %v8055_v10 = vadd.f32 %v7774_v42, %v7802_v8  ;;  %v8059_v38 = vadd.f32 %v7774_v42, %v7809_v56  ;;  %v8677_v52 = vld [vmem:[#allocation26_spill] sm:$0xff]  ;;  %v8679_v55 = vld [vmem:[#allocation3_spill] sm:$0xff] }
 0x372   :  { %v8063_v58 = vadd.f32 %v7774_v42, %v7813_v54  ;;  %v8067_v35 = vadd.f32 %v7774_v42, %v7817_v15  ;;  %v3990_v32 = vadd.f32 %v7821_v12, %v7774_v42  ;;  %v3991_v49 = vadd.f32 %v7825_v36, %v7774_v42 }
 0x373   :  { %v8075_v8 = vadd.f32 %v7833_v47, %v7774_v42  ;;  %4964 = vrot.lane.b32.xlu1 %v4963_v43, %s5232_s5  ;;  %v8080_v56 = vadd.f32 %v7837_v53, %v7774_v42  ;;  %v8084_v54 = vadd.f32 %v7841_v0, %v7774_v42  ;;  %v8088_v15 = vadd.f32 %v7845_v3, %v7774_v42 }
 0x374   :  { %v8092_v12 = vadd.f32 %v7849_v29, %v7774_v42  ;;  %v8096_v36 = vadd.f32 %v7853_v1, %v7774_v42  ;;  %v8100_v47 = vadd.f32 %v7857_v22, %v7774_v42  ;;  %v8104_v53 = vadd.f32 %v7861_v27, %v7774_v42 }
 0x375   :  { %v8108_v0 = vadd.f32 %v7865_v33, %v7774_v42  ;;  %v8112_v3 = vadd.f32 %v7869_v28, %v7774_v42  ;;  %v8116_v29 = vadd.f32 %v7873_v57, %v7774_v42  ;;  %v8120_v1 = vadd.f32 %v7877_v40, %v7774_v42 }
 0x376   :  { %v8124_v22 = vadd.f32 %v7881_v46, %v7774_v42  ;;  %v8128_v27 = vadd.f32 %v7885_v45, %v7774_v42  ;;  %v8132_v33 = vadd.f32 %v7889_v18, %v7774_v42  ;;  %v8136_v28 = vadd.f32 %v7893_v4, %v7774_v42 }
 0x377   :  { %v8140_v57 = vadd.f32 %v7897_v44, %v7774_v42  ;;  %v8144_v40 = vadd.f32 %v7901_v62, %v7774_v42  ;;  %v8148_v46 = vadd.f32 %v7905_v23, %v7774_v42  ;;  %v8152_v45 = vadd.f32 %v7909_v41, %v7774_v42  ;;  %v8674_v62 = vld [vmem:[#allocation22_spill] sm:$0xff] }
 0x378   :  { %8663 = vst [vmem:[#allocation8_spill] sm:$0xff] %v8124_v22  ;;  %8664 = vst [vmem:[#allocation12_spill] sm:$0xff] %v8128_v27  ;;  %v8156_v18 = vadd.f32 %v7913_v9, %v7774_v42  ;;  %v8160_v4 = vadd.f32 %v7917_v20, %v7774_v42  ;;  %v8164_v44 = vadd.f32 %v7921_v26, %v7774_v42 }
 0x379   :  { %8665 = vst [vmem:[#allocation13_spill] sm:$0xff] %v8132_v33  ;;  %8666 = vst [vmem:[#allocation19_spill] sm:$0xff] %v8136_v28  ;;  %v8168_v23 = vadd.f32 %v8674_v62, %v7774_v42  ;;  %v8172_v41 = vadd.f32 %v7929_v7, %v7774_v42  ;;  %v8176_v9 = vadd.f32 %v8677_v52, %v7774_v42 }
 0x37a   :  { %8667 = vst [vmem:[#allocation28_spill] sm:$0xff] %v8140_v57  ;;  %8668 = vst [vmem:[#allocation14_spill] sm:$0xff] %v8144_v40  ;;  %v8180_v20 = vadd.f32 %v8679_v55, %v7774_v42  ;;  %v4198_v26 = vadd.f32 %v7941_v25, %v7774_v42  ;;  %v4199_v43 = vadd.f32 %v7945_v6, %v7774_v42  ;;  %v8681_v25 = vld [vmem:[#allocation32_spill] sm:$0xff]  ;;  %v8682_v6 = vld [vmem:[#allocation33_spill] sm:$0xff] }
 0x37b   :  { %8669 = vst [vmem:[#allocation11_spill] sm:$0xff] %v8148_v46  ;;  %8670 = vst [vmem:[#allocation27_spill] sm:$0xff] %v8152_v45  ;;  %v4200_v62 = vadd.f32 %v7949_v39, %v7774_v42  ;;  %v4201_v7 = vadd.f32 %v7953_v60, %v7774_v42  ;;  %v4202_v52 = vadd.f32 %v7957_v13, %v7774_v42  ;;  %v8683_v39 = vld [vmem:[#allocation31_spill] sm:$0xff]  ;;  %v8684_v60 = vld [vmem:[#allocation4_spill] sm:$0xff]  ;;  %v4013_v45 = vmax.f32 %v8088_v15, 0.0 }
 0x37c   :  { %8671 = vst [vmem:[#allocation10_spill] sm:$0xff] %v8156_v18  ;;  %8672 = vst [vmem:[#allocation25_spill] sm:$0xff] %v8160_v4  ;;  %v4204_v55 = vadd.f32 %v7965_v48, %v7774_v42  ;;  %v4209_v13 = vadd.f32 %v7985_v50, %v7774_v42  ;;  %v4211_v48 = vadd.f32 %v7993_v59, %v7774_v42  ;;  %v4006_v4 = vmax.f32 %v3990_v32, 0.0 }
 0x37d   :  { %8673 = vst [vmem:[#allocation24_spill] sm:$0xff] %v8164_v44  ;;  %8675 = vst [vmem:[#allocation30_spill] sm:$0xff] %v8168_v23  ;;  %v4207_v23 = vadd.f32 %v8683_v39, %v7774_v42  ;;  %v4208_v44 = vadd.f32 %v8684_v60, %v7774_v42  ;;  %v4007_v39 = vmax.f32 %v3991_v49, 0.0  ;;  %v4010_v60 = vmax.f32 %v8075_v8, 0.0 }
 0x37e   :  { %8676 = vst [vmem:[#allocation34_spill] sm:$0xff] %v8172_v41  ;;  %8678 = vst [vmem:[#allocation6_spill] sm:$0xff] %v8176_v9  ;;  %v4203_v9 = vadd.f32 %v7961_v2, %v7774_v42  ;;  %v4206_v41 = vadd.f32 %v8682_v6, %v7774_v42  ;;  %v4210_v2 = vadd.f32 %v7989_v24, %v7774_v42  ;;  %v4011_v50 = vmax.f32 %v8080_v56, 0.0 }
 0x37f   :  { %8680 = vst [vmem:[#allocation5_spill] sm:$0xff] %v8180_v20  ;;  %v4205_v20 = vadd.f32 %v8681_v25, %v7774_v42  ;;  %v4212_v25 = vadd.f32 %v7997_v63, %v7774_v42  ;;  %v4213_v6 = vadd.f32 %v8001_v14, %v7774_v42  ;;  %v4958_v18 = vpack.i.bf16 %v4007_v39, %v4006_v4 }
 0x380   :  { %v4012_v24 = vmax.f32 %v8084_v54, 0.0  ;;  %v4014_v59 = vmax.f32 %v8092_v12, 0.0  ;;  %v4015_v63 = vmax.f32 %v8096_v36, 0.0  ;;  %v4016_v46 = vmax.f32 %v8100_v47, 0.0 }
 0x381   :  { %4959 = vrot.lane.b32.xlu0 %v4958_v18, %s5232_s5  ;;  %v4017_v42 = vmax.f32 %v8104_v53, 0.0  ;;  %v4018_v14 = vmax.f32 %v8108_v0, 0.0  ;;  %v4019_v32 = vmax.f32 %v8112_v3, 0.0  ;;  %v4020_v49 = vmax.f32 %v8116_v29, 0.0 }
 0x382   :  { %v4021_v8 = vmax.f32 %v8120_v1, 0.0  ;;  %v4214_v56 = vmax.f32 %v4198_v26, 0.0  ;;  %v4215_v54 = vmax.f32 %v4199_v43, 0.0  ;;  %v4216_v18 = vmax.f32 %v4200_v62, 0.0 }
 0x383   :  { %v4217_v15 = vmax.f32 %v4201_v7, 0.0  ;;  %v4218_v4 = vmax.f32 %v4202_v52, 0.0  ;;  %v4219_v12 = vmax.f32 %v4203_v9, 0.0  ;;  %v4220_v39 = vmax.f32 %v4204_v55, 0.0 }
 0x384   :  { %v4221_v36 = vmax.f32 %v4205_v20, 0.0  ;;  %v4222_v40 = vmax.f32 %v4206_v41, 0.0  ;;  %v4223_v47 = vmax.f32 %v4207_v23, 0.0  ;;  %v4224_v57 = vmax.f32 %v4208_v44, 0.0 }
 0x385   :  { %v4225_v53 = vmax.f32 %v4209_v13, 0.0  ;;  %v4226_v28 = vmax.f32 %v4210_v2, 0.0  ;;  %v4227_v0 = vmax.f32 %v4211_v48, 0.0  ;;  %v4228_v33 = vmax.f32 %v4212_v25, 0.0 }
 0x386   :  { %v4229_v3 = vmax.f32 %v4213_v6, 0.0  ;;  %v4973_v27 = vpack.i.bf16 %v4013_v45, %v4012_v24  ;;  %v4968_v29 = vpack.i.bf16 %v4011_v50, %v4010_v60  ;;  %v4983_v22 = vpack.i.bf16 %v4017_v42, %v4016_v46 }
 0x387   :  { %v4978_v1 = vpack.i.bf16 %v4015_v63, %v4014_v59  ;;  %v5028_v26 = vpack.i.bf16 %v4227_v0, %v4226_v28  ;;  %v4993_v43 = vpack.i.bf16 %v4021_v8, %v4020_v49  ;;  %v4988_v62 = vpack.i.bf16 %v4019_v32, %v4018_v14 }
 0x388   :  { %v5003_v7 = vpack.i.bf16 %v4217_v15, %v4216_v18  ;;  %4974 = vrot.lane.b32.xlu1 %v4973_v27, %s5232_s5  ;;  %4969 = vrot.lane.b32.xlu0 %v4968_v29, %s5232_s5  ;;  %v4998_v41 = vpack.i.bf16 %v4215_v54, %v4214_v56  ;;  %v5013_v23 = vpack.i.bf16 %v4221_v36, %v4220_v39  ;;  %v3960_v27 = vmax.f32 %v8015_v30, 0.0 }
 0x389   :  { %v5008_v44 = vpack.i.bf16 %v4219_v12, %v4218_v4  ;;  %v5023_v9 = vpack.i.bf16 %v4225_v53, %v4224_v57  ;;  %v5018_v20 = vpack.i.bf16 %v4223_v47, %v4222_v40  ;;  %v5033_v52 = vpack.i.bf16 %v4229_v3, %v4228_v33 }
 0x38a   :  { %v3961_v33 = vmax.f32 %v8019_v37, 0.0  ;;  %v3958_v30 = vmax.f32 %v8007_v51, 0.0  ;;  %v3959_v37 = vmax.f32 %v8011_v17, 0.0  ;;  %v3962_v51 = vmax.f32 %v8023_v34, 0.0 }
 0x38b   :  { %v3963_v17 = vmax.f32 %v8027_v21, 0.0  ;;  %v3964_v24 = vmax.f32 %v8031_v11, 0.0  ;;  %v3965_v59 = vmax.f32 %v8035_v31, 0.0  ;;  %v3966_v56 = vmax.f32 %v8039_v5, 0.0 }
 0x38c   :  { %4984 = vrot.lane.b32.xlu1 %v4983_v22, %s5232_s5  ;;  %4979 = vrot.lane.b32.xlu0 %v4978_v1, %s5232_s5  ;;  %v3967_v54 = vmax.f32 %v8043_v16, 0.0  ;;  %v3968_v18 = vmax.f32 %v8047_v19, 0.0  ;;  %v3969_v34 = vmax.f32 %v8051_v61, 0.0  ;;  %v3970_v61 = vmax.f32 %v8055_v10, 0.0 }
 0x38d   :  { %v3971_v3 = vmax.f32 %v8059_v38, 0.0  ;;  %v3972_v29 = vmax.f32 %v8063_v58, 0.0  ;;  %v3973_v1 = vmax.f32 %v8067_v35, 0.0 }
 0x390   :  { %4994 = vrot.lane.b32.xlu1 %v4993_v43, %s5232_s5  ;;  %4989 = vrot.lane.b32.xlu0 %v4988_v62, %s5232_s5 }
 0x394   :  { %5004 = vrot.lane.b32.xlu1 %v5003_v7, %s5232_s5  ;;  %4999 = vrot.lane.b32.xlu0 %v4998_v41, %s5232_s5 }
 0x398   :  { %5014 = vrot.lane.b32.xlu1 %v5013_v23, %s5232_s5  ;;  %5009 = vrot.lane.b32.xlu0 %v5008_v44, %s5232_s5 }
 0x39c   :  { %5024 = vrot.lane.b32.xlu1 %v5023_v9, %s5232_s5  ;;  %5019 = vrot.lane.b32.xlu0 %v5018_v20, %s5232_s5 }
 0x3a0   :  { %5034 = vrot.lane.b32.xlu1 %v5033_v52, %s5232_s5  ;;  %5029 = vrot.lane.b32.xlu0 %v5028_v26, %s5232_s5 }
 0x3e5   :  { %v4965_v22 = vpop.permute.xlu1 %4964 }
 0x3e6   :  { %v4967_v28 = vunpack.i.h.bf16 %v4965_v22  ;;  %v4966_v57 = vunpack.i.l.bf16 %v4965_v22  ;;  %v8685_v22 = vld [vmem:[#allocation8_spill] sm:$0xff] }
 0x3e8   :  { %v4088_v40 = vsel %vm709_vm1, %v3960_v27, %v4966_v57  ;;  %v4089_v46 = vsel %vm709_vm1, %v3961_v33, %v4967_v28  ;;  %v4166_v27 = vmax.f32 %v8685_v22, 0.0  ;;  %v8686_v33 = vld [vmem:[#allocation12_spill] sm:$0xff]  ;;  %v8687_v57 = vld [vmem:[#allocation13_spill] sm:$0xff] }
 0x3e9   :  { %v4104_v45 = vpack.c.bf16 %v4088_v40, %v4088_v40  ;;  %v4105_v55 = vpack.c.bf16 %v4089_v46, %v4089_v46  ;;  %v4167_v28 = vmax.f32 %v8686_v33, 0.0  ;;  %v4168_v40 = vmax.f32 %v8687_v57, 0.0  ;;  %v8688_v46 = vld [vmem:[#allocation19_spill] sm:$0xff]  ;;  %v8697_v33 = vld [vmem:[#allocation36_spill] sm:$0xff]  ;;  %v8698_v57 = vld [vmem:[#allocation34_spill] sm:$0xff] }
 0x3eb   :  { %4120 = vst [vmem:[%s8405_s4 + $0x10] sm:$0xf] %v4104_v45  ;;  %4121 = vst [vmem:[%s8405_s4 + $0x18] sm:$0xf] %v4105_v55  ;;  %v4169_v45 = vmax.f32 %v8688_v46, 0.0  ;;  %v8699_v46 = vld [vmem:[#allocation6_spill] sm:$0xff] }
 0x3f3   :  { %v4960_v13 = vpop.permute.xlu0 %4959 }
 0x3f4   :  { %v4962_v2 = vunpack.i.h.bf16 %v4960_v13  ;;  %v4961_v48 = vunpack.i.l.bf16 %v4960_v13 }
 0x3f6   :  { %v4086_v25 = vsel %vm709_vm1, %v3958_v30, %v4961_v48  ;;  %v4087_v6 = vsel %vm709_vm1, %v3959_v37, %v4962_v2 }
 0x3f7   :  { %v4102_v60 = vpack.c.bf16 %v4086_v25, %v4086_v25  ;;  %v4103_v50 = vpack.c.bf16 %v4087_v6, %v4087_v6 }
 0x3f9   :  { %4118 = vst [vmem:[%s8405_s4] sm:$0xf] %v4102_v60  ;;  %4119 = vst [vmem:[%s8405_s4 + $0x8] sm:$0xf] %v4103_v50 }
 0x3fa   :  { %v4975_v63 = vpop.permute.xlu1 %4974  ;;  %v4970_v42 = vpop.permute.xlu0 %4969 }
 0x3fb   :  { %v4977_v14 = vunpack.i.h.bf16 %v4975_v63  ;;  %v4976_v32 = vunpack.i.l.bf16 %v4975_v63  ;;  %v4972_v49 = vunpack.i.h.bf16 %v4970_v42  ;;  %v4971_v8 = vunpack.i.l.bf16 %v4970_v42  ;;  %v8689_v63 = vld [vmem:[#allocation28_spill] sm:$0xff] }
 0x3fc   :  { %v4170_v42 = vmax.f32 %v8689_v63, 0.0 }
 0x3fd   :  { %v4092_v21 = vsel %vm709_vm1, %v3964_v24, %v4976_v32  ;;  %v4093_v11 = vsel %vm709_vm1, %v3965_v59, %v4977_v14  ;;  %v4090_v31 = vsel %vm709_vm1, %v3962_v51, %v4971_v8  ;;  %v4091_v15 = vsel %vm709_vm1, %v3963_v17, %v4972_v49  ;;  %v8690_v14 = vld [vmem:[#allocation14_spill] sm:$0xff]  ;;  %v8691_v49 = vld [vmem:[#allocation11_spill] sm:$0xff] }
 0x3fe   :  { %v4108_v4 = vpack.c.bf16 %v4092_v21, %v4092_v21  ;;  %v4109_v12 = vpack.c.bf16 %v4093_v11, %v4093_v11  ;;  %v4106_v39 = vpack.c.bf16 %v4090_v31, %v4090_v31  ;;  %v4107_v36 = vpack.c.bf16 %v4091_v15, %v4091_v15  ;;  %v4985_v47 = vpop.permute.xlu1 %4984  ;;  %v4980_v5 = vpop.permute.xlu0 %4979 }
 0x3ff   :  { %v4987_v53 = vunpack.i.h.bf16 %v4985_v47  ;;  %v4986_v16 = vunpack.i.l.bf16 %v4985_v47  ;;  %v4982_v0 = vunpack.i.h.bf16 %v4980_v5  ;;  %v4981_v19 = vunpack.i.l.bf16 %v4980_v5 }
 0x400   :  { %4124 = vst [vmem:[%s8405_s4 + $0x30] sm:$0xf] %v4108_v4  ;;  %4125 = vst [vmem:[%s8405_s4 + $0x38] sm:$0xf] %v4109_v12  ;;  %v4171_v32 = vmax.f32 %v8690_v14, 0.0  ;;  %v4172_v8 = vmax.f32 %v8691_v49, 0.0 }
 0x401   :  { %4122 = vst [vmem:[%s8405_s4 + $0x20] sm:$0xf] %v4106_v39  ;;  %4123 = vst [vmem:[%s8405_s4 + $0x28] sm:$0xf] %v4107_v36  ;;  %v4096_v10 = vsel %vm709_vm1, %v3968_v18, %v4986_v16  ;;  %v4097_v38 = vsel %vm709_vm1, %v3969_v34, %v4987_v53  ;;  %v4094_v58 = vsel %vm709_vm1, %v3966_v56, %v4981_v19  ;;  %v8692_v56 = vld [vmem:[#allocation27_spill] sm:$0xff] }
 0x402   :  { %v4095_v35 = vsel %vm709_vm1, %v3967_v54, %v4982_v0  ;;  %v4112_v26 = vpack.c.bf16 %v4096_v10, %v4096_v10  ;;  %v4113_v43 = vpack.c.bf16 %v4097_v38, %v4097_v38  ;;  %v4110_v62 = vpack.c.bf16 %v4094_v58, %v4094_v58  ;;  %v4995_v41 = vpop.permute.xlu1 %4994  ;;  %v4990_v23 = vpop.permute.xlu0 %4989  ;;  %v8693_v0 = vld [vmem:[#allocation10_spill] sm:$0xff] }
 0x403   :  { %v4111_v7 = vpack.c.bf16 %v4095_v35, %v4095_v35  ;;  %v4997_v44 = vunpack.i.h.bf16 %v4995_v41  ;;  %v4996_v9 = vunpack.i.l.bf16 %v4995_v41  ;;  %v4992_v20 = vunpack.i.h.bf16 %v4990_v23  ;;  %v8696_v10 = vld [vmem:[#allocation30_spill] sm:$0xff] }
 0x404   :  { %v4991_v52 = vunpack.i.l.bf16 %v4990_v23  ;;  %4128 = vst [vmem:[%s8405_s4 + $0x50] sm:$0xf] %v4112_v26  ;;  %4129 = vst [vmem:[%s8405_s4 + $0x58] sm:$0xf] %v4113_v43  ;;  %v4173_v54 = vmax.f32 %v8692_v56, 0.0  ;;  %v4174_v19 = vmax.f32 %v8693_v0, 0.0 }
 0x405   :  { %4126 = vst [vmem:[%s8405_s4 + $0x40] sm:$0xf] %v4110_v62  ;;  %4127 = vst [vmem:[%s8405_s4 + $0x48] sm:$0xf] %v4111_v7  ;;  %v4100_v55 = vsel %vm709_vm1, %v3972_v29, %v4996_v9  ;;  %v4101_v13 = vsel %vm709_vm1, %v3973_v1, %v4997_v44  ;;  %v4099_v37 = vsel %vm709_vm1, %v3971_v3, %v4992_v20  ;;  %v8695_v29 = vld [vmem:[#allocation24_spill] sm:$0xff]  ;;  %v4177_v38 = vmax.f32 %v8696_v10, 0.0 }
 0x406   :  { %v4098_v30 = vsel %vm709_vm1, %v3970_v61, %v4991_v52  ;;  %v4116_v2 = vpack.c.bf16 %v4100_v55, %v4100_v55  ;;  %v4117_v48 = vpack.c.bf16 %v4101_v13, %v4101_v13  ;;  %v4115_v6 = vpack.c.bf16 %v4099_v37, %v4099_v37  ;;  %v5005_v60 = vpop.permute.xlu1 %5004  ;;  %v5000_v50 = vpop.permute.xlu0 %4999  ;;  %v8694_v61 = vld [vmem:[#allocation25_spill] sm:$0xff] }
 0x407   :  { %v4114_v25 = vpack.c.bf16 %v4098_v30, %v4098_v30  ;;  %v5007_v51 = vunpack.i.h.bf16 %v5005_v60  ;;  %v5006_v17 = vunpack.i.l.bf16 %v5005_v60  ;;  %v5002_v24 = vunpack.i.h.bf16 %v5000_v50  ;;  %v8700_v55 = vld [vmem:[#allocation5_spill] sm:$0xff] }
 0x408   :  { %v5001_v59 = vunpack.i.l.bf16 %v5000_v50  ;;  %4132 = vst [vmem:[%s8405_s4 + $0x70] sm:$0xf] %v4116_v2  ;;  %4133 = vst [vmem:[%s8405_s4 + $0x78] sm:$0xf] %v4117_v48  ;;  %v4175_v3 = vmax.f32 %v8694_v61, 0.0  ;;  %v4176_v1 = vmax.f32 %v8695_v29, 0.0 }
 0x409   :  { %4130 = vst [vmem:[%s8405_s4 + $0x60] sm:$0xf] %v4114_v25  ;;  %4131 = vst [vmem:[%s8405_s4 + $0x68] sm:$0xf] %v4115_v6  ;;  %v4297_v18 = vsel %vm709_vm1, %v4169_v45, %v5007_v51  ;;  %v4296_v34 = vsel %vm709_vm1, %v4168_v40, %v5006_v17  ;;  %v4295_v21 = vsel %vm709_vm1, %v4167_v28, %v5002_v24  ;;  %v4179_v28 = vmax.f32 %v8697_v33, 0.0 }
 0x40a   :  { %v4294_v11 = vsel %vm709_vm1, %v4166_v27, %v5001_v59  ;;  %v4313_v31 = vpack.c.bf16 %v4297_v18, %v4297_v18  ;;  %v4312_v15 = vpack.c.bf16 %v4296_v34, %v4296_v34  ;;  %v4311_v4 = vpack.c.bf16 %v4295_v21, %v4295_v21  ;;  %v5015_v39 = vpop.permute.xlu1 %5014  ;;  %v5010_v36 = vpop.permute.xlu0 %5009 }
 0x40b   :  { %v4310_v12 = vpack.c.bf16 %v4294_v11, %v4294_v11  ;;  %v5017_v47 = vunpack.i.h.bf16 %v5015_v39  ;;  %v5016_v5 = vunpack.i.l.bf16 %v5015_v39  ;;  %v5012_v53 = vunpack.i.h.bf16 %v5010_v36 }
 0x40c   :  { %v5011_v16 = vunpack.i.l.bf16 %v5010_v36  ;;  %4750 = vst [vmem:[%s8405_s4 + $0x1c] sm:$0xf] %v4313_v31  ;;  %4749 = vst [vmem:[%s8405_s4 + $0x14] sm:$0xf] %v4312_v15  ;;  %v4178_v40 = vmax.f32 %v8698_v57, 0.0  ;;  %v4180_v45 = vmax.f32 %v8699_v46, 0.0 }
 0x40d   :  { %4748 = vst [vmem:[%s8405_s4 + $0xc] sm:$0xf] %v4311_v4  ;;  %4747 = vst [vmem:[%s8405_s4 + $0x4] sm:$0xf] %v4310_v12  ;;  %v4301_v58 = vsel %vm709_vm1, %v4173_v54, %v5017_v47  ;;  %v4300_v35 = vsel %vm709_vm1, %v4172_v8, %v5016_v5  ;;  %v4299_v26 = vsel %vm709_vm1, %v4171_v32, %v5012_v53  ;;  %v4181_v13 = vmax.f32 %v8700_v55, 0.0 }
 0x40e   :  { %v4298_v43 = vsel %vm709_vm1, %v4170_v42, %v5011_v16  ;;  %v4317_v62 = vpack.c.bf16 %v4301_v58, %v4301_v58  ;;  %v4316_v7 = vpack.c.bf16 %v4300_v35, %v4300_v35  ;;  %v4315_v41 = vpack.c.bf16 %v4299_v26, %v4299_v26  ;;  %v5025_v44 = vpop.permute.xlu1 %5024  ;;  %v5020_v9 = vpop.permute.xlu0 %5019 }
 0x40f   :  { %v4314_v23 = vpack.c.bf16 %v4298_v43, %v4298_v43  ;;  %v5027_v20 = vunpack.i.h.bf16 %v5025_v44  ;;  %v5026_v52 = vunpack.i.l.bf16 %v5025_v44  ;;  %v5022_v22 = vunpack.i.h.bf16 %v5020_v9 }
 0x410   :  { %v5021_v27 = vunpack.i.l.bf16 %v5020_v9  ;;  %4754 = vst [vmem:[%s8405_s4 + $0x3c] sm:$0xf] %v4317_v62  ;;  %4753 = vst [vmem:[%s8405_s4 + $0x34] sm:$0xf] %v4316_v7 }
 0x411   :  { %4752 = vst [vmem:[%s8405_s4 + $0x2c] sm:$0xf] %v4315_v41  ;;  %4751 = vst [vmem:[%s8405_s4 + $0x24] sm:$0xf] %v4314_v23  ;;  %v4305_v30 = vsel %vm709_vm1, %v4177_v38, %v5027_v20  ;;  %v4304_v37 = vsel %vm709_vm1, %v4176_v1, %v5026_v52  ;;  %v4303_v2 = vsel %vm709_vm1, %v4175_v3, %v5022_v22 }
 0x412   :  { %v4302_v48 = vsel %vm709_vm1, %v4174_v19, %v5021_v27  ;;  %v4321_v25 = vpack.c.bf16 %v4305_v30, %v4305_v30  ;;  %v4320_v6 = vpack.c.bf16 %v4304_v37, %v4304_v37  ;;  %v4319_v60 = vpack.c.bf16 %v4303_v2, %v4303_v2  ;;  %v5035_v51 = vpop.permute.xlu1 %5034  ;;  %v5030_v17 = vpop.permute.xlu0 %5029 }
 0x413   :  { %v4318_v50 = vpack.c.bf16 %v4302_v48, %v4302_v48  ;;  %v5037_v24 = vunpack.i.h.bf16 %v5035_v51  ;;  %v5036_v59 = vunpack.i.l.bf16 %v5035_v51  ;;  %v5032_v63 = vunpack.i.h.bf16 %v5030_v17 }
 0x414   :  { %v5031_v42 = vunpack.i.l.bf16 %v5030_v17  ;;  %4758 = vst [vmem:[%s8405_s4 + $0x5c] sm:$0xf] %v4321_v25  ;;  %4757 = vst [vmem:[%s8405_s4 + $0x54] sm:$0xf] %v4320_v6 }
 0x415   :  { %4756 = vst [vmem:[%s8405_s4 + $0x4c] sm:$0xf] %v4319_v60  ;;  %4755 = vst [vmem:[%s8405_s4 + $0x44] sm:$0xf] %v4318_v50  ;;  %v4309_v14 = vsel %vm709_vm1, %v4181_v13, %v5037_v24  ;;  %v4308_v32 = vsel %vm709_vm1, %v4180_v45, %v5036_v59  ;;  %v4307_v49 = vsel %vm709_vm1, %v4179_v28, %v5032_v63 }
 0x416   :  { %v4306_v8 = vsel %vm709_vm1, %v4178_v40, %v5031_v42  ;;  %v4325_v56 = vpack.c.bf16 %v4309_v14, %v4309_v14  ;;  %v4324_v54 = vpack.c.bf16 %v4308_v32, %v4308_v32  ;;  %v4323_v18 = vpack.c.bf16 %v4307_v49, %v4307_v49 }
 0x417   :  { %v4322_v34 = vpack.c.bf16 %v4306_v8, %v4306_v8 }
 0x418   :  { %4762 = vst [vmem:[%s8405_s4 + $0x7c] sm:$0xf] %v4325_v56  ;;  %4761 = vst [vmem:[%s8405_s4 + $0x74] sm:$0xf] %v4324_v54 }
 0x419   :  { %4760 = vst [vmem:[%s8405_s4 + $0x6c] sm:$0xf] %v4323_v18  ;;  %4759 = vst [vmem:[%s8405_s4 + $0x64] sm:$0xf] %v4322_v34 }

// kernel: vae_forward.9
= control target key start
LH: loop header
LB: loop body
LE: loop exit
PB: predicated region body
PF: predicated region fallthrough
CT: control target
= control target key end

     0   :  { %s4011_s12 = smov 0   ;;  %s5625_s0 = inlined_call_operand.vmem [shape: bf16[2,18,18,64], index: 0, kind: input, shape index: {}]   ;;  %s5626_s1 = inlined_call_operand.vmem [shape: bf16[2,2,3,256], index: 1, kind: input, shape index: {}]   ;;  %s5627_s2 = inlined_call_operand.vmem [shape: f32[3,1], index: 2, kind: input, shape index: {}]   ;;  %s5628_s3 = inlined_call_operand.vmem [shape: f32[2,2,2,3,256], index: 3, kind: output, shape index: {}]  }
   0x1 LB: > { %s3450_s13 = sadd.s32 4294967295, %s3987_s12   ;;  %p3454_p0 = scmp.ge.s32.totalorder %s3987_s12, 1  ;;  %s3987_s12 = sphi %s4011_s12, %s13_s12  }
   0x2   : > { %p137_p1 = scmp.lt.s32.totalorder %s3987_s12, 3 }
   0x4   : > { %p138_p2 = pnand %p3454_p0, %p137_p1 }
   0x6   : > { %141 = sbr.rel (%p138_p2) target bundleno = 715 (0x2cb), region = 32 }
   0xd   : > { %p161_p3 = scmp.lt.s32.totalorder %s3450_s13, 1  ;;  %vm494_vm0 = vsmask.f32 7424  ;;  %s3989_s18 = smov 64   ;;  %vm1071_vm1 = vcmask 523264  }
   0xf   : > { %s5728_s13 = smov (!%p161_p3, %s3450_s13), 1 }
  0x10   : > { %s3751_s14 = smul.u32 216, %s5728_s13  ;;  %s3750_s29 = sshll.u32 %s5728_s13, 5 }
  0x11   : > { %s5616_s5 = scalar_lea.vmem %s5628_s3, %s3750_s29 }
  0x12   : > { %s4025_s17 = scalar_lea.vmem %s5625_s0, %s3751_s14 }
  0x13   : > { %v3763_v0 = vld [vmem:[%s4025_s17 + $0x14] ss:$0 sps:$4 sm:$0x11]   ;;  %v3764_v1 = vld [vmem:[%s4025_s17 + $0x20] ss:$0 sps:$4 sm:$0x11]  }
  0x14   : > { %v1571_v2 = vshrl.u32 %v3763_v0, 16  ;;  %v3765_v3 = vld [vmem:[%s4025_s17 + $0x8] ss:$0 sps:$4 sm:$0x11]   ;;  %v1581_v4 = vshrl.u32 %v3764_v1, 16  ;;  %v855_v7 = vshll.u32 %v3763_v0, 16 }
  0x15   : > { %v3459_v5 = vld [vmem:[%s4025_s17 + $0x10] sm:$0xf]  ;;  %v3506_v6 = vld [vmem:[%s4025_s17 + $0xc] sm:$0xe]  ;;  %v1299_v8 = vshrl.u32 %v3765_v3, 16  ;;  %v503_v11 = vshll.u32 %v3765_v3, 16 }
  0x16   : > { %1725 = vrot.lane.b32.xlu1 %v1571_v2, %s3989_s18  ;;  %v3669_v9 = vcombine.low %v3506_v6, %v3459_v5  ;;  %v3458_v10 = vld [vmem:[%s4025_s17 + $0xc] sm:$0xf]  ;;  %1729 = vrot.lane.b32.xlu0 %v1581_v4, %s3989_s18  ;;  %v3768_v13 = vld [vmem:[%s4025_s17 + $0x14] ss:$0 sps:$4 sm:$0x11]   ;;  %v857_v15 = vrot.slane %v855_v7, 1 }
  0x17   : > { %v4035_v12 = vcombine.low %v3458_v10, %v3459_v5  ;;  %v172_v14 = vld [vmem:[%s4025_s17 + $0x4] sm:$0xf]  ;;  %v219_v18 = vld [vmem:[%s4025_s17] sm:$0xe]  ;;  %v505_v19 = vrot.slane %v503_v11, 1  ;;  %v1309_v20 = vshrl.u32 %v3768_v13, 16 }
  0x18   : > { %v1564_v16 = vshrl.u32 %v3669_v9, 16  ;;  %v1566_v17 = vshll.u32 %v3669_v9, 16  ;;  %v3653_v21 = vcombine.low %v219_v18, %v172_v14  ;;  %v171_v22 = vld [vmem:[%s4025_s17] sm:$0xf]  ;;  %v173_v27 = vld [vmem:[%s4025_s17 + $0xc] sm:$0xf] }
  0x19   : > { %v848_v23 = vshrl.u32 %v4035_v12, 16  ;;  %v850_v24 = vshll.u32 %v4035_v12, 16  ;;  %v4044_v26 = vcombine.low %v171_v22, %v172_v14  ;;  %v174_v28 = vld [vmem:[%s4025_s17 + $0x10] sm:$0xf]  ;;  %v515_v29 = vshll.u32 %v3768_v13, 16 }
  0x1a   : > { %1453 = vrot.lane.b32.xlu1 %v1299_v8, %s3989_s18  ;;  %v1568_v25 = vrot.slane %v1566_v17, 1  ;;  %v1292_v30 = vshrl.u32 %v3653_v21, 16  ;;  %v1294_v31 = vshll.u32 %v3653_v21, 16  ;;  %v220_v33 = vld [vmem:[%s4025_s17 + $0xc] sm:$0xe]  ;;  %v867_v34 = vshll.u32 %v3764_v1, 16 }
  0x1b   : > { %v852_v32 = vrot.slane %v850_v24, 1  ;;  %v496_v36 = vshrl.u32 %v4044_v26, 16  ;;  %v498_v37 = vshll.u32 %v4044_v26, 16  ;;  %v4051_v38 = vcombine.low %v173_v27, %v174_v28  ;;  %v3460_v39 = vld [vmem:[%s4025_s17 + $0x18] sm:$0xf] }
  0x1c   : > { %v1569_v35 = vor.u32 %v1568_v25, %v1564_v16  ;;  %v1296_v40 = vrot.slane %v1294_v31, 1  ;;  %v517_v42 = vrot.slane %v515_v29, 1  ;;  %v3654_v43 = vcombine.low %v220_v33, %v174_v28  ;;  %v3461_v44 = vld [vmem:[%s4025_s17 + $0x1c] sm:$0xf]  ;;  %v3507_v45 = vld [vmem:[%s4025_s17 + $0x18] sm:$0xe] }
  0x1d   : > { %v853_v41 = vor.u32 %v852_v32, %v848_v23  ;;  %v500_v47 = vrot.slane %v498_v37, 1  ;;  %v4058_v48 = vcombine.low %v3460_v39, %v3461_v44  ;;  %v3670_v49 = vcombine.low %v3507_v45, %v3461_v44  ;;  %v176_v50 = vld [vmem:[%s4025_s17 + $0x1c] sm:$0xf]  ;;  %v221_v54 = vld [vmem:[%s4025_s17 + $0x18] sm:$0xe] }
  0x1e   : > { %v1570_v46 = vsel %vm494_vm0, %v1569_v35, %v857_v15  ;;  %1457 = vrot.lane.b32.xlu1 %v1309_v20, %s3989_s18  ;;  %v1297_v51 = vor.u32 %v1296_v40, %v1292_v30  ;;  %v1302_v52 = vshrl.u32 %v3654_v43, 16  ;;  %v1304_v53 = vshll.u32 %v3654_v43, 16  ;;  %v4064_v59 = vld [vmem:[%s4025_s17 + $0x20] ss:$0 sps:$4 sm:$0x11]  }
  0x1f   : > { %1723 = vrot.lane.b32.xlu0 %v1570_v46, %s3989_s18  ;;  %v501_v55 = vor.u32 %v500_v47, %v496_v36  ;;  %v869_v56 = vrot.slane %v867_v34, 1  ;;  %v1574_v57 = vshrl.u32 %v3670_v49, 16  ;;  %v1576_v58 = vshll.u32 %v3670_v49, 16  ;;  %v175_v0 = vld [vmem:[%s4025_s17 + $0x18] sm:$0xf] }
  0x20   : > { %v1298_v60 = vsel %vm494_vm0, %v1297_v51, %v505_v19  ;;  %v1306_v61 = vrot.slane %v1304_v53, 1  ;;  %v508_v62 = vshrl.u32 %v4051_v38, 16  ;;  %v510_v63 = vshll.u32 %v4051_v38, 16  ;;  %v3463_v5 = vld [vmem:[%s4025_s17 + $0x28] sm:$0xf] }
  0x21   : > { %v506_v1 = vsel %vm494_vm0, %v501_v55, %v505_v19  ;;  %v858_v2 = vsel %vm494_vm0, %v853_v41, %v857_v15  ;;  %v1578_v3 = vrot.slane %v1576_v58, 1  ;;  %v862_v4 = vshll.u32 %v4058_v48, 16  ;;  %v3462_v10 = vld [vmem:[%s4025_s17 + $0x24] sm:$0xf]  ;;  %v178_v33 = vld [vmem:[%s4025_s17 + $0x28] sm:$0xf] }
  0x22   : > { %687 = vrot.lane.b32.xlu1 %v506_v1, %s3989_s18  ;;  %v1307_v6 = vor.u32 %v1306_v61, %v1302_v52  ;;  %v512_v7 = vrot.slane %v510_v63, 1  ;;  %v860_v8 = vshrl.u32 %v4058_v48, 16  ;;  %v3655_v9 = vcombine.low %v221_v54, %v176_v50  ;;  %v3508_v11 = vld [vmem:[%s4025_s17 + $0x24] sm:$0xe]  ;;  %v3465_v37 = vld [vmem:[%s4025_s17 + $0x34] sm:$0xf] }
  0x23   : > { %1451 = vrot.lane.b32.xlu0 %v1298_v60, %s3989_s18  ;;  %v1579_v13 = vor.u32 %v1578_v3, %v1574_v57  ;;  %v864_v14 = vrot.slane %v862_v4, 1  ;;  %v527_v16 = vshll.u32 %v4064_v59, 16  ;;  %v4081_v15 = vld [vmem:[%s4025_s17 + $0x2c] ss:$0 sps:$4 sm:$0x11]   ;;  %v3671_v17 = vcombine.low %v3508_v11, %v3463_v5 }
  0x24   : > { %v1308_v18 = vsel %vm494_vm0, %v1307_v6, %v517_v42  ;;  %v513_v19 = vor.u32 %v512_v7, %v508_v62  ;;  %v4084_v20 = vcombine.low %v175_v0, %v176_v50  ;;  %v1312_v21 = vshrl.u32 %v3655_v9, 16  ;;  %v222_v34 = vld [vmem:[%s4025_s17 + $0x24] sm:$0xe]  ;;  %v3509_v41 = vld [vmem:[%s4025_s17 + $0x30] sm:$0xe] }
  0x25   : > { %v1314_v22 = vshll.u32 %v3655_v9, 16  ;;  %v4086_v23 = vcombine.low %v3462_v10, %v3463_v5  ;;  %v865_v24 = vor.u32 %v864_v14, %v860_v8  ;;  %v879_v25 = vshll.u32 %v4081_v15, 16  ;;  %v4103_v45 = vld [vmem:[%s4025_s17 + $0x2c] ss:$0 sps:$4 sm:$0x11]  }
  0x26   : > { %1455 = vrot.lane.b32.xlu1 %v1308_v18, %s3989_s18  ;;  %v1584_v27 = vshrl.u32 %v3671_v17, 16  ;;  %v1586_v28 = vshll.u32 %v3671_v17, 16  ;;  %v1580_v29 = vsel %vm494_vm0, %v1579_v13, %v869_v56  ;;  %v518_v30 = vsel %vm494_vm0, %v513_v19, %v517_v42  ;;  %v177_v51 = vld [vmem:[%s4025_s17 + $0x24] sm:$0xf]  ;;  %v3464_v61 = vld [vmem:[%s4025_s17 + $0x30] sm:$0xf] }
  0x27   : > { %1039 = vrot.lane.b32.xlu0 %v858_v2, %s3989_s18  ;;  %v529_v31 = vrot.slane %v527_v16, 1  ;;  %v1316_v32 = vrot.slane %v1314_v22, 1  ;;  %v522_v36 = vshll.u32 %v4084_v20, 16  ;;  %v874_v40 = vshll.u32 %v4086_v23, 16  ;;  %v180_v2 = vld [vmem:[%s4025_s17 + $0x34] sm:$0xf] }
  0x28   : > { %v1588_v35 = vrot.slane %v1586_v28, 1  ;;  %v870_v42 = vsel %vm494_vm0, %v865_v24, %v869_v56  ;;  %v881_v43 = vrot.slane %v879_v25, 1  ;;  %v3656_v46 = vcombine.low %v222_v34, %v178_v33  ;;  %v4118_v62 = vld [vmem:[%s4025_s17 + $0x38] ss:$0 sps:$4 sm:$0x11]  }
  0x29   : > { %v1317_v39 = vor.u32 %v1316_v32, %v1312_v21  ;;  %v520_v49 = vshrl.u32 %v4084_v20, 16  ;;  %v524_v50 = vrot.slane %v522_v36, 1  ;;  %v3672_v52 = vcombine.low %v3509_v41, %v3465_v37  ;;  %v223_v3 = vld [vmem:[%s4025_s17 + $0x30] sm:$0xe]  ;;  %v3510_v17 = vld [vmem:[%s4025_s17 + $0x3c] sm:$0xe] }
  0x2a   : > { %689 = vrot.lane.b32.xlu1 %v518_v30, %s3989_s18  ;;  %v1589_v44 = vor.u32 %v1588_v35, %v1584_v27  ;;  %v1324_v53 = vshll.u32 %v3656_v46, 16  ;;  %v1319_v54 = vshrl.u32 %v4064_v59, 16  ;;  %v872_v55 = vshrl.u32 %v4086_v23, 16  ;;  %v4134_v19 = vld [vmem:[%s4025_s17 + $0x38] ss:$0 sps:$4 sm:$0x11]  }
  0x2b   : > { %1727 = vrot.lane.b32.xlu0 %v1580_v29, %s3989_s18  ;;  %v1318_v47 = vsel %vm494_vm0, %v1317_v39, %v529_v31  ;;  %v876_v56 = vrot.slane %v874_v40, 1  ;;  %v4113_v58 = vcombine.low %v177_v51, %v178_v33  ;;  %v539_v60 = vshll.u32 %v4103_v45, 16  ;;  %v179_v29 = vld [vmem:[%s4025_s17 + $0x30] sm:$0xf]  ;;  %v3466_v34 = vld [vmem:[%s4025_s17 + $0x3c] sm:$0xf] }
  0x2c   : > { %v1590_v57 = vsel %vm494_vm0, %v1589_v44, %v881_v43  ;;  %v525_v63 = vor.u32 %v524_v50, %v520_v49  ;;  %v1322_v0 = vshrl.u32 %v3656_v46, 16  ;;  %v1326_v1 = vrot.slane %v1324_v53, 1  ;;  %v4151_v40 = vld [vmem:[%s4025_s17 + $0x44] ss:$0 sps:$4 sm:$0x11]  }
  0x2d   : > { %v1596_v59 = vshll.u32 %v3672_v52, 16  ;;  %v1591_v4 = vshrl.u32 %v4081_v15, 16  ;;  %v877_v5 = vor.u32 %v876_v56, %v872_v55  ;;  %v4123_v6 = vcombine.low %v3464_v61, %v3465_v37  ;;  %v3467_v15 = vld [vmem:[%s4025_s17 + $0x40] sm:$0xf]  ;;  %v224_v46 = vld [vmem:[%s4025_s17 + $0x3c] sm:$0xe] }
  0x2e   : > { %1459 = vrot.lane.b32.xlu1 %v1318_v47, %s3989_s18  ;;  %v541_v7 = vrot.slane %v539_v60, 1  ;;  %v891_v8 = vshll.u32 %v4118_v62, 16  ;;  %v1594_v9 = vshrl.u32 %v3672_v52, 16  ;;  %v534_v10 = vshll.u32 %v4113_v58, 16  ;;  %v3469_v61 = vld [vmem:[%s4025_s17 + $0x4c] sm:$0xf] }
  0x2f   : > { %1041 = vrot.lane.b32.xlu0 %v870_v42, %s3989_s18  ;;  %v530_v11 = vsel %vm494_vm0, %v525_v63, %v529_v31  ;;  %v1327_v13 = vor.u32 %v1326_v1, %v1322_v0  ;;  %v1598_v14 = vrot.slane %v1596_v59, 1  ;;  %v3657_v16 = vcombine.low %v223_v3, %v180_v2  ;;  %v4172_v3 = vld [vmem:[%s4025_s17 + $0x44] ss:$0 sps:$4 sm:$0x11]  }
  0x30   : > { %v882_v18 = vsel %vm494_vm0, %v877_v5, %v881_v43  ;;  %v893_v21 = vrot.slane %v891_v8, 1  ;;  %v532_v22 = vshrl.u32 %v4113_v58, 16  ;;  %v536_v24 = vrot.slane %v534_v10, 1 }
  0x31   : > { %v886_v25 = vshll.u32 %v4123_v6, 16  ;;  %v1328_v27 = vsel %vm494_vm0, %v1327_v13, %v541_v7  ;;  %v1599_v28 = vor.u32 %v1598_v14, %v1594_v9  ;;  %v1334_v30 = vshll.u32 %v3657_v16, 16  ;;  %v4179_v13 = vld [vmem:[%s4025_s17 + $0x50] ss:$0 sps:$4 sm:$0x11]  }
  0x32   : > { %1461 = vrot.lane.b32.xlu1 %v1319_v54, %s3989_s18  ;;  %v3673_v31 = vcombine.low %v3510_v17, %v3467_v15  ;;  %v1329_v32 = vshrl.u32 %v4103_v45, 16  ;;  %v551_v33 = vshll.u32 %v4134_v19, 16  ;;  %v537_v35 = vor.u32 %v536_v24, %v532_v22  ;;  %v182_v45 = vld [vmem:[%s4025_s17 + $0x40] sm:$0xf] }
  0x33   : > { %1731 = vrot.lane.b32.xlu0 %v1590_v57, %s3989_s18  ;;  %v884_v36 = vshrl.u32 %v4123_v6, 16  ;;  %v888_v37 = vrot.slane %v886_v25, 1  ;;  %v4148_v39 = vcombine.low %v179_v29, %v180_v2  ;;  %v1600_v41 = vsel %vm494_vm0, %v1599_v28, %v893_v21  ;;  %v184_v25 = vld [vmem:[%s4025_s17 + $0x4c] sm:$0xf] }
  0x34   : > { %v1332_v42 = vshrl.u32 %v3657_v16, 16  ;;  %v1336_v43 = vrot.slane %v1334_v30, 1  ;;  %v1606_v44 = vshll.u32 %v3673_v31, 16  ;;  %v1601_v47 = vshrl.u32 %v4118_v62, 16  ;;  %v3511_v62 = vld [vmem:[%s4025_s17 + $0x48] sm:$0xe] }
  0x35   : > { %v553_v49 = vrot.slane %v551_v33, 1  ;;  %v4157_v50 = vcombine.low %v3466_v34, %v3467_v15  ;;  %v542_v51 = vsel %vm494_vm0, %v537_v35, %v541_v7  ;;  %v889_v52 = vor.u32 %v888_v37, %v884_v36  ;;  %v181_v7 = vld [vmem:[%s4025_s17 + $0x3c] sm:$0xf] }
  0x36   : > { %691 = vrot.lane.b32.xlu1 %v530_v11, %s3989_s18  ;;  %v903_v53 = vshll.u32 %v4151_v40, 16  ;;  %v546_v54 = vshll.u32 %v4148_v39, 16  ;;  %v1337_v55 = vor.u32 %v1336_v43, %v1332_v42  ;;  %v1604_v56 = vshrl.u32 %v3673_v31, 16  ;;  %v3512_v42 = vld [vmem:[%s4025_s17 + $0x54] sm:$0xe] }
  0x37   : > { %1733 = vrot.lane.b32.xlu0 %v1591_v4, %s3989_s18  ;;  %v1608_v57 = vrot.slane %v1606_v44, 1  ;;  %v3658_v60 = vcombine.low %v224_v46, %v182_v45  ;;  %v544_v63 = vshrl.u32 %v4148_v39, 16  ;;  %v894_v0 = vsel %vm494_vm0, %v889_v52, %v893_v21 }
  0x38   : > { %v905_v1 = vrot.slane %v903_v53, 1  ;;  %v548_v59 = vrot.slane %v546_v54, 1  ;;  %v898_v2 = vshll.u32 %v4157_v50, 16  ;;  %v1338_v4 = vsel %vm494_vm0, %v1337_v55, %v553_v49  ;;  %v183_v53 = vld [vmem:[%s4025_s17 + $0x48] sm:$0xf] }
  0x39   : > { %v1609_v5 = vor.u32 %v1608_v57, %v1604_v56  ;;  %v1344_v8 = vshll.u32 %v3658_v60, 16  ;;  %v3674_v9 = vcombine.low %v3511_v62, %v3469_v61  ;;  %v1339_v10 = vshrl.u32 %v4134_v19, 16 }
  0x3a   : > { %1463 = vrot.lane.b32.xlu1 %v1328_v27, %s3989_s18  ;;  %v896_v11 = vshrl.u32 %v4157_v50, 16  ;;  %v549_v14 = vor.u32 %v548_v59, %v544_v63  ;;  %v900_v16 = vrot.slane %v898_v2, 1  ;;  %v4183_v15 = vcombine.low %v181_v7, %v182_v45  ;;  %v225_v27 = vld [vmem:[%s4025_s17 + $0x48] sm:$0xe]  ;;  %v226_v7 = vld [vmem:[%s4025_s17 + $0x54] sm:$0xe] }
  0x3b   : > { %1043 = vrot.lane.b32.xlu0 %v882_v18, %s3989_s18  ;;  %v563_v17 = vshll.u32 %v4172_v3, 16  ;;  %v3468_v18 = vld [vmem:[%s4025_s17 + $0x48] sm:$0xf]  ;;  %v1610_v21 = vsel %vm494_vm0, %v1609_v5, %v905_v1  ;;  %v1342_v22 = vshrl.u32 %v3658_v60, 16  ;;  %v1346_v24 = vrot.slane %v1344_v8, 1 }
  0x3c   : > { %v1616_v19 = vshll.u32 %v3674_v9, 16  ;;  %v1611_v28 = vshrl.u32 %v4151_v40, 16  ;;  %v4191_v29 = vcombine.low %v3468_v18, %v3469_v61  ;;  %v915_v30 = vshll.u32 %v4179_v13, 16  ;;  %v4213_v60 = vld [vmem:[%s4025_s17 + $0x5c] ss:$0 sps:$4 sm:$0x11]  }
  0x3d   : > { %v554_v31 = vsel %vm494_vm0, %v549_v14, %v553_v49  ;;  %v565_v33 = vrot.slane %v563_v17, 1  ;;  %v558_v34 = vshll.u32 %v4183_v15, 16  ;;  %v1347_v35 = vor.u32 %v1346_v24, %v1342_v22  ;;  %v4206_v49 = vld [vmem:[%s4025_s17 + $0x50] ss:$0 sps:$4 sm:$0x11]  }
  0x3e   : > { %1465 = vrot.lane.b32.xlu1 %v1329_v32, %s3989_s18  ;;  %v901_v32 = vor.u32 %v900_v16, %v896_v11  ;;  %v1614_v36 = vshrl.u32 %v3674_v9, 16  ;;  %v1618_v37 = vrot.slane %v1616_v19, 1  ;;  %v3659_v40 = vcombine.low %v225_v27, %v184_v25  ;;  %v186_v5 = vld [vmem:[%s4025_s17 + $0x58] sm:$0xf]  ;;  %v3473_v24 = vld [vmem:[%s4025_s17 + $0x64] sm:$0xf] }
  0x3f   : > { %1735 = vrot.lane.b32.xlu0 %v1600_v41, %s3989_s18  ;;  %v3471_v41 = vld [vmem:[%s4025_s17 + $0x58] sm:$0xf]  ;;  %v917_v43 = vrot.slane %v915_v30, 1  ;;  %v556_v45 = vshrl.u32 %v4183_v15, 16  ;;  %v560_v46 = vrot.slane %v558_v34, 1  ;;  %v1349_v56 = vshrl.u32 %v4172_v3, 16 }
  0x40   : > { %v906_v44 = vsel %vm494_vm0, %v901_v32, %v905_v1  ;;  %v1619_v52 = vor.u32 %v1618_v37, %v1614_v36  ;;  %v1354_v54 = vshll.u32 %v3659_v40, 16  ;;  %v3675_v55 = vcombine.low %v3512_v42, %v3471_v41  ;;  %v3470_v1 = vld [vmem:[%s4025_s17 + $0x54] sm:$0xf]  ;;  %v3513_v19 = vld [vmem:[%s4025_s17 + $0x60] sm:$0xe] }
  0x41   : > { %v908_v57 = vshrl.u32 %v4191_v29, 16  ;;  %v561_v61 = vor.u32 %v560_v46, %v556_v45  ;;  %v4217_v63 = vcombine.low %v183_v53, %v184_v25  ;;  %v1352_v2 = vshrl.u32 %v3659_v40, 16  ;;  %v4240_v32 = vld [vmem:[%s4025_s17 + $0x5c] ss:$0 sps:$4 sm:$0x11]  }
  0x42   : > { %693 = vrot.lane.b32.xlu1 %v542_v51, %s3989_s18  ;;  %v1348_v51 = vsel %vm494_vm0, %v1347_v35, %v565_v33  ;;  %v1620_v59 = vsel %vm494_vm0, %v1619_v52, %v917_v43  ;;  %v1626_v3 = vshll.u32 %v3675_v55, 16  ;;  %v1621_v8 = vshrl.u32 %v4179_v13, 16  ;;  %v185_v35 = vld [vmem:[%s4025_s17 + $0x54] sm:$0xf] }
  0x43   : > { %1737 = vrot.lane.b32.xlu0 %v1601_v47, %s3989_s18  ;;  %v910_v47 = vshll.u32 %v4191_v29, 16  ;;  %v4225_v9 = vcombine.low %v3470_v1, %v3471_v41  ;;  %v566_v11 = vsel %vm494_vm0, %v561_v61, %v565_v33  ;;  %v570_v17 = vshll.u32 %v4217_v63, 16  ;;  %v4247_v42 = vld [vmem:[%s4025_s17 + $0x68] ss:$0 sps:$4 sm:$0x11]  }
  0x44   : > { %v1628_v22 = vrot.slane %v1626_v3, 1  ;;  %v3660_v13 = vcombine.low %v226_v7, %v186_v5  ;;  %v3676_v37 = vcombine.low %v3513_v19, %v3473_v24  ;;  %v1359_v40 = vshrl.u32 %v4206_v49, 16  ;;  %v3514_v7 = vld [vmem:[%s4025_s17 + $0x6c] sm:$0xe] }
  0x45   : > { %v912_v62 = vrot.slane %v910_v47, 1  ;;  %v572_v30 = vrot.slane %v570_v17, 1  ;;  %v920_v41 = vshrl.u32 %v4225_v9, 16  ;;  %v4251_v45 = vcombine.low %v185_v35, %v186_v5  ;;  %v3472_v47 = vld [vmem:[%s4025_s17 + $0x60] sm:$0xf] }
  0x46   : > { %1467 = vrot.lane.b32.xlu1 %v1338_v4, %s3989_s18  ;;  %v1356_v4 = vrot.slane %v1354_v54, 1  ;;  %v1364_v36 = vshll.u32 %v3660_v13, 16  ;;  %v587_v46 = vshll.u32 %v4240_v32, 16  ;;  %v1362_v52 = vshrl.u32 %v3660_v13, 16  ;;  %v188_v54 = vld [vmem:[%s4025_s17 + $0x64] sm:$0xf] }
  0x47   : > { %1045 = vrot.lane.b32.xlu0 %v894_v0, %s3989_s18  ;;  %v575_v0 = vshll.u32 %v4206_v49, 16  ;;  %v913_v14 = vor.u32 %v912_v62, %v908_v57  ;;  %v1636_v49 = vshll.u32 %v3676_v37, 16  ;;  %v4259_v57 = vcombine.low %v3472_v47, %v3473_v24  ;;  %v3475_v5 = vld [vmem:[%s4025_s17 + $0x70] sm:$0xf] }
  0x48   : > { %v1357_v18 = vor.u32 %v1356_v4, %v1352_v2  ;;  %v1366_v53 = vrot.slane %v1364_v36, 1  ;;  %v939_v61 = vshll.u32 %v4247_v42, 16  ;;  %v589_v1 = vrot.slane %v587_v46, 1 }
  0x49   : > { %v577_v16 = vrot.slane %v575_v0, 1  ;;  %v918_v27 = vsel %vm494_vm0, %v913_v14, %v917_v43  ;;  %v1634_v4 = vshrl.u32 %v3676_v37, 16  ;;  %v1638_v3 = vrot.slane %v1636_v49, 1  ;;  %v3477_v49 = vld [vmem:[%s4025_s17 + $0x7c] sm:$0xf] }
  0x4a   : > { %1469 = vrot.lane.b32.xlu1 %v1339_v10, %s3989_s18  ;;  %v927_v10 = vshll.u32 %v4213_v60, 16  ;;  %v1367_v2 = vor.u32 %v1366_v53, %v1362_v52  ;;  %v580_v14 = vshrl.u32 %v4251_v45, 16  ;;  %v934_v17 = vshll.u32 %v4259_v57, 16 }
  0x4b   : > { %1739 = vrot.lane.b32.xlu0 %v1610_v21, %s3989_s18  ;;  %v1624_v21 = vshrl.u32 %v3675_v55, 16  ;;  %v1358_v33 = vsel %vm494_vm0, %v1357_v18, %v577_v16  ;;  %v227_v55 = vld [vmem:[%s4025_s17 + $0x60] sm:$0xe]  ;;  %v3677_v24 = vcombine.low %v3514_v7, %v3475_v5  ;;  %v1369_v19 = vshrl.u32 %v4240_v32, 16 }
  0x4c   : > { %v929_v25 = vrot.slane %v927_v10, 1  ;;  %v4269_v10 = vld [vmem:[%s4025_s17 + $0x68] ss:$0 sps:$4 sm:$0x11]   ;;  %v1368_v18 = vsel %vm494_vm0, %v1367_v2, %v589_v1 }
  0x4d   : > { %v1629_v34 = vor.u32 %v1628_v22, %v1624_v21  ;;  %v1639_v21 = vor.u32 %v1638_v3, %v1634_v4  ;;  %v187_v22 = vld [vmem:[%s4025_s17 + $0x60] sm:$0xf]  ;;  %v1646_v37 = vshll.u32 %v3677_v24, 16  ;;  %v1644_v53 = vshrl.u32 %v3677_v24, 16 }
  0x4e   : > { %695 = vrot.lane.b32.xlu1 %v554_v31, %s3989_s18  ;;  %v922_v31 = vshll.u32 %v4225_v9, 16  ;;  %v4312_v3 = vld [vmem:[%s4025_s17 + $0x80] ss:$0 sps:$4 sm:$0x11]  }
  0x4f   : > { %1741 = vrot.lane.b32.xlu0 %v1611_v28, %s3989_s18  ;;  %v568_v28 = vshrl.u32 %v4217_v63, 16 }
  0x51   : > { %v573_v43 = vor.u32 %v572_v30, %v568_v28  ;;  %v3474_v28 = vld [vmem:[%s4025_s17 + $0x6c] sm:$0xf]  ;;  %v932_v30 = vshrl.u32 %v4259_v57, 16 }
  0x52   : > { %1471 = vrot.lane.b32.xlu1 %v1348_v51, %s3989_s18  ;;  %v1630_v51 = vsel %vm494_vm0, %v1629_v34, %v929_v25  ;;  %v4287_v34 = vld [vmem:[%s4025_s17 + $0x74] ss:$0 sps:$4 sm:$0x11]   ;;  %v4293_v46 = vcombine.low %v3474_v28, %v3475_v5  ;;  %v4328_v28 = vld [vmem:[%s4025_s17 + $0x80] ss:$0 sps:$4 sm:$0x11]  }
  0x53   : > { %1047 = vrot.lane.b32.xlu0 %v906_v44, %s3989_s18  ;;  %v924_v44 = vrot.slane %v922_v31, 1  ;;  %v578_v62 = vsel %vm494_vm0, %v573_v43, %v577_v16  ;;  %v936_v31 = vrot.slane %v934_v17, 1  ;;  %v1641_v43 = vshrl.u32 %v4247_v42, 16 }
  0x54   : > { %v951_v52 = vshll.u32 %v4287_v34, 16 }
  0x55   : > { %v925_v0 = vor.u32 %v924_v44, %v920_v41  ;;  %v228_v41 = vld [vmem:[%s4025_s17 + $0x6c] sm:$0xe] }
  0x56   : > { %1473 = vrot.lane.b32.xlu1 %v1349_v56, %s3989_s18  ;;  %v1631_v56 = vshrl.u32 %v4213_v60, 16  ;;  %v3661_v60 = vcombine.low %v227_v55, %v188_v54  ;;  %v1648_v55 = vrot.slane %v1646_v37, 1  ;;  %v953_v2 = vrot.slane %v951_v52, 1  ;;  %v3479_v37 = vld [vmem:[%s4025_s17 + $0x88] sm:$0xf] }
  0x57   : > { %1743 = vrot.lane.b32.xlu0 %v1620_v59, %s3989_s18  ;;  %v582_v59 = vshll.u32 %v4251_v45, 16 }
  0x58   : > { %v1374_v13 = vshll.u32 %v3661_v60, 16  ;;  %v1372_v36 = vshrl.u32 %v3661_v60, 16  ;;  %v1649_v7 = vor.u32 %v1648_v55, %v1644_v53 }
  0x59   : > { %v584_v16 = vrot.slane %v582_v59, 1  ;;  %v4305_v59 = vld [vmem:[%s4025_s17 + $0x74] ss:$0 sps:$4 sm:$0x11]  }
  0x5a   : > { %697 = vrot.lane.b32.xlu1 %v566_v11, %s3989_s18  ;;  %v930_v11 = vsel %vm494_vm0, %v925_v0, %v929_v25  ;;  %v1376_v32 = vrot.slane %v1374_v13, 1  ;;  %v189_v0 = vld [vmem:[%s4025_s17 + $0x6c] sm:$0xf]  ;;  %v1379_v13 = vshrl.u32 %v4269_v10, 16 }
  0x5b   : > { %1745 = vrot.lane.b32.xlu0 %v1621_v8, %s3989_s18  ;;  %v941_v8 = vrot.slane %v939_v61, 1  ;;  %v585_v25 = vor.u32 %v584_v16, %v580_v14  ;;  %v3515_v61 = vld [vmem:[%s4025_s17 + $0x78] sm:$0xe] }
  0x5c   : > { %v3678_v60 = vcombine.low %v3515_v61, %v3477_v49  ;;  %v3476_v16 = vld [vmem:[%s4025_s17 + $0x78] sm:$0xf] }
  0x5d   : > { %v1640_v35 = vsel %vm494_vm0, %v1639_v21, %v941_v8  ;;  %v590_v47 = vsel %vm494_vm0, %v585_v25, %v589_v1  ;;  %v4324_v24 = vcombine.low %v3476_v16, %v3477_v49  ;;  %v1650_v25 = vsel %vm494_vm0, %v1649_v7, %v953_v2 }
  0x5e   : > { %1475 = vrot.lane.b32.xlu1 %v1358_v33, %s3989_s18  ;;  %v4284_v33 = vcombine.low %v187_v22, %v188_v54  ;;  %v1377_v54 = vor.u32 %v1376_v32, %v1372_v36  ;;  %v192_v22 = vld [vmem:[%s4025_s17 + $0x7c] sm:$0xf]  ;;  %v229_v36 = vld [vmem:[%s4025_s17 + $0x78] sm:$0xe]  ;;  %v1654_v52 = vshrl.u32 %v3678_v60, 16  ;;  %v1661_v16 = vshrl.u32 %v4312_v3, 16 }
  0x5f   : > { %1049 = vrot.lane.b32.xlu0 %v918_v27, %s3989_s18  ;;  %v599_v27 = vshll.u32 %v4269_v10, 16  ;;  %v3516_v10 = vld [vmem:[%s4025_s17 + $0x84] sm:$0xe]  ;;  %v4341_v49 = vcombine.low %v229_v36, %v192_v22 }
  0x60   : > { %v594_v42 = vshll.u32 %v4284_v33, 16  ;;  %v592_v4 = vshrl.u32 %v4284_v33, 16  ;;  %v3679_v61 = vcombine.low %v3516_v10, %v3479_v37  ;;  %v4381_v10 = vld [vmem:[%s4025_s17 + $0x8c] ss:$0 sps:$4 sm:$0x11]  }
  0x61   : > { %v601_v44 = vrot.slane %v599_v27, 1  ;;  %v1656_v27 = vshll.u32 %v3678_v60, 16  ;;  %v194_v60 = vld [vmem:[%s4025_s17 + $0x88] sm:$0xf] }
  0x62   : > { %1477 = vrot.lane.b32.xlu1 %v1359_v40, %s3989_s18  ;;  %v190_v40 = vld [vmem:[%s4025_s17 + $0x70] sm:$0xf] }
  0x63   : > { %1747 = vrot.lane.b32.xlu0 %v1630_v51, %s3989_s18  ;;  %v937_v51 = vor.u32 %v936_v31, %v932_v30  ;;  %v1378_v5 = vsel %vm494_vm0, %v1377_v54, %v601_v44  ;;  %v4316_v17 = vcombine.low %v189_v0, %v190_v40  ;;  %v1658_v53 = vrot.slane %v1656_v27, 1  ;;  %v3478_v54 = vld [vmem:[%s4025_s17 + $0x84] sm:$0xf]  ;;  %v3480_v27 = vld [vmem:[%s4025_s17 + $0x90] sm:$0xf] }
  0x65   : > { %v942_v1 = vsel %vm494_vm0, %v937_v51, %v941_v8  ;;  %v611_v8 = vshll.u32 %v4305_v59, 16  ;;  %v606_v32 = vshll.u32 %v4316_v17, 16  ;;  %v604_v0 = vshrl.u32 %v4316_v17, 16 }
  0x66   : > { %699 = vrot.lane.b32.xlu1 %v578_v62, %s3989_s18  ;;  %v946_v62 = vshll.u32 %v4293_v46, 16 }
  0x67   : > { %1749 = vrot.lane.b32.xlu0 %v1631_v56, %s3989_s18  ;;  %v3662_v56 = vcombine.low %v228_v41, %v190_v40  ;;  %v1651_v40 = vshrl.u32 %v4287_v34, 16 }
  0x68   : > { %v948_v21 = vrot.slane %v946_v62, 1  ;;  %v1389_v62 = vshrl.u32 %v4305_v59, 16  ;;  %v1659_v59 = vor.u32 %v1658_v53, %v1654_v52 }
  0x69   : > { %v1384_v14 = vshll.u32 %v3662_v56, 16  ;;  %v1382_v31 = vshrl.u32 %v3662_v56, 16  ;;  %v4347_v56 = vld [vmem:[%s4025_s17 + $0x8c] ss:$0 sps:$4 sm:$0x11]  }
  0x6a   : > { %1479 = vrot.lane.b32.xlu1 %v1368_v18, %s3989_s18  ;;  %v944_v18 = vshrl.u32 %v4293_v46, 16  ;;  %v975_v36 = vshll.u32 %v4347_v56, 16 }
  0x6b   : > { %1051 = vrot.lane.b32.xlu0 %v930_v11, %s3989_s18  ;;  %v596_v11 = vrot.slane %v594_v42, 1  ;;  %v958_v42 = vshll.u32 %v4324_v24, 16 }
  0x6c   : > { %v949_v41 = vor.u32 %v948_v21, %v944_v18  ;;  %v1394_v18 = vshll.u32 %v4341_v49, 16  ;;  %v4363_v21 = vcombine.low %v3478_v54, %v3479_v37 }
  0x6d   : > { %v597_v30 = vor.u32 %v596_v11, %v592_v4  ;;  %v623_v4 = vshll.u32 %v4328_v28, 16  ;;  %v3481_v11 = vld [vmem:[%s4025_s17 + $0x94] sm:$0xf] }
  0x6e   : > { %1481 = vrot.lane.b32.xlu1 %v1369_v19, %s3989_s18  ;;  %v963_v19 = vshll.u32 %v4312_v3, 16  ;;  %5661 = vst [vmem:[#allocation2_spill] sm:$0xff] %v4363_v21  ;;  %v970_v52 = vshll.u32 %v4363_v21, 16  ;;  %v4391_v53 = vcombine.low %v3480_v27, %v3481_v11  ;;  %v4409_v27 = vld [vmem:[%s4025_s17 + $0x98] ss:$0 sps:$4 sm:$0x11]  }
  0x6f   : > { %1751 = vrot.lane.b32.xlu0 %v1640_v35, %s3989_s18  ;;  %v1386_v35 = vrot.slane %v1384_v14, 1  ;;  %v602_v34 = vsel %vm494_vm0, %v597_v30, %v601_v44  ;;  %v230_v44 = vld [vmem:[%s4025_s17 + $0x84] sm:$0xe]  ;;  %v3517_v14 = vld [vmem:[%s4025_s17 + $0x90] sm:$0xe]  ;;  %v4369_v30 = vrot.slane %v623_v4, 1 }
  0x70   : > { %v4339_v51 = vrot.slane %v963_v19, 1  ;;  %v1666_v19 = vshll.u32 %v3679_v61, 16  ;;  %v4373_v3 = vcombine.low %v3517_v14, %v3481_v11  ;;  %5663 = vst [vmem:[#allocation4_spill] sm:$0xff] %v4391_v53 }
  0x71   : > { %v1387_v55 = vor.u32 %v1386_v35, %v1382_v31  ;;  %v4371_v31 = vcombine.low %v230_v44, %v194_v60  ;;  %v1392_v35 = vshrl.u32 %v4341_v49, 16  ;;  %v1664_v49 = vshrl.u32 %v3679_v61, 16 }
  0x72   : > { %701 = vrot.lane.b32.xlu1 %v590_v47, %s3989_s18  ;;  %v191_v47 = vld [vmem:[%s4025_s17 + $0x78] sm:$0xf]  ;;  %v1668_v54 = vrot.slane %v1666_v19, 1  ;;  %v1676_v4 = vshll.u32 %v4373_v3, 16  ;;  %v977_v44 = vrot.slane %v975_v36, 1  ;;  %v1674_v36 = vshrl.u32 %v4373_v3, 16 }
  0x73   : > { %1753 = vrot.lane.b32.xlu0 %v1641_v43, %s3989_s18  ;;  %v613_v43 = vrot.slane %v611_v8, 1  ;;  %v4354_v7 = vcombine.low %v191_v47, %v192_v22  ;;  %v956_v22 = vshrl.u32 %v4324_v24, 16  ;;  %v1396_v47 = vrot.slane %v1394_v18, 1 }
  0x74   : > { %v972_v18 = vrot.slane %v970_v52, 1 }
  0x75   : > { %v1388_v8 = vsel %vm494_vm0, %v1387_v55, %v613_v43  ;;  %v616_v11 = vshrl.u32 %v4354_v7, 16 }
  0x76   : > { %1483 = vrot.lane.b32.xlu1 %v1378_v5, %s3989_s18  ;;  %v954_v5 = vsel %vm494_vm0, %v949_v41, %v953_v2  ;;  %v193_v2 = vld [vmem:[%s4025_s17 + $0x84] sm:$0xf]  ;;  %v1660_v41 = vsel %vm494_vm0, %v1659_v59, %v4339_v51  ;;  %v968_v59 = vshrl.u32 %v4363_v21, 16 }
  0x77   : > { %1053 = vrot.lane.b32.xlu0 %v942_v1, %s3989_s18  ;;  %v608_v1 = vrot.slane %v606_v32, 1  ;;  %v618_v32 = vshll.u32 %v4354_v7, 16  ;;  %v4378_v37 = vcombine.low %v193_v2, %v194_v60  ;;  %v196_v60 = vld [vmem:[%s4025_s17 + $0x94] sm:$0xf]  ;;  %v982_v2 = vshll.u32 %v4391_v53, 16 }
  0x79   : > { %5662 = vst [vmem:[#allocation3_spill] sm:$0xff] %v4378_v37  ;;  %v620_v14 = vrot.slane %v618_v32, 1  ;;  %v630_v61 = vshll.u32 %v4378_v37, 16  ;;  %v1678_v32 = vrot.slane %v1676_v4, 1  ;;  %v984_v3 = vrot.slane %v982_v2, 1 }
  0x7a   : > { %1485 = vrot.lane.b32.xlu1 %v1379_v13, %s3989_s18  ;;  %v960_v13 = vrot.slane %v958_v42, 1  ;;  %v3483_v4 = vld [vmem:[%s4025_s17 + $0xa0] sm:$0xf] }
  0x7b   : > { %1755 = vrot.lane.b32.xlu0 %v1650_v25, %s3989_s18  ;;  %v609_v25 = vor.u32 %v608_v1, %v604_v0  ;;  %v1404_v1 = vshll.u32 %v4371_v31, 16  ;;  %v632_v52 = vrot.slane %v630_v61, 1 }
  0x7c   : > { %v961_v0 = vor.u32 %v960_v13, %v956_v22  ;;  %v1669_v22 = vor.u32 %v1668_v54, %v1664_v49  ;;  %v635_v13 = vshll.u32 %v4381_v10, 16  ;;  %v195_v49 = vld [vmem:[%s4025_s17 + $0x90] sm:$0xf] }
  0x7d   : > { %v614_v42 = vsel %vm494_vm0, %v609_v25, %v613_v43  ;;  %v1397_v43 = vor.u32 %v1396_v47, %v1392_v35  ;;  %v1406_v35 = vrot.slane %v1404_v1, 1  ;;  %v628_v47 = vshrl.u32 %v4378_v37, 16 }
  0x7e   : > { %703 = vrot.lane.b32.xlu1 %v602_v34, %s3989_s18  ;;  %v980_v1 = vshrl.u32 %v4391_v53, 16  ;;  %v637_v55 = vrot.slane %v635_v13, 1  ;;  %v5666_v13 = vshrl.u32 %v4347_v56, 16 }
  0x7f   : > { %1757 = vrot.lane.b32.xlu0 %v1651_v40, %s3989_s18  ;;  %v4384_v40 = vld [vmem:[%s4025_s17 + $0x98] ss:$0 sps:$4 sm:$0x11]   ;;  %v1398_v61 = vsel %vm494_vm0, %v1397_v43, %v4369_v30  ;;  %v633_v37 = vor.u32 %v632_v52, %v628_v47  ;;  %v3482_v43 = vld [vmem:[%s4025_s17 + $0x9c] sm:$0xf] }
  0x80   : > { %v987_v19 = vshll.u32 %v4384_v40, 16 }
  0x82   : > { %1487 = vrot.lane.b32.xlu1 %v1388_v8, %s3989_s18 }
  0x83   : > { %1055 = vrot.lane.b32.xlu0 %v954_v5, %s3989_s18  ;;  %v231_v5 = vld [vmem:[%s4025_s17 + $0x90] sm:$0xe] }
  0x84   : > { %v4411_v25 = vcombine.low %v231_v5, %v196_v60  ;;  %v973_v5 = vor.u32 %v972_v18, %v968_v59  ;;  %v1679_v59 = vor.u32 %v1678_v32, %v1674_v36  ;;  %v647_v18 = vshll.u32 %v4409_v27, 16 }
  0x86   : > { %1489 = vrot.lane.b32.xlu1 %v1389_v62, %s3989_s18  ;;  %v1402_v62 = vshrl.u32 %v4371_v31, 16  ;;  %v966_v31 = vsel %vm494_vm0, %v961_v0, %v4339_v51  ;;  %v1414_v34 = vshll.u32 %v4411_v25, 16  ;;  %v989_v0 = vrot.slane %v987_v19, 1 }
  0x87   : > { %1759 = vrot.lane.b32.xlu0 %v1660_v41, %s3989_s18  ;;  %v621_v41 = vor.u32 %v620_v14, %v616_v11  ;;  %v3518_v11 = vld [vmem:[%s4025_s17 + $0x9c] sm:$0xe]  ;;  %v985_v19 = vor.u32 %v984_v3, %v980_v1  ;;  %v1412_v32 = vshrl.u32 %v4411_v25, 16 }
  0x88   : > { %v1726_v8 = vpop.permute.xlu1 %1725  ;;  %v4418_v54 = vpop.permute.xlu0 %1729  ;;  %v1407_v51 = vor.u32 %v1406_v35, %v1402_v62  ;;  %v4438_v21 = vcombine.low %v3518_v11, %v3483_v4  ;;  %v4446_v62 = vcombine.low %v195_v49, %v196_v60  ;;  %v3939_v35 = vld [vmem:[%s4025_s17 + $0x14] ss:$0 sps:$4 sm:$0x11]   ;;  %v4458_v60 = vsel %vm494_vm0, %v1679_v59, %v989_v0 }
  0x89   : > { %v626_v2 = vsel %vm494_vm0, %v621_v41, %v4369_v30  ;;  %v1854_v30 = vsel %vm1071_vm1, %v3939_v35, %v1726_v8  ;;  %v1416_v41 = vrot.slane %v1414_v34, 1  ;;  %v4460_v49 = vrot.slane %v647_v18, 1 }
  0x8a   : > { %705 = vrot.lane.b32.xlu1 %v614_v42, %s3989_s18  ;;  %v4431_v42 = vld [vmem:[%s4025_s17 + $0xa4] ss:$0 sps:$4 sm:$0x11]   ;;  %v4462_v8 = vcombine.low %v3482_v43, %v3483_v4  ;;  %v4467_v34 = vsel %vm494_vm0, %v633_v37, %v637_v55  ;;  %v1931_v1 = vshll.u32 %v1854_v30, 16  ;;  %v5665_v11 = vshrl.u32 %v4328_v28, 16 }
  0x8b   : > { %1761 = vrot.lane.b32.xlu0 %v1661_v16, %s3989_s18  ;;  %v1670_v16 = vsel %vm494_vm0, %v1669_v22, %v977_v44  ;;  %v4443_v22 = vsel %vm494_vm0, %v973_v5, %v977_v44  ;;  %v999_v47 = vshll.u32 %v4431_v42, 16  ;;  %v4455_v44 = vsel %vm494_vm0, %v1407_v51, %v637_v55  ;;  %v197_v55 = vld [vmem:[%s4025_s17 + $0x9c] sm:$0xf]  ;;  %v3940_v51 = vld [vmem:[%s4025_s17 + $0x8] ss:$0 sps:$4 sm:$0x11]  }
  0x8c   : > { %v1454_v14 = vpop.permute.xlu1 %1453  ;;  %5664 = vst [vmem:[#allocation5_spill] sm:$0xff] %v4462_v8  ;;  %v4476_v4 = vsel %vm494_vm0, %v985_v19, %v989_v0  ;;  %v1417_v18 = vor.u32 %v1416_v41, %v1412_v32  ;;  %v198_v28 = vld [vmem:[%s4025_s17 + $0xa0] sm:$0xf]  ;;  %v232_v37 = vld [vmem:[%s4025_s17 + $0x9c] sm:$0xe]  ;;  %v992_v32 = vshrl.u32 %v4462_v8, 16 }
  0x8d   : > { %v1790_v59 = vsel %vm1071_vm1, %v3940_v51, %v1454_v14  ;;  %v4485_v43 = vrot.slane %v999_v47, 1  ;;  %v994_v41 = vshll.u32 %v4462_v8, 16  ;;  %v1933_v47 = vrot.slane %v1931_v1, 1 }
  0x8e   : > { %1491 = vrot.lane.b32.xlu1 %v1398_v61, %s3989_s18  ;;  %v4481_v61 = vld [vmem:[%s4025_s17 + $0xa4] ss:$0 sps:$4 sm:$0x11]   ;;  %v4508_v1 = vcombine.low %v232_v37, %v198_v28 }
  0x8f   : > { %1057 = vrot.lane.b32.xlu0 %v966_v31, %s3989_s18  ;;  %v1686_v31 = vshll.u32 %v4438_v21, 16  ;;  %v659_v53 = vshll.u32 %v4481_v61, 16 }
  0x90   : > { %v4450_v36 = vpop.permute.xlu1 %1457 }
  0x91   : > { %v1724_v52 = vpop.permute.xlu0 %1723  ;;  %v1688_v51 = vrot.slane %v1686_v31, 1  ;;  %v4505_v31 = vcombine.low %v197_v55, %v198_v28  ;;  %v3519_v28 = vld [vmem:[%s4025_s17 + $0xa8] sm:$0xe] }
  0x92   : > { %v1852_v25 = vsel %vm1071_vm1, %v4035_v12, %v1724_v52  ;;  %1493 = vrot.lane.b32.xlu1 %v5665_v11, %s3989_s18  ;;  %v640_v52 = vshrl.u32 %v4446_v62, 16  ;;  %v642_v11 = vshll.u32 %v4446_v62, 16 }
  0x93   : > { %v1927_v3 = vshll.u32 %v1852_v25, 16  ;;  %1763 = vrot.lane.b32.xlu0 %v1670_v16, %s3989_s18  ;;  %v1684_v16 = vshrl.u32 %v4438_v21, 16  ;;  %v1925_v35 = vshrl.u32 %v1852_v25, 16  ;;  %v3484_v21 = vld [vmem:[%s4025_s17 + $0xa8] sm:$0xf]  ;;  %v1921_v25 = vshll.u32 %v1790_v59, 16 }
  0x94   : > { %v688_v19 = vpop.permute.xlu1 %687  ;;  %v4511_v59 = vld [vmem:[%s4025_s17 + $0xb0] ss:$0 sps:$4 sm:$0x11]  }
  0x95   : > { %v1929_v30 = vrot.slane %v1927_v3, 1  ;;  %v1452_v0 = vpop.permute.xlu0 %1451 }
  0x96   : > { %v1788_v14 = vsel %vm1071_vm1, %v4044_v26, %v1452_v0  ;;  %707 = vrot.lane.b32.xlu1 %v626_v2, %s3989_s18  ;;  %v4503_v0 = vsel %vm494_vm0, %v1417_v18, %v4460_v49  ;;  %v3485_v18 = vld [vmem:[%s4025_s17 + $0xac] sm:$0xf] }
  0x97   : > { %v1930_v3 = vor.u32 %v1929_v30, %v1925_v35  ;;  %v1917_v5 = vshll.u32 %v1788_v14, 16  ;;  %1765 = vrot.lane.b32.xlu0 %v5666_v13, %s3989_s18  ;;  %v1915_v35 = vshrl.u32 %v1788_v14, 16  ;;  %v1073_v13 = vsel %vm1071_vm1, %v4044_v26, %v688_v19 }
  0x98   : > { %v1456_v2 = vpop.permute.xlu1 %1455  ;;  %v4527_v14 = vcombine.low %v3484_v21, %v3485_v18  ;;  %v1689_v19 = vor.u32 %v1688_v51, %v1684_v16  ;;  %v1011_v21 = vshll.u32 %v4511_v59, 16 }
  0x99   : > { %v1919_v30 = vrot.slane %v1917_v5, 1  ;;  %v1040_v8 = vpop.permute.xlu0 %1039  ;;  %v4514_v56 = vsel %vm494_vm0, %v1930_v3, %v1933_v47  ;;  %v1792_v55 = vsel %vm1071_vm1, %v4051_v38, %v1456_v2  ;;  %v644_v5 = vrot.slane %v642_v11, 1 }
  0x9a   : > { %5667 = vst [vmem:[#allocation6_spill] sm:$0xff] %v4514_v56  ;;  %2280 = vmatprep.subr.bf16.mxu1 %v4514_v56  ;;  %v4522_v37 = vsel %vm1071_vm1, %v4035_v12, %v1040_v8  ;;  %v1923_v47 = vrot.slane %v1921_v25, 1  ;;  %v1937_v26 = vshll.u32 %v1792_v55, 16  ;;  %v3941_v56 = vld [vmem:[%s4025_s17 + $0x20] ss:$0 sps:$4 sm:$0x11]   ;;  %1495 = vrot.lane.b32.xlu1 %v4455_v44, %s3989_s18 }
  0x9b   : > { %5668 = vst [vmem:[#allocation7_spill] sm:$0xff] %v4522_v37  ;;  %v1920_v3 = vor.u32 %v1919_v30, %v1915_v35  ;;  %1059 = vrot.lane.b32.xlu0 %v4443_v22, %s3989_s18  ;;  %1185 = vmatprep.subr.bf16.mxu0 %v4522_v37  ;;  %v1858_v12 = vsel %vm1071_vm1, %v3941_v56, %v4418_v54  ;;  %v996_v8 = vrot.slane %v994_v41, 1  ;;  %v1424_v11 = vshll.u32 %v4508_v1, 16  ;;  %v3942_v25 = vld [vmem:[%s4025_s17 + $0x14] ss:$0 sps:$4 sm:$0x11]  }
  0x9c   : > { %1186 = vmatpush1.bf16.xpose.msra.mxu0 %v1073_v13  ;;  %v1794_v22 = vsel %vm1071_vm1, %v3942_v25, %v4450_v36  ;;  %v690_v51 = vpop.permute.xlu1 %689  ;;  %v4543_v30 = vrot.slane %v659_v53, 1  ;;  %v4545_v54 = vcombine.low %v3519_v28, %v3485_v18  ;;  %v1935_v56 = vshrl.u32 %v1792_v55, 16  ;;  %v200_v25 = vld [vmem:[%s4025_s17 + $0xac] sm:$0xf] }
  0x9d   : > { %v1728_v35 = vpop.permute.xlu0 %1727  ;;  %v1924_v16 = vsel %vm494_vm0, %v1920_v3, %v1923_v47  ;;  %v1939_v2 = vrot.slane %v1937_v26, 1  ;;  %v645_v41 = vor.u32 %v644_v5, %v640_v52  ;;  %v1951_v13 = vshll.u32 %v1858_v12, 16 }
  0x9e   : > { %v1856_v44 = vsel %vm1071_vm1, %v4058_v48, %v1728_v35  ;;  %2281 = vmatpush1.bf16.xpose.msra.mxu1 %v1924_v16  ;;  %v4553_v36 = vsel %vm494_vm0, %v1689_v19, %v4485_v43  ;;  %v1422_v53 = vshrl.u32 %v4508_v1, 16  ;;  %v1941_v18 = vshll.u32 %v1794_v22, 16  ;;  %v233_v22 = vld [vmem:[%s4025_s17 + $0xa8] sm:$0xe] }
  0x9f   : > { %v1947_v37 = vshll.u32 %v1856_v44, 16  ;;  %1767 = vrot.lane.b32.xlu0 %v4458_v60, %s3989_s18  ;;  %v5669_v55 = vshrl.u32 %v4381_v10, 16  ;;  %v997_v28 = vor.u32 %v996_v8, %v992_v32  ;;  %v1426_v47 = vrot.slane %v1424_v11, 1 }
  0xa0   : > { %v4559_v3 = vrot.slane %v1011_v21, 1  ;;  %v1945_v52 = vshrl.u32 %v1856_v44, 16  ;;  %v1460_v26 = vpop.permute.xlu1 %1459  ;;  %v1076_v19 = vsel %vm1071_vm1, %v4051_v38, %v690_v51  ;;  %v1696_v1 = vshll.u32 %v4545_v54, 16 }
  0xa1   : > { %1497 = vrot.lane.b32.xlu1 %v5669_v55, %s3989_s18  ;;  %v1949_v5 = vrot.slane %v1947_v37, 1  ;;  %v1042_v60 = vpop.permute.xlu0 %1041  ;;  %v1940_v12 = vor.u32 %v1939_v2, %v1935_v56  ;;  %v1796_v32 = vsel %vm1071_vm1, %v4084_v20, %v1460_v26  ;;  %v1953_v11 = vrot.slane %v1951_v13, 1  ;;  %v3943_v55 = vld [vmem:[%s4025_s17 + $0x20] ss:$0 sps:$4 sm:$0x11]  }
  0xa2   : > { %v4566_v10 = vsel %vm1071_vm1, %v4058_v48, %v1042_v60  ;;  %v5671_v21 = vshrl.u32 %v4384_v40, 16  ;;  %v4577_v38 = vsel %vm494_vm0, %v645_v41, %v4460_v49  ;;  %v654_v48 = vshll.u32 %v4505_v31, 16 }
  0xa3   : > { %5670 = vst [vmem:[#allocation8_spill] sm:$0xff] %v4566_v10  ;;  %v1950_v37 = vor.u32 %v1949_v5, %v1945_v52  ;;  %1187 = vmatprep.subr.bf16.mxu0 %v4566_v10  ;;  %v1943_v35 = vrot.slane %v1941_v18, 1  ;;  %v1957_v16 = vshll.u32 %v1796_v32, 16  ;;  %v1694_v40 = vshrl.u32 %v4545_v54, 16  ;;  %v199_v5 = vld [vmem:[%s4025_s17 + $0xa8] sm:$0xf] }
  0xa4   : > { %1769 = vrot.lane.b32.xlu0 %v5671_v21, %s3989_s18  ;;  %1188 = vmatpush1.bf16.xpose.msra.mxu0 %v1076_v19  ;;  %v1006_v51 = vshll.u32 %v4527_v14, 16  ;;  %v1462_v2 = vpop.permute.xlu1 %1461  ;;  %v4591_v44 = vsel %vm494_vm0, %v997_v28, %v4485_v43  ;;  %v1427_v41 = vor.u32 %v1426_v47, %v1422_v53  ;;  %v1698_v13 = vrot.slane %v1696_v1, 1  ;;  %v4594_v18 = vld [vmem:[%s4025_s17 + $0xb0] ss:$0 sps:$4 sm:$0x11]  }
  0xa5   : > { %709 = vrot.lane.b32.xlu1 %v4467_v34, %s3989_s18  ;;  %v1732_v49 = vpop.permute.xlu0 %1731  ;;  %v4587_v56 = vsel %vm494_vm0, %v1950_v37, %v1953_v11  ;;  %v1944_v54 = vsel %vm494_vm0, %v1940_v12, %v1943_v35  ;;  %v1798_v52 = vsel %vm1071_vm1, %v3943_v55, %v1462_v2  ;;  %v4603_v43 = vcombine.low %v233_v22, %v200_v25  ;;  %v3486_v53 = vld [vmem:[%s4025_s17 + $0xb4] sm:$0xf]  ;;  %v3487_v19 = vld [vmem:[%s4025_s17 + $0xb8] sm:$0xf] }
  0xa6   : > { %5672 = vst [vmem:[#allocation9_spill] sm:$0xff] %v4587_v56  ;;  %v1860_v34 = vsel %vm1071_vm1, %v4086_v23, %v1732_v49  ;;  %2282 = vmatprep.subr.bf16.mxu1 %v4587_v56  ;;  %v652_v47 = vshrl.u32 %v4505_v31, 16  ;;  %v656_v60 = vrot.slane %v654_v48, 1  ;;  %v1004_v26 = vshrl.u32 %v4527_v14, 16  ;;  %v3520_v22 = vld [vmem:[%s4025_s17 + $0xb4] sm:$0xe] }
  0xa7   : > { %v1967_v28 = vshll.u32 %v1860_v34, 16  ;;  %2283 = vmatpush1.bf16.xpose.msra.mxu1 %v1944_v54  ;;  %v4612_v1 = vld [vmem:[%s4025_s17 + $0xbc] ss:$0 sps:$4 sm:$0x11]   ;;  %v1955_v12 = vshrl.u32 %v1796_v32, 16  ;;  %v1959_v11 = vrot.slane %v1957_v16, 1  ;;  %v4618_v48 = vcombine.low %v199_v5, %v200_v25 }
  0xa8   : > { %1061 = vrot.lane.b32.xlu0 %v4476_v4, %s3989_s18  ;;  %v1961_v37 = vshll.u32 %v1798_v52, 16  ;;  %v1008_v21 = vrot.slane %v1006_v51, 1  ;;  %v692_v49 = vpop.permute.xlu1 %691  ;;  %v671_v54 = vshll.u32 %v4594_v18, 16  ;;  %v3944_v55 = vld [vmem:[%s4025_s17 + $0x2c] ss:$0 sps:$4 sm:$0x11]   ;;  %v4625_v32 = vsel %vm494_vm0, %v1427_v41, %v4543_v30 }
  0xa9   : > { %1499 = vrot.lane.b32.xlu1 %v4503_v0, %s3989_s18  ;;  %v1969_v35 = vrot.slane %v1967_v28, 1  ;;  %v1734_v4 = vpop.permute.xlu0 %1733  ;;  %v1699_v16 = vor.u32 %v1698_v13, %v1694_v40  ;;  %v1434_v0 = vshll.u32 %v4603_v43, 16  ;;  %v1965_v51 = vshrl.u32 %v1860_v34, 16 }
  0xaa   : > { %v1862_v8 = vsel %vm1071_vm1, %v3944_v55, %v1734_v4  ;;  %v4630_v28 = vcombine.low %v3486_v53, %v3487_v19  ;;  %v4632_v25 = vcombine.low %v3520_v22, %v3487_v19  ;;  %v1960_v5 = vor.u32 %v1959_v11, %v1955_v12 }
  0xab   : > { %v1971_v52 = vshll.u32 %v1862_v8, 16  ;;  %v1963_v4 = vrot.slane %v1961_v37, 1  ;;  %v5674_v41 = vshrl.u32 %v4409_v27, 16  ;;  %v657_v40 = vor.u32 %v656_v60, %v652_v47  ;;  %v202_v60 = vld [vmem:[%s4025_s17 + $0xb8] sm:$0xf] }
  0xac   : > { %1771 = vrot.lane.b32.xlu0 %v4553_v36, %s3989_s18  ;;  %5673 = vst [vmem:[#allocation10_spill] sm:$0xff] %v4630_v28  ;;  %v1009_v13 = vor.u32 %v1008_v21, %v1004_v26  ;;  %v1970_v55 = vor.u32 %v1969_v35, %v1965_v51  ;;  %v1464_v2 = vpop.permute.xlu1 %1463  ;;  %v1079_v36 = vsel %vm1071_vm1, %v4084_v20, %v692_v49  ;;  %v1023_v53 = vshll.u32 %v4612_v1, 16  ;;  %v234_v26 = vld [vmem:[%s4025_s17 + $0xb4] sm:$0xe] }
  0xad   : > { %1501 = vrot.lane.b32.xlu1 %v5674_v41, %s3989_s18  ;;  %v1973_v34 = vrot.slane %v1971_v52, 1  ;;  %v1044_v8 = vpop.permute.xlu0 %1043  ;;  %v4646_v12 = vsel %vm1071_vm1, %v4113_v58, %v1464_v2  ;;  %v1432_v27 = vshrl.u32 %v4603_v43, 16  ;;  %v1436_v47 = vrot.slane %v1434_v0, 1  ;;  %v201_v49 = vld [vmem:[%s4025_s17 + $0xb4] sm:$0xf] }
  0xae   : > { %v4642_v19 = vsel %vm1071_vm1, %v4086_v23, %v1044_v8  ;;  %v5676_v11 = vshrl.u32 %v4431_v42, 16  ;;  %v1700_v23 = vsel %vm494_vm0, %v1699_v16, %v4559_v3  ;;  %v4660_v37 = vrot.slane %v671_v54, 1  ;;  %v4682_v51 = vld [vmem:[%s4025_s17 + $0xbc] ss:$0 sps:$4 sm:$0x11]  }
  0xaf   : > { %5675 = vst [vmem:[#allocation11_spill] sm:$0xff] %v4642_v19  ;;  %1189 = vmatprep.subr.bf16.mxu0 %v4642_v19  ;;  %v4656_v20 = vsel %vm494_vm0, %v1970_v55, %v1973_v34  ;;  %v1706_v43 = vshll.u32 %v4632_v25, 16  ;;  %v1977_v21 = vshll.u32 %v4646_v12, 16  ;;  %v1964_v42 = vsel %vm494_vm0, %v1960_v5, %v1963_v4  ;;  %v3945_v4 = vld [vmem:[%s4025_s17 + $0x2c] ss:$0 sps:$4 sm:$0x11]  }
  0xb0   : > { %1773 = vrot.lane.b32.xlu0 %v5676_v11, %s3989_s18  ;;  %5677 = vst [vmem:[#allocation12_spill] sm:$0xff] %v4656_v20  ;;  %2284 = vmatprep.subr.bf16.mxu1 %v4656_v20  ;;  %v4668_v22 = vsel %vm494_vm0, %v657_v40, %v4543_v30  ;;  %v1466_v54 = vpop.permute.xlu1 %1465  ;;  %v4676_v16 = vsel %vm494_vm0, %v1009_v13, %v4559_v3  ;;  %v4678_v0 = vrot.slane %v1023_v53, 1  ;;  %v1704_v30 = vshrl.u32 %v4632_v25, 16  ;;  %v3489_v3 = vld [vmem:[%s4025_s17 + $0xc4] sm:$0xf] }
  0xb1   : > { %1190 = vmatpush1.bf16.xpose.msra.mxu0 %v1079_v36  ;;  %v1736_v2 = vpop.permute.xlu0 %1735  ;;  %2285 = vmatpush1.bf16.xpose.msra.mxu1 %v1964_v42  ;;  %v4684_v52 = vcombine.low %v234_v26, %v202_v60  ;;  %v1437_v41 = vor.u32 %v1436_v47, %v1432_v27  ;;  %v666_v40 = vshll.u32 %v4618_v48, 16  ;;  %v4693_v13 = vld [vmem:[%s4025_s17 + $0xc8] ss:$0 sps:$4 sm:$0x11]   ;;  %v1708_v25 = vrot.slane %v1706_v43, 1 }
  0xb2   : > { %711 = vrot.lane.b32.xlu1 %v4577_v38, %s3989_s18  ;;  %v1864_v5 = vsel %vm1071_vm1, %v4123_v6, %v1736_v2  ;;  %v1802_v38 = vsel %vm1071_vm1, %v3945_v4, %v1466_v54  ;;  %v664_v34 = vshrl.u32 %v4618_v48, 16  ;;  %v1018_v8 = vshll.u32 %v4630_v28, 16  ;;  %v3521_v36 = vld [vmem:[%s4025_s17 + $0xc0] sm:$0xe] }
  0xb3   : > { %v1987_v55 = vshll.u32 %v1864_v5, 16  ;;  %v1975_v53 = vshrl.u32 %v4646_v12, 16  ;;  %v1979_v26 = vrot.slane %v1977_v21, 1  ;;  %v1981_v27 = vshll.u32 %v1802_v38, 16 }
  0xb4   : > { %1063 = vrot.lane.b32.xlu0 %v4591_v44, %s3989_s18  ;;  %v1016_v47 = vshrl.u32 %v4630_v28, 16  ;;  %v694_v44 = vpop.permute.xlu1 %693  ;;  %v4704_v2 = vcombine.low %v201_v49, %v202_v60  ;;  %v683_v43 = vshll.u32 %v4682_v51, 16  ;;  %v1444_v54 = vshll.u32 %v4684_v52, 16  ;;  %v3946_v4 = vld [vmem:[%s4025_s17 + $0x38] ss:$0 sps:$4 sm:$0x11]  }
  0xb5   : > { %v1989_v11 = vrot.slane %v1987_v55, 1  ;;  %v1738_v42 = vpop.permute.xlu0 %1737  ;;  %v4712_v21 = vsel %vm494_vm0, %v1437_v41, %v4660_v37  ;;  %v668_v38 = vrot.slane %v666_v40, 1  ;;  %v4714_v55 = vcombine.low %v3521_v36, %v3489_v3  ;;  %v3488_v49 = vld [vmem:[%s4025_s17 + $0xc0] sm:$0xf] }
  0xb6   : > { %1503 = vrot.lane.b32.xlu1 %v4625_v32, %s3989_s18  ;;  %v1866_v12 = vsel %vm1071_vm1, %v3946_v4, %v1738_v42  ;;  %v1985_v35 = vshrl.u32 %v1864_v5, 16  ;;  %v1709_v32 = vor.u32 %v1708_v25, %v1704_v30  ;;  %v1020_v60 = vrot.slane %v1018_v8, 1 }
  0xb7   : > { %v1991_v20 = vshll.u32 %v1866_v12, 16  ;;  %v1980_v19 = vor.u32 %v1979_v26, %v1975_v53  ;;  %v1983_v56 = vrot.slane %v1981_v27, 1  ;;  %v1442_v10 = vshrl.u32 %v4684_v52, 16  ;;  %v3523_v27 = vld [vmem:[%s4025_s17 + $0x1c] sm:$0xf] }
  0xb8   : > { %1775 = vrot.lane.b32.xlu0 %v1700_v23, %s3989_s18  ;;  %v1035_v42 = vshll.u32 %v4693_v13, 16  ;;  %v1990_v4 = vor.u32 %v1989_v11, %v1985_v35  ;;  %v5678_v40 = vshrl.u32 %v4481_v61, 16  ;;  %v1468_v5 = vpop.permute.xlu1 %1467  ;;  %v1082_v23 = vsel %vm1071_vm1, %v4113_v58, %v694_v44 }
  0xb9   : > { %v1993_v28 = vrot.slane %v1991_v20, 1  ;;  %v1046_v41 = vpop.permute.xlu0 %1045  ;;  %v1446_v30 = vrot.slane %v1444_v54, 1  ;;  %v1804_v52 = vsel %vm1071_vm1, %v4148_v39, %v1468_v5  ;;  %v4731_v35 = vcombine.low %v3488_v49, %v3489_v3  ;;  %v3947_v54 = vld [vmem:[%s4025_s17 + $0x38] ss:$0 sps:$4 sm:$0x11]  }
  0xba   : > { %1505 = vrot.lane.b32.xlu1 %v5678_v40, %s3989_s18  ;;  %v4727_v25 = vsel %vm1071_vm1, %v4123_v6, %v1046_v41  ;;  %v1716_v20 = vshll.u32 %v4714_v55, 16  ;;  %v5679_v61 = vshrl.u32 %v4511_v59, 16  ;;  %v1711_v6 = vshrl.u32 %v4612_v1, 16  ;;  %v3522_v49 = vld [vmem:[%s4025_s17 + $0x18] sm:$0xf] }
  0xbb   : > { %1191 = vmatprep.subr.bf16.mxu0 %v4727_v25  ;;  %v4739_v58 = vsel %vm494_vm0, %v1990_v4, %v1993_v28  ;;  %v669_v8 = vor.u32 %v668_v38, %v664_v34  ;;  %v1021_v36 = vor.u32 %v1020_v60, %v1016_v47  ;;  %v1997_v3 = vshll.u32 %v1804_v52, 16  ;;  %v4772_v40 = vld [vmem:[%s4025_s17 + $0x20] ss:$0 sps:$4 sm:$0x11]  }
  0xbc   : > { %1777 = vrot.lane.b32.xlu0 %v5679_v61, %s3989_s18  ;;  %2286 = vmatprep.subr.bf16.mxu1 %v4739_v58  ;;  %v1984_v53 = vsel %vm494_vm0, %v1980_v19, %v1983_v56  ;;  %v1710_v59 = vsel %vm494_vm0, %v1709_v32, %v4678_v0  ;;  %v4746_v26 = vrot.slane %v683_v43, 1  ;;  %v1470_v34 = vpop.permute.xlu1 %1469  ;;  %v1447_v47 = vor.u32 %v1446_v30, %v1442_v10  ;;  %v3570_v19 = vld [vmem:[%s4025_s17 + $0x18] sm:$0xe] }
  0xbd   : > { %1192 = vmatpush1.bf16.xpose.msra.mxu0 %v1082_v23  ;;  %v1740_v28 = vpop.permute.xlu0 %1739  ;;  %2287 = vmatpush1.bf16.xpose.msra.mxu1 %v1984_v53  ;;  %v4751_v11 = vrot.slane %v1035_v42, 1  ;;  %v1714_v44 = vshrl.u32 %v4714_v55, 16  ;;  %v1449_v56 = vshrl.u32 %v4682_v51, 16  ;;  %v1806_v12 = vsel %vm1071_vm1, %v3947_v54, %v1470_v34  ;;  %v3525_v53 = vld [vmem:[%s4025_s17 + $0x28] sm:$0xf] }
  0xbe   : > { %713 = vrot.lane.b32.xlu1 %v4668_v22, %s3989_s18  ;;  %v1868_v43 = vsel %vm1071_vm1, %v4157_v50, %v1740_v28  ;;  %v1718_v38 = vrot.slane %v1716_v20, 1  ;;  %v1030_v22 = vshll.u32 %v4731_v35, 16  ;;  %v674_v10 = vsel %vm494_vm0, %v669_v8, %v4660_v37  ;;  %v3948_v20 = vld [vmem:[%s4025_s17 + $0x44] ss:$0 sps:$4 sm:$0x11]  }
  0xbf   : > { %v2007_v32 = vshll.u32 %v1868_v43, 16  ;;  %v4767_v55 = vsel %vm494_vm0, %v1021_v36, %v4678_v0  ;;  %v678_v60 = vshll.u32 %v4704_v2, 16  ;;  %v1995_v42 = vshrl.u32 %v1804_v52, 16  ;;  %v3571_v54 = vld [vmem:[%s4025_s17 + $0x24] sm:$0xe] }
  0xc0   : > { %1065 = vrot.lane.b32.xlu0 %v4676_v16, %s3989_s18  ;;  %v1999_v4 = vrot.slane %v1997_v3, 1  ;;  %v2001_v41 = vshll.u32 %v1806_v12, 16  ;;  %v4774_v5 = vcombine.low %v3570_v19, %v3523_v27  ;;  %v696_v37 = vpop.permute.xlu1 %695  ;;  %v1028_v30 = vshrl.u32 %v4731_v35, 16 }
  0xc1   : > { %v2009_v16 = vrot.slane %v2007_v32, 1  ;;  %v1742_v23 = vpop.permute.xlu0 %1741  ;;  %v676_v52 = vshrl.u32 %v4704_v2, 16  ;;  %v4785_v8 = vsel %vm494_vm0, %v1447_v47, %v4746_v26  ;;  %v1719_v36 = vor.u32 %v1718_v38, %v1714_v44  ;;  %v3524_v47 = vld [vmem:[%s4025_s17 + $0x24] sm:$0xf] }
  0xc2   : > { %1507 = vrot.lane.b32.xlu1 %v4712_v21, %s3989_s18  ;;  %v1870_v61 = vsel %vm1071_vm1, %v3948_v20, %v1742_v23  ;;  %v1032_v3 = vrot.slane %v1030_v22, 1  ;;  %v2005_v21 = vshrl.u32 %v1868_v43, 16  ;;  %v680_v34 = vrot.slane %v678_v60, 1  ;;  %v4802_v60 = vld [vmem:[%s4025_s17 + $0x2c] ss:$0 sps:$4 sm:$0x11]  }
  0xc3   : > { %v2011_v28 = vshll.u32 %v1870_v61, 16  ;;  %v4789_v19 = vcombine.low %v3522_v49, %v3523_v27  ;;  %v2000_v12 = vor.u32 %v1999_v4, %v1995_v42  ;;  %v2003_v32 = vrot.slane %v2001_v41, 1 }
  0xc4   : > { %1779 = vrot.lane.b32.xlu0 %v1710_v59, %s3989_s18  ;;  %v2475_v23 = vshll.u32 %v4772_v40, 16  ;;  %v2862_v20 = vshll.u32 %v4774_v5, 16  ;;  %v2010_v0 = vor.u32 %v2009_v16, %v2005_v21  ;;  %v5680_v43 = vshrl.u32 %v4594_v18, 16  ;;  %v1472_v59 = vpop.permute.xlu1 %1471 }
  0xc5   : > { %v2013_v44 = vrot.slane %v2011_v28, 1  ;;  %v1048_v38 = vpop.permute.xlu0 %1047  ;;  %v1085_v27 = vsel %vm1071_vm1, %v4148_v39, %v696_v37  ;;  %v2867_v22 = vshrl.u32 %v4772_v40, 16  ;;  %v1808_v42 = vsel %vm1071_vm1, %v4183_v15, %v1472_v59  ;;  %v3949_v28 = vld [vmem:[%s4025_s17 + $0x44] ss:$0 sps:$4 sm:$0x11]  }
  0xc6   : > { %1509 = vrot.lane.b32.xlu1 %v5680_v43, %s3989_s18  ;;  %v4806_v49 = vsel %vm1071_vm1, %v4157_v50, %v1048_v38  ;;  %v1033_v4 = vor.u32 %v1032_v3, %v1028_v30  ;;  %v4810_v41 = vcombine.low %v3571_v54, %v3525_v53  ;;  %v681_v18 = vor.u32 %v680_v34, %v676_v52 }
  0xc7   : > { %1193 = vmatprep.subr.bf16.mxu0 %v4806_v49  ;;  %v4817_v39 = vsel %vm494_vm0, %v2010_v0, %v2013_v44  ;;  %v2470_v16 = vshll.u32 %v4789_v19, 16  ;;  %v4820_v50 = vcombine.low %v3524_v47, %v3525_v53  ;;  %v2017_v37 = vshll.u32 %v1808_v42, 16  ;;  %v3526_v44 = vld [vmem:[%s4025_s17 + $0x30] sm:$0xf] }
  0xc8   : > { %1781 = vrot.lane.b32.xlu0 %v1711_v6, %s3989_s18  ;;  %5681 = vst [vmem:[#allocation13_spill] sm:$0xff] %v4817_v39  ;;  %2288 = vmatprep.subr.bf16.mxu1 %v4817_v39  ;;  %v2004_v30 = vsel %vm494_vm0, %v2000_v12, %v2003_v32  ;;  %v2860_v1 = vshrl.u32 %v4774_v5, 16  ;;  %v2864_v6 = vrot.slane %v2862_v20, 1  ;;  %v1474_v0 = vpop.permute.xlu1 %1473  ;;  %v1720_v52 = vsel %vm494_vm0, %v1719_v36, %v4751_v11  ;;  %v3527_v36 = vld [vmem:[%s4025_s17 + $0x34] sm:$0xf] }
  0xc9   : > { %1194 = vmatpush1.bf16.xpose.msra.mxu0 %v1085_v27  ;;  %v1744_v61 = vpop.permute.xlu0 %1743  ;;  %2289 = vmatpush1.bf16.xpose.msra.mxu1 %v2004_v30  ;;  %v4828_v3 = vrot.slane %v2475_v23, 1  ;;  %v2468_v53 = vshrl.u32 %v4789_v19, 16  ;;  %v2487_v21 = vshll.u32 %v4802_v60, 16  ;;  %v1810_v34 = vsel %vm1071_vm1, %v3949_v28, %v1474_v0  ;;  %v3572_v12 = vld [vmem:[%s4025_s17 + $0x30] sm:$0xe] }
  0xca   : > { %715 = vrot.lane.b32.xlu1 %v674_v10, %s3989_s18  ;;  %v1872_v5 = vsel %vm1071_vm1, %v4191_v29, %v1744_v61  ;;  %v4838_v10 = vsel %vm494_vm0, %v1033_v4, %v4751_v11  ;;  %v2872_v54 = vshll.u32 %v4810_v41, 16  ;;  %v686_v23 = vsel %vm494_vm0, %v681_v18, %v4746_v26  ;;  %v3950_v18 = vld [vmem:[%s4025_s17 + $0x50] ss:$0 sps:$4 sm:$0x11]  }
  0xcb   : > { %v2027_v32 = vshll.u32 %v1872_v5, 16  ;;  %v2472_v20 = vrot.slane %v2470_v16, 1  ;;  %v2482_v47 = vshll.u32 %v4820_v50, 16  ;;  %v2015_v38 = vshrl.u32 %v1808_v42, 16 }
  0xcc   : > { %1067 = vrot.lane.b32.xlu0 %v4767_v55, %s3989_s18  ;;  %v2019_v11 = vrot.slane %v2017_v37, 1  ;;  %v2021_v43 = vshll.u32 %v1810_v34, 16  ;;  %v2865_v59 = vor.u32 %v2864_v6, %v2860_v1  ;;  %v698_v30 = vpop.permute.xlu1 %697  ;;  %v4851_v55 = vrot.slane %v2487_v21, 1  ;;  %v4862_v6 = vld [vmem:[%s4025_s17 + $0x38] ss:$0 sps:$4 sm:$0x11]  }
  0xcd   : > { %v2029_v27 = vrot.slane %v2027_v32, 1  ;;  %v1746_v4 = vpop.permute.xlu0 %1745  ;;  %v2877_v61 = vshrl.u32 %v4802_v60, 16  ;;  %v4854_v26 = vcombine.low %v3572_v12, %v3527_v36  ;;  %v2870_v16 = vshrl.u32 %v4810_v41, 16 }
  0xce   : > { %1511 = vrot.lane.b32.xlu1 %v4785_v8, %s3989_s18  ;;  %v1874_v42 = vsel %vm1071_vm1, %v3950_v18, %v1746_v4  ;;  %v2874_v37 = vrot.slane %v2872_v54, 1  ;;  %v4859_v1 = vcombine.low %v3526_v44, %v3527_v36  ;;  %v2025_v8 = vshrl.u32 %v1872_v5, 16  ;;  %v3529_v54 = vld [vmem:[%s4025_s17 + $0x40] sm:$0xf]  ;;  %v3573_v36 = vld [vmem:[%s4025_s17 + $0x3c] sm:$0xe] }
  0xcf   : > { %v2031_v0 = vshll.u32 %v1874_v42, 16  ;;  %v2480_v21 = vshrl.u32 %v4820_v50, 16  ;;  %v2484_v28 = vrot.slane %v2482_v47, 1  ;;  %v2020_v34 = vor.u32 %v2019_v11, %v2015_v38  ;;  %v4879_v38 = vld [vmem:[%s4025_s17 + $0x44] ss:$0 sps:$4 sm:$0x11]  }
  0xd0   : > { %1783 = vrot.lane.b32.xlu0 %v1720_v52, %s3989_s18  ;;  %v2023_v12 = vrot.slane %v2021_v43, 1  ;;  %v4868_v32 = vsel %vm494_vm0, %v2865_v59, %v4828_v3  ;;  %v2473_v41 = vor.u32 %v2472_v20, %v2468_v53  ;;  %v2030_v44 = vor.u32 %v2029_v27, %v2025_v8  ;;  %v1476_v52 = vpop.permute.xlu1 %1475 }
  0xd1   : > { %v2033_v4 = vrot.slane %v2031_v0, 1  ;;  %v1050_v18 = vpop.permute.xlu0 %1049  ;;  %v1088_v5 = vsel %vm1071_vm1, %v4183_v15, %v698_v30  ;;  %v2882_v47 = vshll.u32 %v4854_v26, 16  ;;  %v1812_v20 = vsel %vm1071_vm1, %v4217_v63, %v1476_v52 }
  0xd2   : > { %1513 = vrot.lane.b32.xlu1 %v1449_v56, %s3989_s18  ;;  %v4883_v53 = vsel %vm1071_vm1, %v4191_v29, %v1050_v18  ;;  %v2875_v11 = vor.u32 %v2874_v37, %v2870_v16  ;;  %v2494_v43 = vshll.u32 %v4859_v1, 16  ;;  %v5683_v51 = vshrl.u32 %v4693_v13, 16 }
  0xd3   : > { %5682 = vst [vmem:[#allocation14_spill] sm:$0xff] %v4883_v53  ;;  %1195 = vmatprep.subr.bf16.mxu0 %v4883_v53  ;;  %v4893_v15 = vsel %vm494_vm0, %v2030_v44, %v2033_v4  ;;  %v2485_v56 = vor.u32 %v2484_v28, %v2480_v21  ;;  %v2499_v29 = vshll.u32 %v4862_v6, 16  ;;  %v4896_v59 = vcombine.low %v3573_v36, %v3529_v54  ;;  %v3528_v28 = vld [vmem:[%s4025_s17 + $0x3c] sm:$0xf]  ;;  %v3531_v44 = vld [vmem:[%s4025_s17 + $0x4c] sm:$0xf] }
  0xd4   : > { %1785 = vrot.lane.b32.xlu0 %v5683_v51, %s3989_s18  ;;  %5684 = vst [vmem:[#allocation15_spill] sm:$0xff] %v4893_v15  ;;  %2290 = vmatprep.subr.bf16.mxu1 %v4893_v15  ;;  %v2037_v27 = vshll.u32 %v1812_v20, 16  ;;  %v2024_v30 = vsel %vm494_vm0, %v2020_v34, %v2023_v12  ;;  %v4902_v13 = vsel %vm494_vm0, %v2473_v41, %v4828_v3  ;;  %v2887_v42 = vshrl.u32 %v4862_v6, 16  ;;  %v1478_v37 = vpop.permute.xlu1 %1477  ;;  %v3951_v12 = vld [vmem:[%s4025_s17 + $0x50] ss:$0 sps:$4 sm:$0x11]  }
  0xd5   : > { %1196 = vmatpush1.bf16.xpose.msra.mxu0 %v1088_v5  ;;  %v1748_v16 = vpop.permute.xlu0 %1747  ;;  %2291 = vmatpush1.bf16.xpose.msra.mxu1 %v2024_v30  ;;  %v2880_v8 = vshrl.u32 %v4854_v26, 16  ;;  %v2884_v0 = vrot.slane %v2882_v47, 1  ;;  %v2492_v21 = vshrl.u32 %v4859_v1, 16  ;;  %v2511_v34 = vshll.u32 %v4879_v38, 16  ;;  %v3574_v4 = vld [vmem:[%s4025_s17 + $0x48] sm:$0xe] }
  0xd6   : > { %717 = vrot.lane.b32.xlu1 %v686_v23, %s3989_s18  ;;  %v1876_v3 = vsel %vm1071_vm1, %v4225_v9, %v1748_v16  ;;  %v1814_v41 = vsel %vm1071_vm1, %v3951_v12, %v1478_v37  ;;  %v2876_v36 = vsel %vm494_vm0, %v2875_v11, %v4851_v55  ;;  %v2496_v23 = vrot.slane %v2494_v43, 1  ;;  %v3530_v47 = vld [vmem:[%s4025_s17 + $0x48] sm:$0xf] }
  0xd7   : > { %v2047_v26 = vshll.u32 %v1876_v3, 16  ;;  %v2490_v18 = vsel %vm494_vm0, %v2485_v56, %v4851_v55  ;;  %v2501_v52 = vrot.slane %v2499_v29, 1  ;;  %v2892_v5 = vshll.u32 %v4896_v59, 16  ;;  %v3952_v29 = vld [vmem:[%s4025_s17 + $0x5c] ss:$0 sps:$4 sm:$0x11]  }
  0xd8   : > { %1069 = vrot.lane.b32.xlu0 %v4838_v10, %s3989_s18  ;;  %v2035_v51 = vshrl.u32 %v1812_v20, 16  ;;  %v2039_v30 = vrot.slane %v2037_v27, 1  ;;  %v2041_v16 = vshll.u32 %v1814_v41, 16  ;;  %v4924_v11 = vcombine.low %v3528_v28, %v3529_v54  ;;  %v700_v12 = vpop.permute.xlu1 %699  ;;  %v4939_v41 = vld [vmem:[%s4025_s17 + $0x50] ss:$0 sps:$4 sm:$0x11]  }
  0xd9   : > { %v2049_v43 = vrot.slane %v2047_v26, 1  ;;  %v1750_v37 = vpop.permute.xlu0 %1749  ;;  %v2885_v10 = vor.u32 %v2884_v0, %v2880_v8  ;;  %v4929_v55 = vrot.slane %v2511_v34, 1  ;;  %v4931_v56 = vcombine.low %v3574_v4, %v3531_v44  ;;  %v3533_v0 = vld [vmem:[%s4025_s17 + $0x58] sm:$0xf] }
  0xda   : > { %3021 = vrot.lane.b32.xlu1 %v2867_v22, %s3989_s18  ;;  %v1878_v20 = vsel %vm1071_vm1, %v3952_v29, %v1750_v37  ;;  %v2497_v27 = vor.u32 %v2496_v23, %v2492_v21  ;;  %v2890_v54 = vshrl.u32 %v4896_v59, 16  ;;  %v4936_v28 = vcombine.low %v3530_v47, %v3531_v44  ;;  %v3575_v23 = vld [vmem:[%s4025_s17 + $0x54] sm:$0xe] }
  0xdb   : > { %v2045_v26 = vshrl.u32 %v1876_v3, 16  ;;  %v2051_v40 = vshll.u32 %v1878_v20, 16  ;;  %v2894_v22 = vrot.slane %v2892_v5, 1  ;;  %v2040_v34 = vor.u32 %v2039_v30, %v2035_v51  ;;  %v3532_v29 = vld [vmem:[%s4025_s17 + $0x54] sm:$0xf] }
  0xdc   : > { %3019 = vrot.lane.b32.xlu0 %v4868_v32, %s3989_s18  ;;  %v2043_v4 = vrot.slane %v2041_v16, 1  ;;  %v2504_v21 = vshrl.u32 %v4924_v11, 16  ;;  %v2506_v59 = vshll.u32 %v4924_v11, 16  ;;  %v1480_v3 = vpop.permute.xlu1 %1479  ;;  %v1091_v32 = vsel %vm1071_vm1, %v4217_v63, %v700_v12 }
  0xdd   : > { %v2050_v44 = vor.u32 %v2049_v43, %v2045_v26  ;;  %v2053_v47 = vrot.slane %v2051_v40, 1  ;;  %v1052_v37 = vpop.permute.xlu0 %1051  ;;  %v2902_v5 = vshll.u32 %v4931_v56, 16  ;;  %v1816_v30 = vsel %vm1071_vm1, %v4251_v45, %v1480_v3  ;;  %v4978_v40 = vld [vmem:[%s4025_s17 + $0x5c] ss:$0 sps:$4 sm:$0x11]  }
  0xde   : > { %3023 = vrot.lane.b32.xlu1 %v2876_v36, %s3989_s18  ;;  %v4955_v51 = vsel %vm1071_vm1, %v4225_v9, %v1052_v37  ;;  %v2886_v16 = vsel %vm494_vm0, %v2885_v10, %v2501_v52  ;;  %v2518_v43 = vshll.u32 %v4936_v28, 16  ;;  %v2895_v36 = vor.u32 %v2894_v22, %v2890_v54  ;;  %v3535_v3 = vld [vmem:[%s4025_s17 + $0x64] sm:$0xf] }
  0xdf   : > { %5685 = vst [vmem:[#allocation16_spill] sm:$0xff] %v4955_v51  ;;  %1197 = vmatprep.subr.bf16.mxu0 %v4955_v51  ;;  %v4965_v63 = vsel %vm494_vm0, %v2050_v44, %v2053_v47  ;;  %v2523_v9 = vshll.u32 %v4939_v41, 16  ;;  %v4968_v12 = vcombine.low %v3575_v23, %v3533_v0  ;;  %v2057_v20 = vshll.u32 %v1816_v30, 16 }
  0xe0   : > { %2659 = vrot.lane.b32.xlu0 %v4902_v13, %s3989_s18  ;;  %5686 = vst [vmem:[#allocation17_spill] sm:$0xff] %v4965_v63  ;;  %2292 = vmatprep.subr.bf16.mxu1 %v4965_v63  ;;  %v2044_v10 = vsel %vm494_vm0, %v2040_v34, %v2043_v4  ;;  %v4973_v26 = vsel %vm494_vm0, %v2497_v27, %v2501_v52  ;;  %v1482_v22 = vpop.permute.xlu1 %1481  ;;  %v2508_v23 = vrot.slane %v2506_v59, 1  ;;  %v2900_v44 = vshrl.u32 %v4931_v56, 16  ;;  %v3953_v27 = vld [vmem:[%s4025_s17 + $0x5c] ss:$0 sps:$4 sm:$0x11]  }
  0xe1   : > { %1198 = vmatpush1.bf16.xpose.msra.mxu0 %v1091_v32  ;;  %v4975_v13 = vcombine.low %v3532_v29, %v3533_v0  ;;  %v1752_v54 = vpop.permute.xlu0 %1751  ;;  %2293 = vmatpush1.bf16.xpose.msra.mxu1 %v2044_v10  ;;  %v2904_v47 = vrot.slane %v2902_v5, 1  ;;  %v1818_v0 = vsel %vm1071_vm1, %v3953_v27, %v1482_v22  ;;  %v2516_v4 = vshrl.u32 %v4936_v28, 16  ;;  %v3576_v5 = vld [vmem:[%s4025_s17 + $0x60] sm:$0xe] }
  0xe2   : > { %2661 = vrot.lane.b32.xlu1 %v2490_v18, %s3989_s18  ;;  %v1880_v52 = vsel %vm1071_vm1, %v4259_v57, %v1752_v54  ;;  %v2520_v37 = vrot.slane %v2518_v43, 1  ;;  %v2896_v18 = vsel %vm494_vm0, %v2895_v36, %v4929_v55  ;;  %v2525_v56 = vrot.slane %v2523_v9, 1  ;;  %v3534_v22 = vld [vmem:[%s4025_s17 + $0x60] sm:$0xf] }
  0xe3   : > { %v2067_v32 = vshll.u32 %v1880_v52, 16  ;;  %v2912_v59 = vshll.u32 %v4968_v12, 16  ;;  %v2055_v29 = vshrl.u32 %v1816_v30, 16  ;;  %v2059_v10 = vrot.slane %v2057_v20, 1 }
  0xe4   : > { %3025 = vrot.lane.b32.xlu0 %v2877_v61, %s3989_s18  ;;  %v2061_v54 = vshll.u32 %v1818_v0, 16  ;;  %v2530_v43 = vshll.u32 %v4975_v13, 16  ;;  %v702_v8 = vpop.permute.xlu1 %701  ;;  %v2509_v60 = vor.u32 %v2508_v23, %v2504_v21  ;;  %v2905_v61 = vor.u32 %v2904_v47, %v2900_v44  ;;  %v5003_v9 = vld [vmem:[%s4025_s17 + $0x68] ss:$0 sps:$4 sm:$0x11]  }
  0xe5   : > { %v2069_v27 = vrot.slane %v2067_v32, 1  ;;  %v1754_v34 = vpop.permute.xlu0 %1753  ;;  %v2535_v36 = vshll.u32 %v4978_v40, 16  ;;  %v3954_v63 = vld [vmem:[%s4025_s17 + $0x68] ss:$0 sps:$4 sm:$0x11]   ;;  %v2521_v20 = vor.u32 %v2520_v37, %v2516_v4  ;;  %v2910_v0 = vshrl.u32 %v4968_v12, 16 }
  0xe6   : > { %3029 = vrot.lane.b32.xlu1 %v2887_v42, %s3989_s18  ;;  %v1882_v30 = vsel %vm1071_vm1, %v3954_v63, %v1754_v34  ;;  %v5008_v51 = vcombine.low %v3576_v5, %v3535_v3  ;;  %v2065_v32 = vshrl.u32 %v1880_v52, 16  ;;  %v2914_v6 = vrot.slane %v2912_v59, 1  ;;  %v3536_v37 = vld [vmem:[%s4025_s17 + $0x6c] sm:$0xf] }
  0xe7   : > { %v2071_v15 = vshll.u32 %v1882_v30, 16  ;;  %v5011_v42 = vcombine.low %v3534_v22, %v3535_v3  ;;  %v2060_v21 = vor.u32 %v2059_v10, %v2055_v29  ;;  %v2063_v23 = vrot.slane %v2061_v54, 1 }
  0xe8   : > { %3027 = vrot.lane.b32.xlu0 %v2886_v16, %s3989_s18  ;;  %v2528_v44 = vshrl.u32 %v4975_v13, 16  ;;  %v2532_v63 = vrot.slane %v2530_v43, 1  ;;  %v2070_v47 = vor.u32 %v2069_v27, %v2065_v32  ;;  %v1484_v4 = vpop.permute.xlu1 %1483  ;;  %v1094_v52 = vsel %vm1071_vm1, %v4251_v45, %v702_v8  ;;  %v3537_v45 = vld [vmem:[%s4025_s17 + $0x70] sm:$0xf]  ;;  %v3577_v8 = vld [vmem:[%s4025_s17 + $0x6c] sm:$0xe] }
  0xe9   : > { %v2073_v34 = vrot.slane %v2071_v15, 1  ;;  %v1054_v12 = vpop.permute.xlu0 %1053  ;;  %v2547_v16 = vshll.u32 %v5003_v9, 16  ;;  %v5025_v59 = vsel %vm1071_vm1, %v4284_v33, %v1484_v4  ;;  %v2514_v15 = vsel %vm494_vm0, %v2509_v60, %v4929_v55  ;;  %v5048_v27 = vld [vmem:[%s4025_s17 + $0x74] ss:$0 sps:$4 sm:$0x11]  }
  0xea   : > { %3031 = vrot.lane.b32.xlu1 %v2896_v18, %s3989_s18  ;;  %v5021_v3 = vsel %vm1071_vm1, %v4259_v57, %v1054_v12  ;;  %v2922_v5 = vshll.u32 %v5008_v51, 16  ;;  %v5038_v57 = vrot.slane %v2535_v36, 1  ;;  %v2915_v29 = vor.u32 %v2914_v6, %v2910_v0 }
  0xeb   : > { %5687 = vst [vmem:[#allocation18_spill] sm:$0xff] %v5021_v3  ;;  %1199 = vmatprep.subr.bf16.mxu0 %v5021_v3  ;;  %v5034_v18 = vsel %vm494_vm0, %v2070_v47, %v2073_v34  ;;  %v2542_v10 = vshll.u32 %v5011_v42, 16  ;;  %v2077_v55 = vshll.u32 %v5025_v59, 16  ;;  %v2064_v54 = vsel %vm494_vm0, %v2060_v21, %v2063_v23  ;;  %v3955_v21 = vld [vmem:[%s4025_s17 + $0x68] ss:$0 sps:$4 sm:$0x11]  }
  0xec   : > { %5688 = vst [vmem:[#allocation19_spill] sm:$0xff] %v5034_v18  ;;  %2663 = vrot.lane.b32.xlu0 %v4973_v26, %s3989_s18  ;;  %2294 = vmatprep.subr.bf16.mxu1 %v5034_v18  ;;  %v2906_v43 = vsel %vm494_vm0, %v2905_v61, %v2525_v56  ;;  %v5045_v22 = vcombine.low %v3536_v37, %v3537_v45  ;;  %v1486_v60 = vpop.permute.xlu1 %1485  ;;  %v5052_v0 = vrot.slane %v2547_v16, 1  ;;  %v5059_v61 = vld.sshfl [vmem:[%s5626_s1] sm:$0x33 pattern:$0x76325410] }
  0xed   : > { %1200 = vmatpush1.bf16.xpose.msra.mxu0 %v1094_v52  ;;  %v1756_v26 = vpop.permute.xlu0 %1755  ;;  %2295 = vmatpush1.bf16.xpose.msra.mxu1 %v2064_v54  ;;  %v2526_v36 = vsel %vm494_vm0, %v2521_v20, %v2525_v56  ;;  %v2533_v30 = vor.u32 %v2532_v63, %v2528_v44  ;;  %v5054_v32 = vcombine.low %v3577_v8, %v3537_v45  ;;  %v2920_v47 = vshrl.u32 %v5008_v51, 16  ;;  %v5069_v20 = vld.sshfl [vmem:[%s5626_s1 + $0x4] sm:$0x33 pattern:$0x76325410] }
  0xee   : > { %2665 = vrot.lane.b32.xlu1 %v2514_v15, %s3989_s18  ;;  %v1884_v6 = vsel %vm1071_vm1, %v4293_v46, %v1756_v26  ;;  %v1822_v23 = vsel %vm1071_vm1, %v3955_v21, %v1486_v60  ;;  %v2924_v56 = vrot.slane %v2922_v5, 1  ;;  %v5689_v63 = vshrl.u32 %v4879_v38, 16  ;;  %v3538_v15 = vld [vmem:[%s4025_s17 + $0x78] sm:$0xf]  ;;  %v3539_v54 = vld [vmem:[%s4025_s17 + $0x7c] sm:$0xf] }
  0xef   : > { %v2087_v44 = vshll.u32 %v1884_v6, 16  ;;  %v2916_v34 = vsel %vm494_vm0, %v2915_v29, %v5038_v57  ;;  %v2540_v12 = vshrl.u32 %v5011_v42, 16  ;;  %v2544_v51 = vrot.slane %v2542_v10, 1  ;;  %v3578_v26 = vld [vmem:[%s4025_s17 + $0x78] sm:$0xe] }
  0xf0   : > { %3033 = vrot.lane.b32.xlu0 %v5689_v63, %s3989_s18  ;;  %v2075_v4 = vshrl.u32 %v5025_v59, 16  ;;  %v2079_v52 = vrot.slane %v2077_v55, 1  ;;  %v2081_v16 = vshll.u32 %v1822_v23, 16  ;;  %v2554_v37 = vshll.u32 %v5045_v22, 16  ;;  %v704_v8 = vpop.permute.xlu1 %703 }
  0xf1   : > { %v2089_v5 = vrot.slane %v2087_v44, 1  ;;  %v1758_v45 = vpop.permute.xlu0 %1757  ;;  %v5690_v38 = vshrl.u32 %v4939_v41, 16  ;;  %v2932_v29 = vshll.u32 %v5054_v32, 16  ;;  %v1182_v10 = vcombine.high %v5059_v61, %v5059_v61  ;;  %v3956_v55 = vld [vmem:[%s4025_s17 + $0x74] ss:$0 sps:$4 sm:$0x11]  }
  0xf2   : > { %v2277_v59 = vcombine.high %v5069_v20, %v5069_v20  ;;  %v1886_v60 = vsel %vm1071_vm1, %v3956_v55, %v1758_v45  ;;  %v2925_v21 = vor.u32 %v2924_v56, %v2920_v47  ;;  %v2559_v23 = vshll.u32 %v5048_v27, 16 }
  0xf3   : > { %3037 = vrot.lane.b32.xlu1 %v5690_v38, %s3989_s18  ;;  %v2552_v44 = vshrl.u32 %v5045_v22, 16  ;;  %v2085_v41 = vshrl.u32 %v1884_v6, 16  ;;  %v2091_v63 = vshll.u32 %v1886_v60, 16  ;;  %v2930_v38 = vshrl.u32 %v5054_v32, 16  ;;  %1217 = vmatprep.mubr.bf16.mxu0 %v1182_v10 }
  0xf4   : > { %3035 = vrot.lane.b32.xlu0 %v2906_v43, %s3989_s18  ;;  %v5096_v18 = vcombine.low %v3538_v15, %v3539_v54  ;;  %v2080_v3 = vor.u32 %v2079_v52, %v2075_v4  ;;  %v2083_v53 = vrot.slane %v2081_v16, 1  ;;  %v2556_v39 = vrot.slane %v2554_v37, 1  ;;  %2312 = vmatprep.mubr.bf16.mxu1 %v2277_v59  ;;  %v1488_v6 = vpop.permute.xlu1 %1487  ;;  %v5113_v15 = vld [vmem:[%s4025_s17 + $0x80] ss:$0 sps:$4 sm:$0x11]  }
  0xf5   : > { %v5098_v45 = vcombine.low %v3578_v26, %v3539_v54  ;;  %v2090_v47 = vor.u32 %v2089_v5, %v2085_v41  ;;  %v2093_v56 = vrot.slane %v2091_v63, 1  ;;  %v1056_v55 = vpop.permute.xlu0 %1055  ;;  %v1097_v43 = vsel %vm1071_vm1, %v4284_v33, %v704_v8  ;;  %v3541_v5 = vld [vmem:[%s4025_s17 + $0x88] sm:$0xf]  ;;  %v5138_v63 = vld [vmem:[%s4025_s17 + $0x8c] ss:$0 sps:$4 sm:$0x11]  }
  0xf6   : > { %v2934_v32 = vrot.slane %v2932_v29, 1  ;;  %v5105_v4 = vsel %vm1071_vm1, %v4293_v46, %v1056_v55  ;;  %v1824_v52 = vsel %vm1071_vm1, %v4316_v17, %v1488_v6  ;;  %v2917_v16 = vshrl.u32 %v4978_v40, 16  ;;  %v3579_v40 = vld [vmem:[%s4025_s17 + $0x84] sm:$0xe] }
  0xf7   : > { %3039 = vrot.lane.b32.xlu1 %v2916_v34, %s3989_s18  ;;  %v2538_v37 = vsel %vm494_vm0, %v2533_v30, %v5038_v57  ;;  %1201 = vmatprep.subr.bf16.mxu0 %v5105_v4  ;;  %v5118_v33 = vsel %vm494_vm0, %v2090_v47, %v2093_v56  ;;  %v2927_v46 = vshrl.u32 %v5003_v9, 16  ;;  %v2937_v34 = vshrl.u32 %v5048_v27, 16 }
  0xf8   : > { %2667 = vrot.lane.b32.xlu0 %v2526_v36, %s3989_s18  ;;  %v2566_v8 = vshll.u32 %v5096_v18, 16  ;;  %2296 = vmatprep.subr.bf16.mxu1 %v5118_v33  ;;  %v2097_v57 = vshll.u32 %v1824_v52, 16  ;;  %v2084_v30 = vsel %vm494_vm0, %v2080_v3, %v2083_v53  ;;  %v2545_v29 = vor.u32 %v2544_v51, %v2540_v12  ;;  %v1490_v9 = vpop.permute.xlu1 %1489  ;;  %v3957_v53 = vld [vmem:[%s4025_s17 + $0x74] ss:$0 sps:$4 sm:$0x11]  }
  0xf9   : > { %1202 = vmatpush1.bf16.xpose.msra.mxu0 %v1097_v43  ;;  %v2942_v54 = vshll.u32 %v5098_v45, 16  ;;  %v1760_v36 = vpop.permute.xlu0 %1759  ;;  %2297 = vmatpush1.bf16.xpose.msra.mxu1 %v2084_v30  ;;  %v2926_v26 = vsel %vm494_vm0, %v2925_v21, %v5052_v0  ;;  %v2561_v10 = vrot.slane %v2559_v23, 1  ;;  %v2935_v59 = vor.u32 %v2934_v32, %v2930_v38  ;;  %v3540_v51 = vld [vmem:[%s4025_s17 + $0x84] sm:$0xf]  ;;  %v3542_v43 = vld [vmem:[%s4025_s17 + $0x90] sm:$0xf] }
  0xfa   : > { %v2557_v60 = vor.u32 %v2556_v39, %v2552_v44  ;;  %v1888_v41 = vsel %vm1071_vm1, %v4324_v24, %v1760_v36  ;;  %v1826_v3 = vsel %vm1071_vm1, %v3957_v53, %v1490_v9  ;;  %v2571_v12 = vshll.u32 %v5113_v15, 16  ;;  %v3543_v9 = vld [vmem:[%s4025_s17 + $0x94] sm:$0xf] }
  0xfb   : > { %2669 = vrot.lane.b32.xlu1 %v2538_v37, %s3989_s18  ;;  %v5140_v47 = vcombine.low %v3579_v40, %v3541_v5  ;;  %v2107_v56 = vshll.u32 %v1888_v41, 16  ;;  %v2940_v39 = vshrl.u32 %v5098_v45, 16  ;;  %v2564_v21 = vshrl.u32 %v5096_v18, 16 }
  0xfc   : > { %3041 = vrot.lane.b32.xlu0 %v2917_v16, %s3989_s18  ;;  %v2568_v23 = vrot.slane %v2566_v8, 1  ;;  %v2095_v44 = vshrl.u32 %v1824_v52, 16  ;;  %v2099_v38 = vrot.slane %v2097_v57, 1  ;;  %v2101_v55 = vshll.u32 %v1826_v3, 16  ;;  %v706_v30 = vpop.permute.xlu1 %705 }
  0xfd   : > { %v2944_v6 = vrot.slane %v2942_v54, 1  ;;  %v2109_v32 = vrot.slane %v2107_v56, 1  ;;  %v1762_v37 = vpop.permute.xlu0 %1761  ;;  %v2550_v16 = vsel %vm494_vm0, %v2545_v29, %v5052_v0  ;;  %v2562_v40 = vsel %vm494_vm0, %v2557_v60, %v2561_v10  ;;  %v3958_v8 = vld [vmem:[%s4025_s17 + $0x80] ss:$0 sps:$4 sm:$0x11]  }
  0xfe   : > { %v5150_v45 = vcombine.low %v3540_v51, %v3541_v5  ;;  %v1890_v52 = vsel %vm1071_vm1, %v3958_v8, %v1762_v37  ;;  %v2936_v57 = vsel %vm494_vm0, %v2935_v59, %v2561_v10  ;;  %v2573_v54 = vrot.slane %v2571_v12, 1  ;;  %v3580_v56 = vld [vmem:[%s4025_s17 + $0x90] sm:$0xe] }
  0xff   : > { %3045 = vrot.lane.b32.xlu1 %v2927_v46, %s3989_s18  ;;  %v2952_v36 = vshll.u32 %v5140_v47, 16  ;;  %v2105_v53 = vshrl.u32 %v1888_v41, 16  ;;  %v2111_v3 = vshll.u32 %v1890_v52, 16  ;;  %v2583_v0 = vshll.u32 %v5138_v63, 16 }
 0x100   : > { %3043 = vrot.lane.b32.xlu0 %v2926_v26, %s3989_s18  ;;  %v5159_v46 = vcombine.low %v3542_v43, %v3543_v9  ;;  %v2100_v5 = vor.u32 %v2099_v38, %v2095_v44  ;;  %v2103_v29 = vrot.slane %v2101_v55, 1  ;;  %v2945_v60 = vor.u32 %v2944_v6, %v2940_v39  ;;  %v1492_v37 = vpop.permute.xlu1 %1491  ;;  %v3545_v38 = vld [vmem:[%s4025_s17 + $0xa0] sm:$0xf]  ;;  %v3581_v55 = vld [vmem:[%s4025_s17 + $0x9c] sm:$0xe] }
 0x101   : > { %v2569_v51 = vor.u32 %v2568_v23, %v2564_v21  ;;  %v2110_v10 = vor.u32 %v2109_v32, %v2105_v53  ;;  %v2113_v59 = vrot.slane %v2111_v3, 1  ;;  %v1058_v12 = vpop.permute.xlu0 %1057  ;;  %v1100_v41 = vsel %vm1071_vm1, %v4316_v17, %v706_v30  ;;  %v5183_v43 = vld [vmem:[%s4025_s17 + $0x98] ss:$0 sps:$4 sm:$0x11]   ;;  %v3544_v53 = vld [vmem:[%s4025_s17 + $0x9c] sm:$0xf] }
 0x102   : > { %v2578_v26 = vshll.u32 %v5150_v45, 16  ;;  %v5168_v44 = vsel %vm1071_vm1, %v4324_v24, %v1058_v12  ;;  %v1828_v39 = vsel %vm1071_vm1, %v4354_v7, %v1492_v37  ;;  %v2950_v21 = vshrl.u32 %v5140_v47, 16 }
 0x103   : > { %3047 = vrot.lane.b32.xlu1 %v2936_v57, %s3989_s18  ;;  %5691 = vst [vmem:[#allocation20_spill] sm:$0xff] %v5168_v44  ;;  %v2954_v23 = vrot.slane %v2952_v36, 1  ;;  %1203 = vmatprep.subr.bf16.mxu0 %v5168_v44  ;;  %v5177_v17 = vsel %vm494_vm0, %v2110_v10, %v2113_v59  ;;  %v2947_v6 = vshrl.u32 %v5113_v15, 16  ;;  %v5185_v32 = vcombine.low %v3580_v56, %v3543_v9  ;;  %v5693_v56 = vld [vmem:[#allocation2_spill] sm:$0xff] }
 0x104   : > { %5692 = vst [vmem:[#allocation21_spill] sm:$0xff] %v5177_v17  ;;  %2671 = vrot.lane.b32.xlu0 %v2550_v16, %s3989_s18  ;;  %2298 = vmatprep.subr.bf16.mxu1 %v5177_v17  ;;  %v2117_v47 = vshll.u32 %v1828_v39, 16  ;;  %v2104_v30 = vsel %vm494_vm0, %v2100_v5, %v2103_v29  ;;  %v5190_v8 = vsel %vm494_vm0, %v2569_v51, %v2573_v54  ;;  %v2585_v16 = vrot.slane %v2583_v0, 1  ;;  %v1494_v52 = vpop.permute.xlu1 %1493  ;;  %v3959_v29 = vld [vmem:[%s4025_s17 + $0x80] ss:$0 sps:$4 sm:$0x11]  }
 0x105   : > { %1204 = vmatpush1.bf16.xpose.msra.mxu0 %v1100_v41  ;;  %v1764_v15 = vpop.permute.xlu0 %1763  ;;  %2299 = vmatpush1.bf16.xpose.msra.mxu1 %v2104_v30  ;;  %v2946_v57 = vsel %vm494_vm0, %v2945_v60, %v2573_v54  ;;  %v2576_v36 = vshrl.u32 %v5150_v45, 16  ;;  %v2580_v9 = vrot.slane %v2578_v26, 1  ;;  %v5196_v3 = vcombine.low %v3581_v55, %v3545_v38  ;;  %v5204_v59 = vld [vmem:[%s4025_s17 + $0xa4] ss:$0 sps:$4 sm:$0x11]  }
 0x106   : > { %v1892_v5 = vsel %vm1071_vm1, %v5693_v56, %v1764_v15  ;;  %v1830_v51 = vsel %vm1071_vm1, %v3959_v29, %v1494_v52  ;;  %v2955_v0 = vor.u32 %v2954_v23, %v2950_v21  ;;  %v2590_v10 = vshll.u32 %v5159_v46, 16  ;;  %v3960_v52 = vld [vmem:[%s4025_s17 + $0x8c] ss:$0 sps:$4 sm:$0x11]  }
 0x107   : > { %2673 = vrot.lane.b32.xlu1 %v2562_v40, %s3989_s18  ;;  %v2127_v40 = vshll.u32 %v1892_v5, 16  ;;  %v2595_v54 = vshll.u32 %v5183_v43, 16  ;;  %v2962_v60 = vshll.u32 %v5185_v32, 16  ;;  %v2115_v37 = vshrl.u32 %v1828_v39, 16 }
 0x108   : > { %3049 = vrot.lane.b32.xlu0 %v2937_v34, %s3989_s18  ;;  %v2119_v41 = vrot.slane %v2117_v47, 1  ;;  %v2121_v26 = vshll.u32 %v1830_v51, 16  ;;  %v5212_v21 = vcombine.low %v3544_v53, %v3545_v38  ;;  %v708_v30 = vpop.permute.xlu1 %707  ;;  %v2581_v27 = vor.u32 %v2580_v9, %v2576_v36  ;;  %v3547_v53 = vld [vmem:[%s4025_s17 + $0xac] sm:$0xf]  ;;  %v3582_v9 = vld [vmem:[%s4025_s17 + $0xa8] sm:$0xe] }
 0x109   : > { %v2129_v23 = vrot.slane %v2127_v40, 1  ;;  %v1766_v55 = vpop.permute.xlu0 %1765  ;;  %v2588_v34 = vshrl.u32 %v5159_v46, 16  ;;  %v2972_v15 = vshll.u32 %v5196_v3, 16  ;;  %v2956_v39 = vsel %vm494_vm0, %v2955_v0, %v2585_v16 }
 0x10a   : > { %v1894_v29 = vsel %vm1071_vm1, %v3960_v52, %v1766_v55  ;;  %v2960_v47 = vshrl.u32 %v5185_v32, 16  ;;  %v2592_v38 = vrot.slane %v2590_v10, 1  ;;  %v2125_v51 = vshrl.u32 %v1892_v5, 16 }
 0x10b   : > { %3053 = vrot.lane.b32.xlu1 %v2947_v6, %s3989_s18  ;;  %v2131_v40 = vshll.u32 %v1894_v29, 16  ;;  %v2964_v6 = vrot.slane %v2962_v60, 1  ;;  %v2607_v36 = vshll.u32 %v5204_v59, 16  ;;  %v2120_v12 = vor.u32 %v2119_v41, %v2115_v37  ;;  %v5231_v60 = vld [vmem:[%s4025_s17 + $0xb0] ss:$0 sps:$4 sm:$0x11]  }
 0x10c   : > { %3051 = vrot.lane.b32.xlu0 %v2946_v57, %s3989_s18  ;;  %v2123_v24 = vrot.slane %v2121_v26, 1  ;;  %v2970_v55 = vshrl.u32 %v5196_v3, 16  ;;  %v2602_v0 = vshll.u32 %v5212_v21, 16  ;;  %v2130_v52 = vor.u32 %v2129_v23, %v2125_v51  ;;  %v1496_v3 = vpop.permute.xlu1 %1495  ;;  %v3546_v23 = vld [vmem:[%s4025_s17 + $0xa8] sm:$0xf] }
 0x10d   : > { %v2133_v32 = vrot.slane %v2131_v40, 1  ;;  %v1060_v10 = vpop.permute.xlu0 %1059  ;;  %v1103_v5 = vsel %vm1071_vm1, %v4354_v7, %v708_v30  ;;  %v2974_v57 = vrot.slane %v2972_v15, 1  ;;  %v2586_v41 = vsel %vm494_vm0, %v2581_v27, %v2585_v16  ;;  %v5696_v30 = vld [vmem:[#allocation3_spill] sm:$0xff]  ;;  %v3549_v51 = vld [vmem:[%s4025_s17 + $0xb8] sm:$0xf] }
 0x10e   : > { %v5235_v37 = vsel %vm1071_vm1, %v5693_v56, %v1060_v10  ;;  %v2593_v26 = vor.u32 %v2592_v38, %v2588_v34  ;;  %v5239_v29 = vcombine.low %v3582_v9, %v3547_v53  ;;  %v1832_v15 = vsel %vm1071_vm1, %v5696_v30, %v1496_v3  ;;  %v3583_v16 = vld [vmem:[%s4025_s17 + $0xb4] sm:$0xe] }
 0x10f   : > { %3055 = vrot.lane.b32.xlu1 %v2956_v39, %s3989_s18  ;;  %5694 = vst [vmem:[#allocation2_spill] sm:$0xff] %v5235_v37  ;;  %1205 = vmatprep.subr.bf16.mxu0 %v5235_v37  ;;  %v5243_v7 = vsel %vm494_vm0, %v2130_v52, %v2133_v32  ;;  %v2597_v56 = vrot.slane %v2595_v54, 1  ;;  %v2965_v39 = vor.u32 %v2964_v6, %v2960_v47  ;;  %v2137_v27 = vshll.u32 %v1832_v15, 16  ;;  %v3548_v9 = vld [vmem:[%s4025_s17 + $0xb4] sm:$0xf] }
 0x110   : > { %5695 = vst [vmem:[#allocation22_spill] sm:$0xff] %v5243_v7  ;;  %2675 = vrot.lane.b32.xlu0 %v5190_v8, %s3989_s18  ;;  %2300 = vmatprep.subr.bf16.mxu1 %v5243_v7  ;;  %v2124_v34 = vsel %vm494_vm0, %v2120_v12, %v2123_v24  ;;  %v2600_v38 = vshrl.u32 %v5212_v21, 16  ;;  %v2604_v40 = vrot.slane %v2602_v0, 1  ;;  %v2609_v8 = vrot.slane %v2607_v36, 1  ;;  %v5697_v32 = vld [vmem:[#allocation4_spill] sm:$0xff] }
 0x111   : > { %1206 = vmatpush1.bf16.xpose.msra.mxu0 %v1103_v5  ;;  %v1768_v52 = vpop.permute.xlu0 %1767  ;;  %2301 = vmatpush1.bf16.xpose.msra.mxu1 %v2124_v34  ;;  %v2975_v54 = vor.u32 %v2974_v57, %v2970_v55  ;;  %v5256_v47 = vcombine.low %v3546_v23, %v3547_v53  ;;  %v2619_v6 = vshll.u32 %v5231_v60, 16  ;;  %v2598_v12 = vsel %vm494_vm0, %v2593_v26, %v2597_v56  ;;  %v3961_v34 = vld [vmem:[%s4025_s17 + $0x8c] ss:$0 sps:$4 sm:$0x11]  }
 0x112   : > { %v1896_v10 = vsel %vm1071_vm1, %v5697_v32, %v1768_v52  ;;  %v2982_v0 = vshll.u32 %v5239_v29, 16  ;;  %v5263_v5 = vcombine.low %v3583_v16, %v3549_v51  ;;  %v5698_v53 = vshrl.u32 %v5138_v63, 16 }
 0x113   : > { %2677 = vrot.lane.b32.xlu1 %v2586_v41, %s3989_s18  ;;  %v1498_v24 = vpop.permute.xlu1 %1497  ;;  %v2147_v3 = vshll.u32 %v1896_v10, 16  ;;  %v2966_v55 = vsel %vm494_vm0, %v2965_v39, %v2597_v56  ;;  %v5271_v57 = vcombine.low %v3548_v9, %v3549_v51  ;;  %v5274_v41 = vld [vmem:[%s4025_s17 + $0xbc] ss:$0 sps:$4 sm:$0x11]   ;;  %v2135_v26 = vshrl.u32 %v1832_v15, 16 }
 0x114   : > { %v1834_v36 = vsel %vm1071_vm1, %v3961_v34, %v1498_v24  ;;  %3057 = vrot.lane.b32.xlu0 %v5698_v53, %s3989_s18  ;;  %5700 = vst [vmem:[#allocation4_spill] sm:$0xff] %v5274_v41  ;;  %v2139_v23 = vrot.slane %v2137_v27, 1  ;;  %v2605_v16 = vor.u32 %v2604_v40, %v2600_v38  ;;  %v5701_v17 = vshrl.u32 %v5183_v43, 16  ;;  %v3962_v39 = vld [vmem:[%s4025_s17 + $0x98] ss:$0 sps:$4 sm:$0x11]  }
 0x115   : > { %5699 = vst [vmem:[#allocation3_spill] sm:$0xff] %v5271_v57  ;;  %v2141_v52 = vshll.u32 %v1834_v36, 16  ;;  %v2149_v7 = vrot.slane %v2147_v3, 1  ;;  %v2976_v24 = vsel %vm494_vm0, %v2975_v54, %v2609_v8  ;;  %v5280_v63 = vrot.slane %v2619_v6, 1  ;;  %v3551_v53 = vld [vmem:[%s4025_s17 + $0xc4] sm:$0xf] }
 0x116   : > { %v1770_v37 = vpop.permute.xlu0 %1769  ;;  %v2614_v56 = vshll.u32 %v5256_v47, 16  ;;  %v2980_v27 = vshrl.u32 %v5239_v29, 16  ;;  %v2984_v38 = vrot.slane %v2982_v0, 1  ;;  %v2992_v40 = vshll.u32 %v5263_v5, 16 }
 0x117   : > { %3061 = vrot.lane.b32.xlu1 %v5701_v17, %s3989_s18  ;;  %v1898_v15 = vsel %vm1071_vm1, %v3962_v39, %v1770_v37  ;;  %v710_v51 = vpop.permute.xlu1 %709  ;;  %v2145_v9 = vshrl.u32 %v1896_v10, 16  ;;  %v2612_v17 = vshrl.u32 %v5256_v47, 16  ;;  %v2631_v54 = vshll.u32 %v5274_v41, 16  ;;  %v3584_v39 = vld [vmem:[%s4025_s17 + $0xc0] sm:$0xe] }
 0x118   : > { %v2151_v3 = vshll.u32 %v1898_v15, 16  ;;  %3059 = vrot.lane.b32.xlu0 %v2966_v55, %s3989_s18  ;;  %v2140_v6 = vor.u32 %v2139_v23, %v2135_v26  ;;  %v2143_v34 = vrot.slane %v2141_v52, 1  ;;  %v2610_v36 = vsel %vm494_vm0, %v2605_v16, %v2609_v8 }
 0x119   : > { %v2626_v37 = vshll.u32 %v5271_v57, 16  ;;  %v2150_v29 = vor.u32 %v2149_v7, %v2145_v9  ;;  %v1106_v10 = vsel %vm1071_vm1, %v5696_v30, %v710_v51  ;;  %v2616_v55 = vrot.slane %v2614_v56, 1  ;;  %v3585_v56 = vld [vmem:[%s4025_s17 + $0xcc] sm:$0xe] }
 0x11a   : > { %v2153_v0 = vrot.slane %v2151_v3, 1  ;;  %v1062_v44 = vpop.permute.xlu0 %1061  ;;  %v2985_v23 = vor.u32 %v2984_v38, %v2980_v27  ;;  %v2990_v52 = vshrl.u32 %v5263_v5, 16  ;;  %v2994_v7 = vrot.slane %v2992_v40, 1  ;;  %v3550_v38 = vld [vmem:[%s4025_s17 + $0xc0] sm:$0xf] }
 0x11b   : > { %3063 = vrot.lane.b32.xlu1 %v2976_v24, %s3989_s18  ;;  %v5299_v26 = vsel %vm1071_vm1, %v5697_v32, %v1062_v44  ;;  %v1500_v8 = vpop.permute.xlu1 %1499  ;;  %v2977_v24 = vshrl.u32 %v5204_v59, 16  ;;  %v5310_v44 = vcombine.low %v3584_v39, %v3551_v53  ;;  %v3553_v32 = vld [vmem:[%s4025_s17 + $0xd0] sm:$0xf]  ;;  %v2144_v15 = vsel %vm494_vm0, %v2140_v6, %v2143_v34  ;;  %v5321_v39 = vld [vmem:[%s4025_s17 + $0xc8] ss:$0 sps:$4 sm:$0x11]  }
 0x11c   : > { %5702 = vst [vmem:[#allocation23_spill] sm:$0xff] %v5299_v26  ;;  %1207 = vmatprep.subr.bf16.mxu0 %v5299_v26  ;;  %v5304_v16 = vsel %vm494_vm0, %v2150_v29, %v2153_v0  ;;  %v1836_v30 = vsel %vm1071_vm1, %v4446_v62, %v1500_v8  ;;  %2679 = vrot.lane.b32.xlu0 %v2598_v12, %s3989_s18  ;;  %v2624_v51 = vshrl.u32 %v5271_v57, 16  ;;  %v2628_v27 = vrot.slane %v2626_v37, 1  ;;  %v5704_v29 = vld [vmem:[#allocation5_spill] sm:$0xff] }
 0x11d   : > { %5703 = vst [vmem:[#allocation24_spill] sm:$0xff] %v5304_v16  ;;  %2302 = vmatprep.subr.bf16.mxu1 %v5304_v16  ;;  %v2157_v5 = vshll.u32 %v1836_v30, 16  ;;  %1208 = vmatpush1.bf16.xpose.msra.mxu0 %v1106_v10  ;;  %v2987_v12 = vshrl.u32 %v5231_v60, 16  ;;  %v2617_v9 = vor.u32 %v2616_v55, %v2612_v17  ;;  %v2633_v3 = vrot.slane %v2631_v54, 1  ;;  %v3552_v55 = vld [vmem:[%s4025_s17 + $0xcc] sm:$0xf] }
 0x11e   : > { %v1772_v40 = vpop.permute.xlu0 %1771  ;;  %2303 = vmatpush1.bf16.xpose.msra.mxu1 %v2144_v15  ;;  %v2986_v34 = vsel %vm494_vm0, %v2985_v23, %v5280_v63  ;;  %v2995_v37 = vor.u32 %v2994_v7, %v2990_v52  ;;  %v5327_v10 = vcombine.low %v3585_v56, %v3553_v32  ;;  %v3963_v15 = vld [vmem:[%s4025_s17 + $0x98] ss:$0 sps:$4 sm:$0x11]   ;;  %v5332_v17 = vcombine.low %v3550_v38, %v3551_v53  ;;  %v5342_v53 = vld [vmem:[%s4025_s17 + $0xd4] ss:$0 sps:$4 sm:$0x11]  }
 0x11f   : > { %2681 = vrot.lane.b32.xlu1 %v2610_v36, %s3989_s18  ;;  %v1900_v0 = vsel %vm1071_vm1, %v5704_v29, %v1772_v40  ;;  %v1502_v6 = vpop.permute.xlu1 %1501  ;;  %v3002_v54 = vshll.u32 %v5310_v44, 16  ;;  %v2155_v40 = vshrl.u32 %v1836_v30, 16  ;;  %v2159_v16 = vrot.slane %v2157_v5, 1  ;;  %v3964_v38 = vld [vmem:[%s4025_s17 + $0xa4] ss:$0 sps:$4 sm:$0x11]  }
 0x120   : > { %v2167_v8 = vshll.u32 %v1900_v0, 16  ;;  %v1838_v36 = vsel %vm1071_vm1, %v3963_v15, %v1502_v6  ;;  %3065 = vrot.lane.b32.xlu0 %v2977_v24, %s3989_s18  ;;  %v2629_v23 = vor.u32 %v2628_v27, %v2624_v51  ;;  %v2622_v56 = vsel %vm494_vm0, %v2617_v9, %v5280_v63 }
 0x121   : > { %v2161_v26 = vshll.u32 %v1838_v36, 16  ;;  %v2997_v6 = vshrl.u32 %v5274_v41, 16  ;;  %v2643_v24 = vshll.u32 %v5321_v39, 16  ;;  %v2996_v30 = vsel %vm494_vm0, %v2995_v37, %v2633_v3 }
 0x122   : > { %v2169_v52 = vrot.slane %v2167_v8, 1  ;;  %v1774_v7 = vpop.permute.xlu0 %1773  ;;  %v5347_v5 = vcombine.low %v3552_v55, %v3553_v32  ;;  %v3012_v51 = vshll.u32 %v5327_v10, 16  ;;  %v2165_v27 = vshrl.u32 %v1900_v0, 16 }
 0x123   : > { %3069 = vrot.lane.b32.xlu1 %v2987_v12, %s3989_s18  ;;  %v1902_v15 = vsel %vm1071_vm1, %v3964_v38, %v1774_v7  ;;  %v3000_v63 = vshrl.u32 %v5310_v44, 16  ;;  %v3004_v9 = vrot.slane %v3002_v54, 1  ;;  %v2160_v36 = vor.u32 %v2159_v16, %v2155_v40 }
 0x124   : > { %v2171_v12 = vshll.u32 %v1902_v15, 16  ;;  %v712_v8 = vpop.permute.xlu1 %711  ;;  %3067 = vrot.lane.b32.xlu0 %v2986_v34, %s3989_s18  ;;  %v2163_v41 = vrot.slane %v2161_v26, 1  ;;  %v2634_v57 = vsel %vm494_vm0, %v2629_v23, %v2633_v3  ;;  %v2638_v7 = vshll.u32 %v5332_v17, 16 }
 0x125   : > { %v2170_v38 = vor.u32 %v2169_v52, %v2165_v27  ;;  %v1109_v55 = vsel %vm1071_vm1, %v4446_v62, %v712_v8  ;;  %v2655_v0 = vshll.u32 %v5342_v53, 16  ;;  %v3010_v26 = vshrl.u32 %v5327_v10, 16 }
 0x126   : > { %v2173_v37 = vrot.slane %v2171_v12, 1  ;;  %v1064_v32 = vpop.permute.xlu0 %1063  ;;  %v3014_v16 = vrot.slane %v3012_v51, 1  ;;  %v2650_v3 = vshll.u32 %v5347_v5, 16  ;;  %v2645_v62 = vrot.slane %v2643_v24, 1 }
 0x127   : > { %3071 = vrot.lane.b32.xlu1 %v2996_v30, %s3989_s18  ;;  %v5360_v44 = vsel %vm1071_vm1, %v5704_v29, %v1064_v32  ;;  %v3005_v40 = vor.u32 %v3004_v9, %v3000_v63  ;;  %v2164_v10 = vsel %vm494_vm0, %v2160_v36, %v2163_v41  ;;  %v2636_v23 = vshrl.u32 %v5332_v17, 16 }
 0x128   : > { %1209 = vmatprep.subr.bf16.mxu0 %v5360_v44  ;;  %v5366_v34 = vsel %vm494_vm0, %v2170_v38, %v2173_v37  ;;  %v1504_v54 = vpop.permute.xlu1 %1503  ;;  %2683 = vrot.lane.b32.xlu0 %v2622_v56, %s3989_s18  ;;  %v2640_v52 = vrot.slane %v2638_v7, 1  ;;  %v3007_v56 = vshrl.u32 %v5321_v39, 16  ;;  %v2657_v24 = vrot.slane %v2655_v0, 1  ;;  %v3965_v38 = vld [vmem:[%s4025_s17 + $0xa4] ss:$0 sps:$4 sm:$0x11]  }
 0x129   : > { %2304 = vmatprep.subr.bf16.mxu1 %v5366_v34  ;;  %v1840_v29 = vsel %vm1071_vm1, %v4505_v31, %v1504_v54  ;;  %1210 = vmatpush1.bf16.xpose.msra.mxu0 %v1109_v55  ;;  %v3015_v27 = vor.u32 %v3014_v16, %v3010_v26  ;;  %v2648_v12 = vshrl.u32 %v5347_v5, 16  ;;  %v2652_v8 = vrot.slane %v2650_v3, 1  ;;  %v3966_v16 = vld [vmem:[%s4025_s17 + $0xb0] ss:$0 sps:$4 sm:$0x11]  }
 0x12a   : > { %v2177_v15 = vshll.u32 %v1840_v29, 16  ;;  %v1776_v30 = vpop.permute.xlu0 %1775  ;;  %2305 = vmatpush1.bf16.xpose.msra.mxu1 %v2164_v10  ;;  %v3990_v41 = vmov 0   ;;  %v3006_v36 = vsel %vm494_vm0, %v3005_v40, %v2645_v62  ;;  %v2641_v32 = vor.u32 %v2640_v52, %v2636_v23 }
 0x12b   : > { %2685 = vrot.lane.b32.xlu1 %v2634_v57, %s3989_s18  ;;  %v1904_v51 = vsel %vm1071_vm1, %v4527_v14, %v1776_v30  ;;  %3762 = vset.pattern.permute.xlu0 %v3990_v41  ;;  %v2175_v57 = vshrl.u32 %v1840_v29, 16  ;;  %v3016_v54 = vsel %vm494_vm0, %v3015_v27, %v2657_v24  ;;  %v2653_v10 = vor.u32 %v2652_v8, %v2648_v12 }
 0x12c   : > { %v2187_v63 = vshll.u32 %v1904_v51, 16  ;;  %v1506_v9 = vpop.permute.xlu1 %1505  ;;  %3073 = vrot.lane.b32.xlu0 %v2997_v6, %s3989_s18  ;;  %v2179_v7 = vrot.slane %v2177_v15, 1  ;;  %v2185_v6 = vshrl.u32 %v1904_v51, 16  ;;  %v2646_v23 = vsel %vm494_vm0, %v2641_v32, %v2645_v62 }
 0x12d   : > { %v1842_v37 = vsel %vm1071_vm1, %v3965_v38, %v1506_v9  ;;  %v2658_v51 = vsel %vm494_vm0, %v2653_v10, %v2657_v24  ;;  %v3017_v8 = vshrl.u32 %v5342_v53, 16  ;;  %v3968_v10 = vld [vmem:[%s4025_s17 + $0xbc] ss:$0 sps:$4 sm:$0x11]  }
 0x12e   : > { %v2189_v55 = vrot.slane %v2187_v63, 1  ;;  %v2181_v0 = vshll.u32 %v1842_v37, 16  ;;  %v1778_v26 = vpop.permute.xlu0 %1777  ;;  %v2180_v29 = vor.u32 %v2179_v7, %v2175_v57 }
 0x12f   : > { %3077 = vrot.lane.b32.xlu1 %v3007_v56, %s3989_s18  ;;  %v1906_v3 = vsel %vm1071_vm1, %v3966_v16, %v1778_v26  ;;  %v365_v26 = vld [vmem:[%s5627_s2] sm:$0x7] }
 0x130   : > { %v2191_v30 = vshll.u32 %v1906_v3, 16  ;;  %v714_v40 = vpop.permute.xlu1 %713  ;;  %3075 = vrot.lane.b32.xlu0 %v3006_v36, %s3989_s18  ;;  %v2183_v15 = vrot.slane %v2181_v0, 1  ;;  %v2190_v52 = vor.u32 %v2189_v55, %v2185_v6  ;;  %v5705_v36 = vld [vmem:[#allocation10_spill] sm:$0xff]  ;;  %v3967_v55 = vld [vmem:[%s4025_s17 + $0xb0] ss:$0 sps:$4 sm:$0x11]  }
 0x131   : > { %v1112_v56 = vsel %vm1071_vm1, %v4505_v31, %v714_v40 }
 0x132   : > { %v2193_v41 = vrot.slane %v2191_v30, 1  ;;  %v1066_v63 = vpop.permute.xlu0 %1065 }
 0x133   : > { %3079 = vrot.lane.b32.xlu1 %v3016_v54, %s3989_s18  ;;  %v5394_v27 = vsel %vm1071_vm1, %v4527_v14, %v1066_v63  ;;  %v2184_v14 = vsel %vm494_vm0, %v2180_v29, %v2183_v15 }
 0x134   : > { %1211 = vmatprep.subr.bf16.mxu0 %v5394_v27  ;;  %v5399_v12 = vsel %vm494_vm0, %v2190_v52, %v2193_v41  ;;  %v1508_v62 = vpop.permute.xlu1 %1507  ;;  %2687 = vrot.lane.b32.xlu0 %v2646_v23, %s3989_s18 }
 0x135   : > { %2306 = vmatprep.subr.bf16.mxu1 %v5399_v12  ;;  %v1844_v31 = vsel %vm1071_vm1, %v4618_v48, %v1508_v62  ;;  %1212 = vmatpush1.bf16.xpose.msra.mxu0 %v1112_v56 }
 0x136   : > { %v2197_v24 = vshll.u32 %v1844_v31, 16  ;;  %v1780_v9 = vpop.permute.xlu0 %1779  ;;  %2307 = vmatpush1.bf16.xpose.msra.mxu1 %v2184_v14  ;;  %v2195_v37 = vshrl.u32 %v1844_v31, 16 }
 0x137   : > { %2689 = vrot.lane.b32.xlu1 %v2658_v51, %s3989_s18  ;;  %v1908_v57 = vsel %vm1071_vm1, %v5705_v36, %v1780_v9 }
 0x138   : > { %v2207_v7 = vshll.u32 %v1908_v57, 16  ;;  %v1510_v38 = vpop.permute.xlu1 %1509  ;;  %3081 = vrot.lane.b32.xlu0 %v3017_v8, %s3989_s18  ;;  %v2199_v32 = vrot.slane %v2197_v24, 1  ;;  %v2205_v30 = vshrl.u32 %v1908_v57, 16 }
 0x139   : > { %v1846_v0 = vsel %vm1071_vm1, %v3967_v55, %v1510_v38 }
 0x13a   : > { %v2209_v16 = vrot.slane %v2207_v7, 1  ;;  %v2201_v3 = vshll.u32 %v1846_v0, 16  ;;  %v1782_v54 = vpop.permute.xlu0 %1781  ;;  %v2200_v15 = vor.u32 %v2199_v32, %v2195_v37  ;;  %v3969_v37 = vld [vmem:[%s4025_s17 + $0xbc] ss:$0 sps:$4 sm:$0x11]  }
 0x13b   : > { %v1910_v6 = vsel %vm1071_vm1, %v3968_v10, %v1782_v54 }
 0x13c   : > { %v2211_v40 = vshll.u32 %v1910_v6, 16  ;;  %v716_v29 = vpop.permute.xlu1 %715  ;;  %1171 = vperm.xlu0 %3762, %v365_v26   ;;  %v2203_v23 = vrot.slane %v2201_v3, 1  ;;  %v2210_v52 = vor.u32 %v2209_v16, %v2205_v30  ;;  %v3970_v16 = vld [vmem:[%s4025_s17 + $0xc8] ss:$0 sps:$4 sm:$0x11]  }
 0x13d   : > { %v1115_v56 = vsel %vm1071_vm1, %v4618_v48, %v716_v29 }
 0x13e   : > { %v2213_v41 = vrot.slane %v2211_v40, 1  ;;  %v1068_v63 = vpop.permute.xlu0 %1067  ;;  %v2204_v48 = vsel %vm494_vm0, %v2200_v15, %v2203_v23 }
 0x13f   : > { %v5422_v51 = vsel %vm1071_vm1, %v5705_v36, %v1068_v63 }
 0x140   : > { %1213 = vmatprep.subr.bf16.mxu0 %v5422_v51  ;;  %v5426_v62 = vsel %vm494_vm0, %v2210_v52, %v2213_v41  ;;  %v1512_v8 = vpop.permute.xlu1 %1511 }
 0x141   : > { %2308 = vmatprep.subr.bf16.mxu1 %v5426_v62  ;;  %v1848_v31 = vsel %vm1071_vm1, %v4704_v2, %v1512_v8  ;;  %1214 = vmatpush1.bf16.xpose.msra.mxu0 %v1115_v56 }
 0x142   : > { %v2217_v14 = vshll.u32 %v1848_v31, 16  ;;  %v1784_v24 = vpop.permute.xlu0 %1783  ;;  %2309 = vmatpush1.bf16.xpose.msra.mxu1 %v2204_v48  ;;  %v2215_v7 = vshrl.u32 %v1848_v31, 16  ;;  %v3971_v31 = vld [vmem:[%s4025_s17 + $0x20] ss:$0 sps:$4 sm:$0x11]  }
 0x143   : > { %v1912_v9 = vsel %vm1071_vm1, %v4731_v35, %v1784_v24 }
 0x144   : > { %v2227_v36 = vshll.u32 %v1912_v9, 16  ;;  %v1514_v57 = vpop.permute.xlu1 %1513  ;;  %v2219_v38 = vrot.slane %v2217_v14, 1  ;;  %v2225_v54 = vshrl.u32 %v1912_v9, 16 }
 0x145   : > { %v1850_v32 = vsel %vm1071_vm1, %v3969_v37, %v1514_v57 }
 0x146   : > { %v2229_v55 = vrot.slane %v2227_v36, 1  ;;  %v2221_v0 = vshll.u32 %v1850_v32, 16  ;;  %v1786_v26 = vpop.permute.xlu0 %1785  ;;  %v2220_v30 = vor.u32 %v2219_v38, %v2215_v7  ;;  %v5459_v7 = vld.sshfl [vmem:[%s5626_s1 + $0x8] sm:$0x33 pattern:$0x76325410] }
 0x147   : > { %v1914_v3 = vsel %vm1071_vm1, %v3970_v16, %v1786_v26  ;;  %v5468_v16 = vld.sshfl [vmem:[%s5626_s1 + $0xc] sm:$0x33 pattern:$0x76325410] }
 0x148   : > { %v2231_v10 = vshll.u32 %v1914_v3, 16  ;;  %v718_v6 = vpop.permute.xlu1 %717  ;;  %v2223_v40 = vrot.slane %v2221_v0, 1  ;;  %v2230_v29 = vor.u32 %v2229_v55, %v2225_v54  ;;  %v2749_v0 = vcombine.high %v5459_v7, %v5459_v7 }
 0x149   : > { %v1118_v52 = vsel %vm1071_vm1, %v4704_v2, %v718_v6 }
 0x14a   : > { %v2233_v15 = vrot.slane %v2231_v10, 1  ;;  %v1070_v23 = vpop.permute.xlu0 %1069  ;;  %v2224_v8 = vsel %vm494_vm0, %v2220_v30, %v2223_v40  ;;  %v3333_v30 = vcombine.high %v5468_v16, %v5468_v16 }
 0x14b   : > { %v5442_v41 = vsel %vm1071_vm1, %v4731_v35, %v1070_v23  ;;  %v3972_v23 = vld [vmem:[%s4025_s17 + $0x2c] ss:$0 sps:$4 sm:$0x11]  }
 0x14c   : > { %1215 = vmatprep.subr.bf16.mxu0 %v5442_v41  ;;  %v5446_v63 = vsel %vm494_vm0, %v2230_v29, %v2233_v15  ;;  %v3022_v56 = vpop.permute.xlu1 %3021 }
 0x14d   : > { %1216 = vmatpush1.bf16.xpose.msra.mxu0 %v1118_v52  ;;  %2310 = vmatprep.subr.bf16.mxu1 %v5446_v63  ;;  %v3086_v48 = vsel %vm1071_vm1, %v3971_v31, %v3022_v56  ;;  %v3973_v31 = vld [vmem:[%s4025_s17 + $0x38] ss:$0 sps:$4 sm:$0x11]  }
 0x14e   : > { %v3020_v14 = vpop.permute.xlu0 %3019  ;;  %2311 = vmatpush1.bf16.xpose.msra.mxu1 %v2224_v8  ;;  %v3153_v2 = vshll.u32 %v3086_v48, 16  ;;  %v5707_v8 = vld [vmem:[#allocation6_spill] sm:$0xff] }
 0x14f   : > { %v3084_v35 = vsel %vm1071_vm1, %v4789_v19, %v3020_v14 }
 0x150   : > { %v3149_v24 = vshll.u32 %v3084_v35, 16  ;;  %v3024_v9 = vpop.permute.xlu1 %3023  ;;  %v3147_v36 = vshrl.u32 %v3084_v35, 16  ;;  %v3155_v37 = vrot.slane %v3153_v2, 1 }
 0x151   : > { %v3088_v57 = vsel %vm1071_vm1, %v4820_v50, %v3024_v9 }
 0x152   : > { %v3151_v38 = vrot.slane %v3149_v24, 1  ;;  %v2660_v32 = vpop.permute.xlu0 %2659  ;;  %v3159_v55 = vshll.u32 %v3088_v57, 16  ;;  %v3157_v54 = vshrl.u32 %v3088_v57, 16 }
 0x153   : > { %v2692_v26 = vsel %vm1071_vm1, %v4789_v19, %v2660_v32  ;;  %v5706_v19 = vld [vmem:[#allocation7_spill] sm:$0xff] }
 0x154   : > { %v3152_v3 = vor.u32 %v3151_v38, %v3147_v36  ;;  %2752 = vmatprep.subr.bf16.mxu0 %v2692_v26  ;;  %v3161_v10 = vrot.slane %v3159_v55, 1  ;;  %1218 = vmatmul.mubr.bf16.vlgmr.msra.gmra.mrb[0].mxu0 %v5059_v61  ;;  %v2662_v6 = vpop.permute.xlu1 %2661  ;;  %v5708_v38 = vld [vmem:[#allocation8_spill] sm:$0xff] }
 0x155   : > { %2313 = vmatmul.mubr.bf16.vlgmr.msra.gmra.mrb[0].mxu1 %v5069_v20  ;;  %2753 = vmatpush1.bf16.xpose.msra.mxu0 %v5706_v19  ;;  %v2695_v40 = vsel %vm1071_vm1, %v4820_v50, %v2662_v6 }
 0x156   : > { %v3026_v29 = vpop.permute.xlu0 %3025  ;;  %v3156_v15 = vsel %vm494_vm0, %v3152_v3, %v3155_v37  ;;  %2754 = vmatprep.subr.bf16.mxu0 %v2695_v40  ;;  %2784 = vmatprep.mubr.bf16.mxu0 %v2749_v0  ;;  %v3162_v52 = vor.u32 %v3161_v10, %v3157_v54  ;;  %v5709_v10 = vld [vmem:[#allocation9_spill] sm:$0xff] }
 0x157   : > { %v3090_v61 = vsel %vm1071_vm1, %v3972_v23, %v3026_v29  ;;  %3336 = vmatprep.subr.bf16.mxu1 %v3156_v15  ;;  %3368 = vmatprep.mubr.bf16.mxu1 %v3333_v30  ;;  %v3974_v15 = vld [vmem:[%s4025_s17 + $0x44] ss:$0 sps:$4 sm:$0x11]  }
 0x158   : > { %v3163_v56 = vshll.u32 %v3090_v61, 16  ;;  %3337 = vmatpush1.bf16.xpose.msra.mxu1 %v5707_v8  ;;  %v3030_v20 = vpop.permute.xlu1 %3029  ;;  %v5710_v8 = vld [vmem:[#allocation11_spill] sm:$0xff] }
 0x159   : > { %v3094_v48 = vsel %vm1071_vm1, %v3973_v31, %v3030_v20  ;;  %v3975_v20 = vld [vmem:[%s4025_s17 + $0x50] ss:$0 sps:$4 sm:$0x11]  }
 0x15a   : > { %v3165_v14 = vrot.slane %v3163_v56, 1  ;;  %v3028_v50 = vpop.permute.xlu0 %3027  ;;  %v3173_v2 = vshll.u32 %v3094_v48, 16 }
 0x15b   : > { %v3092_v35 = vsel %vm1071_vm1, %v4859_v1, %v3028_v50 }
 0x15c   : > { %v3167_v24 = vshrl.u32 %v3092_v35, 16  ;;  %v3169_v9 = vshll.u32 %v3092_v35, 16  ;;  %v3166_v36 = vsel %vm494_vm0, %v3162_v52, %v3165_v14  ;;  %v3032_v57 = vpop.permute.xlu1 %3031  ;;  %v3175_v55 = vrot.slane %v3173_v2, 1  ;;  %v5711_v35 = vld [vmem:[#allocation12_spill] sm:$0xff] }
 0x15d   : > { %2755 = vmatpush1.bf16.xpose.msra.mxu0 %v5708_v38  ;;  %3338 = vmatprep.subr.bf16.mxu1 %v3166_v36  ;;  %v3096_v37 = vsel %vm1071_vm1, %v4924_v11, %v3032_v57 }
 0x15e   : > { %v3171_v32 = vrot.slane %v3169_v9, 1  ;;  %v2664_v0 = vpop.permute.xlu0 %2663  ;;  %v3179_v26 = vshll.u32 %v3096_v37, 16  ;;  %v3177_v6 = vshrl.u32 %v3096_v37, 16 }
 0x15f   : > { %v2698_v3 = vsel %vm1071_vm1, %v4859_v1, %v2664_v0 }
 0x160   : > { %v3172_v54 = vor.u32 %v3171_v32, %v3167_v24  ;;  %3339 = vmatpush1.bf16.xpose.msra.mxu1 %v5709_v10  ;;  %2756 = vmatprep.subr.bf16.mxu0 %v2698_v3  ;;  %v3181_v30 = vrot.slane %v3179_v26, 1  ;;  %v2666_v19 = vpop.permute.xlu1 %2665 }
 0x161   : > { %v2701_v61 = vsel %vm1071_vm1, %v4924_v11, %v2666_v19  ;;  %v3976_v19 = vld [vmem:[%s4025_s17 + $0x5c] ss:$0 sps:$4 sm:$0x11]  }
 0x162   : > { %v3176_v40 = vsel %vm494_vm0, %v3172_v54, %v3175_v55  ;;  %v3034_v29 = vpop.permute.xlu0 %3033  ;;  %v3182_v52 = vor.u32 %v3181_v30, %v3177_v6 }
 0x163   : > { %3340 = vmatprep.subr.bf16.mxu1 %v3176_v40  ;;  %v3098_v23 = vsel %vm1071_vm1, %v3974_v15, %v3034_v29 }
 0x164   : > { %v3183_v1 = vshll.u32 %v3098_v23, 16 }
 0x165   : > { %v3038_v56 = vpop.permute.xlu1 %3037  ;;  %2757 = vmatpush1.bf16.xpose.msra.mxu0 %v5710_v8 }
 0x166   : > { %v3102_v31 = vsel %vm1071_vm1, %v3975_v20, %v3038_v56  ;;  %v3185_v48 = vrot.slane %v3183_v1, 1  ;;  %v3036_v14 = vpop.permute.xlu0 %3035  ;;  %2758 = vmatprep.subr.bf16.mxu0 %v2701_v61  ;;  %v3977_v1 = vld [vmem:[%s4025_s17 + $0x68] ss:$0 sps:$4 sm:$0x11]  }
 0x167   : > { %v3193_v50 = vshll.u32 %v3102_v31, 16  ;;  %v3100_v2 = vsel %vm1071_vm1, %v4936_v28, %v3036_v14 }
 0x168   : > { %3341 = vmatpush1.bf16.xpose.msra.mxu1 %v5711_v35  ;;  %v3187_v24 = vshrl.u32 %v3100_v2, 16  ;;  %v3189_v9 = vshll.u32 %v3100_v2, 16  ;;  %v3186_v11 = vsel %vm494_vm0, %v3182_v52, %v3185_v48  ;;  %v5712_v35 = vld [vmem:[#allocation13_spill] sm:$0xff] }
 0x169   : > { %v3040_v36 = vpop.permute.xlu1 %3039  ;;  %3342 = vmatprep.subr.bf16.mxu1 %v3186_v11  ;;  %v3195_v37 = vrot.slane %v3193_v50, 1 }
 0x16a   : > { %v3104_v57 = vsel %vm1071_vm1, %v4975_v13, %v3040_v36  ;;  %v3191_v38 = vrot.slane %v3189_v9, 1  ;;  %v2668_v32 = vpop.permute.xlu0 %2667 }
 0x16b   : > { %v3199_v55 = vshll.u32 %v3104_v57, 16  ;;  %v2704_v0 = vsel %vm1071_vm1, %v4936_v28, %v2668_v32  ;;  %v3197_v54 = vshrl.u32 %v3104_v57, 16  ;;  %v3978_v57 = vld [vmem:[%s4025_s17 + $0x74] ss:$0 sps:$4 sm:$0x11]  }
 0x16c   : > { %v3192_v26 = vor.u32 %v3191_v38, %v3187_v24 }
 0x16d   : > { %v2670_v3 = vpop.permute.xlu1 %2669  ;;  %2759 = vmatpush1.bf16.xpose.msra.mxu0 %v4727_v25  ;;  %v3201_v10 = vrot.slane %v3199_v55, 1 }
 0x16e   : > { %2760 = vmatprep.subr.bf16.mxu0 %v2704_v0  ;;  %v3196_v6 = vsel %vm494_vm0, %v3192_v26, %v3195_v37  ;;  %v3042_v30 = vpop.permute.xlu0 %3041  ;;  %v2707_v52 = vsel %vm1071_vm1, %v4975_v13, %v2670_v3  ;;  %v5713_v37 = vld [vmem:[#allocation14_spill] sm:$0xff] }
 0x16f   : > { %v3106_v40 = vsel %vm1071_vm1, %v3976_v19, %v3042_v30  ;;  %v3202_v28 = vor.u32 %v3201_v10, %v3197_v54  ;;  %v5714_v10 = vld [vmem:[#allocation15_spill] sm:$0xff] }
 0x170   : > { %3343 = vmatpush1.bf16.xpose.msra.mxu1 %v4739_v58  ;;  %v3203_v29 = vshll.u32 %v3106_v40, 16 }
 0x171   : > { %v3046_v15 = vpop.permute.xlu1 %3045  ;;  %3344 = vmatprep.subr.bf16.mxu1 %v3196_v6 }
 0x172   : > { %v3205_v23 = vrot.slane %v3203_v29, 1  ;;  %v3044_v61 = vpop.permute.xlu0 %3043  ;;  %v3110_v56 = vsel %vm1071_vm1, %v3977_v1, %v3046_v15  ;;  %v3979_v15 = vld [vmem:[%s4025_s17 + $0x80] ss:$0 sps:$4 sm:$0x11]  }
 0x173   : > { %v3108_v25 = vsel %vm1071_vm1, %v5011_v42, %v3044_v61  ;;  %v3213_v14 = vshll.u32 %v3110_v56, 16  ;;  %v5715_v61 = vld [vmem:[#allocation16_spill] sm:$0xff] }
 0x174   : > { %v3209_v8 = vshll.u32 %v3108_v25, 16  ;;  %v3207_v58 = vshrl.u32 %v3108_v25, 16  ;;  %v3206_v48 = vsel %vm494_vm0, %v3202_v28, %v3205_v23 }
 0x175   : > { %v3048_v20 = vpop.permute.xlu1 %3047  ;;  %2761 = vmatpush1.bf16.xpose.msra.mxu0 %v4806_v49  ;;  %v3215_v24 = vrot.slane %v3213_v14, 1 }
 0x176   : > { %v3211_v31 = vrot.slane %v3209_v8, 1  ;;  %2762 = vmatprep.subr.bf16.mxu0 %v2707_v52  ;;  %v2672_v50 = vpop.permute.xlu0 %2671  ;;  %v3112_v2 = vsel %vm1071_vm1, %v5045_v22, %v3048_v20  ;;  %v5716_v20 = vld [vmem:[#allocation17_spill] sm:$0xff] }
 0x177   : > { %v3219_v9 = vshll.u32 %v3112_v2, 16  ;;  %v2710_v49 = vsel %vm1071_vm1, %v5011_v42, %v2672_v50  ;;  %v3217_v32 = vshrl.u32 %v3112_v2, 16  ;;  %v3980_v2 = vld [vmem:[%s4025_s17 + $0x8c] ss:$0 sps:$4 sm:$0x11]  }
 0x178   : > { %3345 = vmatpush1.bf16.xpose.msra.mxu1 %v5712_v35  ;;  %v3212_v13 = vor.u32 %v3211_v31, %v3207_v58 }
 0x179   : > { %3346 = vmatprep.subr.bf16.mxu1 %v3206_v48  ;;  %v2674_v36 = vpop.permute.xlu1 %2673  ;;  %v3221_v55 = vrot.slane %v3219_v9, 1 }
 0x17a   : > { %v3050_v11 = vpop.permute.xlu0 %3049  ;;  %v3216_v0 = vsel %vm494_vm0, %v3212_v13, %v3215_v24  ;;  %v2713_v29 = vsel %vm1071_vm1, %v5045_v22, %v2674_v36  ;;  %v5717_v24 = vld [vmem:[#allocation18_spill] sm:$0xff] }
 0x17b   : > { %v3114_v38 = vsel %vm1071_vm1, %v3978_v57, %v3050_v11  ;;  %v3222_v42 = vor.u32 %v3221_v55, %v3217_v32 }
 0x17c   : > { %v3223_v26 = vshll.u32 %v3114_v38, 16  ;;  %v5718_v38 = vld [vmem:[#allocation19_spill] sm:$0xff] }
 0x17d   : > { %2763 = vmatpush1.bf16.xpose.msra.mxu0 %v5713_v37  ;;  %v3054_v6 = vpop.permute.xlu1 %3053 }
 0x17e   : > { %2764 = vmatprep.subr.bf16.mxu0 %v2710_v49  ;;  %v3052_v3 = vpop.permute.xlu0 %3051  ;;  %v3225_v30 = vrot.slane %v3223_v26, 1  ;;  %v3118_v28 = vsel %vm1071_vm1, %v3979_v15, %v3054_v6 }
 0x17f   : > { %v3116_v54 = vsel %vm1071_vm1, %v5096_v18, %v3052_v3  ;;  %v3233_v56 = vshll.u32 %v3118_v28, 16 }
 0x180   : > { %3347 = vmatpush1.bf16.xpose.msra.mxu1 %v5714_v10  ;;  %v3229_v19 = vshll.u32 %v3116_v54, 16  ;;  %v3227_v25 = vshrl.u32 %v3116_v54, 16  ;;  %v3226_v1 = vsel %vm494_vm0, %v3222_v42, %v3225_v30 }
 0x181   : > { %3348 = vmatprep.subr.bf16.mxu1 %v3216_v0  ;;  %v3056_v23 = vpop.permute.xlu1 %3055  ;;  %v3235_v31 = vrot.slane %v3233_v56, 1 }
 0x182   : > { %v2676_v40 = vpop.permute.xlu0 %2675  ;;  %v3231_v52 = vrot.slane %v3229_v19, 1  ;;  %v3120_v8 = vsel %vm1071_vm1, %v5150_v45, %v3056_v23 }
 0x183   : > { %v3239_v48 = vshll.u32 %v3120_v8, 16  ;;  %v2716_v50 = vsel %vm1071_vm1, %v5096_v18, %v2676_v40  ;;  %v3237_v9 = vshrl.u32 %v3120_v8, 16  ;;  %v5720_v8 = vld [vmem:[#allocation21_spill] sm:$0xff] }
 0x184   : > { %v3232_v22 = vor.u32 %v3231_v52, %v3227_v25 }
 0x185   : > { %2765 = vmatpush1.bf16.xpose.msra.mxu0 %v5715_v61  ;;  %v2678_v14 = vpop.permute.xlu1 %2677  ;;  %v3241_v11 = vrot.slane %v3239_v48, 1  ;;  %v5719_v61 = vld [vmem:[#allocation20_spill] sm:$0xff] }
 0x186   : > { %2766 = vmatprep.subr.bf16.mxu0 %v2713_v29  ;;  %v3058_v58 = vpop.permute.xlu0 %3057  ;;  %v3236_v36 = vsel %vm494_vm0, %v3232_v22, %v3235_v31  ;;  %v2719_v26 = vsel %vm1071_vm1, %v5150_v45, %v2678_v14 }
 0x187   : > { %v3122_v35 = vsel %vm1071_vm1, %v3980_v2, %v3058_v58  ;;  %v3242_v18 = vor.u32 %v3241_v11, %v3237_v9  ;;  %v5722_v9 = vld [vmem:[#allocation3_spill] sm:$0xff] }
 0x188   : > { %3349 = vmatpush1.bf16.xpose.msra.mxu1 %v5716_v20  ;;  %v3243_v49 = vshll.u32 %v3122_v35, 16 }
 0x189   : > { %3350 = vmatprep.subr.bf16.mxu1 %v3226_v1  ;;  %v3062_v37 = vpop.permute.xlu1 %3061 }
 0x18a   : > { %v3060_v13 = vpop.permute.xlu0 %3059  ;;  %v3245_v32 = vrot.slane %v3243_v49, 1  ;;  %v3126_v3 = vsel %vm1071_vm1, %v5183_v43, %v3062_v37 }
 0x18b   : > { %v3124_v57 = vsel %vm1071_vm1, %v5159_v46, %v3060_v13  ;;  %v3253_v30 = vshll.u32 %v3126_v3, 16 }
 0x18c   : > { %v3249_v55 = vshll.u32 %v3124_v57, 16  ;;  %v3247_v10 = vshrl.u32 %v3124_v57, 16  ;;  %v3246_v42 = vsel %vm494_vm0, %v3242_v18, %v3245_v32  ;;  %v5724_v18 = vld [vmem:[#allocation4_spill] sm:$0xff] }
 0x18d   : > { %2767 = vmatpush1.bf16.xpose.msra.mxu0 %v5717_v24  ;;  %v3064_v54 = vpop.permute.xlu1 %3063  ;;  %v3255_v29 = vrot.slane %v3253_v30, 1 }
 0x18e   : > { %2768 = vmatprep.subr.bf16.mxu0 %v2716_v50  ;;  %v2680_v0 = vpop.permute.xlu0 %2679  ;;  %v3251_v6 = vrot.slane %v3249_v55, 1  ;;  %v3128_v19 = vsel %vm1071_vm1, %v5212_v21, %v3064_v54  ;;  %v5721_v50 = vld [vmem:[#allocation2_spill] sm:$0xff] }
 0x18f   : > { %v3259_v15 = vshll.u32 %v3128_v19, 16  ;;  %v3257_v25 = vshrl.u32 %v3128_v19, 16 }
 0x190   : > { %3351 = vmatpush1.bf16.xpose.msra.mxu1 %v5718_v38  ;;  %v3252_v45 = vor.u32 %v3251_v6, %v3247_v10 }
 0x191   : > { %3352 = vmatprep.subr.bf16.mxu1 %v3236_v36  ;;  %v2682_v43 = vpop.permute.xlu1 %2681  ;;  %v3261_v52 = vrot.slane %v3259_v15, 1  ;;  %v5723_v36 = vld [vmem:[#allocation22_spill] sm:$0xff] }
 0x192   : > { %v3066_v40 = vpop.permute.xlu0 %3065  ;;  %v2725_v31 = vsel %vm1071_vm1, %v5212_v21, %v2682_v43 }
 0x193   : > { %v3130_v28 = vsel %vm1071_vm1, %v5204_v59, %v3066_v40 }
 0x194   : > { %v3263_v1 = vshll.u32 %v3130_v28, 16 }
 0x195   : > { %2769 = vmatpush1.bf16.xpose.msra.mxu0 %v5105_v4  ;;  %v2722_v4 = vsel %vm1071_vm1, %v5159_v46, %v2680_v0  ;;  %v3070_v20 = vpop.permute.xlu1 %3069  ;;  %v3262_v46 = vor.u32 %v3261_v52, %v3257_v25  ;;  %v5725_v0 = vld [vmem:[#allocation23_spill] sm:$0xff] }
 0x196   : > { %2770 = vmatprep.subr.bf16.mxu0 %v2719_v26  ;;  %v3068_v23 = vpop.permute.xlu0 %3067  ;;  %v3265_v58 = vrot.slane %v3263_v1, 1  ;;  %v3134_v48 = vsel %vm1071_vm1, %v5231_v60, %v3070_v20 }
 0x197   : > { %v3132_v56 = vsel %vm1071_vm1, %v5256_v47, %v3068_v23  ;;  %v3273_v24 = vshll.u32 %v3134_v48, 16 }
 0x198   : > { %3353 = vmatpush1.bf16.xpose.msra.mxu1 %v5118_v33  ;;  %v3256_v33 = vsel %vm494_vm0, %v3252_v45, %v3255_v29  ;;  %v3269_v22 = vshll.u32 %v3132_v56, 16  ;;  %v3267_v2 = vshrl.u32 %v3132_v56, 16  ;;  %v3266_v13 = vsel %vm494_vm0, %v3262_v46, %v3265_v58 }
 0x199   : > { %3354 = vmatprep.subr.bf16.mxu1 %v3246_v42  ;;  %v3072_v14 = vpop.permute.xlu1 %3071  ;;  %v3275_v57 = vrot.slane %v3273_v24, 1  ;;  %v5726_v42 = vld [vmem:[#allocation24_spill] sm:$0xff] }
 0x19a   : > { %v2684_v59 = vpop.permute.xlu0 %2683  ;;  %v3271_v35 = vrot.slane %v3269_v22, 1  ;;  %v3136_v11 = vsel %vm1071_vm1, %v5722_v9, %v3072_v14 }
 0x19b   : > { %v3279_v38 = vshll.u32 %v3136_v11, 16  ;;  %v2728_v37 = vsel %vm1071_vm1, %v5256_v47, %v2684_v59  ;;  %v3277_v26 = vshrl.u32 %v3136_v11, 16 }
 0x19c   : > { %v3272_v21 = vor.u32 %v3271_v35, %v3267_v2 }
 0x19d   : > { %2771 = vmatpush1.bf16.xpose.msra.mxu0 %v5719_v61  ;;  %v2686_v60 = vpop.permute.xlu1 %2685  ;;  %v3281_v3 = vrot.slane %v3279_v38, 1 }
 0x19e   : > { %2772 = vmatprep.subr.bf16.mxu0 %v2722_v4  ;;  %v3074_v49 = vpop.permute.xlu0 %3073  ;;  %v3276_v54 = vsel %vm494_vm0, %v3272_v21, %v3275_v57  ;;  %v2731_v29 = vsel %vm1071_vm1, %v5722_v9, %v2686_v60 }
 0x19f   : > { %v3138_v32 = vsel %vm1071_vm1, %v5724_v18, %v3074_v49  ;;  %v3282_v47 = vor.u32 %v3281_v3, %v3277_v26 }
 0x1a0   : > { %3355 = vmatpush1.bf16.xpose.msra.mxu1 %v5720_v8  ;;  %v3283_v10 = vshll.u32 %v3138_v32, 16 }
 0x1a1   : > { %3356 = vmatprep.subr.bf16.mxu1 %v3256_v33  ;;  %v3078_v30 = vpop.permute.xlu1 %3077 }
 0x1a2   : > { %v3076_v55 = vpop.permute.xlu0 %3075  ;;  %v3285_v19 = vrot.slane %v3283_v10, 1  ;;  %v3142_v15 = vsel %vm1071_vm1, %v5321_v39, %v3078_v30 }
 0x1a3   : > { %v3140_v6 = vsel %vm1071_vm1, %v5332_v17, %v3076_v55  ;;  %v3293_v61 = vshll.u32 %v3142_v15, 16 }
 0x1a4   : > { %v3289_v40 = vshll.u32 %v3140_v6, 16  ;;  %v3287_v4 = vshrl.u32 %v3140_v6, 16  ;;  %v3286_v23 = vsel %vm494_vm0, %v3282_v47, %v3285_v19 }
 0x1a5   : > { %2773 = vmatpush1.bf16.xpose.msra.mxu0 %v5721_v50  ;;  %v3080_v43 = vpop.permute.xlu1 %3079  ;;  %v3295_v1 = vrot.slane %v3293_v61, 1 }
 0x1a6   : > { %2774 = vmatprep.subr.bf16.mxu0 %v2725_v31  ;;  %v2688_v45 = vpop.permute.xlu0 %2687  ;;  %v3291_v28 = vrot.slane %v3289_v40, 1  ;;  %v3144_v25 = vsel %vm1071_vm1, %v5347_v5, %v3080_v43 }
 0x1a7   : > { %v3299_v56 = vshll.u32 %v3144_v25, 16  ;;  %v2734_v39 = vsel %vm1071_vm1, %v5332_v17, %v2688_v45  ;;  %v3297_v8 = vshrl.u32 %v3144_v25, 16 }
 0x1a8   : > { %3357 = vmatpush1.bf16.xpose.msra.mxu1 %v5723_v36  ;;  %v3292_v33 = vor.u32 %v3291_v28, %v3287_v4 }
 0x1a9   : > { %3358 = vmatprep.subr.bf16.mxu1 %v3266_v13  ;;  %v3301_v20 = vrot.slane %v3299_v56, 1 }
 0x1aa   : > { %v3082_v52 = vpop.permute.xlu0 %3081  ;;  %v3296_v46 = vsel %vm494_vm0, %v3292_v33, %v3295_v1 }
 0x1ab   : > { %v3302_v22 = vor.u32 %v3301_v20, %v3297_v8 }
 0x1ad   : > { %2775 = vmatpush1.bf16.xpose.msra.mxu0 %v5725_v0 }
 0x1ae   : > { %2776 = vmatprep.subr.bf16.mxu0 %v2728_v37 }
 0x1b0   : > { %3359 = vmatpush1.bf16.xpose.msra.mxu1 %v5726_v42 }
 0x1b1   : > { %3360 = vmatprep.subr.bf16.mxu1 %v3276_v54 }
 0x1b5   : > { %2777 = vmatpush1.bf16.xpose.msra.mxu0 %v5360_v44  ;;  %v3146_v44 = vsel %vm1071_vm1, %v5342_v53, %v3082_v52 }
 0x1b6   : > { %2778 = vmatprep.subr.bf16.mxu0 %v2731_v29  ;;  %v3303_v58 = vshll.u32 %v3146_v44, 16 }
 0x1b8   : > { %3361 = vmatpush1.bf16.xpose.msra.mxu1 %v5366_v34  ;;  %v2690_v34 = vpop.permute.xlu1 %2689  ;;  %v3305_v59 = vrot.slane %v3303_v58, 1 }
 0x1b9   : > { %3362 = vmatprep.subr.bf16.mxu1 %v3286_v23  ;;  %v2737_v17 = vsel %vm1071_vm1, %v5347_v5, %v2690_v34 }
 0x1ba   : > { %v3306_v53 = vsel %vm494_vm0, %v3302_v22, %v3305_v59 }
 0x1bd   : > { %2779 = vmatpush1.bf16.xpose.msra.mxu0 %v5394_v27  ;;  %v1172_v27 = vpop.permute.xlu0 %1171 }
 0x1be   : > { %2780 = vmatprep.subr.bf16.mxu0 %v2734_v39 }
 0x1c0   : > { %3363 = vmatpush1.bf16.xpose.msra.mxu1 %v5399_v12 }
 0x1c1   : > { %3364 = vmatprep.subr.bf16.mxu1 %v3296_v46 }
 0x1c5   : > { %2781 = vmatpush1.bf16.xpose.msra.mxu0 %v5422_v51 }
 0x1c6   : > { %2782 = vmatprep.subr.bf16.mxu0 %v2737_v17 }
 0x1c8   : > { %3365 = vmatpush1.bf16.xpose.msra.mxu1 %v5426_v62 }
 0x1c9   : > { %3366 = vmatprep.subr.bf16.mxu1 %v3306_v53 }
 0x1cd   : > { %2783 = vmatpush1.bf16.xpose.msra.mxu0 %v5442_v41 }
 0x1d0   : > { %3367 = vmatpush1.bf16.xpose.msra.mxu1 %v5446_v63 }
 0x1d4   : > { %2785 = vmatmul.mubr.bf16.vlgmr.msra.gmra.mrb[4].mxu0 %v5459_v7 }
 0x1d7   : > { %3369 = vmatmul.mubr.bf16.vlgmr.msra.gmra.mrb[4].mxu1 %v5468_v16 }
 0x227   : > { %v1219_v12 = vpop.f32.mrb[0].mxu0 }
 0x228   : > { %v2314_v31 = vpop.f32.mrb[0].mxu1  ;;  %v1221_v5 = vpop.f32.mrb[1].mxu0  ;;  %v1220_v48 = vadd.f32 %v1219_v12, %v1172_v27 }
 0x229   : > { %v2316_v51 = vpop.f32.mrb[1].mxu1  ;;  %v1223_v14 = vpop.f32.mrb[2].mxu0  ;;  %v1222_v50 = vadd.f32 %v1221_v5, %v1172_v27  ;;  %v2315_v2 = vadd.f32 %v2314_v31, %v1172_v27 }
 0x22a   : > { %v2318_v35 = vpop.f32.mrb[2].mxu1  ;;  %v3651_v62 = vmul.f32 -1.442695, %v1220_v48  ;;  %v2317_v13 = vadd.f32 %v2316_v51, %v1172_v27  ;;  %v1224_v24 = vpop.f32.mrb[3].mxu0 }
 0x22b   : > { %v3652_v41 = vmul.f32 -1.442695, %v1222_v50  ;;  %v3687_v9 = vmul.f32 -1.442695, %v2315_v2  ;;  %v2319_v63 = vpop.f32.mrb[3].mxu1 }
 0x22c   : > { %3907 = vpow2.f32 %v3651_v62  ;;  %v3688_v7 = vmul.f32 -1.442695, %v2317_v13 }
 0x22d   : > { %3909 = vpow2.f32 %v3652_v41 }
 0x22e   : > { %3911 = vpow2.f32 %v3687_v9 }
 0x22f   : > { %3913 = vpow2.f32 %v3688_v7 }
 0x236   : > { %v3908_v16 = vpop.eup %3907 }
 0x237   : > { %v3910_v11 = vpop.eup %3909  ;;  %v1232_v36 = vadd.f32 1.0, %v3908_v16 }
 0x238   : > { %v3912_v49 = vpop.eup %3911  ;;  %v1233_v21 = vadd.f32 1.0, %v3910_v11 }
 0x239   : > { %v3914_v57 = vpop.eup %3913  ;;  %3915 = vrcp.f32 %v1232_v36  ;;  %v2327_v38 = vadd.f32 1.0, %v3912_v49 }
 0x23a   : > { %3917 = vrcp.f32 %v1233_v21  ;;  %v2328_v60 = vadd.f32 1.0, %v3914_v57 }
 0x23b   : > { %3919 = vrcp.f32 %v2327_v38 }
 0x23c   : > { %3921 = vrcp.f32 %v2328_v60 }
 0x243   : > { %v3916_v37 = vpop.eup %3915 }
 0x244   : > { %v3918_v18 = vpop.eup %3917 }
 0x245   : > { %v3920_v32 = vpop.eup %3919  ;;  %v1240_v55 = vcombine.low %v3916_v37, %v3918_v18 }
 0x246   : > { %v3922_v0 = vpop.eup %3921 }
 0x247   : > { %1242 = vst [vmem:[%s5616_s5] sm:$0x77] %v1240_v55  ;;  %v2335_v26 = vcombine.low %v3920_v32, %v3922_v0 }
 0x249   : > { %3689 = vst [vmem:[%s5616_s5 + $0x8] sm:$0x77] %v2335_v26 }
 0x2a7   : > { %v2786_v3 = vpop.f32.mrb[4].mxu0 }
 0x2a8   : > { %v2787_v54 = vadd.f32 %v2786_v3, %v1172_v27  ;;  %v2788_v10 = vpop.f32.mrb[5].mxu0 }
 0x2a9   : > { %v2789_v6 = vadd.f32 %v2788_v10, %v1172_v27  ;;  %v2790_v42 = vpop.f32.mrb[6].mxu0 }
 0x2aa   : > { %v3724_v30 = vmul.f32 -1.442695, %v2787_v54  ;;  %v2791_v47 = vpop.f32.mrb[7].mxu0  ;;  %v3370_v19 = vpop.f32.mrb[4].mxu1 }
 0x2ab   : > { %v3725_v40 = vmul.f32 -1.442695, %v2789_v6  ;;  %v3371_v45 = vadd.f32 %v3370_v19, %v1172_v27  ;;  %v3372_v29 = vpop.f32.mrb[5].mxu1 }
 0x2ac   : > { %3923 = vpow2.f32 %v3724_v30  ;;  %v3373_v15 = vadd.f32 %v3372_v29, %v1172_v27  ;;  %v3374_v43 = vpop.f32.mrb[6].mxu1 }
 0x2ad   : > { %3925 = vpow2.f32 %v3725_v40  ;;  %v3745_v4 = vmul.f32 -1.442695, %v3371_v45  ;;  %v3375_v28 = vpop.f32.mrb[7].mxu1 }
 0x2ae   : > { %v3746_v23 = vmul.f32 -1.442695, %v3373_v15 }
 0x2af   : > { %3927 = vpow2.f32 %v3745_v4 }
 0x2b0   : > { %3929 = vpow2.f32 %v3746_v23 }
 0x2b6   : > { %v3924_v61 = vpop.eup %3923 }
 0x2b7   : > { %v3926_v25 = vpop.eup %3925  ;;  %v2799_v52 = vadd.f32 1.0, %v3924_v61 }
 0x2b8   : > { %v2800_v33 = vadd.f32 1.0, %v3926_v25 }
 0x2b9   : > { %v3928_v1 = vpop.eup %3927  ;;  %3931 = vrcp.f32 %v2799_v52 }
 0x2ba   : > { %v3930_v56 = vpop.eup %3929  ;;  %3933 = vrcp.f32 %v2800_v33  ;;  %v3383_v39 = vadd.f32 1.0, %v3928_v1 }
 0x2bb   : > { %v3384_v44 = vadd.f32 1.0, %v3930_v56 }
 0x2bc   : > { %3935 = vrcp.f32 %v3383_v39 }
 0x2bd   : > { %3937 = vrcp.f32 %v3384_v44 }
 0x2c3   : > { %v3932_v8 = vpop.eup %3931 }
 0x2c4   : > { %v3934_v20 = vpop.eup %3933 }
 0x2c5   : > { %v2807_v46 = vcombine.low %v3932_v8, %v3934_v20 }
 0x2c6   : > { %v3936_v58 = vpop.eup %3935 }
 0x2c7   : > { %v3938_v34 = vpop.eup %3937  ;;  %3726 = vst [vmem:[%s5616_s5 + $0x10] sm:$0x77] %v2807_v46 }
 0x2c8   : > { %v3391_v22 = vcombine.low %v3936_v58, %v3938_v34 }
 0x2ca   : > { %3747 = vst [vmem:[%s5616_s5 + $0x18] sm:$0x77] %v3391_v22 }
 0x2cb PF: > { %s13_s12 = sadd.s32 1, %s3987_s12  }
 0x2cc   : > { %p10_p4 = scmp.ge.s32.totalorder %s13_s12, 4  }
 0x2ce   :  { %12 = sbr.rel (!%p10_p4) target bundleno = 1 (0x1), region = 70 }

</bundles_post_ra>
